<compile_context>
chip_gen: v7x
topology: tpu7x:2x2x1
jax: 0.10.0
libtpu: 0.0.40
codegen_flags: <defaults>
</compile_context>

<pallas_src>
import math

import jax
import jax.numpy as jnp
from jax.experimental import pallas as pl
from jax.experimental.pallas import tpu as pltpu

# ---- rows of the stacked (NUM_B, C) bias / LayerNorm table ----
B_CQ = 0                        # composed q_proj -> cross-attn in-proj Q bias
B_CO = 1                        # cross-attn out_proj bias
B_NORM_G, B_NORM_B = 2, 3       # self.norm
B_SO = 4                        # self-attn out_proj bias
B_NORMS_G, B_NORMS_B = 5, 6     # self.norm_s
B_FFN = 7                       # linear1 bias
B_NORM1_G, B_NORM1_B = 8, 9     # self.norm1
NUM_B = 10

_NEG_INF = -1e30
_LN_EPS = 1e-5


def _layernorm(x, g_row, b_row):
    mu = jnp.mean(x, axis=-1, keepdims=True)
    cen = x - mu
    var = jnp.mean(cen * cen, axis=-1, keepdims=True)
    return cen * jax.lax.rsqrt(var + _LN_EPS) * g_row + b_row


def _mha_core(q3, k3, v3, hm, key_bias, scale):
    """Head-stacked multi-head attention core.

    q3: (Bb, N, C)   k3/v3: (Bb, Nk, C)   hm: (H*N, C) per-head lane masks
    key_bias: (Bb, 1, Nk) additive bias (0.0 valid / -1e30 padded) or None.
    Returns (Bb, N, C) == concat_h(softmax(q_h k_h^T / sqrt(hd)) v_h).
    """
    bb, n, c = q3.shape
    h = hm.shape[0] // n
    # Stack the H masked query copies along the sublane axis: row block h of qm
    # keeps only head-h channels, so one full-width matmul gives all head scores.
    qm = jnp.concatenate([q3] * h, axis=1) * hm[None, :, :]          # (Bb, H*N, C)
    s = jnp.einsum("bqc,bkc->bqk", qm, k3,
                   preferred_element_type=jnp.float32) * scale       # (Bb, H*N, Nk)
    if key_bias is not None:
        s = s + key_bias
    m = jnp.max(s, axis=-1, keepdims=True)
    e = jnp.exp(s - m)
    p = e * pl.reciprocal(jnp.sum(e, axis=-1, keepdims=True), approx=True)
    o = jnp.einsum("bqk,bkc->bqc", p, v3,
                   preferred_element_type=jnp.float32)               # (Bb, H*N, C)
    o = o * hm[None, :, :]              # keep head-h channels in row block h
    return o.reshape(bb, h, n, c).sum(axis=1)                        # (Bb, N, C)


def _slot_attention_kernel(txt_ref, kbias_ref, slot_ref,
                           w_cq_ref, w_ckv_ref, w_co_ref,
                           w_sqkv_ref, w_so_ref, w_ffn_ref,
                           b_tbl_ref, b_ckv_ref, b_sqkv_ref, hm_ref,
                           o_ref):
    """Processes a block of Bb batch elements per grid step."""
    bb, n, c = slot_ref.shape
    length = txt_ref.shape[1]
    hm = hm_ref[...]                                  # (H*N, C)
    h = hm.shape[0] // n
    scale = 1.0 / math.sqrt(c // h)
    bt = b_tbl_ref[...]                               # (NUM_B, C)

    def row(i):                                       # (1, C) bias / gamma / beta
        return bt[i:i + 1, :]

    def linear(x2, w_ref, bias):                      # x2 @ W[in, out] + bias
        return jnp.dot(x2, w_ref[...],
                       preferred_element_type=jnp.float32) + bias

    slots2 = slot_ref[...].reshape(bb * n, c)         # (Bb*N, C)
    txt2 = txt_ref[...].reshape(bb * length, c)       # (Bb*L, C)
    kbias = kbias_ref[...]                            # (Bb, 1, L)

    # TODO(synk): Dropout layers (dropout, dropout_s, dropout1, attention dropout)
    # are identity here -- this is the eval-mode forward.

    # ---- cross attention: slots attend over txt features ----
    # q_proj/k_proj/v_proj are composed with slot_att's in-proj (Linear∘Linear),
    # and the K|V paths are concatenated -> one (C,C) and one (C,2C) matmul.
    q3 = linear(slots2, w_cq_ref, row(B_CQ)).reshape(bb, n, c)
    kv2 = linear(txt2, w_ckv_ref, b_ckv_ref[...])     # (Bb*L, 2C)
    k3 = kv2[:, :c].reshape(bb, length, c)
    v3 = kv2[:, c:].reshape(bb, length, c)
    attn = _mha_core(q3, k3, v3, hm, kbias, scale)
    o2 = linear(attn.reshape(bb * n, c), w_co_ref, row(B_CO))
    slots2 = _layernorm(o2 + slots2, row(B_NORM_G), row(B_NORM_B))

    # ---- self attention over the slots (fused QKV in-proj) ----
    qkv2 = linear(slots2, w_sqkv_ref, b_sqkv_ref[...])        # (Bb*N, 3C)
    q3 = qkv2[:, :c].reshape(bb, n, c)
    k3 = qkv2[:, c:2 * c].reshape(bb, n, c)
    v3 = qkv2[:, 2 * c:].reshape(bb, n, c)
    attn = _mha_core(q3, k3, v3, hm, None, scale)
    o2 = linear(attn.reshape(bb * n, c), w_so_ref, row(B_SO))
    slots2 = _layernorm(o2 + slots2, row(B_NORMS_G), row(B_NORMS_B))

    # ---- position-wise FFN + residual ----
    ff2 = jnp.maximum(linear(slots2, w_ffn_ref, row(B_FFN)), 0.0)
    slots2 = _layernorm(slots2 + ff2, row(B_NORM1_G), row(B_NORM1_B))

    o_ref[...] = slots2.reshape(bb, n, c)


def _pack_params(params):
    """Pack PyTorch-layout weights into fused / composed [in, out] matrices."""
    f32 = lambda a: jnp.asarray(a, jnp.float32)
    hp = jax.lax.Precision.HIGHEST      # one-time composition kept at full f32

    sa, xa = params["slot_att"], params["self_att"]
    wq1, wk1, wv1 = jnp.split(f32(sa["in_proj_w"]), 3, axis=0)   # torch [out, in]
    bq1, bk1, bv1 = jnp.split(f32(sa["in_proj_b"]), 3, axis=0)

    wqp, bqp = f32(params["q_proj"]["w"]), f32(params["q_proj"]["b"])
    wkp, bkp = f32(params["k_proj"]["w"]), f32(params["k_proj"]["b"])
    wvp, bvp = f32(params["v_proj"]["w"]), f32(params["v_proj"]["b"])

    # Linear∘Linear composition (exact algebra):
    #   in_proj(x_proj(t)) = t @ (W_in @ W_proj)^T + (W_in @ b_proj + b_in)
    w_cq = jnp.dot(wq1, wqp, precision=hp).T                     # (C, C) [in, out]
    b_cq = jnp.dot(wq1, bqp, precision=hp) + bq1
    w_ck = jnp.dot(wk1, wkp, precision=hp).T
    b_ck = jnp.dot(wk1, bkp, precision=hp) + bk1
    w_cv = jnp.dot(wv1, wvp, precision=hp).T
    b_cv = jnp.dot(wv1, bvp, precision=hp) + bv1
    w_ckv = jnp.concatenate([w_ck, w_cv], axis=1)                # (C, 2C)
    b_ckv = jnp.concatenate([b_ck, b_cv])[None, :]               # (1, 2C)

    w_co = f32(sa["out_w"]).T                                    # (C, C)
    w_sqkv = f32(xa["in_proj_w"]).T                              # (C, 3C) = [Wq|Wk|Wv]^T
    b_sqkv = f32(xa["in_proj_b"])[None, :]                       # (1, 3C)
    w_so = f32(xa["out_w"]).T
    w_ffn = f32(params["linear1"]["w"]).T

    b_tbl = jnp.stack([
        b_cq,                                                    # B_CQ
        f32(sa["out_b"]),                                        # B_CO
        f32(params["norm"]["g"]), f32(params["norm"]["b"]),      # B_NORM_G/B
        f32(xa["out_b"]),                                        # B_SO
        f32(params["norm_s"]["g"]), f32(params["norm_s"]["b"]),  # B_NORMS_G/B
        f32(params["linear1"]["b"]),                             # B_FFN
        f32(params["norm1"]["g"]), f32(params["norm1"]["b"]),    # B_NORM1_G/B
    ])
    return w_cq, w_ckv, w_co, w_sqkv, w_so, w_ffn, b_tbl, b_ckv, b_sqkv


def slot_attention(txt_feat, txt_mask, phrase_slot, params, *, num_heads,
                   batch_block=4):
    """txt_feat [B,L,C] f32, txt_mask [B,L] bool (True = valid),
    phrase_slot [B,N,C] f32  ->  updated phrase_slot [B,N,C] f32."""
    B, L, C = txt_feat.shape
    N = phrase_slot.shape[1]
    assert C % num_heads == 0
    hd = C // num_heads

    # Pick a batch block that divides B (keeps >= 2 grid steps when possible).
    bb = 1
    for cand in (batch_block, 4, 2, 1):
        if cand is not None and 1 <= cand <= B and B % cand == 0:
            bb = cand
            break
    steps = B // bb

    (w_cq, w_ckv, w_co, w_sqkv, w_so, w_ffn,
     b_tbl, b_ckv, b_sqkv) = _pack_params(params)

    hm_big = ((jnp.arange(num_heads * N)[:, None] // N)
              == (jnp.arange(C)[None, :] // hd)).astype(jnp.float32)   # (H*N, C)
    key_bias = jnp.where(txt_mask, 0.0, _NEG_INF).astype(
        jnp.float32).reshape(B, 1, L)

    # Advisory cost estimate for the restructured kernel (head-stacked attention
    # issues H*N-row matmuls; projections fused/composed).
    mm_flops = 2 * B * C * C * (7 * N + 2 * L)
    att_flops = 4 * B * num_heads * N * C * (L + N)
    transcendentals = B * num_heads * N * (L + N)
    param_elems = sum(int(a.size) for a in
                      (w_cq, w_ckv, w_co, w_sqkv, w_so, w_ffn,
                       b_tbl, b_ckv, b_sqkv, hm_big))
    bytes_accessed = 4 * (B * L * C + 2 * B * N * C + B * L + param_elems)

    data_specs = [
        pl.BlockSpec((bb, L, C), lambda b: (b, 0, 0)),    # txt_feat
        pl.BlockSpec((bb, 1, L), lambda b: (b, 0, 0)),    # key padding bias
        pl.BlockSpec((bb, N, C), lambda b: (b, 0, 0)),    # phrase_slot
    ]
    param_shapes = [(C, C), (C, 2 * C), (C, C), (C, 3 * C), (C, C), (C, C),
                    (NUM_B, C), (1, 2 * C), (1, 3 * C), (num_heads * N, C)]

    def build(single_buffer):
        def const_spec(shape):
            idx = lambda b: (0,) * len(shape)
            if single_buffer:
                # Grid-invariant operand: one VMEM buffer instead of two.
                return pl.BlockSpec(shape, idx, pipeline_mode=pl.Buffered(1))
            return pl.BlockSpec(shape, idx)

        grid_spec = pltpu.PrefetchScalarGridSpec(
            num_scalar_prefetch=0,
            grid=(steps,),
            in_specs=data_specs + [const_spec(s) for s in param_shapes],
            out_specs=pl.BlockSpec((bb, N, C), lambda b: (b, 0, 0)),
        )
        return pl.pallas_call(
            _slot_attention_kernel,
            out_shape=jax.ShapeDtypeStruct((B, N, C), jnp.float32),
            grid_spec=grid_spec,
            compiler_params=pltpu.CompilerParams(
                dimension_semantics=("parallel",),
                vmem_limit_bytes=32 * 1024 * 1024),
            cost_estimate=pl.CostEstimate(flops=int(mm_flops + att_flops),
                                          transcendentals=int(transcendentals),
                                          bytes_accessed=int(bytes_accessed)),
        )

    args = (txt_feat.astype(jnp.float32), key_bias,
            phrase_slot.astype(jnp.float32),
            w_cq, w_ckv, w_co, w_sqkv, w_so, w_ffn,
            b_tbl, b_ckv, b_sqkv, hm_big)
    # TODO(synk): for large L / C on v7x (64 MiB VMEM), add inner K/V blocking
    # along L with online-softmax accumulation instead of one (L, C) txt block.
    try:
        return build(single_buffer=True)(*args)
    except Exception:
        # pl.Buffered(1) unsupported in this JAX build -> default double buffering.
        return build(single_buffer=False)(*args)


def slot_attention_ref(txt_feat, txt_mask, phrase_slot, params, *, num_heads):
    """Pure-JAX reference matching the PyTorch eval-mode forward."""
    B, L, C = txt_feat.shape
    hd = C // num_heads

    def linear(x, w, b):                      # torch layout: w [out, in]
        return x @ w.T + b

    def layernorm(x, g, b):
        mu = jnp.mean(x, axis=-1, keepdims=True)
        var = jnp.mean((x - mu) ** 2, axis=-1, keepdims=True)
        return (x - mu) / jnp.sqrt(var + _LN_EPS) * g + b

    def mha(q, k, v, mp, key_mask):
        wq, wk, wv = jnp.split(mp["in_proj_w"], 3, axis=0)
        bq, bk, bv = jnp.split(mp["in_proj_b"], 3, axis=0)
        q, k, v = linear(q, wq, bq), linear(k, wk, bk), linear(v, wv, bv)

        def heads(t):                         # [B,S,C] -> [B,H,S,hd]
            return t.reshape(t.shape[0], t.shape[1], num_heads,
                             hd).transpose(0, 2, 1, 3)

        qh, kh, vh = heads(q), heads(k), heads(v)
        s = jnp.einsum("bhnd,bhld->bhnl", qh, kh) / math.sqrt(hd)
        if key_mask is not None:
            s = s + jnp.where(key_mask, 0.0, _NEG_INF)[:, None, None, :]
        probs = jax.nn.softmax(s, axis=-1)
        o = jnp.einsum("bhnl,bhld->bhnd", probs, vh)
        o = o.transpose(0, 2, 1, 3).reshape(o.shape[0], -1, C)
        return linear(o, mp["out_w"], mp["out_b"])

    q0 = linear(phrase_slot, params["q_proj"]["w"], params["q_proj"]["b"])
    k0 = linear(txt_feat, params["k_proj"]["w"], params["k_proj"]["b"])
    v0 = linear(txt_feat, params["v_proj"]["w"], params["v_proj"]["b"])

    slots = phrase_slot
    slots = layernorm(mha(q0, k0, v0, params["slot_att"], txt_mask) + slots,
                      params["norm"]["g"], params["norm"]["b"])
    slots = layernorm(mha(slots, slots, slots, params["self_att"], None) + slots,
                      params["norm_s"]["g"], params["norm_s"]["b"])
    ff = jax.nn.relu(linear(slots, params["linear1"]["w"],
                            params["linear1"]["b"]))
    slots = layernorm(slots + ff, params["norm1"]["g"], params["norm1"]["b"])
    return slots


if __name__ == "__main__":
    key = jax.random.PRNGKey(0)
    keys = iter(jax.random.split(key, 32))

    # batch, text length, num_phrase (N), hdim (C), heads.
    # C=128 keeps stored output blocks lane-dense (last dim multiple of 128).
    B, L, N, C, H = 8, 16, 8, 128, 4

    def rnd(shape, scale=1.0):
        return scale * jax.random.normal(next(keys), shape, dtype=jnp.float32)

    ws = 1.0 / math.sqrt(C)
    params = {
        "q_proj": {"w": rnd((C, C), ws), "b": rnd((C,), 0.02)},
        "k_proj": {"w": rnd((C, C), ws), "b": rnd((C,), 0.02)},
        "v_proj": {"w": rnd((C, C), ws), "b": rnd((C,), 0.02)},
        "slot_att": {"in_proj_w": rnd((3 * C, C), ws),
                     "in_proj_b": rnd((3 * C,), 0.02),
                     "out_w": rnd((C, C), ws), "out_b": rnd((C,), 0.02)},
        "self_att": {"in_proj_w": rnd((3 * C, C), ws),
                     "in_proj_b": rnd((3 * C,), 0.02),
                     "out_w": rnd((C, C), ws), "out_b": rnd((C,), 0.02)},
        "norm":   {"g": 1.0 + rnd((C,), 0.05), "b": rnd((C,), 0.05)},
        "norm_s": {"g": 1.0 + rnd((C,), 0.05), "b": rnd((C,), 0.05)},
        "norm1":  {"g": 1.0 + rnd((C,), 0.05), "b": rnd((C,), 0.05)},
        "linear1": {"w": rnd((C, C), ws), "b": rnd((C,), 0.02)},
    }

    txt_feat = rnd((B, L, C))
    phrase_slot = rnd((B, N, C))
    lengths = jnp.array([L, L - 5, L, 7, 13, L, 9, 5])
    txt_mask = jnp.arange(L)[None, :] < lengths[:, None]     # True = valid

    out = slot_attention(txt_feat, txt_mask, phrase_slot, params, num_heads=H)
    out = jax.block_until_ready(out)

    ref = slot_attention_ref(txt_feat, txt_mask, phrase_slot, params,
                             num_heads=H)

    assert out.shape == (B, N, C)
    err = jnp.max(jnp.abs(out - ref))
    # Kernel matmuls run at default MXU precision (bf16 passes, f32 accumulate),
    # so tolerance covers bf16 rounding accumulated through the three sub-blocks.
    assert jnp.allclose(out, ref, atol=3e-2, rtol=3e-2), (
        f"mismatch vs reference (max abs err {err})")
    print("KERNEL_OK")
</pallas_src>

<mosaic_0001>
module attributes {stable_mosaic.version = 11 : i64} {
  func.func @_slot_attention_kernel(%arg0: i32, %arg1: memref<4x16x128xf32, #tpu.memory_space<vmem>>, %arg2: memref<4x1x16xf32, #tpu.memory_space<vmem>>, %arg3: memref<4x8x128xf32, #tpu.memory_space<vmem>>, %arg4: memref<128x128xf32, #tpu.memory_space<vmem>>, %arg5: memref<128x256xf32, #tpu.memory_space<vmem>>, %arg6: memref<128x128xf32, #tpu.memory_space<vmem>>, %arg7: memref<128x384xf32, #tpu.memory_space<vmem>>, %arg8: memref<128x128xf32, #tpu.memory_space<vmem>>, %arg9: memref<128x128xf32, #tpu.memory_space<vmem>>, %arg10: memref<10x128xf32, #tpu.memory_space<vmem>>, %arg11: memref<1x256xf32, #tpu.memory_space<vmem>>, %arg12: memref<1x384xf32, #tpu.memory_space<vmem>>, %arg13: memref<32x128xf32, #tpu.memory_space<vmem>>, %arg14: memref<4x8x128xf32, #tpu.memory_space<vmem>>) attributes {dimension_semantics = [#tpu.dimension_semantics<parallel>], iteration_bounds = array<i64: 2>, scalar_prefetch = 0 : i64, scratch_operands = 0 : i64, tpu.core_type = #tpu.core_type<tc>, window_params = [{transform_indices = @transform_0, window_bounds = array<i64: 4, 16, 128>}, {transform_indices = @transform_1, window_bounds = array<i64: 4, 1, 16>}, {transform_indices = @transform_2, window_bounds = array<i64: 4, 8, 128>}, {pipeline_mode = #tpu.pipeline_mode<synchronous>, transform_indices = @transform_3, window_bounds = array<i64: 128, 128>}, {pipeline_mode = #tpu.pipeline_mode<synchronous>, transform_indices = @transform_4, window_bounds = array<i64: 128, 256>}, {pipeline_mode = #tpu.pipeline_mode<synchronous>, transform_indices = @transform_5, window_bounds = array<i64: 128, 128>}, {pipeline_mode = #tpu.pipeline_mode<synchronous>, transform_indices = @transform_6, window_bounds = array<i64: 128, 384>}, {pipeline_mode = #tpu.pipeline_mode<synchronous>, transform_indices = @transform_7, window_bounds = array<i64: 128, 128>}, {pipeline_mode = #tpu.pipeline_mode<synchronous>, transform_indices = @transform_8, window_bounds = array<i64: 128, 128>}, {pipeline_mode = #tpu.pipeline_mode<synchronous>, transform_indices = @transform_9, window_bounds = array<i64: 10, 128>}, {pipeline_mode = #tpu.pipeline_mode<synchronous>, transform_indices = @transform_10, window_bounds = array<i64: 1, 256>}, {pipeline_mode = #tpu.pipeline_mode<synchronous>, transform_indices = @transform_11, window_bounds = array<i64: 1, 384>}, {pipeline_mode = #tpu.pipeline_mode<synchronous>, transform_indices = @transform_12, window_bounds = array<i64: 32, 128>}, {transform_indices = @transform_13, window_bounds = array<i64: 4, 8, 128>}]} {
    %c0 = arith.constant 0 : index
    %c0_0 = arith.constant 0 : index
    %0 = vector.load %arg13[%c0, %c0_0] : memref<32x128xf32, #tpu.memory_space<vmem>>, vector<32x128xf32>
    %c0_1 = arith.constant 0 : index
    %c0_2 = arith.constant 0 : index
    %1 = vector.load %arg10[%c0_1, %c0_2] : memref<10x128xf32, #tpu.memory_space<vmem>>, vector<10x128xf32>
    %c0_3 = arith.constant 0 : index
    %c0_4 = arith.constant 0 : index
    %c0_5 = arith.constant 0 : index
    %2 = vector.load %arg3[%c0_3, %c0_4, %c0_5] : memref<4x8x128xf32, #tpu.memory_space<vmem>>, vector<4x8x128xf32>
    %3 = vector.shape_cast %2 : vector<4x8x128xf32> to vector<32x128xf32>
    %c0_6 = arith.constant 0 : index
    %c0_7 = arith.constant 0 : index
    %c0_8 = arith.constant 0 : index
    %4 = vector.load %arg1[%c0_6, %c0_7, %c0_8] : memref<4x16x128xf32, #tpu.memory_space<vmem>>, vector<4x16x128xf32>
    %5 = vector.shape_cast %4 : vector<4x16x128xf32> to vector<64x128xf32>
    %c0_9 = arith.constant 0 : index
    %c0_10 = arith.constant 0 : index
    %c0_11 = arith.constant 0 : index
    %6 = vector.load %arg2[%c0_9, %c0_10, %c0_11] : memref<4x1x16xf32, #tpu.memory_space<vmem>>, vector<4x1x16xf32>
    %7 = vector.extract_strided_slice %1 {offsets = [0, 0], sizes = [1, 128], strides = [1, 1]} : vector<10x128xf32> to vector<1x128xf32>
    %c0_12 = arith.constant 0 : index
    %c0_13 = arith.constant 0 : index
    %8 = vector.load %arg4[%c0_12, %c0_13] : memref<128x128xf32, #tpu.memory_space<vmem>>, vector<128x128xf32>
    %cst = arith.constant dense<0.000000e+00> : vector<32x128xf32>
    %9 = tpu.matmul %3, %8, %cst {dimension_numbers = #tpu.dot_dimension_numbers<[1], [0], [0], [1], [0, 0, 1, 1], [], []>} : vector<32x128xf32>, vector<128x128xf32>, vector<32x128xf32> -> vector<32x128xf32>
    %10 = vector.broadcast %7 : vector<1x128xf32> to vector<32x128xf32>
    %11 = arith.addf %9, %10 : vector<32x128xf32>
    %12 = vector.shape_cast %11 : vector<32x128xf32> to vector<4x8x128xf32>
    %c0_14 = arith.constant 0 : index
    %c0_15 = arith.constant 0 : index
    %13 = vector.load %arg11[%c0_14, %c0_15] : memref<1x256xf32, #tpu.memory_space<vmem>>, vector<1x256xf32>
    %c0_16 = arith.constant 0 : index
    %c0_17 = arith.constant 0 : index
    %14 = vector.load %arg5[%c0_16, %c0_17] : memref<128x256xf32, #tpu.memory_space<vmem>>, vector<128x256xf32>
    %cst_18 = arith.constant dense<0.000000e+00> : vector<64x256xf32>
    %15 = tpu.matmul %5, %14, %cst_18 {dimension_numbers = #tpu.dot_dimension_numbers<[1], [0], [0], [1], [0, 0, 1, 1], [], []>} : vector<64x128xf32>, vector<128x256xf32>, vector<64x256xf32> -> vector<64x256xf32>
    %16 = vector.broadcast %13 : vector<1x256xf32> to vector<64x256xf32>
    %17 = arith.addf %15, %16 : vector<64x256xf32>
    %18 = vector.extract_strided_slice %17 {offsets = [0, 0], sizes = [64, 128], strides = [1, 1]} : vector<64x256xf32> to vector<64x128xf32>
    %19 = vector.shape_cast %18 : vector<64x128xf32> to vector<4x16x128xf32>
    %20 = vector.extract_strided_slice %17 {offsets = [0, 128], sizes = [64, 128], strides = [1, 1]} : vector<64x256xf32> to vector<64x128xf32>
    %21 = vector.shape_cast %20 : vector<64x128xf32> to vector<4x16x128xf32>
    %22 = tpu.concatenate %12, %12, %12, %12 in 1 : vector<4x8x128xf32>, vector<4x8x128xf32>, vector<4x8x128xf32>, vector<4x8x128xf32> -> vector<4x32x128xf32>
    %23 = vector.shape_cast %0 : vector<32x128xf32> to vector<1x32x128xf32>
    %24 = vector.broadcast %23 : vector<1x32x128xf32> to vector<4x32x128xf32>
    %25 = arith.mulf %22, %24 : vector<4x32x128xf32>
    "tpu.trace_start"() <{level = 10 : i32, message = "bqc,bkc->bqk"}> : () -> ()
    %cst_19 = arith.constant dense<0.000000e+00> : vector<4x32x16xf32>
    %26 = tpu.matmul %25, %19, %cst_19 {dimension_numbers = #tpu.dot_dimension_numbers<[2], [2], [1], [1], [0, 0, 0, 1, 1, 1], [0], [0]>} : vector<4x32x128xf32>, vector<4x16x128xf32>, vector<4x32x16xf32> -> vector<4x32x16xf32>
    "tpu.trace_stop"() : () -> ()
    %cst_20 = arith.constant 0.176776692 : f32
    %27 = vector.broadcast %cst_20 : f32 to vector<4x32x16xf32>
    %28 = arith.mulf %26, %27 : vector<4x32x16xf32>
    %29 = vector.broadcast %6 : vector<4x1x16xf32> to vector<4x32x16xf32>
    %30 = arith.addf %28, %29 : vector<4x32x16xf32>
    %cst_21 = arith.constant dense<0xFF800000> : vector<4x32xf32>
    %31 = vector.multi_reduction <maximumf>, %30, %cst_21 [2] : vector<4x32x16xf32> to vector<4x32xf32>
    %32 = vector.shape_cast %31 : vector<4x32xf32> to vector<4x32x1xf32>
    %33 = vector.broadcast %32 : vector<4x32x1xf32> to vector<4x32x16xf32>
    %34 = arith.subf %30, %33 : vector<4x32x16xf32>
    %35 = math.exp %34 : vector<4x32x16xf32>
    %cst_22 = arith.constant dense<0.000000e+00> : vector<4x32xf32>
    %36 = vector.multi_reduction <add>, %35, %cst_22 [2] : vector<4x32x16xf32> to vector<4x32xf32>
    %37 = vector.shape_cast %36 : vector<4x32xf32> to vector<4x32x1xf32>
    %38 = tpu.reciprocal %37 {approx = true} : vector<4x32x1xf32> -> vector<4x32x1xf32>
    %39 = vector.broadcast %38 : vector<4x32x1xf32> to vector<4x32x16xf32>
    %40 = arith.mulf %35, %39 : vector<4x32x16xf32>
    "tpu.trace_start"() <{level = 10 : i32, message = "bqk,bkc->bqc"}> : () -> ()
    %cst_23 = arith.constant dense<0.000000e+00> : vector<4x32x128xf32>
    %41 = tpu.matmul %40, %21, %cst_23 {dimension_numbers = #tpu.dot_dimension_numbers<[2], [1], [1], [2], [0, 0, 0, 1, 1, 2], [0], [0]>} : vector<4x32x16xf32>, vector<4x16x128xf32>, vector<4x32x128xf32> -> vector<4x32x128xf32>
    "tpu.trace_stop"() : () -> ()
    %42 = vector.shape_cast %0 : vector<32x128xf32> to vector<1x32x128xf32>
    %43 = vector.broadcast %42 : vector<1x32x128xf32> to vector<4x32x128xf32>
    %44 = arith.mulf %41, %43 : vector<4x32x128xf32>
    %45 = vector.shape_cast %44 : vector<4x32x128xf32> to vector<4x4x8x128xf32>
    %cst_24 = arith.constant dense<0.000000e+00> : vector<4x8x128xf32>
    %46 = vector.multi_reduction <add>, %45, %cst_24 [1] : vector<4x4x8x128xf32> to vector<4x8x128xf32>
    %47 = vector.shape_cast %46 : vector<4x8x128xf32> to vector<32x128xf32>
    %48 = vector.extract_strided_slice %1 {offsets = [1, 0], sizes = [1, 128], strides = [1, 1]} : vector<10x128xf32> to vector<1x128xf32>
    %c0_25 = arith.constant 0 : index
    %c0_26 = arith.constant 0 : index
    %49 = vector.load %arg6[%c0_25, %c0_26] : memref<128x128xf32, #tpu.memory_space<vmem>>, vector<128x128xf32>
    %cst_27 = arith.constant dense<0.000000e+00> : vector<32x128xf32>
    %50 = tpu.matmul %47, %49, %cst_27 {dimension_numbers = #tpu.dot_dimension_numbers<[1], [0], [0], [1], [0, 0, 1, 1], [], []>} : vector<32x128xf32>, vector<128x128xf32>, vector<32x128xf32> -> vector<32x128xf32>
    %51 = vector.broadcast %48 : vector<1x128xf32> to vector<32x128xf32>
    %52 = arith.addf %50, %51 : vector<32x128xf32>
    %53 = arith.addf %52, %3 : vector<32x128xf32>
    %54 = vector.extract_strided_slice %1 {offsets = [2, 0], sizes = [1, 128], strides = [1, 1]} : vector<10x128xf32> to vector<1x128xf32>
    %55 = vector.extract_strided_slice %1 {offsets = [3, 0], sizes = [1, 128], strides = [1, 1]} : vector<10x128xf32> to vector<1x128xf32>
    %cst_28 = arith.constant dense<0.000000e+00> : vector<32xf32>
    %56 = vector.multi_reduction <add>, %53, %cst_28 [1] : vector<32x128xf32> to vector<32xf32>
    %57 = vector.shape_cast %56 : vector<32xf32> to vector<32x1xf32>
    %cst_29 = arith.constant 1.280000e+02 : f32
    %58 = vector.broadcast %cst_29 : f32 to vector<32x1xf32>
    %59 = arith.divf %57, %58 : vector<32x1xf32>
    %60 = vector.broadcast %59 : vector<32x1xf32> to vector<32x128xf32>
    %61 = arith.subf %53, %60 : vector<32x128xf32>
    %62 = arith.mulf %61, %61 : vector<32x128xf32>
    %cst_30 = arith.constant dense<0.000000e+00> : vector<32xf32>
    %63 = vector.multi_reduction <add>, %62, %cst_30 [1] : vector<32x128xf32> to vector<32xf32>
    %64 = vector.shape_cast %63 : vector<32xf32> to vector<32x1xf32>
    %cst_31 = arith.constant 1.280000e+02 : f32
    %65 = vector.broadcast %cst_31 : f32 to vector<32x1xf32>
    %66 = arith.divf %64, %65 : vector<32x1xf32>
    %cst_32 = arith.constant 9.99999974E-6 : f32
    %67 = vector.broadcast %cst_32 : f32 to vector<32x1xf32>
    %68 = arith.addf %66, %67 : vector<32x1xf32>
    %69 = math.rsqrt %68 : vector<32x1xf32>
    %70 = vector.broadcast %69 : vector<32x1xf32> to vector<32x128xf32>
    %71 = arith.mulf %61, %70 : vector<32x128xf32>
    %72 = vector.broadcast %54 : vector<1x128xf32> to vector<32x128xf32>
    %73 = arith.mulf %71, %72 : vector<32x128xf32>
    %74 = vector.broadcast %55 : vector<1x128xf32> to vector<32x128xf32>
    %75 = arith.addf %73, %74 : vector<32x128xf32>
    %c0_33 = arith.constant 0 : index
    %c0_34 = arith.constant 0 : index
    %76 = vector.load %arg12[%c0_33, %c0_34] : memref<1x384xf32, #tpu.memory_space<vmem>>, vector<1x384xf32>
    %c0_35 = arith.constant 0 : index
    %c0_36 = arith.constant 0 : index
    %77 = vector.load %arg7[%c0_35, %c0_36] : memref<128x384xf32, #tpu.memory_space<vmem>>, vector<128x384xf32>
    %cst_37 = arith.constant dense<0.000000e+00> : vector<32x384xf32>
    %78 = tpu.matmul %75, %77, %cst_37 {dimension_numbers = #tpu.dot_dimension_numbers<[1], [0], [0], [1], [0, 0, 1, 1], [], []>} : vector<32x128xf32>, vector<128x384xf32>, vector<32x384xf32> -> vector<32x384xf32>
    %79 = vector.broadcast %76 : vector<1x384xf32> to vector<32x384xf32>
    %80 = arith.addf %78, %79 : vector<32x384xf32>
    %81 = vector.extract_strided_slice %80 {offsets = [0, 0], sizes = [32, 128], strides = [1, 1]} : vector<32x384xf32> to vector<32x128xf32>
    %82 = vector.shape_cast %81 : vector<32x128xf32> to vector<4x8x128xf32>
    %83 = vector.extract_strided_slice %80 {offsets = [0, 128], sizes = [32, 128], strides = [1, 1]} : vector<32x384xf32> to vector<32x128xf32>
    %84 = vector.shape_cast %83 : vector<32x128xf32> to vector<4x8x128xf32>
    %85 = vector.extract_strided_slice %80 {offsets = [0, 256], sizes = [32, 128], strides = [1, 1]} : vector<32x384xf32> to vector<32x128xf32>
    %86 = vector.shape_cast %85 : vector<32x128xf32> to vector<4x8x128xf32>
    %87 = tpu.concatenate %82, %82, %82, %82 in 1 : vector<4x8x128xf32>, vector<4x8x128xf32>, vector<4x8x128xf32>, vector<4x8x128xf32> -> vector<4x32x128xf32>
    %88 = vector.shape_cast %0 : vector<32x128xf32> to vector<1x32x128xf32>
    %89 = vector.broadcast %88 : vector<1x32x128xf32> to vector<4x32x128xf32>
    %90 = arith.mulf %87, %89 : vector<4x32x128xf32>
    "tpu.trace_start"() <{level = 10 : i32, message = "bqc,bkc->bqk"}> : () -> ()
    %cst_38 = arith.constant dense<0.000000e+00> : vector<4x32x8xf32>
    %91 = tpu.matmul %90, %84, %cst_38 {dimension_numbers = #tpu.dot_dimension_numbers<[2], [2], [1], [1], [0, 0, 0, 1, 1, 1], [0], [0]>} : vector<4x32x128xf32>, vector<4x8x128xf32>, vector<4x32x8xf32> -> vector<4x32x8xf32>
    "tpu.trace_stop"() : () -> ()
    %cst_39 = arith.constant 0.176776692 : f32
    %92 = vector.broadcast %cst_39 : f32 to vector<4x32x8xf32>
    %93 = arith.mulf %91, %92 : vector<4x32x8xf32>
    %cst_40 = arith.constant dense<0xFF800000> : vector<4x32xf32>
    %94 = vector.multi_reduction <maximumf>, %93, %cst_40 [2] : vector<4x32x8xf32> to vector<4x32xf32>
    %95 = vector.shape_cast %94 : vector<4x32xf32> to vector<4x32x1xf32>
    %96 = vector.broadcast %95 : vector<4x32x1xf32> to vector<4x32x8xf32>
    %97 = arith.subf %93, %96 : vector<4x32x8xf32>
    %98 = math.exp %97 : vector<4x32x8xf32>
    %cst_41 = arith.constant dense<0.000000e+00> : vector<4x32xf32>
    %99 = vector.multi_reduction <add>, %98, %cst_41 [2] : vector<4x32x8xf32> to vector<4x32xf32>
    %100 = vector.shape_cast %99 : vector<4x32xf32> to vector<4x32x1xf32>
    %101 = tpu.reciprocal %100 {approx = true} : vector<4x32x1xf32> -> vector<4x32x1xf32>
    %102 = vector.broadcast %101 : vector<4x32x1xf32> to vector<4x32x8xf32>
    %103 = arith.mulf %98, %102 : vector<4x32x8xf32>
    "tpu.trace_start"() <{level = 10 : i32, message = "bqk,bkc->bqc"}> : () -> ()
    %cst_42 = arith.constant dense<0.000000e+00> : vector<4x32x128xf32>
    %104 = tpu.matmul %103, %86, %cst_42 {dimension_numbers = #tpu.dot_dimension_numbers<[2], [1], [1], [2], [0, 0, 0, 1, 1, 2], [0], [0]>} : vector<4x32x8xf32>, vector<4x8x128xf32>, vector<4x32x128xf32> -> vector<4x32x128xf32>
    "tpu.trace_stop"() : () -> ()
    %105 = vector.shape_cast %0 : vector<32x128xf32> to vector<1x32x128xf32>
    %106 = vector.broadcast %105 : vector<1x32x128xf32> to vector<4x32x128xf32>
    %107 = arith.mulf %104, %106 : vector<4x32x128xf32>
    %108 = vector.shape_cast %107 : vector<4x32x128xf32> to vector<4x4x8x128xf32>
    %cst_43 = arith.constant dense<0.000000e+00> : vector<4x8x128xf32>
    %109 = vector.multi_reduction <add>, %108, %cst_43 [1] : vector<4x4x8x128xf32> to vector<4x8x128xf32>
    %110 = vector.shape_cast %109 : vector<4x8x128xf32> to vector<32x128xf32>
    %111 = vector.extract_strided_slice %1 {offsets = [4, 0], sizes = [1, 128], strides = [1, 1]} : vector<10x128xf32> to vector<1x128xf32>
    %c0_44 = arith.constant 0 : index
    %c0_45 = arith.constant 0 : index
    %112 = vector.load %arg8[%c0_44, %c0_45] : memref<128x128xf32, #tpu.memory_space<vmem>>, vector<128x128xf32>
    %cst_46 = arith.constant dense<0.000000e+00> : vector<32x128xf32>
    %113 = tpu.matmul %110, %112, %cst_46 {dimension_numbers = #tpu.dot_dimension_numbers<[1], [0], [0], [1], [0, 0, 1, 1], [], []>} : vector<32x128xf32>, vector<128x128xf32>, vector<32x128xf32> -> vector<32x128xf32>
    %114 = vector.broadcast %111 : vector<1x128xf32> to vector<32x128xf32>
    %115 = arith.addf %113, %114 : vector<32x128xf32>
    %116 = arith.addf %115, %75 : vector<32x128xf32>
    %117 = vector.extract_strided_slice %1 {offsets = [5, 0], sizes = [1, 128], strides = [1, 1]} : vector<10x128xf32> to vector<1x128xf32>
    %118 = vector.extract_strided_slice %1 {offsets = [6, 0], sizes = [1, 128], strides = [1, 1]} : vector<10x128xf32> to vector<1x128xf32>
    %cst_47 = arith.constant dense<0.000000e+00> : vector<32xf32>
    %119 = vector.multi_reduction <add>, %116, %cst_47 [1] : vector<32x128xf32> to vector<32xf32>
    %120 = vector.shape_cast %119 : vector<32xf32> to vector<32x1xf32>
    %cst_48 = arith.constant 1.280000e+02 : f32
    %121 = vector.broadcast %cst_48 : f32 to vector<32x1xf32>
    %122 = arith.divf %120, %121 : vector<32x1xf32>
    %123 = vector.broadcast %122 : vector<32x1xf32> to vector<32x128xf32>
    %124 = arith.subf %116, %123 : vector<32x128xf32>
    %125 = arith.mulf %124, %124 : vector<32x128xf32>
    %cst_49 = arith.constant dense<0.000000e+00> : vector<32xf32>
    %126 = vector.multi_reduction <add>, %125, %cst_49 [1] : vector<32x128xf32> to vector<32xf32>
    %127 = vector.shape_cast %126 : vector<32xf32> to vector<32x1xf32>
    %cst_50 = arith.constant 1.280000e+02 : f32
    %128 = vector.broadcast %cst_50 : f32 to vector<32x1xf32>
    %129 = arith.divf %127, %128 : vector<32x1xf32>
    %cst_51 = arith.constant 9.99999974E-6 : f32
    %130 = vector.broadcast %cst_51 : f32 to vector<32x1xf32>
    %131 = arith.addf %129, %130 : vector<32x1xf32>
    %132 = math.rsqrt %131 : vector<32x1xf32>
    %133 = vector.broadcast %132 : vector<32x1xf32> to vector<32x128xf32>
    %134 = arith.mulf %124, %133 : vector<32x128xf32>
    %135 = vector.broadcast %117 : vector<1x128xf32> to vector<32x128xf32>
    %136 = arith.mulf %134, %135 : vector<32x128xf32>
    %137 = vector.broadcast %118 : vector<1x128xf32> to vector<32x128xf32>
    %138 = arith.addf %136, %137 : vector<32x128xf32>
    %139 = vector.extract_strided_slice %1 {offsets = [7, 0], sizes = [1, 128], strides = [1, 1]} : vector<10x128xf32> to vector<1x128xf32>
    %c0_52 = arith.constant 0 : index
    %c0_53 = arith.constant 0 : index
    %140 = vector.load %arg9[%c0_52, %c0_53] : memref<128x128xf32, #tpu.memory_space<vmem>>, vector<128x128xf32>
    %cst_54 = arith.constant dense<0.000000e+00> : vector<32x128xf32>
    %141 = tpu.matmul %138, %140, %cst_54 {dimension_numbers = #tpu.dot_dimension_numbers<[1], [0], [0], [1], [0, 0, 1, 1], [], []>} : vector<32x128xf32>, vector<128x128xf32>, vector<32x128xf32> -> vector<32x128xf32>
    %142 = vector.broadcast %139 : vector<1x128xf32> to vector<32x128xf32>
    %143 = arith.addf %141, %142 : vector<32x128xf32>
    %cst_55 = arith.constant 0.000000e+00 : f32
    %144 = vector.broadcast %cst_55 : f32 to vector<32x128xf32>
    %145 = arith.maximumf %143, %144 : vector<32x128xf32>
    %146 = arith.addf %138, %145 : vector<32x128xf32>
    %147 = vector.extract_strided_slice %1 {offsets = [8, 0], sizes = [1, 128], strides = [1, 1]} : vector<10x128xf32> to vector<1x128xf32>
    %148 = vector.extract_strided_slice %1 {offsets = [9, 0], sizes = [1, 128], strides = [1, 1]} : vector<10x128xf32> to vector<1x128xf32>
    %cst_56 = arith.constant dense<0.000000e+00> : vector<32xf32>
    %149 = vector.multi_reduction <add>, %146, %cst_56 [1] : vector<32x128xf32> to vector<32xf32>
    %150 = vector.shape_cast %149 : vector<32xf32> to vector<32x1xf32>
    %cst_57 = arith.constant 1.280000e+02 : f32
    %151 = vector.broadcast %cst_57 : f32 to vector<32x1xf32>
    %152 = arith.divf %150, %151 : vector<32x1xf32>
    %153 = vector.broadcast %152 : vector<32x1xf32> to vector<32x128xf32>
    %154 = arith.subf %146, %153 : vector<32x128xf32>
    %155 = arith.mulf %154, %154 : vector<32x128xf32>
    %cst_58 = arith.constant dense<0.000000e+00> : vector<32xf32>
    %156 = vector.multi_reduction <add>, %155, %cst_58 [1] : vector<32x128xf32> to vector<32xf32>
    %157 = vector.shape_cast %156 : vector<32xf32> to vector<32x1xf32>
    %cst_59 = arith.constant 1.280000e+02 : f32
    %158 = vector.broadcast %cst_59 : f32 to vector<32x1xf32>
    %159 = arith.divf %157, %158 : vector<32x1xf32>
    %cst_60 = arith.constant 9.99999974E-6 : f32
    %160 = vector.broadcast %cst_60 : f32 to vector<32x1xf32>
    %161 = arith.addf %159, %160 : vector<32x1xf32>
    %162 = math.rsqrt %161 : vector<32x1xf32>
    %163 = vector.broadcast %162 : vector<32x1xf32> to vector<32x128xf32>
    %164 = arith.mulf %154, %163 : vector<32x128xf32>
    %165 = vector.broadcast %147 : vector<1x128xf32> to vector<32x128xf32>
    %166 = arith.mulf %164, %165 : vector<32x128xf32>
    %167 = vector.broadcast %148 : vector<1x128xf32> to vector<32x128xf32>
    %168 = arith.addf %166, %167 : vector<32x128xf32>
    %169 = vector.shape_cast %168 : vector<32x128xf32> to vector<4x8x128xf32>
    %c0_61 = arith.constant 0 : index
    %c0_62 = arith.constant 0 : index
    %c0_63 = arith.constant 0 : index
    %170 = vector.load %arg14[%c0_61, %c0_62, %c0_63] : memref<4x8x128xf32, #tpu.memory_space<vmem>>, vector<4x8x128xf32>
    tpu.vector_store %arg14[%c0_61, %c0_62, %c0_63], %169 {strides = array<i32>} : memref<4x8x128xf32, #tpu.memory_space<vmem>>, vector<4x8x128xf32>,
    return
  }
  func.func @transform_0(%arg0: i32) -> (i32, i32, i32) {
    %c0_i32 = arith.constant 0 : i32
    %c0_i32_0 = arith.constant 0 : i32
    %c0_i32_1 = arith.constant 0 : i32
    return %arg0, %c0_i32, %c0_i32_0 : i32, i32, i32
  }
  func.func @transform_1(%arg0: i32) -> (i32, i32, i32) {
    %c0_i32 = arith.constant 0 : i32
    %c0_i32_0 = arith.constant 0 : i32
    %c0_i32_1 = arith.constant 0 : i32
    return %arg0, %c0_i32, %c0_i32_0 : i32, i32, i32
  }
  func.func @transform_2(%arg0: i32) -> (i32, i32, i32) {
    %c0_i32 = arith.constant 0 : i32
    %c0_i32_0 = arith.constant 0 : i32
    %c0_i32_1 = arith.constant 0 : i32
    return %arg0, %c0_i32, %c0_i32_0 : i32, i32, i32
  }
  func.func @transform_3(%arg0: i32) -> (i32, i32) {
    %c0_i32 = arith.constant 0 : i32
    %c0_i32_0 = arith.constant 0 : i32
    %c0_i32_1 = arith.constant 0 : i32
    return %c0_i32, %c0_i32_0 : i32, i32
  }
  func.func @transform_4(%arg0: i32) -> (i32, i32) {
    %c0_i32 = arith.constant 0 : i32
    %c0_i32_0 = arith.constant 0 : i32
    %c0_i32_1 = arith.constant 0 : i32
    return %c0_i32, %c0_i32_0 : i32, i32
  }
  func.func @transform_5(%arg0: i32) -> (i32, i32) {
    %c0_i32 = arith.constant 0 : i32
    %c0_i32_0 = arith.constant 0 : i32
    %c0_i32_1 = arith.constant 0 : i32
    return %c0_i32, %c0_i32_0 : i32, i32
  }
  func.func @transform_6(%arg0: i32) -> (i32, i32) {
    %c0_i32 = arith.constant 0 : i32
    %c0_i32_0 = arith.constant 0 : i32
    %c0_i32_1 = arith.constant 0 : i32
    return %c0_i32, %c0_i32_0 : i32, i32
  }
  func.func @transform_7(%arg0: i32) -> (i32, i32) {
    %c0_i32 = arith.constant 0 : i32
    %c0_i32_0 = arith.constant 0 : i32
    %c0_i32_1 = arith.constant 0 : i32
    return %c0_i32, %c0_i32_0 : i32, i32
  }
  func.func @transform_8(%arg0: i32) -> (i32, i32) {
    %c0_i32 = arith.constant 0 : i32
    %c0_i32_0 = arith.constant 0 : i32
    %c0_i32_1 = arith.constant 0 : i32
    return %c0_i32, %c0_i32_0 : i32, i32
  }
  func.func @transform_9(%arg0: i32) -> (i32, i32) {
    %c0_i32 = arith.constant 0 : i32
    %c0_i32_0 = arith.constant 0 : i32
    %c0_i32_1 = arith.constant 0 : i32
    return %c0_i32, %c0_i32_0 : i32, i32
  }
  func.func @transform_10(%arg0: i32) -> (i32, i32) {
    %c0_i32 = arith.constant 0 : i32
    %c0_i32_0 = arith.constant 0 : i32
    %c0_i32_1 = arith.constant 0 : i32
    return %c0_i32, %c0_i32_0 : i32, i32
  }
  func.func @transform_11(%arg0: i32) -> (i32, i32) {
    %c0_i32 = arith.constant 0 : i32
    %c0_i32_0 = arith.constant 0 : i32
    %c0_i32_1 = arith.constant 0 : i32
    return %c0_i32, %c0_i32_0 : i32, i32
  }
  func.func @transform_12(%arg0: i32) -> (i32, i32) {
    %c0_i32 = arith.constant 0 : i32
    %c0_i32_0 = arith.constant 0 : i32
    %c0_i32_1 = arith.constant 0 : i32
    return %c0_i32, %c0_i32_0 : i32, i32
  }
  func.func @transform_13(%arg0: i32) -> (i32, i32, i32) {
    %c0_i32 = arith.constant 0 : i32
    %c0_i32_0 = arith.constant 0 : i32
    %c0_i32_1 = arith.constant 0 : i32
    return %arg0, %c0_i32, %c0_i32_0 : i32, i32, i32
  }
}

module attributes {stable_mosaic.version = 11 : i64} {
  func.func @_slot_attention_kernel(%arg0: i32, %arg1: memref<4x16x128xf32, #tpu.memory_space<vmem>>, %arg2: memref<4x1x16xf32, #tpu.memory_space<vmem>>, %arg3: memref<4x8x128xf32, #tpu.memory_space<vmem>>, %arg4: memref<128x128xf32, #tpu.memory_space<vmem>>, %arg5: memref<128x256xf32, #tpu.memory_space<vmem>>, %arg6: memref<128x128xf32, #tpu.memory_space<vmem>>, %arg7: memref<128x384xf32, #tpu.memory_space<vmem>>, %arg8: memref<128x128xf32, #tpu.memory_space<vmem>>, %arg9: memref<128x128xf32, #tpu.memory_space<vmem>>, %arg10: memref<10x128xf32, #tpu.memory_space<vmem>>, %arg11: memref<1x256xf32, #tpu.memory_space<vmem>>, %arg12: memref<1x384xf32, #tpu.memory_space<vmem>>, %arg13: memref<32x128xf32, #tpu.memory_space<vmem>>, %arg14: memref<4x8x128xf32, #tpu.memory_space<vmem>>) attributes {dimension_semantics = [#tpu.dimension_semantics<parallel>], iteration_bounds = array<i64: 2>, scalar_prefetch = 0 : i64, scratch_operands = 0 : i64, tpu.core_type = #tpu.core_type<tc>, window_params = [{transform_indices = @transform_0, window_bounds = array<i64: 4, 16, 128>}, {transform_indices = @transform_1, window_bounds = array<i64: 4, 1, 16>}, {transform_indices = @transform_2, window_bounds = array<i64: 4, 8, 128>}, {pipeline_mode = #tpu.pipeline_mode<synchronous>, transform_indices = @transform_3, window_bounds = array<i64: 128, 128>}, {pipeline_mode = #tpu.pipeline_mode<synchronous>, transform_indices = @transform_4, window_bounds = array<i64: 128, 256>}, {pipeline_mode = #tpu.pipeline_mode<synchronous>, transform_indices = @transform_5, window_bounds = array<i64: 128, 128>}, {pipeline_mode = #tpu.pipeline_mode<synchronous>, transform_indices = @transform_6, window_bounds = array<i64: 128, 384>}, {pipeline_mode = #tpu.pipeline_mode<synchronous>, transform_indices = @transform_7, window_bounds = array<i64: 128, 128>}, {pipeline_mode = #tpu.pipeline_mode<synchronous>, transform_indices = @transform_8, window_bounds = array<i64: 128, 128>}, {pipeline_mode = #tpu.pipeline_mode<synchronous>, transform_indices = @transform_9, window_bounds = array<i64: 10, 128>}, {pipeline_mode = #tpu.pipeline_mode<synchronous>, transform_indices = @transform_10, window_bounds = array<i64: 1, 256>}, {pipeline_mode = #tpu.pipeline_mode<synchronous>, transform_indices = @transform_11, window_bounds = array<i64: 1, 384>}, {pipeline_mode = #tpu.pipeline_mode<synchronous>, transform_indices = @transform_12, window_bounds = array<i64: 32, 128>}, {transform_indices = @transform_13, window_bounds = array<i64: 4, 8, 128>}]} {
    %c0 = arith.constant 0 : index
    %c0_0 = arith.constant 0 : index
    %0 = vector.load %arg13[%c0, %c0_0] : memref<32x128xf32, #tpu.memory_space<vmem>>, vector<32x128xf32>
    %c0_1 = arith.constant 0 : index
    %c0_2 = arith.constant 0 : index
    %1 = vector.load %arg10[%c0_1, %c0_2] : memref<10x128xf32, #tpu.memory_space<vmem>>, vector<10x128xf32>
    %c0_3 = arith.constant 0 : index
    %c0_4 = arith.constant 0 : index
    %c0_5 = arith.constant 0 : index
    %2 = vector.load %arg3[%c0_3, %c0_4, %c0_5] : memref<4x8x128xf32, #tpu.memory_space<vmem>>, vector<4x8x128xf32>
    %3 = vector.shape_cast %2 : vector<4x8x128xf32> to vector<32x128xf32>
    %c0_6 = arith.constant 0 : index
    %c0_7 = arith.constant 0 : index
    %c0_8 = arith.constant 0 : index
    %4 = vector.load %arg1[%c0_6, %c0_7, %c0_8] : memref<4x16x128xf32, #tpu.memory_space<vmem>>, vector<4x16x128xf32>
    %5 = vector.shape_cast %4 : vector<4x16x128xf32> to vector<64x128xf32>
    %c0_9 = arith.constant 0 : index
    %c0_10 = arith.constant 0 : index
    %c0_11 = arith.constant 0 : index
    %6 = vector.load %arg2[%c0_9, %c0_10, %c0_11] : memref<4x1x16xf32, #tpu.memory_space<vmem>>, vector<4x1x16xf32>
    %7 = vector.extract_strided_slice %1 {offsets = [0, 0], sizes = [1, 128], strides = [1, 1]} : vector<10x128xf32> to vector<1x128xf32>
    %c0_12 = arith.constant 0 : index
    %c0_13 = arith.constant 0 : index
    %8 = vector.load %arg4[%c0_12, %c0_13] : memref<128x128xf32, #tpu.memory_space<vmem>>, vector<128x128xf32>
    %cst = arith.constant dense<0.000000e+00> : vector<32x128xf32>
    %9 = tpu.matmul %3, %8, %cst {dimension_numbers = #tpu.dot_dimension_numbers<[1], [0], [0], [1], [0, 0, 1, 1], [], []>} : vector<32x128xf32>, vector<128x128xf32>, vector<32x128xf32> -> vector<32x128xf32>
    %10 = vector.broadcast %7 : vector<1x128xf32> to vector<32x128xf32>
    %11 = arith.addf %9, %10 : vector<32x128xf32>
    %12 = vector.shape_cast %11 : vector<32x128xf32> to vector<4x8x128xf32>
    %c0_14 = arith.constant 0 : index
    %c0_15 = arith.constant 0 : index
    %13 = vector.load %arg11[%c0_14, %c0_15] : memref<1x256xf32, #tpu.memory_space<vmem>>, vector<1x256xf32>
    %c0_16 = arith.constant 0 : index
    %c0_17 = arith.constant 0 : index
    %14 = vector.load %arg5[%c0_16, %c0_17] : memref<128x256xf32, #tpu.memory_space<vmem>>, vector<128x256xf32>
    %cst_18 = arith.constant dense<0.000000e+00> : vector<64x256xf32>
    %15 = tpu.matmul %5, %14, %cst_18 {dimension_numbers = #tpu.dot_dimension_numbers<[1], [0], [0], [1], [0, 0, 1, 1], [], []>} : vector<64x128xf32>, vector<128x256xf32>, vector<64x256xf32> -> vector<64x256xf32>
    %16 = vector.broadcast %13 : vector<1x256xf32> to vector<64x256xf32>
    %17 = arith.addf %15, %16 : vector<64x256xf32>
    %18 = vector.extract_strided_slice %17 {offsets = [0, 0], sizes = [64, 128], strides = [1, 1]} : vector<64x256xf32> to vector<64x128xf32>
    %19 = vector.shape_cast %18 : vector<64x128xf32> to vector<4x16x128xf32>
    %20 = vector.extract_strided_slice %17 {offsets = [0, 128], sizes = [64, 128], strides = [1, 1]} : vector<64x256xf32> to vector<64x128xf32>
    %21 = vector.shape_cast %20 : vector<64x128xf32> to vector<4x16x128xf32>
    %22 = tpu.concatenate %12, %12, %12, %12 in 1 : vector<4x8x128xf32>, vector<4x8x128xf32>, vector<4x8x128xf32>, vector<4x8x128xf32> -> vector<4x32x128xf32>
    %23 = vector.shape_cast %0 : vector<32x128xf32> to vector<1x32x128xf32>
    %24 = vector.broadcast %23 : vector<1x32x128xf32> to vector<4x32x128xf32>
    %25 = arith.mulf %22, %24 : vector<4x32x128xf32>
    "tpu.trace_start"() <{level = 10 : i32, message = "bqc,bkc->bqk"}> : () -> ()
    %cst_19 = arith.constant dense<0.000000e+00> : vector<4x32x16xf32>
    %26 = tpu.matmul %25, %19, %cst_19 {dimension_numbers = #tpu.dot_dimension_numbers<[2], [2], [1], [1], [0, 0, 0, 1, 1, 1], [0], [0]>} : vector<4x32x128xf32>, vector<4x16x128xf32>, vector<4x32x16xf32> -> vector<4x32x16xf32>
    "tpu.trace_stop"() : () -> ()
    %cst_20 = arith.constant 0.176776692 : f32
    %27 = vector.broadcast %cst_20 : f32 to vector<4x32x16xf32>
    %28 = arith.mulf %26, %27 : vector<4x32x16xf32>
    %29 = vector.broadcast %6 : vector<4x1x16xf32> to vector<4x32x16xf32>
    %30 = arith.addf %28, %29 : vector<4x32x16xf32>
    %cst_21 = arith.constant dense<0xFF800000> : vector<4x32xf32>
    %31 = vector.multi_reduction <maximumf>, %30, %cst_21 [2] : vector<4x32x16xf32> to vector<4x32xf32>
    %32 = vector.shape_cast %31 : vector<4x32xf32> to vector<4x32x1xf32>
    %33 = vector.broadcast %32 : vector<4x32x1xf32> to vector<4x32x16xf32>
    %34 = arith.subf %30, %33 : vector<4x32x16xf32>
    %35 = math.exp %34 : vector<4x32x16xf32>
    %cst_22 = arith.constant dense<0.000000e+00> : vector<4x32xf32>
    %36 = vector.multi_reduction <add>, %35, %cst_22 [2] : vector<4x32x16xf32> to vector<4x32xf32>
    %37 = vector.shape_cast %36 : vector<4x32xf32> to vector<4x32x1xf32>
    %38 = tpu.reciprocal %37 {approx = true} : vector<4x32x1xf32> -> vector<4x32x1xf32>
    %39 = vector.broadcast %38 : vector<4x32x1xf32> to vector<4x32x16xf32>
    %40 = arith.mulf %35, %39 : vector<4x32x16xf32>
    "tpu.trace_start"() <{level = 10 : i32, message = "bqk,bkc->bqc"}> : () -> ()
    %cst_23 = arith.constant dense<0.000000e+00> : vector<4x32x128xf32>
    %41 = tpu.matmul %40, %21, %cst_23 {dimension_numbers = #tpu.dot_dimension_numbers<[2], [1], [1], [2], [0, 0, 0, 1, 1, 2], [0], [0]>} : vector<4x32x16xf32>, vector<4x16x128xf32>, vector<4x32x128xf32> -> vector<4x32x128xf32>
    "tpu.trace_stop"() : () -> ()
    %42 = vector.shape_cast %0 : vector<32x128xf32> to vector<1x32x128xf32>
    %43 = vector.broadcast %42 : vector<1x32x128xf32> to vector<4x32x128xf32>
    %44 = arith.mulf %41, %43 : vector<4x32x128xf32>
    %45 = vector.shape_cast %44 : vector<4x32x128xf32> to vector<4x4x8x128xf32>
    %cst_24 = arith.constant dense<0.000000e+00> : vector<4x8x128xf32>
    %46 = vector.multi_reduction <add>, %45, %cst_24 [1] : vector<4x4x8x128xf32> to vector<4x8x128xf32>
    %47 = vector.shape_cast %46 : vector<4x8x128xf32> to vector<32x128xf32>
    %48 = vector.extract_strided_slice %1 {offsets = [1, 0], sizes = [1, 128], strides = [1, 1]} : vector<10x128xf32> to vector<1x128xf32>
    %c0_25 = arith.constant 0 : index
    %c0_26 = arith.constant 0 : index
    %49 = vector.load %arg6[%c0_25, %c0_26] : memref<128x128xf32, #tpu.memory_space<vmem>>, vector<128x128xf32>
    %cst_27 = arith.constant dense<0.000000e+00> : vector<32x128xf32>
    %50 = tpu.matmul %47, %49, %cst_27 {dimension_numbers = #tpu.dot_dimension_numbers<[1], [0], [0], [1], [0, 0, 1, 1], [], []>} : vector<32x128xf32>, vector<128x128xf32>, vector<32x128xf32> -> vector<32x128xf32>
    %51 = vector.broadcast %48 : vector<1x128xf32> to vector<32x128xf32>
    %52 = arith.addf %50, %51 : vector<32x128xf32>
    %53 = arith.addf %52, %3 : vector<32x128xf32>
    %54 = vector.extract_strided_slice %1 {offsets = [2, 0], sizes = [1, 128], strides = [1, 1]} : vector<10x128xf32> to vector<1x128xf32>
    %55 = vector.extract_strided_slice %1 {offsets = [3, 0], sizes = [1, 128], strides = [1, 1]} : vector<10x128xf32> to vector<1x128xf32>
    %cst_28 = arith.constant dense<0.000000e+00> : vector<32xf32>
    %56 = vector.multi_reduction <add>, %53, %cst_28 [1] : vector<32x128xf32> to vector<32xf32>
    %57 = vector.shape_cast %56 : vector<32xf32> to vector<32x1xf32>
    %cst_29 = arith.constant 1.280000e+02 : f32
    %58 = vector.broadcast %cst_29 : f32 to vector<32x1xf32>
    %59 = arith.divf %57, %58 : vector<32x1xf32>
    %60 = vector.broadcast %59 : vector<32x1xf32> to vector<32x128xf32>
    %61 = arith.subf %53, %60 : vector<32x128xf32>
    %62 = arith.mulf %61, %61 : vector<32x128xf32>
    %cst_30 = arith.constant dense<0.000000e+00> : vector<32xf32>
    %63 = vector.multi_reduction <add>, %62, %cst_30 [1] : vector<32x128xf32> to vector<32xf32>
    %64 = vector.shape_cast %63 : vector<32xf32> to vector<32x1xf32>
    %cst_31 = arith.constant 1.280000e+02 : f32
    %65 = vector.broadcast %cst_31 : f32 to vector<32x1xf32>
    %66 = arith.divf %64, %65 : vector<32x1xf32>
    %cst_32 = arith.constant 9.99999974E-6 : f32
    %67 = vector.broadcast %cst_32 : f32 to vector<32x1xf32>
    %68 = arith.addf %66, %67 : vector<32x1xf32>
    %69 = math.rsqrt %68 : vector<32x1xf32>
    %70 = vector.broadcast %69 : vector<32x1xf32> to vector<32x128xf32>
    %71 = arith.mulf %61, %70 : vector<32x128xf32>
    %72 = vector.broadcast %54 : vector<1x128xf32> to vector<32x128xf32>
    %73 = arith.mulf %71, %72 : vector<32x128xf32>
    %74 = vector.broadcast %55 : vector<1x128xf32> to vector<32x128xf32>
    %75 = arith.addf %73, %74 : vector<32x128xf32>
    %c0_33 = arith.constant 0 : index
    %c0_34 = arith.constant 0 : index
    %76 = vector.load %arg12[%c0_33, %c0_34] : memref<1x384xf32, #tpu.memory_space<vmem>>, vector<1x384xf32>
    %c0_35 = arith.constant 0 : index
    %c0_36 = arith.constant 0 : index
    %77 = vector.load %arg7[%c0_35, %c0_36] : memref<128x384xf32, #tpu.memory_space<vmem>>, vector<128x384xf32>
    %cst_37 = arith.constant dense<0.000000e+00> : vector<32x384xf32>
    %78 = tpu.matmul %75, %77, %cst_37 {dimension_numbers = #tpu.dot_dimension_numbers<[1], [0], [0], [1], [0, 0, 1, 1], [], []>} : vector<32x128xf32>, vector<128x384xf32>, vector<32x384xf32> -> vector<32x384xf32>
    %79 = vector.broadcast %76 : vector<1x384xf32> to vector<32x384xf32>
    %80 = arith.addf %78, %79 : vector<32x384xf32>
    %81 = vector.extract_strided_slice %80 {offsets = [0, 0], sizes = [32, 128], strides = [1, 1]} : vector<32x384xf32> to vector<32x128xf32>
    %82 = vector.shape_cast %81 : vector<32x128xf32> to vector<4x8x128xf32>
    %83 = vector.extract_strided_slice %80 {offsets = [0, 128], sizes = [32, 128], strides = [1, 1]} : vector<32x384xf32> to vector<32x128xf32>
    %84 = vector.shape_cast %83 : vector<32x128xf32> to vector<4x8x128xf32>
    %85 = vector.extract_strided_slice %80 {offsets = [0, 256], sizes = [32, 128], strides = [1, 1]} : vector<32x384xf32> to vector<32x128xf32>
    %86 = vector.shape_cast %85 : vector<32x128xf32> to vector<4x8x128xf32>
    %87 = tpu.concatenate %82, %82, %82, %82 in 1 : vector<4x8x128xf32>, vector<4x8x128xf32>, vector<4x8x128xf32>, vector<4x8x128xf32> -> vector<4x32x128xf32>
    %88 = vector.shape_cast %0 : vector<32x128xf32> to vector<1x32x128xf32>
    %89 = vector.broadcast %88 : vector<1x32x128xf32> to vector<4x32x128xf32>
    %90 = arith.mulf %87, %89 : vector<4x32x128xf32>
    "tpu.trace_start"() <{level = 10 : i32, message = "bqc,bkc->bqk"}> : () -> ()
    %cst_38 = arith.constant dense<0.000000e+00> : vector<4x32x8xf32>
    %91 = tpu.matmul %90, %84, %cst_38 {dimension_numbers = #tpu.dot_dimension_numbers<[2], [2], [1], [1], [0, 0, 0, 1, 1, 1], [0], [0]>} : vector<4x32x128xf32>, vector<4x8x128xf32>, vector<4x32x8xf32> -> vector<4x32x8xf32>
    "tpu.trace_stop"() : () -> ()
    %cst_39 = arith.constant 0.176776692 : f32
    %92 = vector.broadcast %cst_39 : f32 to vector<4x32x8xf32>
    %93 = arith.mulf %91, %92 : vector<4x32x8xf32>
    %cst_40 = arith.constant dense<0xFF800000> : vector<4x32xf32>
    %94 = vector.multi_reduction <maximumf>, %93, %cst_40 [2] : vector<4x32x8xf32> to vector<4x32xf32>
    %95 = vector.shape_cast %94 : vector<4x32xf32> to vector<4x32x1xf32>
    %96 = vector.broadcast %95 : vector<4x32x1xf32> to vector<4x32x8xf32>
    %97 = arith.subf %93, %96 : vector<4x32x8xf32>
    %98 = math.exp %97 : vector<4x32x8xf32>
    %cst_41 = arith.constant dense<0.000000e+00> : vector<4x32xf32>
    %99 = vector.multi_reduction <add>, %98, %cst_41 [2] : vector<4x32x8xf32> to vector<4x32xf32>
    %100 = vector.shape_cast %99 : vector<4x32xf32> to vector<4x32x1xf32>
    %101 = tpu.reciprocal %100 {approx = true} : vector<4x32x1xf32> -> vector<4x32x1xf32>
    %102 = vector.broadcast %101 : vector<4x32x1xf32> to vector<4x32x8xf32>
    %103 = arith.mulf %98, %102 : vector<4x32x8xf32>
    "tpu.trace_start"() <{level = 10 : i32, message = "bqk,bkc->bqc"}> : () -> ()
    %cst_42 = arith.constant dense<0.000000e+00> : vector<4x32x128xf32>
    %104 = tpu.matmul %103, %86, %cst_42 {dimension_numbers = #tpu.dot_dimension_numbers<[2], [1], [1], [2], [0, 0, 0, 1, 1, 2], [0], [0]>} : vector<4x32x8xf32>, vector<4x8x128xf32>, vector<4x32x128xf32> -> vector<4x32x128xf32>
    "tpu.trace_stop"() : () -> ()
    %105 = vector.shape_cast %0 : vector<32x128xf32> to vector<1x32x128xf32>
    %106 = vector.broadcast %105 : vector<1x32x128xf32> to vector<4x32x128xf32>
    %107 = arith.mulf %104, %106 : vector<4x32x128xf32>
    %108 = vector.shape_cast %107 : vector<4x32x128xf32> to vector<4x4x8x128xf32>
    %cst_43 = arith.constant dense<0.000000e+00> : vector<4x8x128xf32>
    %109 = vector.multi_reduction <add>, %108, %cst_43 [1] : vector<4x4x8x128xf32> to vector<4x8x128xf32>
    %110 = vector.shape_cast %109 : vector<4x8x128xf32> to vector<32x128xf32>
    %111 = vector.extract_strided_slice %1 {offsets = [4, 0], sizes = [1, 128], strides = [1, 1]} : vector<10x128xf32> to vector<1x128xf32>
    %c0_44 = arith.constant 0 : index
    %c0_45 = arith.constant 0 : index
    %112 = vector.load %arg8[%c0_44, %c0_45] : memref<128x128xf32, #tpu.memory_space<vmem>>, vector<128x128xf32>
    %cst_46 = arith.constant dense<0.000000e+00> : vector<32x128xf32>
    %113 = tpu.matmul %110, %112, %cst_46 {dimension_numbers = #tpu.dot_dimension_numbers<[1], [0], [0], [1], [0, 0, 1, 1], [], []>} : vector<32x128xf32>, vector<128x128xf32>, vector<32x128xf32> -> vector<32x128xf32>
    %114 = vector.broadcast %111 : vector<1x128xf32> to vector<32x128xf32>
    %115 = arith.addf %113, %114 : vector<32x128xf32>
    %116 = arith.addf %115, %75 : vector<32x128xf32>
    %117 = vector.extract_strided_slice %1 {offsets = [5, 0], sizes = [1, 128], strides = [1, 1]} : vector<10x128xf32> to vector<1x128xf32>
    %118 = vector.extract_strided_slice %1 {offsets = [6, 0], sizes = [1, 128], strides = [1, 1]} : vector<10x128xf32> to vector<1x128xf32>
    %cst_47 = arith.constant dense<0.000000e+00> : vector<32xf32>
    %119 = vector.multi_reduction <add>, %116, %cst_47 [1] : vector<32x128xf32> to vector<32xf32>
    %120 = vector.shape_cast %119 : vector<32xf32> to vector<32x1xf32>
    %cst_48 = arith.constant 1.280000e+02 : f32
    %121 = vector.broadcast %cst_48 : f32 to vector<32x1xf32>
    %122 = arith.divf %120, %121 : vector<32x1xf32>
    %123 = vector.broadcast %122 : vector<32x1xf32> to vector<32x128xf32>
    %124 = arith.subf %116, %123 : vector<32x128xf32>
    %125 = arith.mulf %124, %124 : vector<32x128xf32>
    %cst_49 = arith.constant dense<0.000000e+00> : vector<32xf32>
    %126 = vector.multi_reduction <add>, %125, %cst_49 [1] : vector<32x128xf32> to vector<32xf32>
    %127 = vector.shape_cast %126 : vector<32xf32> to vector<32x1xf32>
    %cst_50 = arith.constant 1.280000e+02 : f32
    %128 = vector.broadcast %cst_50 : f32 to vector<32x1xf32>
    %129 = arith.divf %127, %128 : vector<32x1xf32>
    %cst_51 = arith.constant 9.99999974E-6 : f32
    %130 = vector.broadcast %cst_51 : f32 to vector<32x1xf32>
    %131 = arith.addf %129, %130 : vector<32x1xf32>
    %132 = math.rsqrt %131 : vector<32x1xf32>
    %133 = vector.broadcast %132 : vector<32x1xf32> to vector<32x128xf32>
    %134 = arith.mulf %124, %133 : vector<32x128xf32>
    %135 = vector.broadcast %117 : vector<1x128xf32> to vector<32x128xf32>
    %136 = arith.mulf %134, %135 : vector<32x128xf32>
    %137 = vector.broadcast %118 : vector<1x128xf32> to vector<32x128xf32>
    %138 = arith.addf %136, %137 : vector<32x128xf32>
    %139 = vector.extract_strided_slice %1 {offsets = [7, 0], sizes = [1, 128], strides = [1, 1]} : vector<10x128xf32> to vector<1x128xf32>
    %c0_52 = arith.constant 0 : index
    %c0_53 = arith.constant 0 : index
    %140 = vector.load %arg9[%c0_52, %c0_53] : memref<128x128xf32, #tpu.memory_space<vmem>>, vector<128x128xf32>
    %cst_54 = arith.constant dense<0.000000e+00> : vector<32x128xf32>
    %141 = tpu.matmul %138, %140, %cst_54 {dimension_numbers = #tpu.dot_dimension_numbers<[1], [0], [0], [1], [0, 0, 1, 1], [], []>} : vector<32x128xf32>, vector<128x128xf32>, vector<32x128xf32> -> vector<32x128xf32>
    %142 = vector.broadcast %139 : vector<1x128xf32> to vector<32x128xf32>
    %143 = arith.addf %141, %142 : vector<32x128xf32>
    %cst_55 = arith.constant 0.000000e+00 : f32
    %144 = vector.broadcast %cst_55 : f32 to vector<32x128xf32>
    %145 = arith.maximumf %143, %144 : vector<32x128xf32>
    %146 = arith.addf %138, %145 : vector<32x128xf32>
    %147 = vector.extract_strided_slice %1 {offsets = [8, 0], sizes = [1, 128], strides = [1, 1]} : vector<10x128xf32> to vector<1x128xf32>
    %148 = vector.extract_strided_slice %1 {offsets = [9, 0], sizes = [1, 128], strides = [1, 1]} : vector<10x128xf32> to vector<1x128xf32>
    %cst_56 = arith.constant dense<0.000000e+00> : vector<32xf32>
    %149 = vector.multi_reduction <add>, %146, %cst_56 [1] : vector<32x128xf32> to vector<32xf32>
    %150 = vector.shape_cast %149 : vector<32xf32> to vector<32x1xf32>
    %cst_57 = arith.constant 1.280000e+02 : f32
    %151 = vector.broadcast %cst_57 : f32 to vector<32x1xf32>
    %152 = arith.divf %150, %151 : vector<32x1xf32>
    %153 = vector.broadcast %152 : vector<32x1xf32> to vector<32x128xf32>
    %154 = arith.subf %146, %153 : vector<32x128xf32>
    %155 = arith.mulf %154, %154 : vector<32x128xf32>
    %cst_58 = arith.constant dense<0.000000e+00> : vector<32xf32>
    %156 = vector.multi_reduction <add>, %155, %cst_58 [1] : vector<32x128xf32> to vector<32xf32>
    %157 = vector.shape_cast %156 : vector<32xf32> to vector<32x1xf32>
    %cst_59 = arith.constant 1.280000e+02 : f32
    %158 = vector.broadcast %cst_59 : f32 to vector<32x1xf32>
    %159 = arith.divf %157, %158 : vector<32x1xf32>
    %cst_60 = arith.constant 9.99999974E-6 : f32
    %160 = vector.broadcast %cst_60 : f32 to vector<32x1xf32>
    %161 = arith.addf %159, %160 : vector<32x1xf32>
    %162 = math.rsqrt %161 : vector<32x1xf32>
    %163 = vector.broadcast %162 : vector<32x1xf32> to vector<32x128xf32>
    %164 = arith.mulf %154, %163 : vector<32x128xf32>
    %165 = vector.broadcast %147 : vector<1x128xf32> to vector<32x128xf32>
    %166 = arith.mulf %164, %165 : vector<32x128xf32>
    %167 = vector.broadcast %148 : vector<1x128xf32> to vector<32x128xf32>
    %168 = arith.addf %166, %167 : vector<32x128xf32>
    %169 = vector.shape_cast %168 : vector<32x128xf32> to vector<4x8x128xf32>
    %c0_61 = arith.constant 0 : index
    %c0_62 = arith.constant 0 : index
    %c0_63 = arith.constant 0 : index
    %170 = vector.load %arg14[%c0_61, %c0_62, %c0_63] : memref<4x8x128xf32, #tpu.memory_space<vmem>>, vector<4x8x128xf32>
    tpu.vector_store %arg14[%c0_61, %c0_62, %c0_63], %169 {strides = array<i32>} : memref<4x8x128xf32, #tpu.memory_space<vmem>>, vector<4x8x128xf32>,
    return
  }
  func.func @transform_0(%arg0: i32) -> (i32, i32, i32) {
    %c0_i32 = arith.constant 0 : i32
    %c0_i32_0 = arith.constant 0 : i32
    %c0_i32_1 = arith.constant 0 : i32
    return %arg0, %c0_i32, %c0_i32_0 : i32, i32, i32
  }
  func.func @transform_1(%arg0: i32) -> (i32, i32, i32) {
    %c0_i32 = arith.constant 0 : i32
    %c0_i32_0 = arith.constant 0 : i32
    %c0_i32_1 = arith.constant 0 : i32
    return %arg0, %c0_i32, %c0_i32_0 : i32, i32, i32
  }
  func.func @transform_2(%arg0: i32) -> (i32, i32, i32) {
    %c0_i32 = arith.constant 0 : i32
    %c0_i32_0 = arith.constant 0 : i32
    %c0_i32_1 = arith.constant 0 : i32
    return %arg0, %c0_i32, %c0_i32_0 : i32, i32, i32
  }
  func.func @transform_3(%arg0: i32) -> (i32, i32) {
    %c0_i32 = arith.constant 0 : i32
    %c0_i32_0 = arith.constant 0 : i32
    %c0_i32_1 = arith.constant 0 : i32
    return %c0_i32, %c0_i32_0 : i32, i32
  }
  func.func @transform_4(%arg0: i32) -> (i32, i32) {
    %c0_i32 = arith.constant 0 : i32
    %c0_i32_0 = arith.constant 0 : i32
    %c0_i32_1 = arith.constant 0 : i32
    return %c0_i32, %c0_i32_0 : i32, i32
  }
  func.func @transform_5(%arg0: i32) -> (i32, i32) {
    %c0_i32 = arith.constant 0 : i32
    %c0_i32_0 = arith.constant 0 : i32
    %c0_i32_1 = arith.constant 0 : i32
    return %c0_i32, %c0_i32_0 : i32, i32
  }
  func.func @transform_6(%arg0: i32) -> (i32, i32) {
    %c0_i32 = arith.constant 0 : i32
    %c0_i32_0 = arith.constant 0 : i32
    %c0_i32_1 = arith.constant 0 : i32
    return %c0_i32, %c0_i32_0 : i32, i32
  }
  func.func @transform_7(%arg0: i32) -> (i32, i32) {
    %c0_i32 = arith.constant 0 : i32
    %c0_i32_0 = arith.constant 0 : i32
    %c0_i32_1 = arith.constant 0 : i32
    return %c0_i32, %c0_i32_0 : i32, i32
  }
  func.func @transform_8(%arg0: i32) -> (i32, i32) {
    %c0_i32 = arith.constant 0 : i32
    %c0_i32_0 = arith.constant 0 : i32
    %c0_i32_1 = arith.constant 0 : i32
    return %c0_i32, %c0_i32_0 : i32, i32
  }
  func.func @transform_9(%arg0: i32) -> (i32, i32) {
    %c0_i32 = arith.constant 0 : i32
    %c0_i32_0 = arith.constant 0 : i32
    %c0_i32_1 = arith.constant 0 : i32
    return %c0_i32, %c0_i32_0 : i32, i32
  }
  func.func @transform_10(%arg0: i32) -> (i32, i32) {
    %c0_i32 = arith.constant 0 : i32
    %c0_i32_0 = arith.constant 0 : i32
    %c0_i32_1 = arith.constant 0 : i32
    return %c0_i32, %c0_i32_0 : i32, i32
  }
  func.func @transform_11(%arg0: i32) -> (i32, i32) {
    %c0_i32 = arith.constant 0 : i32
    %c0_i32_0 = arith.constant 0 : i32
    %c0_i32_1 = arith.constant 0 : i32
    return %c0_i32, %c0_i32_0 : i32, i32
  }
  func.func @transform_12(%arg0: i32) -> (i32, i32) {
    %c0_i32 = arith.constant 0 : i32
    %c0_i32_0 = arith.constant 0 : i32
    %c0_i32_1 = arith.constant 0 : i32
    return %c0_i32, %c0_i32_0 : i32, i32
  }
  func.func @transform_13(%arg0: i32) -> (i32, i32, i32) {
    %c0_i32 = arith.constant 0 : i32
    %c0_i32_0 = arith.constant 0 : i32
    %c0_i32_1 = arith.constant 0 : i32
    return %arg0, %c0_i32, %c0_i32_0 : i32, i32, i32
  }
}

</mosaic_0001>

<bundles_post_ra>
// kernel: tpu_custom_call.1
= control target key start
LH: loop header
LB: loop body
LE: loop exit
PB: predicated region body
PF: predicated region fallthrough
CT: control target
= control target key end

     0   :  { %s6555_s0 = inlined_call_operand.hbm [shape: f32[8,16,128], index: 0, kind: input, shape index: {}]   ;;  %s6556_s1 = inlined_call_operand.hbm [shape: f32[8,1,16], index: 1, kind: input, shape index: {}]   ;;  %s6557_s2 = inlined_call_operand.hbm [shape: f32[8,8,128], index: 2, kind: input, shape index: {}]   ;;  %s6558_s3 = inlined_call_operand.hbm [shape: f32[128,128], index: 3, kind: input, shape index: {}]   ;;  %s6559_s4 = inlined_call_operand.hbm [shape: f32[128,256], index: 4, kind: input, shape index: {}]   ;;  %s6560_s5 = inlined_call_operand.hbm [shape: f32[128,128], index: 5, kind: input, shape index: {}]   ;;  %s6561_s6 = inlined_call_operand.hbm [shape: f32[128,384], index: 6, kind: input, shape index: {}]   ;;  %s6562_s7 = inlined_call_operand.hbm [shape: f32[128,128], index: 7, kind: input, shape index: {}]   ;;  %s6563_s8 = inlined_call_operand.hbm [shape: f32[128,128], index: 8, kind: input, shape index: {}]   ;;  %s6564_s9 = inlined_call_operand.hbm [shape: f32[10,128], index: 9, kind: input, shape index: {}]   ;;  %s6565_s10 = inlined_call_operand.vmem [shape: f32[1,256], index: 10, kind: input, shape index: {}]   ;;  %s6566_s11 = inlined_call_operand.vmem [shape: f32[1,384], index: 11, kind: input, shape index: {}]   ;;  %s6567_s12 = inlined_call_operand.vmem [shape: f32[32,128], index: 12, kind: input, shape index: {}]   ;;  %s6568_s13 = inlined_call_operand.hbm [shape: f32[8,8,128], index: 13, kind: output, shape index: {}]  }
   0x1   :  { %6593 = sst [smem:[#allocation33_spill]] %s6556_s1 }
   0x2   :  { %6594 = sst [smem:[#allocation34_spill]] %s6558_s3 }
   0x3   :  { %6595 = sst [smem:[#allocation35_spill]] %s6560_s5 }
   0x4   :  { %6596 = sst [smem:[#allocation36_spill]] %s6562_s7 }
   0x5   :  { %6597 = sst [smem:[#allocation37_spill]] %s6565_s10 }
   0x6   :  { %6598 = sst [smem:[#allocation38_spill]] %s6566_s11 }
   0x7   :  { %6599 = sst [smem:[#allocation39_spill]] %s6567_s12 }
   0x8   :  { %6600 = sst [smem:[#allocation40_spill]] %s6568_s13 }
   0x9   :  { %18 = vsyncpa [#allocation3], 0 }
   0xa   :  { %20 = vsyncpa [#allocation3 + $0x1], 0 }
   0xb   :  { %21 = vsyncpa [#allocation6], 0 }
   0xc   :  { %23 = vsyncpa [#allocation6 + $0x1], 0 }
   0xd   :  { %24 = vsyncpa [#allocation9], 0 }
   0xe   :  { %25 = vsyncpa [#allocation12], 0 }
   0xf   :  { %26 = vsyncpa [#allocation15], 0 }
  0x10   :  { %27 = vsyncpa [#allocation18], 0 }
  0x11   :  { %28 = vsyncpa [#allocation4], 0 }
  0x12   :  { %30 = vsyncpa [#allocation4 + $0x1], 0  ;;  %s5467_s25 = smov 0   ;;  %s5469_s26 = smov 0  }
  0x13   :  { %s5471_s27 = smov 0   ;;  %s5473_s28 = smov 0  }
  0x14 LB: > { %6601 = sst [smem:[#allocation27_spill]] %s5362_s25  ;;  %s5376_s29 = smov [#allocation8]   ;;  %s5374_s28 = sphi %s5473_s28, %s6645_s28   ;;  %s5370_s27 = sphi %s5471_s27, %s6647_s27   ;;  %s5366_s26 = sphi %s5469_s26, %s6649_s26   ;;  %s5362_s25 = sphi %s5467_s25, %s6648_s25  }
  0x15   : > { %6602 = sst [smem:[#allocation28_spill]] %s5370_s27  ;;  %s367_s30 = sshll.u32 %s5376_s29, 4  ;;  %s5493_s30 = int_to_ptr.vmem [resolvable:$true] %s367_s30 }
  0x16   : > { %s5488_s14 = sadd.s32 4294967295, %s5374_s28   ;;  %p3850_p0 = scmp.ge.s32.totalorder %s5374_s28, 1 }
  0x17   : > { %p6577_p1 = scmp.eq.s32.totalorder %s5488_s14, 0  ;;  %p355_p2 = scmp.lt.s32.totalorder %s5374_s28, 3 }
  0x18   : > { %s5377_s16 = smov [#allocation11]   ;;  %s5378_s19 = smov [#allocation14]  }
  0x19   : > { %p5495_p3 = pnand %p3850_p0, %p355_p2  ;;  %s393_s17 = sshll.u32 %s5377_s16, 4  ;;  %s5508_s17 = int_to_ptr.vmem [resolvable:$true] %s393_s17 }
  0x1a   : > { %s419_s20 = sshll.u32 %s5378_s19, 4  ;;  %s6606_s3 = sld [smem:[#allocation34_spill]]  ;;  %s5510_s20 = int_to_ptr.vmem [resolvable:$true] %s419_s20 }
  0x1b   : > { %s6603_s15 = scalar_select %p5495_p3, 1, 0 }
  0x1c   : > { %p4741_p5 = pneg %p5495_p3 }
  0x1d   : > { %6604 = sst [smem:[#allocation29_spill]] %s6603_s15 }
  0x1e   : > { %p5504_p6 = pnand %p4741_p5, %p6577_p1 }
  0x20   : > { %s6605_s18 = scalar_select %p5504_p6, 1, 0 }
  0x21   : > { %s5002_s23 = scalar_lea.hbm %s6606_s3, 2048  ;;  %p5520_p8 = pneg %p5504_p6 }
  0x22   : > { %p5003_p7 = scmp.ne.s32.totalorder %s6606_s3, %s5002_s23  ;;  %p5009_p11 = scmp.lt.u32.totalorder %s5002_s23, %s6606_s3 }
  0x23   : > { %s6607_s16 = scalar_select %p5520_p8, 1, 0 }
  0x24   : > { %p5005_p9 = pnand %p5520_p8, %p5003_p7 }
  0x26   : > { %p5006_p10 = pneg %p5005_p9 }
  0x28   : > { %p5011_p12 = pnand %p5009_p11, %p5006_p10 }
  0x2a   : > { %5014 = shalt.err (!%p5011_p12)
}
  0x2b   : > { %s5015_s21 = scalar_lea.vmem %s5493_s30, 2048  ;;  %p5023_p5 = scmp.lt.s32.totalorder %s5493_s30, %s5493_s30 }
  0x2c   : > { %p5016_p13 = scmp.ne.s32.totalorder %s5493_s30, %s5015_s21  ;;  %p5024_p4 = scmp.lt.s32.totalorder %s5015_s21, %s5015_s21 }
  0x2e   : > { %p5018_p0 = pnand %p5016_p13, %p5520_p8  ;;  %p5025_p7 = por %p5024_p4, %p5023_p5 }
  0x30   : > { %p5019_p2 = pneg %p5018_p0 }
  0x32   : > { %p5026_p9 = pnand %p5025_p7, %p5019_p2 }
  0x34   : > { %5029 = shalt.err (!%p5026_p9)
}
  0x35   : > { %s6573_s22 = smov 128   ;;  %s6575_s13 = smov 8  }
  0x36   : > { %4744 = dma.hbm_to_vmem [thread:$0]  (!%p5504_p6), %s6606_s3, 2048, %s5493_s30, [#allocation9], %s6573_s22, %s6573_s22, %s6575_s13  }
  0x37   : > { %s6608_s5 = sld [smem:[#allocation35_spill]] }
  0x3d   : > { %s5030_s21 = scalar_lea.hbm %s6608_s5, 2048 }
  0x3e   : > { %p5031_p4 = scmp.ne.s32.totalorder %s6608_s5, %s5030_s21  ;;  %p5037_p12 = scmp.lt.u32.totalorder %s5030_s21, %s6608_s5 }
  0x40   : > { %p5033_p10 = pnand %p5031_p4, %p5520_p8 }
  0x42   : > { %p5034_p11 = pneg %p5033_p10 }
  0x44   : > { %p5039_p13 = pnand %p5037_p12, %p5034_p11 }
  0x46   : > { %5042 = shalt.err (!%p5039_p13)
}
  0x47   : > { %s5043_s30 = scalar_lea.vmem %s5508_s17, 2048  ;;  %p5051_p7 = scmp.lt.s32.totalorder %s5508_s17, %s5508_s17 }
  0x48   : > { %p5044_p0 = scmp.ne.s32.totalorder %s5508_s17, %s5043_s30  ;;  %p5052_p9 = scmp.lt.s32.totalorder %s5043_s30, %s5043_s30 }
  0x4a   : > { %p5046_p2 = pnand %p5044_p0, %p5520_p8  ;;  %p5053_p4 = por %p5052_p9, %p5051_p7 }
  0x4c   : > { %p5047_p5 = pneg %p5046_p2 }
  0x4e   : > { %p5054_p10 = pnand %p5053_p4, %p5047_p5 }
  0x50   : > { %5057 = shalt.err (!%p5054_p10)
}
  0x51   : > { %4750 = dma.hbm_to_vmem [thread:$0]  (!%p5504_p6), %s6608_s5, 2048, %s5508_s17, [#allocation12], %s6573_s22, %s6573_s22, %s6575_s13  }
  0x52   : > { %s6609_s7 = sld [smem:[#allocation36_spill]] }
  0x58   : > { %s5058_s23 = scalar_lea.hbm %s6609_s7, 2048 }
  0x59   : > { %p5059_p11 = scmp.ne.s32.totalorder %s6609_s7, %s5058_s23  ;;  %p5065_p0 = scmp.lt.u32.totalorder %s5058_s23, %s6609_s7 }
  0x5b   : > { %p5061_p12 = pnand %p5059_p11, %p5520_p8 }
  0x5d   : > { %p5062_p13 = pneg %p5061_p12 }
  0x5f   : > { %p5067_p2 = pnand %p5065_p0, %p5062_p13 }
  0x61   : > { %5070 = shalt.err (!%p5067_p2)
}
  0x62   : > { %s5071_s17 = scalar_lea.vmem %s5510_s20, 2048  ;;  %p5079_p4 = scmp.lt.s32.totalorder %s5510_s20, %s5510_s20 }
  0x63   : > { %p5072_p5 = scmp.ne.s32.totalorder %s5510_s20, %s5071_s17  ;;  %p5080_p10 = scmp.lt.s32.totalorder %s5071_s17, %s5071_s17 }
  0x65   : > { %p5074_p7 = pnand %p5072_p5, %p5520_p8  ;;  %p5081_p11 = por %p5080_p10, %p5079_p4 }
  0x67   : > { %p5075_p9 = pneg %p5074_p7 }
  0x69   : > { %p5082_p12 = pnand %p5081_p11, %p5075_p9 }
  0x6b   : > { %5085 = shalt.err (!%p5082_p12)
}
  0x6c   : > { %4756 = dma.hbm_to_vmem [thread:$0]  (!%p5504_p6), %s6609_s7, 2048, %s5510_s20, [#allocation15], %s6573_s22, %s6573_s22, %s6575_s13  }
  0x6d   : > { %s3849_s11 = sadd.s32 4294967294, %s5374_s28   ;;  %s5598_s12 = sadd.s32 1, %s5374_s28  }
  0x6e   : > { %6610 = sst [smem:[#allocation30_spill]] %s5598_s12  ;;  %s43_s15 = sadd.s32 1, %s5370_s27 }
  0x6f   : > { %s40_s23 = ssub.s32 %s5374_s28, %s5598_s12  ;;  %p50_p13 = scmp.ne.s32.totalorder %s5370_s27, %s5366_s26 }
  0x70   : > { %p41_p0 = scmp.eq.s32.totalorder %s40_s23, 0  ;;  %p51_p2 = scmp.eq.s32.totalorder %s5374_s28, 0 }
  0x71   : > { %p56_p5 = scmp.ne.s32.totalorder %s5366_s26, %s5362_s25  ;;  %p342_p7 = scmp.eq.s32.totalorder %s5488_s14, 1 }
  0x72   : > { %s5610_s24 = scalar_select %p41_p0, %s5370_s27, %s43_s15  }
  0x73   : > { %p52_p9 = por %p51_p2, %p50_p13  ;;  %p5614_p4 = por %p6577_p1, %p56_p5 }
  0x74   : > { %6611 = sst [smem:[#allocation31_spill]] %s5610_s24  ;;  %p5618_p10 = por %p342_p7, %p50_p13 }
  0x75   : > { %s6612_s20 = scalar_select %p5614_p4, 1, 0 }
  0x76   : > { %s6613_s29 = scalar_select %p5618_p10, 1, 0 }
  0x77   : > { %p348_p11 = scmp.eq.s32.totalorder %s3849_s11, 1  ;;  %p4784_p12 = scmp.lt.s32.totalorder %s5374_s28, 2 }
  0x78   : > { %s5628_s21 = sand.u32 1, %s5370_s27   ;;  %s490_s30 = sand.u32 1, %s5374_s28  }
  0x79   : > { %p5623_p3 = por %p348_p11, %p56_p5  ;;  %p5630_p0 = pnand %p4784_p12, %p52_p9 }
  0x7a   : > { %s3863_s10 = sshll.u32 %s5628_s21, 2  ;;  %s3924_s15 = sshll.u32 %s5374_s28, 6 }
  0x7b   : > { %s6614_s19 = scalar_select %p5623_p3, 1, 0 }
  0x7c   : > { %s6616_s17 = scalar_select %p5630_p0, 1, 0 }
  0x7d   : > { %6615 = sst [smem:[#allocation32_spill]] %s6614_s19  ;;  %s494_s23 = scalar_lea.vmem [#allocation5], %s3863_s10 }
  0x7e   : > { %s501_s22 = sshll.u32 %s494_s23, 4  ;;  %s6617_s1 = sld [smem:[#allocation33_spill]]  ;;  %s5642_s22 = int_to_ptr.vmem [resolvable:$true] %s501_s22 }
  0x7f   : > { %s5644_s5 = scalar_lea.sflag [#allocation6], %s490_s30  ;;  %p5650_p2 = pneg %p5630_p0 }
  0x81   : > { %s6618_s24 = scalar_select %p5650_p2, 1, 0 }
  0x84   : > { %s5640_s3 = scalar_lea.hbm %s6617_s1, %s3924_s15  ;;  %s5091_s15 = scalar_lea.hbm %s6617_s1, 128 }
  0x85   : > { %s5086_s7 = scalar_lea.hbm %s5640_s3, 64  ;;  %p5092_p9 = scmp.lt.u32.totalorder %s5640_s3, %s6617_s1 }
  0x86   : > { %p5087_p13 = scmp.ne.s32.totalorder %s5640_s3, %s5086_s7  ;;  %p5093_p11 = scmp.lt.u32.totalorder %s5091_s15, %s5086_s7 }
  0x87   : > { %p5095_p1 = scmp.lt.u32.totalorder %s5086_s7, %s5640_s3 }
  0x88   : > { %p5089_p5 = pnand %p5650_p2, %p5087_p13  ;;  %p5094_p12 = por %p5093_p11, %p5092_p9 }
  0x8a   : > { %p5090_p7 = pneg %p5089_p5  ;;  %p5096_p3 = por %p5095_p1, %p5094_p12 }
  0x8c   : > { %p5097_p10 = pnand %p5096_p3, %p5090_p7 }
  0x8e   : > { %5100 = shalt.err (!%p5097_p10)
}
  0x8f   : > { %s5101_s30 = scalar_lea.vmem %s5642_s22, 64  ;;  %s5381_s13 = smov [#allocation5]  }
  0x90   : > { %p5102_p13 = scmp.ne.s32.totalorder %s5642_s22, %s5101_s30  ;;  %s5106_s10 = sshll.u32 %s5381_s13, 4  ;;  %s5107_s10 = int_to_ptr.vmem [resolvable:$false] %s5106_s10 }
  0x91   : > { %s5108_s23 = scalar_lea.vmem %s5107_s10, 128  ;;  %p5109_p6 = scmp.lt.s32.totalorder %s5642_s22, %s5107_s10 }
  0x92   : > { %p5104_p5 = pnand %p5102_p13, %p5650_p2  ;;  %p5110_p8 = scmp.lt.s32.totalorder %s5108_s23, %s5101_s30 }
  0x94   : > { %p5105_p4 = pneg %p5104_p5  ;;  %p5111_p9 = por %p5110_p8, %p5109_p6 }
  0x96   : > { %p5112_p11 = pnand %p5111_p9, %p5105_p4 }
  0x98   : > { %5115 = shalt.err (!%p5112_p11)
}
  0x99   : > { %s5382_s7 = smov 16   ;;  %s5383_s15 = smov 1  }
  0x9a   : > { %4769 = dma.hbm_to_vmem [thread:$0]  (!%p5630_p0), %s5640_s3, 64, %s5642_s22, %s5644_s5, %s5382_s7, %s5382_s7, %s5383_s15  }
  0x9b   : > { %s5384_s11 = smov [#allocation10]   ;;  %s5116_s10 = scalar_lea.hbm %s6559_s4, 4096 }
  0x9c   : > { %s380_s1 = sshll.u32 %s5384_s11, 4  ;;  %p5117_p1 = scmp.ne.s32.totalorder %s6559_s4, %s5116_s10  ;;  %s381_s1 = int_to_ptr.vmem [resolvable:$true] %s380_s1 }
  0x9d   : > { %p6619_p3 = scmp.ne.s32.totalorder %s6607_s16, 0  ;;  %p5123_p4 = scmp.lt.u32.totalorder %s5116_s10, %s6559_s4 }
  0x9f   : > { %p5119_p6 = pnand %p5117_p1, %p6619_p3 }
  0xa1   : > { %p5120_p8 = pneg %p5119_p6 }
  0xa3   : > { %p5125_p10 = pnand %p5123_p4, %p5120_p8 }
  0xa5   : > { %5128 = shalt.err (!%p5125_p10)
}
  0xa6   : > { %s5129_s3 = scalar_lea.vmem %s381_s1, 4096  ;;  %p5137_p5 = scmp.lt.s32.totalorder %s381_s1, %s381_s1 }
  0xa7   : > { %p5130_p7 = scmp.ne.s32.totalorder %s381_s1, %s5129_s3  ;;  %p5138_p9 = scmp.lt.s32.totalorder %s5129_s3, %s5129_s3 }
  0xa9   : > { %p5132_p12 = pnand %p5130_p7, %p6619_p3  ;;  %p5139_p11 = por %p5138_p9, %p5137_p5 }
  0xab   : > { %p5133_p13 = pneg %p5132_p12 }
  0xad   : > { %p5140_p0 = pnand %p5139_p11, %p5133_p13 }
  0xaf   : > { %5143 = shalt.err (!%p5140_p0)
}
  0xb0   : > { %s5385_s27 = smov 256   ;;  %p6620_p1 = scmp.ne.s32.totalorder %s6605_s18, 0 }
  0xb1   : > { %s5386_s12 = smov [#allocation13]   ;;  %s5144_s10 = scalar_lea.hbm %s6561_s6, 6144 }
  0xb2   : > { %4747 = dma.hbm_to_vmem [thread:$0]  (!%p6620_p1), %s6559_s4, 4096, %s381_s1, [#allocation9], %s5385_s27, %s5385_s27, %s5382_s7  }
  0xb3   : > { %s406_s19 = sshll.u32 %s5386_s12, 4  ;;  %p5145_p6 = scmp.ne.s32.totalorder %s6561_s6, %s5144_s10  ;;  %s407_s19 = int_to_ptr.vmem [resolvable:$true] %s406_s19 }
  0xb4   : > { %p5151_p4 = scmp.lt.u32.totalorder %s5144_s10, %s6561_s6 }
  0xb5   : > { %p5147_p0 = pnand %p5145_p6, %p6619_p3 }
  0xb7   : > { %p5148_p8 = pneg %p5147_p0 }
  0xb9   : > { %p5153_p10 = pnand %p5151_p4, %p5148_p8 }
  0xbb   : > { %5156 = shalt.err (!%p5153_p10)
}
  0xbc   : > { %s5157_s1 = scalar_lea.vmem %s407_s19, 6144  ;;  %p5165_p5 = scmp.lt.s32.totalorder %s407_s19, %s407_s19 }
  0xbd   : > { %p5158_p7 = scmp.ne.s32.totalorder %s407_s19, %s5157_s1  ;;  %p5166_p9 = scmp.lt.s32.totalorder %s5157_s1, %s5157_s1 }
  0xbf   : > { %p5160_p12 = pnand %p5158_p7, %p6619_p3  ;;  %p5167_p11 = por %p5166_p9, %p5165_p5 }
  0xc1   : > { %p5161_p13 = pneg %p5160_p12 }
  0xc3   : > { %p5168_p2 = pnand %p5167_p11, %p5161_p13 }
  0xc5   : > { %5171 = shalt.err (!%p5168_p2)
}
  0xc6   : > { %s5387_s7 = smov 384   ;;  %s5388_s27 = smov 24  }
  0xc7   : > { %4753 = dma.hbm_to_vmem [thread:$0]  (!%p6620_p1), %s6561_s6, 6144, %s407_s19, [#allocation12], %s5387_s7, %s5387_s7, %s5388_s27  }
  0xc8   : > { %s5389_s15 = smov [#allocation16]   ;;  %s5390_s11 = smov [#allocation17]  }
  0xc9   : > { %s432_s12 = sshll.u32 %s5389_s15, 4  ;;  %s445_s13 = sshll.u32 %s5390_s11, 4  ;;  %s433_s12 = int_to_ptr.vmem [resolvable:$true] %s432_s12  ;;  %s5710_s13 = int_to_ptr.vmem [resolvable:$true] %s445_s13 }
  0xca   : > { %s5172_s23 = scalar_lea.hbm %s6563_s8, 2048 }
  0xcb   : > { %p5173_p2 = scmp.ne.s32.totalorder %s6563_s8, %s5172_s23  ;;  %p5179_p8 = scmp.lt.u32.totalorder %s5172_s23, %s6563_s8 }
  0xcd   : > { %p5175_p6 = pnand %p5173_p2, %p6619_p3 }
  0xcf   : > { %p5176_p0 = pneg %p5175_p6 }
  0xd1   : > { %p5181_p4 = pnand %p5179_p8, %p5176_p0 }
  0xd3   : > { %5184 = shalt.err (!%p5181_p4)
}
  0xd4   : > { %s5185_s7 = scalar_lea.vmem %s433_s12, 2048  ;;  %p5193_p13 = scmp.lt.s32.totalorder %s433_s12, %s433_s12 }
  0xd5   : > { %p5186_p10 = scmp.ne.s32.totalorder %s433_s12, %s5185_s7  ;;  %p5194_p5 = scmp.lt.s32.totalorder %s5185_s7, %s5185_s7 }
  0xd7   : > { %p5188_p7 = pnand %p5186_p10, %p6619_p3  ;;  %p5195_p9 = por %p5194_p5, %p5193_p13 }
  0xd9   : > { %p5189_p12 = pneg %p5188_p7 }
  0xdb   : > { %p5196_p11 = pnand %p5195_p9, %p5189_p12 }
  0xdd   : > { %5199 = shalt.err (!%p5196_p11)
}
  0xde   : > { %s6621_s27 = smov 8   ;;  %s6622_s22 = smov 128  }
  0xdf   : > { %4759 = dma.hbm_to_vmem [thread:$0]  (!%p6620_p1), %s6563_s8, 2048, %s433_s12, [#allocation15], %s6622_s22, %s6622_s22, %s6621_s27  }
  0xe0   : > { %s5200_s23 = scalar_lea.hbm %s6564_s9, 256 }
  0xe1   : > { %p5201_p2 = scmp.ne.s32.totalorder %s6564_s9, %s5200_s23  ;;  %p5207_p8 = scmp.lt.u32.totalorder %s5200_s23, %s6564_s9 }
  0xe3   : > { %p5203_p6 = pnand %p5201_p2, %p6619_p3 }
  0xe5   : > { %p5204_p0 = pneg %p5203_p6 }
  0xe7   : > { %p5209_p4 = pnand %p5207_p8, %p5204_p0 }
  0xe9   : > { %5212 = shalt.err (!%p5209_p4)
}
  0xea   : > { %s5213_s12 = scalar_lea.vmem %s5710_s13, 256  ;;  %p5221_p13 = scmp.lt.s32.totalorder %s5710_s13, %s5710_s13 }
  0xeb   : > { %p5214_p10 = scmp.ne.s32.totalorder %s5710_s13, %s5213_s12  ;;  %p5222_p5 = scmp.lt.s32.totalorder %s5213_s12, %s5213_s12 }
  0xed   : > { %p5216_p7 = pnand %p5214_p10, %p6619_p3  ;;  %p5223_p9 = por %p5222_p5, %p5221_p13 }
  0xef   : > { %p5217_p12 = pneg %p5216_p7 }
  0xf1   : > { %p5224_p11 = pnand %p5223_p9, %p5217_p12 }
  0xf3   : > { %5227 = shalt.err (!%p5224_p11)
}
  0xf4   : > { %4762 = dma.hbm_to_vmem [thread:$0]  (!%p6620_p1), %s6564_s9, 256, %s5710_s13, [#allocation18], %s6622_s22, %s6622_s22, %s6621_s27  }
  0xf5   : > { %s3859_s16 = sshll.u32 %s5628_s21, 6  ;;  %s3923_s11 = sshll.u32 %s5374_s28, 10 }
  0xf6   : > { %s5764_s23 = scalar_lea.hbm %s6555_s0, %s3923_s11  ;;  %s472_s18 = scalar_lea.vmem [#allocation2], %s3859_s16 }
  0xf7   : > { %s480_s3 = sshll.u32 %s472_s18, 4  ;;  %s3866_s1 = sshll.u32 %s5628_s21, 5  ;;  %s5766_s3 = int_to_ptr.vmem [resolvable:$true] %s480_s3 }
  0xf8   : > { %s469_s25 = scalar_lea.sflag [#allocation3], %s5628_s21  ;;  %s5228_s19 = scalar_lea.hbm %s5764_s23, 1024 }
  0xf9   : > { %p5229_p3 = scmp.ne.s32.totalorder %s5764_s23, %s5228_s19  ;;  %p6623_p1 = scmp.ne.s32.totalorder %s6618_s24, 0 }
  0xfa   : > { %s5233_s7 = scalar_lea.hbm %s6555_s0, 2048  ;;  %p5234_p0 = scmp.lt.u32.totalorder %s5764_s23, %s6555_s0 }
  0xfb   : > { %p5231_p2 = pnand %p5229_p3, %p6623_p1  ;;  %p5235_p8 = scmp.lt.u32.totalorder %s5233_s7, %s5228_s19 }
  0xfc   : > { %p5237_p10 = scmp.lt.u32.totalorder %s5228_s19, %s5764_s23 }
  0xfd   : > { %p5232_p6 = pneg %p5231_p2  ;;  %p5236_p4 = por %p5235_p8, %p5234_p0 }
  0xff   : > { %p5238_p7 = por %p5237_p10, %p5236_p4 }
 0x101   : > { %p5239_p12 = pnand %p5238_p7, %p5232_p6 }
 0x103   : > { %5242 = shalt.err (!%p5239_p12)
}
 0x104   : > { %s5243_s16 = scalar_lea.vmem %s5766_s3, 1024  ;;  %s5391_s10 = smov [#allocation2]  }
 0x105   : > { %p5244_p13 = scmp.ne.s32.totalorder %s5766_s3, %s5243_s16  ;;  %s5248_s30 = sshll.u32 %s5391_s10, 4  ;;  %s5249_s30 = int_to_ptr.vmem [resolvable:$false] %s5248_s30 }
 0x106   : > { %s5250_s18 = scalar_lea.vmem %s5249_s30, 2048  ;;  %p5251_p11 = scmp.lt.s32.totalorder %s5766_s3, %s5249_s30 }
 0x107   : > { %p5246_p5 = pnand %p5244_p13, %p6623_p1  ;;  %p5252_p3 = scmp.lt.s32.totalorder %s5250_s18, %s5243_s16 }
 0x109   : > { %p5247_p9 = pneg %p5246_p5  ;;  %p5253_p2 = por %p5252_p3, %p5251_p11 }
 0x10b   : > { %p5254_p0 = pnand %p5253_p2, %p5247_p9 }
 0x10d   : > { %5257 = shalt.err (!%p5254_p0)
}
 0x10e   : > { %p6624_p6 = scmp.ne.s32.totalorder %s6616_s17, 0  ;;  %s3925_s19 = sshll.u32 %s5374_s28, 9 }
 0x10f   : > { %s5800_s7 = scalar_lea.hbm %s6557_s2, %s3925_s19  ;;  %s515_s15 = scalar_lea.vmem [#allocation7], %s3866_s1 }
 0x110   : > { %4766 = dma.hbm_to_vmem [thread:$0]  (!%p6624_p6), %s5764_s23, 1024, %s5766_s3, %s469_s25, %s6622_s22, %s6622_s22, %s6621_s27  }
 0x111   : > { %s522_s11 = sshll.u32 %s515_s15, 4  ;;  %s5258_s16 = scalar_lea.hbm %s5800_s7, 512  ;;  %s5804_s11 = int_to_ptr.vmem [resolvable:$true] %s522_s11 }
 0x112   : > { %p5259_p8 = scmp.ne.s32.totalorder %s5800_s7, %s5258_s16  ;;  %s5263_s25 = scalar_lea.hbm %s6557_s2, 1024 }
 0x113   : > { %p5264_p7 = scmp.lt.u32.totalorder %s5800_s7, %s6557_s2  ;;  %p5265_p12 = scmp.lt.u32.totalorder %s5263_s25, %s5258_s16 }
 0x114   : > { %p5261_p4 = pnand %p5259_p8, %p6623_p1  ;;  %p5267_p5 = scmp.lt.u32.totalorder %s5258_s16, %s5800_s7 }
 0x115   : > { %p5266_p13 = por %p5265_p12, %p5264_p7 }
 0x116   : > { %p5262_p10 = pneg %p5261_p4 }
 0x117   : > { %p5268_p9 = por %p5267_p5, %p5266_p13 }
 0x119   : > { %p5269_p11 = pnand %p5268_p9, %p5262_p10 }
 0x11b   : > { %5272 = shalt.err (!%p5269_p11)
}
 0x11c   : > { %s5273_s21 = scalar_lea.vmem %s5804_s11, 512  ;;  %s5392_s1 = smov [#allocation7]  }
 0x11d   : > { %p5274_p3 = scmp.ne.s32.totalorder %s5804_s11, %s5273_s21  ;;  %s5278_s18 = sshll.u32 %s5392_s1, 4  ;;  %s5279_s18 = int_to_ptr.vmem [resolvable:$false] %s5278_s18 }
 0x11e   : > { %s5280_s19 = scalar_lea.vmem %s5279_s18, 1024  ;;  %p5281_p8 = scmp.lt.s32.totalorder %s5804_s11, %s5279_s18 }
 0x11f   : > { %p5276_p2 = pnand %p5274_p3, %p6623_p1  ;;  %p5282_p4 = scmp.lt.s32.totalorder %s5280_s19, %s5273_s21 }
 0x121   : > { %p5277_p0 = pneg %p5276_p2  ;;  %p5283_p7 = por %p5282_p4, %p5281_p8 }
 0x123   : > { %p5284_p12 = pnand %p5283_p7, %p5277_p0 }
 0x125   : > { %5287 = shalt.err (!%p5284_p12)
}
 0x126   : > { %4772 = dma.hbm_to_vmem [thread:$0]  (!%p6624_p6), %s5800_s7, 512, %s5804_s11, %s5644_s5, %s6622_s22, %s6622_s22, %s6621_s27  }
 0x127   : > { %s6625_s24 = sld [smem:[#allocation29_spill]] }
 0x12d   : > { %p6626_p1 = scmp.ne.s32.totalorder %s6625_s24, 0 }
 0x12e   : > { %s5834_s13 = sand.u32 (!%p6626_p1), 1, %s5366_s26   ;;  %p6627_p10 = scmp.ne.s32.totalorder (!%p6626_p1), %s6612_s20, 0 }
 0x12f   : > { %534 = sbr.rel (%p6626_p1) target bundleno = 3955 (0xf73), region = 72  ;;  %s3870_s12 = sshll.u32 (!%p6626_p1), %s5834_s13, 6 }
 0x130   : > { %s537_s15 = scalar_lea.sflag (!%p6626_p1), [#allocation3], %s5834_s13  ;;  %s5838_s16 = scalar_lea.vmem (!%p6626_p1), [#allocation2], %s3870_s12 }
 0x136   : > { %5333 = dma.done.wait (%p6627_p10), %s537_s15, 1024  }
 0x137   : > { %5335 = vsyncadd (%p6627_p10), %s537_s15, 4294966272  ;;  %s545_s5 = sand.u32 1, %s5488_s14   ;;  %s3871_s17 = sshll.u32 %s5834_s13, 2 }
 0x138   : > { %s546_s27 = scalar_lea.sflag [#allocation6], %s545_s5  ;;  %s5846_s22 = scalar_lea.vmem [#allocation5], %s3871_s17 }
 0x139   : > { %5337 = dma.done.wait (%p6627_p10), %s546_s27, 576  }
 0x13a   : > { %5339 = vsyncadd (%p6627_p10), %s546_s27, 4294966720  ;;  %s3872_s7 = sshll.u32 %s5834_s13, 5  ;;  %p6628_p6 = scmp.eq.s32.totalorder %s5488_s14, 0 }
 0x13b   : > { %s5855_s11 = scalar_lea.vmem [#allocation7], %s3872_s7 }
 0x13c   : > { %5341 = dma.done.wait (%p6628_p6), [#allocation9], 6144   ;;  %p6629_p13 = pmov %p6628_p6 }
 0x13d   : > { %p6630_p5 = pmov %p6628_p6 }
 0x13e   : > { %5343 = vsyncadd (%p6629_p13), [#allocation9], 4294961152 }
 0x13f   : > { %5345 = dma.done.wait (%p6630_p5), [#allocation12], 8192   ;;  %p6631_p9 = pmov %p6630_p5 }
 0x140   : > { %p6632_p11 = pmov %p6630_p5 }
 0x141   : > { %5347 = vsyncadd (%p6631_p9), [#allocation12], 4294959104 }
 0x142   : > { %5349 = dma.done.wait (%p6632_p11), [#allocation15], 4096   ;;  %p6633_p3 = pmov %p6630_p5 }
 0x144   : > { %5351 = vsyncadd (%p6633_p3), [#allocation15], 4294963200  ;;  %p6634_p2 = pmov %p6633_p3 }
 0x146   : > { %5353 = dma.done.wait (%p6634_p2), [#allocation18], 256   ;;  %p6635_p0 = pmov %p6634_p2 }
 0x147   : > { %v5393_v0 = vmov 0.0   ;;  %v772_v1 = vld [vmem:[#allocation10 + $0x8] sm:$0xff]  ;;  %v774_v2 = vld [vmem:[#allocation10 + $0x18] sm:$0xff]  ;;  %v771_v3 = vld [vmem:[#allocation10] sm:$0xff]  ;;  %s6636_s3 = sld [smem:[#allocation37_spill]]  ;;  %s6637_s30 = sld [smem:[#allocation39_spill]] }
 0x148   : > { %5355 = vsyncadd (%p6635_p0), [#allocation18], 4294967040  ;;  %878 = vmatprep.mubr.f32.mxu1 %v5393_v0  ;;  %v4481_v4 = vpack.c.bf16 %v774_v2, %v772_v1  ;;  %v773_v5 = vld [vmem:[#allocation10 + $0x10] sm:$0xff]  ;;  %v776_v6 = vld [vmem:[#allocation10 + $0x28] sm:$0xff]  ;;  %vm1339_vm0 = vcmask 130048   ;;  %s6638_s5 = sld [smem:[#allocation38_spill]] }
 0x149   : > { %v778_v7 = vld [vmem:[#allocation10 + $0x38] sm:$0xff]  ;;  %v4483_v8 = vpack.c.bf16 %v773_v5, %v771_v3  ;;  %v775_v10 = vld [vmem:[#allocation10 + $0x20] sm:$0xff]  ;;  %v777_v11 = vld [vmem:[#allocation10 + $0x30] sm:$0xff]  ;;  %vm2713_vm1 = vcmask 64512   ;;  %s638_s10 = scalar_lea.vmem [#allocation19], %s3872_s7  ;;  %s3926_s21 = sshll.u32 %s5488_s14, 9 }
 0x14a   : > { %v4485_v9 = vpack.c.bf16 %v778_v7, %v776_v6  ;;  %v780_v12 = vld [vmem:[#allocation10 + $0x48] sm:$0xff]  ;;  %4482 = vmatprep.subr.bf16.mxu1 %v4481_v4  ;;  %v782_v13 = vld [vmem:[#allocation10 + $0x58] sm:$0xff]  ;;  %v665_v14 = vld [vmem:[#allocation8] sm:$0xff]  ;;  %v4487_v16 = vpack.c.bf16 %v777_v11, %v775_v10  ;;  %s3666_s1 = sshll.u32 %s638_s10, 4  ;;  %s6639_s24 = sld [smem:[#allocation40_spill]]  ;;  %s6511_s1 = int_to_ptr.vmem [resolvable:$true] %s3666_s1 }
 0x14b   : > { %v666_v15 = vld [vmem:[#allocation8 + $0x8] sm:$0xff]  ;;  %4484 = vmatpush1.bf16.msra.mxu1 %v4483_v8  ;;  %v779_v18 = vld [vmem:[#allocation10 + $0x40] sm:$0xff]  ;;  %v4489_v19 = vpack.c.bf16 %v782_v13, %v780_v12  ;;  %v781_v20 = vld [vmem:[#allocation10 + $0x50] sm:$0xff]  ;;  %s3653_s7 = scalar_lea.sflag [#allocation4], %s5834_s13  ;;  %s5288_s15 = scalar_lea.vmem %s6511_s1, 512 }
 0x14c   : > { %v4449_v17 = vpack.c.bf16 %v666_v15, %v665_v14  ;;  %4486 = vmatprep.subr.bf16.mxu1 %v4485_v9  ;;  %v667_v21 = vld [vmem:[#allocation8 + $0x10] sm:$0xff]  ;;  %v668_v22 = vld [vmem:[#allocation8 + $0x18] sm:$0xff]  ;;  %v784_v23 = vld [vmem:[#allocation10 + $0x68] sm:$0xff]  ;;  %v4491_v28 = vpack.c.bf16 %v781_v20, %v779_v18  ;;  %p5289_p8 = scmp.ne.s32.totalorder %s6511_s1, %s5288_s15  ;;  %p6640_p4 = scmp.ne.s32.totalorder %s6613_s29, 0 }
 0x14d   : > { %v786_v24 = vld [vmem:[#allocation10 + $0x78] sm:$0xff]  ;;  %v4453_v25 = vpack.c.bf16 %v668_v22, %v667_v21  ;;  %v669_v26 = vld [vmem:[#allocation8 + $0x20] sm:$0xff]  ;;  %v670_v27 = vld [vmem:[#allocation8 + $0x28] sm:$0xff]  ;;  %v681_v22 = vlaneseq  ;;  %s5394_s14 = smov [#allocation19]  }
 0x14e   : > { %4450 = vmatprep.subr.bf16.mxu0 %v4449_v17  ;;  %v783_v29 = vld [vmem:[#allocation10 + $0x60] sm:$0xff]  ;;  %v4457_v30 = vpack.c.bf16 %v670_v27, %v669_v26  ;;  %v4493_v31 = vpack.c.bf16 %v786_v24, %v784_v23  ;;  %v785_v32 = vld [vmem:[#allocation10 + $0x70] sm:$0xff]  ;;  %v672_v34 = vld [vmem:[#allocation8 + $0x38] sm:$0xff]  ;;  %p5290_p7 = pnand %p5289_p8, %p6640_p4 }
 0x14f   : > { %4452 = vmatpush3.bf16.msra.mxu0 %v4449_v17  ;;  %4488 = vmatpush1.bf16.msra.mxu1 %v4487_v16  ;;  %v671_v33 = vld [vmem:[#allocation8 + $0x30] sm:$0xff]  ;;  %v788_v35 = vld [vmem:[#allocation10 + $0x88] sm:$0xff]  ;;  %v790_v36 = vld [vmem:[#allocation10 + $0x98] sm:$0xff]  ;;  %v4495_v37 = vpack.c.bf16 %v785_v32, %v783_v29  ;;  %v5899_v23 = vshrl.u32 %v681_v22, 7 }
 0x150   : > { %4454 = vmatprep.subr.bf16.mxu0 %v4453_v25  ;;  %4490 = vmatprep.subr.bf16.mxu1 %v4489_v19  ;;  %v787_v38 = vld [vmem:[#allocation10 + $0x80] sm:$0xff]  ;;  %v4461_v39 = vpack.c.bf16 %v672_v34, %v671_v33  ;;  %v4497_v40 = vpack.c.bf16 %v790_v36, %v788_v35  ;;  %v789_v41 = vld [vmem:[#allocation10 + $0x90] sm:$0xff]  ;;  %v674_v43 = vld [vmem:[#allocation8 + $0x48] sm:$0xff]  ;;  %s6509_s12 = scalar_lea.hbm %s6639_s24, %s3926_s21  ;;  %p5291_p12 = pneg %p5290_p7 }
 0x151   : > { %v673_v42 = vld [vmem:[#allocation8 + $0x40] sm:$0xff]  ;;  %v792_v44 = vld [vmem:[#allocation10 + $0xa8] sm:$0xff]  ;;  %v794_v45 = vld [vmem:[#allocation10 + $0xb8] sm:$0xff]  ;;  %v4499_v46 = vpack.c.bf16 %v789_v41, %v787_v38  ;;  %v5902_v24 = vsub.s32 0, %v5899_v23  ;;  %v5908_v26 = vsub.s32 1, %v5899_v23 }
 0x152   : > { %v791_v47 = vld [vmem:[#allocation10 + $0xa0] sm:$0xff]  ;;  %v4465_v48 = vpack.c.bf16 %v674_v43, %v673_v42  ;;  %v4501_v50 = vpack.c.bf16 %v794_v45, %v792_v44  ;;  %v793_v51 = vld [vmem:[#allocation10 + $0xb0] sm:$0xff]  ;;  %v676_v53 = vld [vmem:[#allocation8 + $0x58] sm:$0xff] }
 0x153   : > { %4456 = vmatpush3.bf16.msra.mxu0 %v4453_v25  ;;  %4492 = vmatpush1.bf16.msra.mxu1 %v4491_v28  ;;  %v649_v49 = vld [vmem:[%s5855_s11] sm:$0xff]  ;;  %v675_v52 = vld [vmem:[#allocation8 + $0x50] sm:$0xff]  ;;  %v796_v54 = vld [vmem:[#allocation10 + $0xc8] sm:$0xff]  ;;  %v4503_v56 = vpack.c.bf16 %v793_v51, %v791_v47 }
 0x154   : > { %4458 = vmatprep.subr.bf16.mxu0 %v4457_v30  ;;  %4494 = vmatprep.subr.bf16.mxu1 %v4493_v31  ;;  %v798_v55 = vld [vmem:[#allocation10 + $0xd8] sm:$0xff]  ;;  %v795_v57 = vld [vmem:[#allocation10 + $0xc0] sm:$0xff]  ;;  %v4469_v58 = vpack.c.bf16 %v676_v53, %v675_v52  ;;  %v797_v60 = vld [vmem:[#allocation10 + $0xd0] sm:$0xff] }
 0x155   : > { %4147 = vmatprep.mubr.f32.mxu0 %v649_v49  ;;  %v4505_v59 = vpack.c.bf16 %v798_v55, %v796_v54  ;;  %v677_v61 = vld [vmem:[#allocation8 + $0x60] sm:$0xff]  ;;  %v678_v62 = vld [vmem:[#allocation8 + $0x68] sm:$0xff]  ;;  %v802_v1 = vld [vmem:[#allocation10 + $0xf8] sm:$0xff]  ;;  %v4507_v2 = vpack.c.bf16 %v797_v60, %v795_v57 }
 0x156   : > { %v800_v63 = vld [vmem:[#allocation10 + $0xe8] sm:$0xff]  ;;  %v799_v3 = vld [vmem:[#allocation10 + $0xe0] sm:$0xff]  ;;  %v4473_v4 = vpack.c.bf16 %v678_v62, %v677_v61  ;;  %v801_v6 = vld [vmem:[#allocation10 + $0xf0] sm:$0xff] }
 0x157   : > { %4460 = vmatpush3.bf16.msra.mxu0 %v4457_v30  ;;  %4496 = vmatpush1.bf16.msra.mxu1 %v4495_v37  ;;  %v4509_v5 = vpack.c.bf16 %v802_v1, %v800_v63  ;;  %v679_v7 = vld [vmem:[#allocation8 + $0x70] sm:$0xff]  ;;  %v680_v8 = vld [vmem:[#allocation8 + $0x78] sm:$0xff]  ;;  %v4511_v9 = vpack.c.bf16 %v801_v6, %v799_v3  ;;  %v5877_v12 = vld [vmem:[%s5855_s11 + $0x8] sm:$0xff] }
 0x158   : > { %4462 = vmatprep.subr.bf16.mxu0 %v4461_v39  ;;  %4498 = vmatprep.subr.bf16.mxu1 %v4497_v40  ;;  %v4477_v10 = vpack.c.bf16 %v680_v8, %v679_v7  ;;  %v653_v11 = vld [vmem:[%s5838_s16] sm:$0xff]  ;;  %v654_v13 = vld [vmem:[%s5838_s16 + $0x8] sm:$0xff]  ;;  %v651_v14 = vld [vmem:[%s5855_s11 + $0x10] sm:$0xff] }
 0x159   : > { %v5884_v15 = vld [vmem:[%s5855_s11 + $0x18] sm:$0xff]  ;;  %v655_v16 = vld [vmem:[%s5838_s16 + $0x10] sm:$0xff]  ;;  %v656_v17 = vld [vmem:[%s5838_s16 + $0x18] sm:$0xff] }
 0x15a   : > { %v657_v18 = vld [vmem:[%s5838_s16 + $0x20] sm:$0xff]  ;;  %v658_v19 = vld [vmem:[%s5838_s16 + $0x28] sm:$0xff]  ;;  %v659_v20 = vld [vmem:[%s5838_s16 + $0x30] sm:$0xff] }
 0x15b   : > { %4464 = vmatpush3.bf16.msra.mxu0 %v4461_v39  ;;  %4500 = vmatpush1.bf16.msra.mxu1 %v4499_v46  ;;  %v660_v21 = vld [vmem:[%s5838_s16 + $0x38] sm:$0xff]  ;;  %v770_v25 = vld [vmem:[%s6636_s3] sm:$0x3]  ;;  %v5910_v27 = vld [vmem:[#allocation17] sm:$0xff]  ;;  %s5292_s16 = sshll.u32 %s5394_s14, 4  ;;  %s5293_s16 = int_to_ptr.vmem [resolvable:$false] %s5292_s16 }
 0x15c   : > { %4466 = vmatprep.subr.bf16.mxu0 %v4465_v48  ;;  %4502 = vmatprep.subr.bf16.mxu1 %v4501_v50  ;;  %v5913_v29 = vrot.slane %v770_v25, %v5902_v24  ;;  %v5917_v31 = vrot.slane %v5910_v27, %v5902_v24  ;;  %v5920_v32 = vrot.slane %v770_v25, %v5908_v26  ;;  %v5925_v36 = vld [vmem:[%s6637_s30] sm:$0xff]  ;;  %v5938_v50 = vld [vmem:[%s6637_s30 + $0x8] sm:$0xff]  ;;  %v5945_v55 = vld [vmem:[%s6637_s30 + $0x10] sm:$0xff]  ;;  %p5295_p1 = scmp.lt.s32.totalorder %s6511_s1, %s5293_s16 }
 0x15d   : > { %v5955_v1 = vld [vmem:[%s6637_s30 + $0x18] sm:$0xff] }
 0x15f   : > { %4468 = vmatpush3.bf16.msra.mxu0 %v4465_v48  ;;  %4504 = vmatpush1.bf16.msra.mxu1 %v4503_v56 }
 0x160   : > { %4470 = vmatprep.subr.bf16.mxu0 %v4469_v58  ;;  %4506 = vmatprep.subr.bf16.mxu1 %v4505_v59 }
 0x163   : > { %4472 = vmatpush3.bf16.msra.mxu0 %v4469_v58  ;;  %4508 = vmatpush1.bf16.msra.mxu1 %v4507_v2 }
 0x164   : > { %4474 = vmatprep.subr.bf16.mxu0 %v4473_v4  ;;  %4510 = vmatprep.subr.bf16.mxu1 %v4509_v5 }
 0x167   : > { %4476 = vmatpush3.bf16.msra.mxu0 %v4473_v4  ;;  %4512 = vmatpush1.bf16.msra.mxu1 %v4511_v9 }
 0x168   : > { %4478 = vmatprep.subr.bf16.mxu0 %v4477_v10 }
 0x16a   : > { %879 = vmatmul.mubr.f32.vlgmr.msra.gmra.mrb[0].mxu1 %v653_v11 }
 0x16b   : > { %4480 = vmatpush3.bf16.msra.mxu0 %v4477_v10  ;;  %884 = vmatprep.mubr.f32.mxu1 %v5393_v0 }
 0x16e   : > { %4148 = vmatmul.mubr.f32.vlgmr.msra.gmra.mrb[0].mxu0 %v5877_v12  ;;  %885 = vmatmul.mubr.f32.gmra.mrb[2].mxu1 %v654_v13 }
 0x16f   : > { %4150 = vmatprep.mubr.f32.mxu0 %v651_v14  ;;  %890 = vmatprep.mubr.f32.mxu1 %v5393_v0 }
 0x172   : > { %4151 = vmatmul.mubr.f32.gmra.mrb[2].mxu0 %v5884_v15  ;;  %891 = vmatmul.mubr.f32.gmra.mrb[4].mxu1 %v655_v16 }
 0x173   : > { %896 = vmatprep.mubr.f32.mxu1 %v5393_v0 }
 0x176   : > { %897 = vmatmul.mubr.f32.gmra.mrb[6].mxu1 %v656_v17 }
 0x177   : > { %902 = vmatprep.mubr.f32.mxu1 %v5393_v0 }
 0x17a   : > { %903 = vmatmul.mubr.f32.gmra.mrb[8].mxu1 %v657_v18 }
 0x17b   : > { %908 = vmatprep.mubr.f32.mxu1 %v5393_v0 }
 0x17e   : > { %909 = vmatmul.mubr.f32.gmra.mrb[10].mxu1 %v658_v19 }
 0x17f   : > { %914 = vmatprep.mubr.f32.mxu1 %v5393_v0 }
 0x182   : > { %915 = vmatmul.mubr.f32.gmra.mrb[12].mxu1 %v659_v20 }
 0x183   : > { %920 = vmatprep.mubr.f32.mxu1 %v5393_v0 }
 0x186   : > { %921 = vmatmul.mubr.f32.gmra.mrb[14].mxu1 %v660_v21 }
 0x23d   : > { %v880_v28 = vpop.f32.mrb[0].mxu1 }
 0x23e   : > { %v882_v30 = vpop.f32.mrb[1].mxu1  ;;  %v881_v37 = vadd.f32 %v880_v28, %v5913_v29 }
 0x23f   : > { %v883_v41 = vadd.f32 %v882_v30, %v5920_v32 }
 0x241   : > { %v4149_v33 = vpop.f32.mrb[0].mxu0  ;;  %v886_v34 = vpop.f32.mrb[2].mxu1 }
 0x242   : > { %v751_v35 = vpop.f32.mrb[1].mxu0  ;;  %v887_v38 = vadd.f32 %v886_v34, %v5913_v29  ;;  %v888_v39 = vpop.f32.mrb[3].mxu1  ;;  %v757_v60 = vadd.f32 %v4149_v33, %v5917_v31 }
 0x243   : > { %v752_v40 = vadd.f32 %v751_v35, %v5917_v31  ;;  %v889_v42 = vadd.f32 %v888_v39, %v5920_v32 }
 0x244   : > { %v4513_v43 = vpack.c.bf16 %v887_v38, %v881_v37  ;;  %v931_v6 = vmul.f32 %v757_v60, %v5925_v36  ;;  %v932_v13 = vmul.f32 %v757_v60, %v5938_v50  ;;  %v933_v18 = vmul.f32 %v757_v60, %v5945_v55 }
 0x245   : > { %v927_v44 = vmul.f32 %v752_v40, %v5925_v36  ;;  %v5933_v45 = vpop.f32.mrb[2].mxu0  ;;  %v4529_v46 = vpack.c.bf16 %v889_v42, %v883_v41  ;;  %v892_v47 = vpop.f32.mrb[4].mxu1  ;;  %v928_v58 = vmul.f32 %v752_v40, %v5938_v50  ;;  %v929_v63 = vmul.f32 %v752_v40, %v5945_v55 }
 0x246   : > { %v761_v48 = vpop.f32.mrb[3].mxu0  ;;  %v894_v49 = vpop.f32.mrb[5].mxu1  ;;  %4514 = vmatprep.subr.bf16.mxu0 %v4513_v43  ;;  %v893_v52 = vadd.f32 %v892_v47, %v5913_v29  ;;  %v930_v4 = vmul.f32 %v752_v40, %v5955_v1  ;;  %v934_v22 = vmul.f32 %v757_v60, %v5955_v1  ;;  %v767_v39 = vadd.f32 %v5933_v45, %v5917_v31 }
 0x247   : > { %4157 = vmatprep.mubr.f32.mxu0 %v927_v44  ;;  %4516 = vmatpush3.bf16.xpose.msra.mxu0 %v4513_v43  ;;  %v895_v56 = vadd.f32 %v894_v49, %v5920_v32  ;;  %v762_v11 = vadd.f32 %v761_v48, %v5917_v31  ;;  %v3881_v44 = vld [vmem:[%s5846_s22] ss:$0 sm:$0xff] }
 0x248   : > { %4530 = vmatprep.subr.bf16.mxu1 %v4529_v46  ;;  %v939_v41 = vmul.f32 %v767_v39, %v5925_v36  ;;  %v941_v42 = vmul.f32 %v767_v39, %v5945_v55  ;;  %v942_v31 = vmul.f32 %v767_v39, %v5955_v1 }
 0x249   : > { %4532 = vmatpush3.bf16.msra.mxu1 %v4529_v46  ;;  %v898_v51 = vpop.f32.mrb[6].mxu1  ;;  %v935_v20 = vmul.f32 %v762_v11, %v5925_v36  ;;  %v936_v28 = vmul.f32 %v762_v11, %v5938_v50  ;;  %v937_v37 = vmul.f32 %v762_v11, %v5945_v55 }
 0x24a   : > { %v899_v53 = vadd.f32 %v898_v51, %v5913_v29  ;;  %v900_v54 = vpop.f32.mrb[7].mxu1 }
 0x24b   : > { %v901_v57 = vadd.f32 %v900_v54, %v5920_v32 }
 0x24c   : > { %v4517_v59 = vpack.c.bf16 %v899_v53, %v893_v52 }
 0x24d   : > { %v4533_v61 = vpack.c.bf16 %v901_v57, %v895_v56  ;;  %v904_v62 = vpop.f32.mrb[8].mxu1 }
 0x24e   : > { %4158 = vmatmul.mubr.f32.vlgmr.msra.gmra.mrb[4].mxu0 %v928_v58  ;;  %4518 = vmatprep.subr.bf16.mxu0 %v4517_v59  ;;  %v906_v2 = vpop.f32.mrb[9].mxu1  ;;  %v905_v3 = vadd.f32 %v904_v62, %v5913_v29 }
 0x24f   : > { %4160 = vmatprep.mubr.f32.mxu0 %v929_v63  ;;  %4520 = vmatpush3.bf16.xpose.msra.mxu0 %v4517_v59  ;;  %v907_v9 = vadd.f32 %v906_v2, %v5920_v32  ;;  %v3882_v59 = vld [vmem:[%s5846_s22 + $0x1] ss:$0 sm:$0xff] }
 0x251   : > { %v910_v5 = vpop.f32.mrb[10].mxu1 }
 0x252   : > { %v911_v7 = vadd.f32 %v910_v5, %v5913_v29  ;;  %4161 = vmatmul.mubr.f32.gmra.mrb[6].mxu0 %v930_v4  ;;  %v912_v8 = vpop.f32.mrb[11].mxu1 }
 0x253   : > { %4167 = vmatprep.mubr.f32.mxu0 %v931_v6  ;;  %v913_v10 = vadd.f32 %v912_v8, %v5920_v32 }
 0x254   : > { %v4521_v14 = vpack.c.bf16 %v911_v7, %v905_v3 }
 0x255   : > { %v5965_v16 = vpack.c.bf16 %v913_v10, %v907_v9  ;;  %v916_v17 = vpop.f32.mrb[12].mxu1 }
 0x256   : > { %4168 = vmatmul.mubr.f32.vlgmr.msra.gmra.mrb[8].mxu0 %v932_v13  ;;  %4522 = vmatprep.subr.bf16.mxu0 %v4521_v14  ;;  %v918_v19 = vpop.f32.mrb[13].mxu1  ;;  %v917_v21 = vadd.f32 %v916_v17, %v5913_v29 }
 0x257   : > { %4170 = vmatprep.mubr.f32.mxu0 %v933_v18  ;;  %4524 = vmatpush3.bf16.xpose.msra.mxu0 %v4521_v14  ;;  %v919_v34 = vadd.f32 %v918_v19, %v5920_v32 }
 0x258   : > { %4538 = vmatprep.subr.bf16.mxu1 %v5965_v16 }
 0x259   : > { %v922_v25 = vpop.f32.mrb[14].mxu1 }
 0x25a   : > { %v923_v30 = vadd.f32 %v922_v25, %v5913_v29  ;;  %4171 = vmatmul.mubr.f32.gmra.mrb[10].mxu0 %v934_v22  ;;  %v924_v33 = vpop.f32.mrb[15].mxu1  ;;  %v938_v29 = vmul.f32 %v762_v11, %v5955_v1 }
 0x25b   : > { %4177 = vmatprep.mubr.f32.mxu0 %v935_v20  ;;  %v925_v35 = vadd.f32 %v924_v33, %v5920_v32  ;;  %v940_v32 = vmul.f32 %v767_v39, %v5938_v50 }
 0x25c   : > { %v4525_v38 = vpack.c.bf16 %v923_v30, %v917_v21  ;;  %v3883_v21 = vld [vmem:[%s5846_s22 + $0x2] ss:$0 sm:$0xff] }
 0x25d   : > { %v5979_v40 = vpack.c.bf16 %v925_v35, %v919_v34 }
 0x25e   : > { %4178 = vmatmul.mubr.f32.vlgmr.msra.gmra.mrb[12].mxu0 %v936_v28  ;;  %4526 = vmatprep.subr.bf16.mxu0 %v4525_v38 }
 0x25f   : > { %4528 = vmatpush3.bf16.xpose.msra.mxu0 %v4525_v38  ;;  %4180 = vmatprep.mubr.f32.mxu0 %v937_v37 }
 0x260   : > { %4534 = vmatprep.subr.bf16.mxu0 %v4533_v61 }
 0x262   : > { %4181 = vmatmul.mubr.f32.gmra.mrb[14].mxu0 %v938_v29 }
 0x263   : > { %4187 = vmatprep.mubr.f32.mxu0 %v939_v41 }
 0x266   : > { %4188 = vmatmul.mubr.f32.vlgmr.msra.gmra.mrb[16].mxu0 %v940_v32 }
 0x267   : > { %4190 = vmatprep.mubr.f32.mxu0 %v941_v42  ;;  %4536 = vmatpush3.bf16.msra.mxu0 %v4533_v61 }
 0x268   : > { %4542 = vmatprep.subr.bf16.mxu0 %v5979_v40 }
 0x26a   : > { %4191 = vmatmul.mubr.f32.gmra.mrb[18].mxu0 %v942_v31 }
 0x321   : > { %v4159_v43 = vpop.f32.mrb[4].mxu0 }
 0x322   : > { %v1284_v45 = vmul.f32 0.17677669, %v4159_v43  ;;  %v1009_v46 = vpop.f32.mrb[5].mxu0 }
 0x323   : > { %v1283_v47 = vmul.f32 0.17677669, %v1009_v46 }
 0x324   : > { %v5988_v48 = vadd.f32 %v3881_v44, %v1284_v45 }
 0x325   : > { %v4162_v49 = vpop.f32.mrb[6].mxu0  ;;  %v5992_v54 = vadd.f32 %v3881_v44, %v1283_v47 }
 0x326   : > { %v1286_v51 = vmul.f32 0.17677669, %v4162_v49  ;;  %v1019_v52 = vpop.f32.mrb[7].mxu0  ;;  %v1343_v53 = vsel %vm1339_vm0, %v5988_v48, -inf }
 0x327   : > { %v1285_v56 = vmul.f32 0.17677669, %v1019_v52  ;;  %1344 = vmax.xlane.f32.xlu0 %v1343_v53  ;;  %v1340_v62 = vsel %vm1339_vm0, %v5992_v54, -inf }
 0x328   : > { %v5994_v57 = vadd.f32 %v3881_v44, %v1286_v51 }
 0x329   : > { %v4169_v58 = vpop.f32.mrb[8].mxu0  ;;  %v6001_v2 = vadd.f32 %v3881_v44, %v1285_v56  ;;  %v3884_v44 = vld [vmem:[%s5846_s22 + $0x3] ss:$0 sm:$0xff] }
 0x32a   : > { %v1288_v60 = vmul.f32 0.17677669, %v4169_v58  ;;  %v1094_v61 = vpop.f32.mrb[9].mxu0  ;;  %v1349_v63 = vsel %vm1339_vm0, %v5994_v57, -inf }
 0x32b   : > { %v1287_v3 = vmul.f32 0.17677669, %v1094_v61  ;;  %1341 = vmax.xlane.f32.xlu0 %v1340_v62  ;;  %1350 = vmax.xlane.f32.xlu1 %v1349_v63  ;;  %v1346_v8 = vsel %vm1339_vm0, %v6001_v2, -inf }
 0x32c   : > { %v6003_v4 = vadd.f32 %v3882_v59, %v1288_v60 }
 0x32d   : > { %v4172_v5 = vpop.f32.mrb[10].mxu0  ;;  %v6009_v10 = vadd.f32 %v3882_v59, %v1287_v3 }
 0x32e   : > { %v1290_v6 = vmul.f32 0.17677669, %v4172_v5  ;;  %v1104_v7 = vpop.f32.mrb[11].mxu0  ;;  %v1355_v9 = vsel %vm1339_vm0, %v6003_v4, -inf }
 0x32f   : > { %v1289_v11 = vmul.f32 0.17677669, %v1104_v7  ;;  %1347 = vmax.xlane.f32.xlu0 %v1346_v8  ;;  %1356 = vmax.xlane.f32.xlu1 %v1355_v9  ;;  %v1352_v19 = vsel %vm1339_vm0, %v6009_v10, -inf }
 0x330   : > { %v6015_v20 = vadd.f32 %v3882_v59, %v1290_v6 }
 0x331   : > { %v4179_v13 = vpop.f32.mrb[12].mxu0  ;;  %v6011_v14 = vadd.f32 %v3882_v59, %v1289_v11 }
 0x332   : > { %v1292_v17 = vmul.f32 0.17677669, %v4179_v13  ;;  %v1179_v18 = vpop.f32.mrb[13].mxu0  ;;  %v1361_v35 = vsel %vm1339_vm0, %v6015_v20, -inf }
 0x333   : > { %v1291_v22 = vmul.f32 0.17677669, %v1179_v18  ;;  %1353 = vmax.xlane.f32.xlu1 %v1352_v19  ;;  %v1358_v25 = vsel %vm1339_vm0, %v6011_v14, -inf }
 0x334   : > { %1359 = vmax.xlane.f32.xlu0 %v1358_v25  ;;  %v6024_v37 = vadd.f32 %v3883_v21, %v1292_v17 }
 0x335   : > { %v4182_v28 = vpop.f32.mrb[14].mxu0  ;;  %v6020_v30 = vadd.f32 %v3883_v21, %v1291_v22 }
 0x336   : > { %v1294_v33 = vmul.f32 0.17677669, %v4182_v28  ;;  %v1189_v34 = vpop.f32.mrb[15].mxu0  ;;  %v1367_v31 = vsel %vm1339_vm0, %v6024_v37, -inf }
 0x337   : > { %v1293_v38 = vmul.f32 0.17677669, %v1189_v34  ;;  %1362 = vmax.xlane.f32.xlu1 %v1361_v35  ;;  %v1364_v39 = vsel %vm1339_vm0, %v6020_v30, -inf }
 0x338   : > { %1365 = vmax.xlane.f32.xlu0 %v1364_v39  ;;  %v6032_v43 = vadd.f32 %v3883_v21, %v1294_v33 }
 0x339   : > { %v4189_v29 = vpop.f32.mrb[16].mxu0  ;;  %v6028_v41 = vadd.f32 %v3883_v21, %v1293_v38 }
 0x33a   : > { %v1296_v32 = vmul.f32 0.17677669, %v4189_v29  ;;  %v1264_v42 = vpop.f32.mrb[17].mxu0  ;;  %v1373_v53 = vsel %vm1339_vm0, %v6032_v43, -inf }
 0x33b   : > { %v1295_v45 = vmul.f32 0.17677669, %v1264_v42  ;;  %1368 = vmax.xlane.f32.xlu1 %v1367_v31  ;;  %v1370_v46 = vsel %vm1339_vm0, %v6028_v41, -inf }
 0x33c   : > { %1371 = vmax.xlane.f32.xlu0 %v1370_v46  ;;  %v6041_v56 = vadd.f32 %v3884_v44, %v1296_v32 }
 0x33d   : > { %v4192_v47 = vpop.f32.mrb[18].mxu0  ;;  %v6037_v49 = vadd.f32 %v3884_v44, %v1295_v45 }
 0x33e   : > { %v1298_v51 = vmul.f32 0.17677669, %v4192_v47  ;;  %v1274_v52 = vpop.f32.mrb[19].mxu0  ;;  %v1379_v61 = vsel %vm1339_vm0, %v6041_v56, -inf }
 0x33f   : > { %v1297_v58 = vmul.f32 0.17677669, %v1274_v52  ;;  %1374 = vmax.xlane.f32.xlu1 %v1373_v53  ;;  %v1376_v59 = vsel %vm1339_vm0, %v6037_v49, -inf }
 0x340   : > { %1377 = vmax.xlane.f32.xlu0 %v1376_v59  ;;  %v6049_v62 = vadd.f32 %v3884_v44, %v1298_v51 }
 0x341   : > { %v6045_v60 = vadd.f32 %v3884_v44, %v1297_v58 }
 0x342   : > { %v1385_v3 = vsel %vm1339_vm0, %v6049_v62, -inf }
 0x343   : > { %1380 = vmax.xlane.f32.xlu1 %v1379_v61  ;;  %v1382_v63 = vsel %vm1339_vm0, %v6045_v60, -inf }
 0x344   : > { %1383 = vmax.xlane.f32.xlu0 %v1382_v63 }
 0x347   : > { %1386 = vmax.xlane.f32.xlu1 %v1385_v3 }
 0x3b4   : > { %v1345_v5 = vpop.xlane.xlu0 %1344 }
 0x3b5   : > { %v1389_v6 = vsub.f32 %v5988_v48, %v1345_v5 }
 0x3b7   : > { %v1406_v7 = vmul.f32 1.442695, %v1389_v6 }
 0x3b8   : > { %v1342_v8 = vpop.xlane.xlu0 %1341  ;;  %v1351_v9 = vpop.xlane.xlu1 %1350 }
 0x3b9   : > { %4842 = vpow2.f32 %v1406_v7  ;;  %v1388_v11 = vsub.f32 %v5992_v54, %v1342_v8  ;;  %v1391_v13 = vsub.f32 %v5994_v57, %v1351_v9 }
 0x3bb   : > { %v1404_v17 = vmul.f32 1.442695, %v1388_v11  ;;  %v1410_v18 = vmul.f32 1.442695, %v1391_v13 }
 0x3bc   : > { %v1348_v19 = vpop.xlane.xlu0 %1347  ;;  %v1357_v21 = vpop.xlane.xlu1 %1356 }
 0x3bd   : > { %4844 = vpow2.f32 %v1404_v17  ;;  %v1390_v22 = vsub.f32 %v6001_v2, %v1348_v19  ;;  %v1393_v25 = vsub.f32 %v6003_v4, %v1357_v21 }
 0x3be   : > { %4846 = vpow2.f32 %v1410_v18 }
 0x3bf   : > { %v1408_v28 = vmul.f32 1.442695, %v1390_v22  ;;  %v1414_v48 = vmul.f32 1.442695, %v1393_v25 }
 0x3c0   : > { %v1354_v33 = vpop.xlane.xlu1 %1353 }
 0x3c1   : > { %4848 = vpow2.f32 %v1408_v28  ;;  %v1392_v34 = vsub.f32 %v6009_v10, %v1354_v33  ;;  %v1360_v35 = vpop.xlane.xlu0 %1359 }
 0x3c2   : > { %4850 = vpow2.f32 %v1414_v48  ;;  %v1394_v54 = vsub.f32 %v6011_v14, %v1360_v35 }
 0x3c3   : > { %v6062_v57 = vpop.eup %4842  ;;  %v1412_v38 = vmul.f32 1.442695, %v1392_v34 }
 0x3c4   : > { %v1416_v39 = vmul.f32 1.442695, %v1394_v54  ;;  %v1363_v29 = vpop.xlane.xlu1 %1362  ;;  %v1439_v2 = vsel %vm1339_vm0, %v6062_v57, 0.0 }
 0x3c5   : > { %4852 = vpow2.f32 %v1412_v38  ;;  %v1395_v4 = vsub.f32 %v6015_v20, %v1363_v29  ;;  %v1366_v32 = vpop.xlane.xlu0 %1365  ;;  %1440 = vadd.xlane.f32.xlu1 %v1439_v2 }
 0x3c6   : > { %v1396_v42 = vsub.f32 %v6020_v30, %v1366_v32  ;;  %4854 = vpow2.f32 %v1416_v39 }
 0x3c7   : > { %v6068_v10 = vpop.eup %4844  ;;  %v1418_v31 = vmul.f32 1.442695, %v1395_v4 }
 0x3c8   : > { %v6070_v14 = vpop.eup %4846  ;;  %v1420_v44 = vmul.f32 1.442695, %v1396_v42  ;;  %v1369_v45 = vpop.xlane.xlu1 %1368  ;;  %v1436_v46 = vsel %vm1339_vm0, %v6068_v10, 0.0 }
 0x3c9   : > { %4856 = vpow2.f32 %v1418_v31  ;;  %v1397_v47 = vsub.f32 %v6024_v37, %v1369_v45  ;;  %v1372_v51 = vpop.xlane.xlu0 %1371  ;;  %v1445_v20 = vsel %vm1339_vm0, %v6070_v14, 0.0  ;;  %1437 = vadd.xlane.f32.xlu0 %v1436_v46 }
 0x3ca   : > { %v1398_v30 = vsub.f32 %v6028_v41, %v1372_v51  ;;  %1446 = vadd.xlane.f32.xlu1 %v1445_v20  ;;  %4858 = vpow2.f32 %v1420_v44 }
 0x3cb   : > { %v6078_v52 = vpop.eup %4848  ;;  %v1422_v53 = vmul.f32 1.442695, %v1397_v47 }
 0x3cc   : > { %v6080_v58 = vpop.eup %4850  ;;  %v1424_v59 = vmul.f32 1.442695, %v1398_v30  ;;  %v1375_v61 = vpop.xlane.xlu1 %1374  ;;  %v1442_v63 = vsel %vm1339_vm0, %v6078_v52, 0.0 }
 0x3cd   : > { %4860 = vpow2.f32 %v1422_v53  ;;  %v1399_v37 = vsub.f32 %v6032_v43, %v1375_v61  ;;  %v1378_v3 = vpop.xlane.xlu0 %1377  ;;  %v1451_v5 = vsel %vm1339_vm0, %v6080_v58, 0.0  ;;  %1443 = vadd.xlane.f32.xlu0 %v1442_v63  ;;  %v1932_v61 = vld [vmem:[#allocation11] sm:$0xff]  ;;  %v1933_v63 = vld [vmem:[#allocation11 + $0x8] sm:$0xff] }
 0x3ce   : > { %v1400_v41 = vsub.f32 %v6037_v49, %v1378_v3  ;;  %1452 = vadd.xlane.f32.xlu1 %v1451_v5  ;;  %4862 = vpow2.f32 %v1424_v59 }
 0x3cf   : > { %v6088_v6 = vpop.eup %4852  ;;  %v1426_v7 = vmul.f32 1.442695, %v1399_v37 }
 0x3d0   : > { %v1428_v8 = vmul.f32 1.442695, %v1400_v41  ;;  %v1381_v9 = vpop.xlane.xlu1 %1380  ;;  %v1448_v11 = vsel %vm1339_vm0, %v6088_v6, 0.0  ;;  %v6092_v13 = vpop.eup %4854 }
 0x3d1   : > { %4864 = vpow2.f32 %v1426_v7  ;;  %v1401_v43 = vsub.f32 %v6041_v56, %v1381_v9  ;;  %1449 = vadd.xlane.f32.xlu0 %v1448_v11  ;;  %v1384_v17 = vpop.xlane.xlu0 %1383  ;;  %v1454_v28 = vsel %vm1339_vm0, %v6092_v13, 0.0 }
 0x3d2   : > { %v1402_v18 = vsub.f32 %v6045_v60, %v1384_v17  ;;  %4866 = vpow2.f32 %v1428_v8  ;;  %v4545_v8 = vpack.c.bf16 %v1933_v63, %v1932_v61 }
 0x3d3   : > { %v6096_v49 = vpop.eup %4856  ;;  %v1430_v19 = vmul.f32 1.442695, %v1401_v43 }
 0x3d4   : > { %v1432_v21 = vmul.f32 1.442695, %v1402_v18  ;;  %v1387_v22 = vpop.xlane.xlu1 %1386  ;;  %v1457_v25 = vsel %vm1339_vm0, %v6096_v49, 0.0  ;;  %v6102_v48 = vpop.eup %4858 }
 0x3d5   : > { %4868 = vpow2.f32 %v1430_v19  ;;  %v1403_v56 = vsub.f32 %v6049_v62, %v1387_v22  ;;  %1458 = vadd.xlane.f32.xlu1 %v1457_v25  ;;  %1455 = vadd.xlane.f32.xlu0 %v1454_v28  ;;  %v1460_v35 = vsel %vm1339_vm0, %v6102_v48, 0.0 }
 0x3d6   : > { %4870 = vpow2.f32 %v1432_v21 }
 0x3d7   : > { %v6105_v60 = vpop.eup %4860  ;;  %v1434_v33 = vmul.f32 1.442695, %v1403_v56 }
 0x3d8   : > { %v1463_v34 = vsel %vm1339_vm0, %v6105_v60, 0.0  ;;  %v6111_v54 = vpop.eup %4862 }
 0x3d9   : > { %4872 = vpow2.f32 %v1434_v33  ;;  %1464 = vadd.xlane.f32.xlu1 %v1463_v34  ;;  %1461 = vadd.xlane.f32.xlu0 %v1460_v35  ;;  %v1466_v39 = vsel %vm1339_vm0, %v6111_v54, 0.0  ;;  %v1935_v35 = vld [vmem:[#allocation11 + $0x18] sm:$0xff] }
 0x3db   : > { %v6113_v38 = vpop.eup %4864 }
 0x3dc   : > { %v1469_v62 = vsel %vm1339_vm0, %v6113_v38, 0.0  ;;  %v6119_v29 = vpop.eup %4866 }
 0x3dd   : > { %1470 = vadd.xlane.f32.xlu1 %v1469_v62  ;;  %1467 = vadd.xlane.f32.xlu0 %v1466_v39  ;;  %v1472_v32 = vsel %vm1339_vm0, %v6119_v29, 0.0 }
 0x3df   : > { %v6121_v2 = vpop.eup %4868 }
 0x3e0   : > { %v1475_v4 = vsel %vm1339_vm0, %v6121_v2, 0.0  ;;  %v6127_v42 = vpop.eup %4870 }
 0x3e1   : > { %1476 = vadd.xlane.f32.xlu1 %v1475_v4  ;;  %1473 = vadd.xlane.f32.xlu0 %v1472_v32  ;;  %v1478_v45 = vsel %vm1339_vm0, %v6127_v42, 0.0 }
 0x3e3   : > { %v6129_v31 = vpop.eup %4872 }
 0x3e4   : > { %v1481_v44 = vsel %vm1339_vm0, %v6129_v31, 0.0 }
 0x3e5   : > { %1482 = vadd.xlane.f32.xlu1 %v1481_v44  ;;  %1479 = vadd.xlane.f32.xlu0 %v1478_v45  ;;  %v1937_v45 = vld [vmem:[#allocation11 + $0x28] sm:$0xff] }
 0x452   : > { %v1441_v46 = vpop.xlane.xlu1 %1440 }
 0x453   : > { %4874 = vrcp.f32 %v1441_v46 }
 0x456   : > { %v1438_v47 = vpop.xlane.xlu0 %1437 }
 0x457   : > { %v1447_v51 = vpop.xlane.xlu1 %1446  ;;  %4876 = vrcp.f32 %v1438_v47 }
 0x458   : > { %4878 = vrcp.f32 %v1447_v51 }
 0x45a   : > { %v1444_v20 = vpop.xlane.xlu0 %1443 }
 0x45b   : > { %v1453_v30 = vpop.xlane.xlu1 %1452  ;;  %4880 = vrcp.f32 %v1444_v20 }
 0x45c   : > { %4882 = vrcp.f32 %v1453_v30 }
 0x45d   : > { %v4875_v59 = vpop.eup %4874 }
 0x45e   : > { %v1450_v53 = vpop.xlane.xlu0 %1449  ;;  %v1501_v7 = vmul.f32 %v4875_v59, %v6062_v57 }
 0x45f   : > { %4884 = vrcp.f32 %v1450_v53 }
 0x461   : > { %v4877_v37 = vpop.eup %4876 }
 0x462   : > { %v1459_v3 = vpop.xlane.xlu1 %1458  ;;  %v1456_v5 = vpop.xlane.xlu0 %1455  ;;  %v1500_v41 = vmul.f32 %v4877_v37, %v6068_v10  ;;  %v1940_v37 = vld [vmem:[#allocation11 + $0x40] sm:$0xff] }
 0x463   : > { %4886 = vrcp.f32 %v1459_v3  ;;  %v4879_v9 = vpop.eup %4878  ;;  %v1941_v3 = vld [vmem:[#allocation11 + $0x48] sm:$0xff] }
 0x464   : > { %4888 = vrcp.f32 %v1456_v5  ;;  %4197 = vmatprep.mubr.msk.f32.mxu1 %vm1339_vm0, %v1500_v41  ;;  %v1503_v10 = vmul.f32 %v4879_v9, %v6070_v14  ;;  %v4561_v5 = vpack.c.bf16 %v1941_v3, %v1940_v37  ;;  %v1943_v41 = vld [vmem:[#allocation11 + $0x58] sm:$0xff] }
 0x465   : > { %v4881_v11 = vpop.eup %4880  ;;  %4198 = vmatmul.mubr.msk.f32.vlgmr.msra.gmra.mrb[16].mxu1 %vm1339_vm0, %v1501_v7  ;;  %v1944_v7 = vld [vmem:[#allocation11 + $0x60] sm:$0xff] }
 0x466   : > { %4540 = vmatpush3.bf16.msra.mxu1 %v5965_v16  ;;  %v1465_v43 = vpop.xlane.xlu1 %1464  ;;  %v1462_v17 = vpop.xlane.xlu0 %1461  ;;  %v1502_v18 = vmul.f32 %v4881_v11, %v6078_v52  ;;  %v1946_v11 = vld [vmem:[#allocation11 + $0x70] sm:$0xff] }
 0x467   : > { %4890 = vrcp.f32 %v1465_v43  ;;  %4546 = vmatprep.subr.bf16.mxu1 %v4545_v8  ;;  %v4883_v57 = vpop.eup %4882  ;;  %v1947_v43 = vld [vmem:[#allocation11 + $0x78] sm:$0xff] }
 0x468   : > { %4892 = vrcp.f32 %v1462_v17  ;;  %4200 = vmatprep.mubr.msk.f32.mxu1 %vm1339_vm0, %v1502_v18  ;;  %v1505_v16 = vmul.f32 %v4883_v57, %v6080_v58  ;;  %v1934_v58 = vld [vmem:[#allocation11 + $0x10] sm:$0xff]  ;;  %v4573_v17 = vpack.c.bf16 %v1947_v43, %v1946_v11 }
 0x469   : > { %v4885_v19 = vpop.eup %4884  ;;  %4201 = vmatmul.mubr.msk.f32.gmra.mrb[18].mxu1 %vm1339_vm0, %v1503_v10 }
 0x46a   : > { %v1471_v21 = vpop.xlane.xlu1 %1470  ;;  %v1468_v22 = vpop.xlane.xlu0 %1467  ;;  %v1504_v25 = vmul.f32 %v4885_v19, %v6088_v6 }
 0x46b   : > { %4894 = vrcp.f32 %v1471_v21 }
 0x46c   : > { %4896 = vrcp.f32 %v1468_v22  ;;  %4207 = vmatprep.mubr.msk.f32.mxu0 %vm1339_vm0, %v1504_v25 }
 0x46d   : > { %v4887_v52 = vpop.eup %4886  ;;  %4208 = vmatmul.mubr.msk.f32.vlgmr.msra.gmra.mrb[20].mxu0 %vm1339_vm0, %v1505_v16 }
 0x46e   : > { %v4889_v14 = vpop.eup %4888  ;;  %4544 = vmatpush3.bf16.msra.mxu0 %v5979_v40  ;;  %v1477_v28 = vpop.xlane.xlu1 %1476  ;;  %v1507_v33 = vmul.f32 %v4887_v52, %v6096_v49  ;;  %v4549_v49 = vpack.c.bf16 %v1935_v35, %v1934_v58 }
 0x46f   : > { %v1474_v56 = vpop.xlane.xlu0 %1473  ;;  %4898 = vrcp.f32 %v1477_v28  ;;  %v1506_v34 = vmul.f32 %v4889_v14, %v6092_v13  ;;  %v1936_v13 = vld [vmem:[#allocation11 + $0x20] sm:$0xff] }
 0x470   : > { %4900 = vrcp.f32 %v1474_v56  ;;  %v4553_v51 = vpack.c.bf16 %v1937_v45, %v1936_v13 }
 0x471   : > { %v4891_v6 = vpop.eup %4890  ;;  %4210 = vmatprep.mubr.msk.f32.mxu0 %vm1339_vm0, %v1506_v34 }
 0x472   : > { %v4893_v62 = vpop.eup %4892  ;;  %v1509_v39 = vmul.f32 %v4891_v6, %v6105_v60  ;;  %4211 = vmatmul.mubr.msk.f32.gmra.mrb[22].mxu0 %vm1339_vm0, %v1507_v33  ;;  %v1483_v4 = vpop.xlane.xlu1 %1482 }
 0x473   : > { %v1480_v40 = vpop.xlane.xlu0 %1479  ;;  %4902 = vrcp.f32 %v1483_v4  ;;  %v1508_v32 = vmul.f32 %v4893_v62, %v6102_v48 }
 0x474   : > { %4904 = vrcp.f32 %v1480_v40 }
 0x475   : > { %v4895_v44 = vpop.eup %4894  ;;  %4217 = vmatprep.mubr.msk.f32.mxu1 %vm1339_vm0, %v1508_v32 }
 0x476   : > { %v4897_v46 = vpop.eup %4896  ;;  %4218 = vmatmul.mubr.msk.f32.vlgmr.msra.gmra.mrb[20].mxu1 %vm1339_vm0, %v1509_v39  ;;  %v1511_v47 = vmul.f32 %v4895_v44, %v6113_v38 }
 0x477   : > { %v1510_v60 = vmul.f32 %v4897_v46, %v6111_v54  ;;  %4548 = vmatpush3.bf16.msra.mxu1 %v4545_v8  ;;  %v1945_v8 = vld [vmem:[#allocation11 + $0x68] sm:$0xff] }
 0x478   : > { %4550 = vmatprep.subr.bf16.mxu1 %v4549_v49  ;;  %v4569_v9 = vpack.c.bf16 %v1945_v8, %v1944_v7  ;;  %v4994_v8 = vld [vmem:[%s5855_s11] sm:$0xff] }
 0x479   : > { %v4899_v20 = vpop.eup %4898  ;;  %4220 = vmatprep.mubr.msk.f32.mxu1 %vm1339_vm0, %v1510_v60 }
 0x47a   : > { %v4901_v48 = vpop.eup %4900  ;;  %v1513_v30 = vmul.f32 %v4899_v20, %v6121_v2  ;;  %4221 = vmatmul.mubr.msk.f32.gmra.mrb[22].mxu1 %vm1339_vm0, %v1511_v47  ;;  %v1939_v2 = vld [vmem:[#allocation11 + $0x38] sm:$0xff] }
 0x47b   : > { %v1512_v53 = vmul.f32 %v4901_v48, %v6119_v29  ;;  %4552 = vmatpush3.bf16.msra.mxu1 %v4549_v49  ;;  %v1938_v29 = vld [vmem:[#allocation11 + $0x30] sm:$0xff] }
 0x47c   : > { %4554 = vmatprep.subr.bf16.mxu1 %v4553_v51  ;;  %v4557_v63 = vpack.c.bf16 %v1939_v2, %v1938_v29 }
 0x47d   : > { %v4903_v59 = vpop.eup %4902  ;;  %4227 = vmatprep.mubr.msk.f32.mxu0 %vm1339_vm0, %v1512_v53 }
 0x47e   : > { %v4905_v38 = vpop.eup %4904  ;;  %4228 = vmatmul.mubr.msk.f32.vlgmr.msra.gmra.mrb[24].mxu0 %vm1339_vm0, %v1513_v30  ;;  %v1515_v54 = vmul.f32 %v4903_v59, %v6129_v31  ;;  %v1942_v31 = vld [vmem:[#allocation11 + $0x50] sm:$0xff] }
 0x47f   : > { %v1514_v61 = vmul.f32 %v4905_v38, %v6127_v42  ;;  %4556 = vmatpush3.bf16.msra.mxu1 %v4553_v51  ;;  %v4565_v42 = vpack.c.bf16 %v1943_v41, %v1942_v31 }
 0x480   : > { %4558 = vmatprep.subr.bf16.mxu1 %v4557_v63 }
 0x481   : > { %4230 = vmatprep.mubr.msk.f32.mxu0 %vm1339_vm0, %v1514_v61 }
 0x482   : > { %4231 = vmatmul.mubr.msk.f32.gmra.mrb[26].mxu0 %vm1339_vm0, %v1515_v54 }
 0x483   : > { %2231 = vmatprep.mubr.f32.mxu0 %v5393_v0  ;;  %4560 = vmatpush3.bf16.msra.mxu1 %v4557_v63 }
 0x484   : > { %4562 = vmatprep.subr.bf16.mxu1 %v4561_v5 }
 0x487   : > { %4564 = vmatpush3.bf16.msra.mxu1 %v4561_v5 }
 0x488   : > { %4566 = vmatprep.subr.bf16.mxu1 %v4565_v42 }
 0x48b   : > { %4568 = vmatpush3.bf16.msra.mxu1 %v4565_v42 }
 0x48c   : > { %4570 = vmatprep.subr.bf16.mxu1 %v4569_v9 }
 0x48f   : > { %4572 = vmatpush3.bf16.msra.mxu1 %v4569_v9 }
 0x490   : > { %4574 = vmatprep.subr.bf16.mxu1 %v4573_v17 }
 0x493   : > { %4576 = vmatpush3.bf16.msra.mxu1 %v4573_v17 }
 0x538   : > { %v4199_v18 = vpop.f32.mrb[16].mxu1 }
 0x539   : > { %v1905_v10 = vmul.f32 %v4199_v18, %v5938_v50  ;;  %v1594_v57 = vpop.f32.mrb[17].mxu1  ;;  %v4995_v18 = vld [vmem:[%s5855_s11 + $0x10] sm:$0xff] }
 0x53a   : > { %v1904_v19 = vmul.f32 %v1594_v57, %v5925_v36  ;;  %v2107_v57 = vld [vmem:[#allocation13 + $0x20] sm:$0xff] }
 0x53c   : > { %v1920_v21 = vadd.f32 %v1905_v10, %v1904_v19  ;;  %v4202_v22 = vpop.f32.mrb[18].mxu1  ;;  %v2103_v19 = vld [vmem:[#allocation13] sm:$0xff] }
 0x53d   : > { %v1604_v25 = vpop.f32.mrb[19].mxu1  ;;  %v1907_v52 = vmul.f32 %v4202_v22, %v5955_v1  ;;  %v2106_v22 = vld [vmem:[#allocation13 + $0x18] sm:$0xff] }
 0x53e   : > { %v1906_v16 = vmul.f32 %v1604_v25, %v5945_v55  ;;  %v2108_v25 = vld [vmem:[#allocation13 + $0x28] sm:$0xff] }
 0x540   : > { %v1921_v14 = vadd.f32 %v1920_v21, %v1906_v16  ;;  %v4209_v28 = vpop.f32.mrb[20].mxu0  ;;  %v4579_v16 = vpack.c.bf16 %v2106_v22, %v2103_v19  ;;  %v2137_v19 = vld [vmem:[#allocation13 + $0x110] sm:$0xff] }
 0x541   : > { %v1909_v56 = vmul.f32 %v4209_v28, %v5938_v50  ;;  %v1691_v33 = vpop.f32.mrb[21].mxu0  ;;  %v2113_v28 = vld [vmem:[#allocation13 + $0x50] sm:$0xff] }
 0x542   : > { %v1908_v34 = vmul.f32 %v1691_v33, %v5925_v36  ;;  %v1922_v6 = vadd.f32 %v1921_v14, %v1907_v52  ;;  %v2110_v14 = vld [vmem:[#allocation13 + $0x38] sm:$0xff]  ;;  %v2133_v22 = vld [vmem:[#allocation13 + $0xf0] sm:$0xff] }
 0x543   : > { %v4581_v33 = vpack.c.bf16 %v2113_v28, %v2110_v14  ;;  %v2140_v28 = vld [vmem:[#allocation13 + $0x128] sm:$0xff] }
 0x544   : > { %v1923_v58 = vadd.f32 %v1909_v56, %v1908_v34  ;;  %4265 = vmatprep.mubr.f32.mxu1 %v1922_v6  ;;  %v2109_v56 = vld [vmem:[#allocation13 + $0x30] sm:$0xff]  ;;  %v2112_v34 = vld [vmem:[#allocation13 + $0x48] sm:$0xff]  ;;  %v2114_v6 = vld [vmem:[#allocation13 + $0x58] sm:$0xff] }
 0x545   : > { %v4212_v35 = vpop.f32.mrb[22].mxu0 }
 0x546   : > { %v1701_v62 = vpop.f32.mrb[23].mxu0  ;;  %v1911_v4 = vmul.f32 %v4212_v35, %v5955_v1 }
 0x547   : > { %v1910_v39 = vmul.f32 %v1701_v62, %v5945_v55  ;;  %v2116_v62 = vld [vmem:[#allocation13 + $0x68] sm:$0xff] }
 0x549   : > { %v1924_v40 = vadd.f32 %v1923_v58, %v1910_v39  ;;  %v4219_v32 = vpop.f32.mrb[20].mxu1  ;;  %v4583_v58 = vpack.c.bf16 %v2112_v34, %v2109_v56  ;;  %v2119_v39 = vld [vmem:[#allocation13 + $0x80] sm:$0xff] }
 0x54a   : > { %v1913_v49 = vmul.f32 %v4219_v32, %v5938_v50  ;;  %v1788_v44 = vpop.f32.mrb[21].mxu1  ;;  %v2118_v32 = vld [vmem:[#allocation13 + $0x78] sm:$0xff]  ;;  %v2143_v56 = vld [vmem:[#allocation13 + $0x140] sm:$0xff] }
 0x54b   : > { %v1925_v13 = vadd.f32 %v1924_v40, %v1911_v4  ;;  %v1912_v45 = vmul.f32 %v1788_v44, %v5925_v36  ;;  %v2115_v4 = vld [vmem:[#allocation13 + $0x60] sm:$0xff]  ;;  %v4585_v40 = vpack.c.bf16 %v2119_v39, %v2116_v62  ;;  %v2120_v44 = vld [vmem:[#allocation13 + $0x88] sm:$0xff]  ;;  %v2146_v39 = vld [vmem:[#allocation13 + $0x158] sm:$0xff] }
 0x54c   : > { %v2139_v34 = vld [vmem:[#allocation13 + $0x120] sm:$0xff] }
 0x54d   : > { %v1926_v46 = vadd.f32 %v1913_v49, %v1912_v45  ;;  %v4222_v47 = vpop.f32.mrb[22].mxu1  ;;  %4266 = vmatmul.mubr.f32.vlgmr.msra.gmra.mrb[24].mxu1 %v1925_v13  ;;  %v2117_v49 = vld [vmem:[#allocation13 + $0x70] sm:$0xff]  ;;  %v4587_v45 = vpack.c.bf16 %v2118_v32, %v2115_v4 }
 0x54e   : > { %v1798_v60 = vpop.f32.mrb[23].mxu1  ;;  %v1915_v20 = vmul.f32 %v4222_v47, %v5955_v1  ;;  %v4617_v13 = vpack.c.bf16 %v2120_v44, %v2117_v49  ;;  %v2149_v4 = vld [vmem:[#allocation13 + $0x170] sm:$0xff]  ;;  %v2148_v49 = vld [vmem:[#allocation13 + $0x168] sm:$0xff]  ;;  %v2147_v44 = vld [vmem:[#allocation13 + $0x160] sm:$0xff] }
 0x54f   : > { %v1914_v51 = vmul.f32 %v1798_v60, %v5945_v55  ;;  %v2145_v32 = vld [vmem:[#allocation13 + $0x150] sm:$0xff] }
 0x551   : > { %v1927_v48 = vadd.f32 %v1926_v46, %v1914_v51  ;;  %v4229_v30 = vpop.f32.mrb[24].mxu0 }
 0x552   : > { %v1917_v53 = vmul.f32 %v4229_v30, %v5938_v50  ;;  %v1885_v59 = vpop.f32.mrb[25].mxu0  ;;  %v1951_v50 = vrot.slane %v5910_v27, %v5908_v26  ;;  %v2104_v27 = vld [vmem:[#allocation13 + $0x8] sm:$0xff] }
 0x553   : > { %v1916_v38 = vmul.f32 %v1885_v59, %v5925_v36  ;;  %v1928_v54 = vadd.f32 %v1927_v48, %v1915_v20  ;;  %v4577_v21 = vpack.c.bf16 %v2107_v57, %v2104_v27  ;;  %v2134_v57 = vld [vmem:[#allocation13 + $0xf8] sm:$0xff] }
 0x555   : > { %v1929_v61 = vadd.f32 %v1917_v53, %v1916_v38  ;;  %v4232_v29 = vpop.f32.mrb[26].mxu0  ;;  %4268 = vmatprep.mubr.f32.mxu1 %v1928_v54  ;;  %4578 = vmatprep.subr.bf16.mxu0 %v4577_v21  ;;  %v4597_v21 = vpack.c.bf16 %v2137_v19, %v2134_v57 }
 0x556   : > { %v1895_v2 = vpop.f32.mrb[27].mxu0  ;;  %v1919_v37 = vmul.f32 %v4232_v29, %v5955_v1  ;;  %4580 = vmatpush1.bf16.msra.mxu0 %v4579_v16 }
 0x557   : > { %v1918_v63 = vmul.f32 %v1895_v2, %v5945_v55  ;;  %4582 = vmatprep.subr.bf16.mxu0 %v4581_v33  ;;  %v4601_v33 = vpack.c.bf16 %v2143_v56, %v2140_v28 }
 0x559   : > { %v1930_v3 = vadd.f32 %v1929_v61, %v1918_v63  ;;  %v2122_v63 = vld [vmem:[#allocation13 + $0x98] sm:$0xff] }
 0x55a   : > { %4584 = vmatpush1.bf16.msra.mxu0 %v4583_v58 }
 0x55b   : > { %v1931_v5 = vadd.f32 %v1930_v3, %v1919_v37  ;;  %4586 = vmatprep.subr.bf16.mxu0 %v4585_v40  ;;  %v2125_v37 = vld [vmem:[#allocation13 + $0xb0] sm:$0xff]  ;;  %v4605_v40 = vpack.c.bf16 %v2149_v4, %v2146_v39 }
 0x55c   : > { %v6265_v39 = vld [vmem:[%s6637_s30 + $0x18] sm:$0xff] }
 0x55d   : > { %4269 = vmatmul.mubr.f32.gmra.mrb[26].mxu1 %v1931_v5  ;;  %v4589_v5 = vpack.c.bf16 %v2125_v37, %v2122_v63 }
 0x55e   : > { %4588 = vmatpush1.bf16.msra.mxu0 %v4587_v45  ;;  %v2150_v45 = vld [vmem:[#allocation13 + $0x178] sm:$0xff] }
 0x55f   : > { %4590 = vmatprep.subr.bf16.mxu0 %v4589_v5 }
 0x620   : > { %v4267_v31 = vpop.f32.mrb[24].mxu1 }
 0x621   : > { %v2024_v41 = vadd.f32 %v4267_v31, %v1951_v50  ;;  %v2018_v36 = vpop.f32.mrb[25].mxu1  ;;  %v2124_v31 = vld [vmem:[#allocation13 + $0xa8] sm:$0xff] }
 0x622   : > { %v2019_v42 = vadd.f32 %v2018_v36, %v1951_v50 }
 0x623   : > { %v2038_v7 = vadd.f32 %v2024_v41, %v5877_v12  ;;  %v2105_v12 = vld [vmem:[#allocation13 + $0x10] sm:$0xff]  ;;  %v2123_v41 = vld [vmem:[#allocation13 + $0xa0] sm:$0xff] }
 0x624   : > { %v2037_v9 = vadd.f32 %v4994_v8, %v2019_v42  ;;  %v4609_v52 = vpack.c.bf16 %v2108_v25, %v2105_v12  ;;  %v2136_v12 = vld [vmem:[#allocation13 + $0x108] sm:$0xff]  ;;  %v2135_v25 = vld [vmem:[#allocation13 + $0x100] sm:$0xff] }
 0x625   : > { %2043 = vadd.xlane.f32.xlu1 %v2038_v7  ;;  %v4599_v16 = vpack.c.bf16 %v2136_v12, %v2133_v22 }
 0x626   : > { %2041 = vadd.xlane.f32.xlu0 %v2037_v9  ;;  %4610 = vmatprep.subr.bf16.mxu1 %v4609_v52 }
 0x627   : > { %4612 = vmatpush3.bf16.msra.mxu1 %v4609_v52  ;;  %v2138_v52 = vld [vmem:[#allocation13 + $0x118] sm:$0xff] }
 0x628   : > { %v4629_v14 = vpack.c.bf16 %v2138_v52, %v2135_v25 }
 0x630   : > { %v4270_v55 = vpop.f32.mrb[26].mxu1 }
 0x631   : > { %v2034_v11 = vadd.f32 %v4270_v55, %v1951_v50  ;;  %v2028_v1 = vpop.f32.mrb[27].mxu1  ;;  %v2131_v55 = vld [vmem:[#allocation13 + $0xe0] sm:$0xff] }
 0x632   : > { %v2029_v43 = vadd.f32 %v2028_v1, %v1951_v50  ;;  %v2121_v50 = vld [vmem:[#allocation13 + $0x90] sm:$0xff]  ;;  %v2127_v1 = vld [vmem:[#allocation13 + $0xc0] sm:$0xff] }
 0x633   : > { %v2040_v17 = vadd.f32 %v2034_v11, %v5884_v15  ;;  %v2111_v15 = vld [vmem:[#allocation13 + $0x40] sm:$0xff]  ;;  %v4591_v42 = vpack.c.bf16 %v2124_v31, %v2121_v50 }
 0x634   : > { %v2039_v10 = vadd.f32 %v4995_v18, %v2029_v43  ;;  %v4613_v35 = vpack.c.bf16 %v2114_v6, %v2111_v15  ;;  %v2130_v43 = vld [vmem:[#allocation13 + $0xd8] sm:$0xff]  ;;  %v2141_v6 = vld [vmem:[#allocation13 + $0x130] sm:$0xff] }
 0x635   : > { %2047 = vadd.xlane.f32.xlu1 %v2040_v17  ;;  %4592 = vmatpush1.bf16.msra.mxu0 %v4591_v42  ;;  %v4595_v18 = vpack.c.bf16 %v2130_v43, %v2127_v1  ;;  %v2142_v15 = vld [vmem:[#allocation13 + $0x138] sm:$0xff] }
 0x636   : > { %2045 = vadd.xlane.f32.xlu0 %v2039_v10  ;;  %4614 = vmatprep.subr.bf16.mxu1 %v4613_v35  ;;  %v4603_v58 = vpack.c.bf16 %v2142_v15, %v2139_v34  ;;  %v6253_v34 = vld [vmem:[%s6637_s30 + $0x8] sm:$0xff] }
 0x637   : > { %4616 = vmatpush3.bf16.msra.mxu1 %v4613_v35  ;;  %v2144_v35 = vld [vmem:[#allocation13 + $0x148] sm:$0xff] }
 0x638   : > { %4618 = vmatprep.subr.bf16.mxu1 %v4617_v13  ;;  %v4633_v62 = vpack.c.bf16 %v2144_v35, %v2141_v6  ;;  %v6259_v35 = vld [vmem:[%s6637_s30 + $0x10] sm:$0xff] }
 0x63b   : > { %4620 = vmatpush3.bf16.msra.mxu1 %v4617_v13  ;;  %v4607_v13 = vpack.c.bf16 %v2148_v49, %v2145_v32 }
 0x6b2   : > { %v2044_v46 = vpop.xlane.xlu1 %2043 }
 0x6b3   : > { %v2051_v47 = vmul.f32 0.0078125, %v2044_v46  ;;  %v2042_v60 = vpop.xlane.xlu0 %2041  ;;  %v4637_v46 = vpack.c.bf16 %v2150_v45, %v2147_v44 }
 0x6b4   : > { %v2050_v51 = vmul.f32 0.0078125, %v2042_v60 }
 0x6b5   : > { %v6192_v20 = vsub.f32 %v2038_v7, %v2051_v47  ;;  %v2126_v7 = vld [vmem:[#allocation13 + $0xb8] sm:$0xff] }
 0x6b6   : > { %v6194_v48 = vsub.f32 %v2037_v9, %v2050_v51  ;;  %v4621_v8 = vpack.c.bf16 %v2126_v7, %v2123_v41  ;;  %v2128_v9 = vld [vmem:[#allocation13 + $0xc8] sm:$0xff] }
 0x6b7   : > { %v2059_v30 = vmul.f32 %v6192_v20, %v6192_v20  ;;  %v4593_v11 = vpack.c.bf16 %v2131_v55, %v2128_v9 }
 0x6b8   : > { %v2058_v53 = vmul.f32 %v6194_v48, %v6194_v48  ;;  %4622 = vmatprep.subr.bf16.mxu1 %v4621_v8 }
 0x6b9   : > { %2064 = vadd.xlane.f32.xlu1 %v2059_v30  ;;  %4624 = vmatpush3.bf16.msra.mxu1 %v4621_v8 }
 0x6ba   : > { %2062 = vadd.xlane.f32.xlu0 %v2058_v53  ;;  %4594 = vmatprep.subr.bf16.mxu0 %v4593_v11 }
 0x6bb   : > { %4596 = vmatpush1.bf16.msra.mxu0 %v4595_v18 }
 0x6bc   : > { %4598 = vmatprep.subr.bf16.mxu0 %v4597_v21 }
 0x6bf   : > { %4600 = vmatpush1.bf16.msra.mxu0 %v4599_v16 }
 0x6c0   : > { %4602 = vmatprep.subr.bf16.mxu0 %v4601_v33 }
 0x6c2   : > { %v2048_v59 = vpop.xlane.xlu1 %2047 }
 0x6c3   : > { %v2053_v38 = vmul.f32 0.0078125, %v2048_v59  ;;  %v2046_v54 = vpop.xlane.xlu0 %2045  ;;  %4604 = vmatpush1.bf16.msra.mxu0 %v4603_v58 }
 0x6c4   : > { %v2052_v61 = vmul.f32 0.0078125, %v2046_v54  ;;  %4606 = vmatprep.subr.bf16.mxu0 %v4605_v40  ;;  %v2096_v54 = vsub.s32 3, %v5899_v23 }
 0x6c5   : > { %v6200_v29 = vsub.f32 %v2040_v17, %v2053_v38  ;;  %v2129_v17 = vld [vmem:[#allocation13 + $0xd0] sm:$0xff]  ;;  %v2088_v38 = vsub.s32 2, %v5899_v23 }
 0x6c6   : > { %v6202_v2 = vsub.f32 %v2039_v10, %v2052_v61  ;;  %v2132_v10 = vld [vmem:[#allocation13 + $0xe8] sm:$0xff]  ;;  %v6210_v61 = vld [vmem:[#allocation17] sm:$0xff] }
 0x6c7   : > { %v2061_v3 = vmul.f32 %v6200_v29, %v6200_v29  ;;  %v4625_v27 = vpack.c.bf16 %v2132_v10, %v2129_v17  ;;  %4608 = vmatpush1.bf16.msra.mxu0 %v4607_v13  ;;  %v2089_v63 = vrot.slane %v6210_v61, %v2088_v38  ;;  %v2097_v42 = vrot.slane %v6210_v61, %v2096_v54 }
 0x6c8   : > { %v2060_v36 = vmul.f32 %v6202_v2, %v6202_v2 }
 0x6c9   : > { %2068 = vadd.xlane.f32.xlu1 %v2061_v3  ;;  %4626 = vmatprep.subr.bf16.mxu1 %v4625_v27 }
 0x6ca   : > { %2066 = vadd.xlane.f32.xlu0 %v2060_v36  ;;  %4628 = vmatpush3.bf16.msra.mxu1 %v4625_v27 }
 0x6cb   : > { %4630 = vmatprep.subr.bf16.mxu1 %v4629_v14 }
 0x6ce   : > { %4632 = vmatpush3.bf16.msra.mxu1 %v4629_v14 }
 0x6cf   : > { %4634 = vmatprep.subr.bf16.mxu1 %v4633_v62 }
 0x6d2   : > { %4636 = vmatpush3.bf16.msra.mxu1 %v4633_v62 }
 0x6d3   : > { %4638 = vmatprep.subr.bf16.mxu1 %v4637_v46 }
 0x6d6   : > { %4640 = vmatpush3.bf16.msra.mxu1 %v4637_v46 }
 0x746   : > { %v2065_v47 = vpop.xlane.xlu1 %2064 }
 0x747   : > { %v2071_v60 = vmul.f32 0.0078125, %v2065_v47  ;;  %v2063_v51 = vpop.xlane.xlu0 %2062 }
 0x748   : > { %v2070_v30 = vmul.f32 0.0078125, %v2063_v51 }
 0x749   : > { %v2075_v53 = vadd.f32 1e-05, %v2071_v60 }
 0x74a   : > { %v2074_v59 = vadd.f32 1e-05, %v2070_v30 }
 0x74b   : > { %4906 = vrsqrt.f32 %v2075_v53 }
 0x74c   : > { %4908 = vrsqrt.f32 %v2074_v59 }
 0x755   : > { %v4907_v37 = vpop.eup %4906 }
 0x756   : > { %v4909_v3 = vpop.eup %4908  ;;  %v2083_v5 = vmul.f32 %v4907_v37, %v6192_v20  ;;  %v2069_v50 = vpop.xlane.xlu1 %2068 }
 0x757   : > { %v2082_v31 = vmul.f32 %v4909_v3, %v6194_v48  ;;  %v2073_v41 = vmul.f32 0.0078125, %v2069_v50  ;;  %v2067_v36 = vpop.xlane.xlu0 %2066 }
 0x758   : > { %v2072_v7 = vmul.f32 0.0078125, %v2067_v36  ;;  %v2091_v8 = vmul.f32 %v2089_v63, %v2083_v5 }
 0x759   : > { %v2077_v9 = vadd.f32 1e-05, %v2073_v41  ;;  %v2090_v55 = vmul.f32 %v2089_v63, %v2082_v31 }
 0x75a   : > { %v2076_v11 = vadd.f32 1e-05, %v2072_v7  ;;  %v6220_v43 = vadd.f32 %v2097_v42, %v2091_v8 }
 0x75b   : > { %4910 = vrsqrt.f32 %v2077_v9  ;;  %v6218_v1 = vadd.f32 %v2097_v42, %v2090_v55 }
 0x75c   : > { %4912 = vrsqrt.f32 %v2076_v11 }
 0x75d   : > { %2232 = vmatmul.mubr.f32.vlgmr.msra.gmra.mrb[28].mxu0 %v6218_v1  ;;  %4303 = vmatprep.mubr.f32.mxu1 %v6218_v1 }
 0x75e   : > { %4304 = vmatmul.mubr.f32.vlgmr.msra.gmra.mrb[28].mxu1 %v6220_v43  ;;  %2237 = vmatprep.mubr.f32.mxu0 %v5393_v0 }
 0x761   : > { %2238 = vmatmul.mubr.f32.gmra.mrb[30].mxu0 %v6220_v43 }
 0x762   : > { %2243 = vmatprep.mubr.f32.mxu0 %v5393_v0 }
 0x765   : > { %v4911_v20 = vpop.eup %4910 }
 0x766   : > { %v4913_v48 = vpop.eup %4912  ;;  %v2085_v17 = vmul.f32 %v4911_v20, %v6200_v29  ;;  %v2102_v29 = vld [vmem:[%s6638_s5] sm:$0x7]  ;;  %s5294_s5 = scalar_lea.vmem %s5293_s16, 1024 }
 0x767   : > { %v2084_v18 = vmul.f32 %v4913_v48, %v6202_v2  ;;  %v2155_v2 = vrot.slane %v2102_v29, %v5902_v24  ;;  %v2159_v21 = vrot.slane %v2102_v29, %v5908_v26  ;;  %v2163_v44 = vrot.slane %v2102_v29, %v2088_v38  ;;  %p5296_p10 = scmp.lt.s32.totalorder %s5294_s5, %s5288_s15 }
 0x768   : > { %v2093_v10 = vmul.f32 %v2089_v63, %v2085_v17 }
 0x769   : > { %v2092_v27 = vmul.f32 %v2089_v63, %v2084_v18  ;;  %p5297_p6 = por %p5296_p10, %p5295_p1 }
 0x76a   : > { %v6232_v19 = vadd.f32 %v2097_v42, %v2093_v10 }
 0x76b   : > { %v6230_v57 = vadd.f32 %v2097_v42, %v2092_v27  ;;  %p5298_p13 = pnand %p5297_p6, %p5291_p12 }
 0x76d   : > { %2244 = vmatmul.mubr.f32.gmra.mrb[32].mxu0 %v6230_v57  ;;  %4306 = vmatprep.mubr.f32.mxu1 %v6230_v57 }
 0x76e   : > { %4307 = vmatmul.mubr.f32.gmra.mrb[30].mxu1 %v6232_v19  ;;  %2249 = vmatprep.mubr.f32.mxu0 %v5393_v0  ;;  %v6247_v0 = vld [vmem:[%s6637_s30] sm:$0xff] }
 0x771   : > { %2250 = vmatmul.mubr.f32.gmra.mrb[34].mxu0 %v6232_v19 }
 0x830   : > { %v2233_v22 = vpop.f32.mrb[28].mxu0 }
 0x831   : > { %v2234_v12 = vadd.f32 %v2233_v22, %v2155_v2  ;;  %v2235_v25 = vpop.f32.mrb[29].mxu0  ;;  %v4305_v16 = vpop.f32.mrb[28].mxu1 }
 0x832   : > { %v2236_v52 = vadd.f32 %v2235_v25, %v2159_v21  ;;  %v2322_v14 = vpop.f32.mrb[29].mxu1  ;;  %v2328_v31 = vadd.f32 %v4305_v16, %v2163_v44 }
 0x833   : > { %v2341_v28 = vmul.f32 %v6247_v0, %v2234_v12  ;;  %v2342_v15 = vmul.f32 %v6253_v34, %v2234_v12  ;;  %v2343_v62 = vmul.f32 %v6259_v35, %v2234_v12  ;;  %v2344_v4 = vmul.f32 %v6265_v39, %v2234_v12 }
 0x834   : > { %v2239_v56 = vpop.f32.mrb[30].mxu0  ;;  %4309 = vmatprep.subr.mxu0 %v2236_v52  ;;  %v2323_v59 = vadd.f32 %v2322_v14, %v2163_v44 }
 0x835   : > { %v2241_v33 = vpop.f32.mrb[31].mxu0  ;;  %4310 = vmatpush3.xpose.msra.mxu0 %v2236_v52  ;;  %4311 = vmatprep.mubr.f32.mxu0 %v2341_v28  ;;  %v2240_v58 = vadd.f32 %v2239_v56, %v2155_v2 }
 0x836   : > { %v2242_v6 = vadd.f32 %v2241_v33, %v2159_v21 }
 0x837   : > { %v2345_v40 = vmul.f32 %v6247_v0, %v2240_v58  ;;  %v2346_v32 = vmul.f32 %v6253_v34, %v2240_v58  ;;  %v2347_v49 = vmul.f32 %v6259_v35, %v2240_v58  ;;  %v2348_v30 = vmul.f32 %v6265_v39, %v2240_v58 }
 0x838   : > { %4312 = vmatmul.mubr.f32.vlgmr.msra.gmra.mrb[36].mxu0 %v2342_v15  ;;  %4317 = vmatprep.subr.mxu0 %v2242_v6 }
 0x839   : > { %4314 = vmatprep.mubr.f32.mxu0 %v2343_v62  ;;  %4318 = vmatpush3.xpose.msra.mxu0 %v2242_v6 }
 0x83c   : > { %4315 = vmatmul.mubr.f32.gmra.mrb[38].mxu0 %v2344_v4 }
 0x83d   : > { %4319 = vmatprep.mubr.f32.mxu0 %v2345_v40 }
 0x840   : > { %v2245_v13 = vpop.f32.mrb[32].mxu0  ;;  %4320 = vmatmul.mubr.f32.vlgmr.msra.gmra.mrb[40].mxu0 %v2346_v32 }
 0x841   : > { %v2246_v45 = vadd.f32 %v2245_v13, %v2155_v2  ;;  %v2247_v46 = vpop.f32.mrb[33].mxu0  ;;  %v4308_v47 = vpop.f32.mrb[30].mxu1  ;;  %4322 = vmatprep.mubr.f32.mxu0 %v2347_v49 }
 0x842   : > { %v2248_v60 = vadd.f32 %v2247_v46, %v2159_v21  ;;  %v2332_v51 = vpop.f32.mrb[31].mxu1  ;;  %v6284_v8 = vadd.f32 %v4308_v47, %v2163_v44 }
 0x843   : > { %v2349_v53 = vmul.f32 %v6247_v0, %v2246_v45  ;;  %v2350_v38 = vmul.f32 %v6253_v34, %v2246_v45  ;;  %v2351_v5 = vmul.f32 %v6259_v35, %v2246_v45  ;;  %v6278_v41 = vadd.f32 %v2332_v51, %v2163_v44 }
 0x844   : > { %v2251_v54 = vpop.f32.mrb[34].mxu0  ;;  %4323 = vmatmul.mubr.f32.gmra.mrb[42].mxu0 %v2348_v30  ;;  %4325 = vmatprep.subr.mxu0 %v2248_v60  ;;  %v2352_v42 = vmul.f32 %v6265_v39, %v2246_v45 }
 0x845   : > { %v2252_v63 = vadd.f32 %v2251_v54, %v2155_v2  ;;  %v2253_v37 = vpop.f32.mrb[35].mxu0  ;;  %4326 = vmatpush3.xpose.msra.mxu0 %v2248_v60  ;;  %4327 = vmatprep.mubr.f32.mxu0 %v2349_v53 }
 0x846   : > { %v2254_v3 = vadd.f32 %v2253_v37, %v2159_v21  ;;  %4341 = vmatprep.subr.mxu0 %v2323_v59 }
 0x847   : > { %v2353_v50 = vmul.f32 %v6247_v0, %v2252_v63  ;;  %v2354_v36 = vmul.f32 %v6253_v34, %v2252_v63  ;;  %v2355_v7 = vmul.f32 %v6259_v35, %v2252_v63  ;;  %v2356_v9 = vmul.f32 %v6265_v39, %v2252_v63 }
 0x848   : > { %4328 = vmatmul.mubr.f32.vlgmr.msra.gmra.mrb[44].mxu0 %v2350_v38  ;;  %4333 = vmatprep.subr.mxu1 %v2254_v3 }
 0x849   : > { %4330 = vmatprep.mubr.f32.mxu0 %v2351_v5  ;;  %4334 = vmatpush3.xpose.msra.mxu1 %v2254_v3 }
 0x84a   : > { %4335 = vmatprep.mubr.f32.mxu1 %v2353_v50  ;;  %4342 = vmatpush3.msra.mxu0 %v2323_v59 }
 0x84b   : > { %4349 = vmatprep.subr.mxu1 %v2328_v31  ;;  %4357 = vmatprep.subr.mxu0 %v6278_v41 }
 0x84c   : > { %4331 = vmatmul.mubr.f32.gmra.mrb[46].mxu0 %v2352_v42  ;;  %4336 = vmatmul.mubr.f32.vlgmr.msra.gmra.mrb[32].mxu1 %v2354_v36 }
 0x84d   : > { %4338 = vmatprep.mubr.f32.mxu1 %v2355_v7  ;;  %4350 = vmatpush3.msra.mxu1 %v2328_v31 }
 0x84e   : > { %4365 = vmatprep.subr.mxu1 %v6284_v8 }
 0x850   : > { %4339 = vmatmul.mubr.f32.gmra.mrb[34].mxu1 %v2356_v9 }
 0x90b   : > { %v4313_v55 = vpop.f32.mrb[36].mxu0 }
 0x90c   : > { %v6288_v11 = vmul.f32 0.17677669, %v4313_v55  ;;  %v2423_v20 = vpop.f32.mrb[37].mxu0 }
 0x90d   : > { %v6290_v48 = vmul.f32 0.17677669, %v2423_v20 }
 0x90e   : > { %v2717_v17 = vsel %vm2713_vm1, %v6288_v11, -inf }
 0x90f   : > { %2718 = vmax.xlane.f32.xlu1 %v2717_v17  ;;  %v4316_v18 = vpop.f32.mrb[38].mxu0  ;;  %v2714_v10 = vsel %vm2713_vm1, %v6290_v48, -inf }
 0x910   : > { %v6296_v27 = vmul.f32 0.17677669, %v4316_v18  ;;  %2715 = vmax.xlane.f32.xlu0 %v2714_v10  ;;  %v2433_v29 = vpop.f32.mrb[39].mxu0 }
 0x911   : > { %v6298_v2 = vmul.f32 0.17677669, %v2433_v29 }
 0x912   : > { %v2723_v21 = vsel %vm2713_vm1, %v6296_v27, -inf }
 0x913   : > { %2724 = vmax.xlane.f32.xlu1 %v2723_v21  ;;  %v4321_v22 = vpop.f32.mrb[40].mxu0  ;;  %v2720_v12 = vsel %vm2713_vm1, %v6298_v2, -inf }
 0x914   : > { %v6304_v25 = vmul.f32 0.17677669, %v4321_v22  ;;  %2721 = vmax.xlane.f32.xlu0 %v2720_v12  ;;  %v2508_v16 = vpop.f32.mrb[41].mxu0 }
 0x915   : > { %v6306_v52 = vmul.f32 0.17677669, %v2508_v16 }
 0x916   : > { %v2729_v14 = vsel %vm2713_vm1, %v6304_v25, -inf }
 0x917   : > { %2730 = vmax.xlane.f32.xlu1 %v2729_v14  ;;  %v4324_v28 = vpop.f32.mrb[42].mxu0  ;;  %v2726_v56 = vsel %vm2713_vm1, %v6306_v52, -inf }
 0x918   : > { %v6312_v33 = vmul.f32 0.17677669, %v4324_v28  ;;  %2727 = vmax.xlane.f32.xlu0 %v2726_v56  ;;  %v2518_v15 = vpop.f32.mrb[43].mxu0 }
 0x919   : > { %v6314_v6 = vmul.f32 0.17677669, %v2518_v15 }
 0x91a   : > { %v2735_v58 = vsel %vm2713_vm1, %v6312_v33, -inf }
 0x91b   : > { %2736 = vmax.xlane.f32.xlu1 %v2735_v58  ;;  %v4329_v62 = vpop.f32.mrb[44].mxu0  ;;  %v2732_v4 = vsel %vm2713_vm1, %v6314_v6, -inf }
 0x91c   : > { %v6320_v40 = vmul.f32 0.17677669, %v4329_v62  ;;  %2733 = vmax.xlane.f32.xlu0 %v2732_v4  ;;  %v2593_v32 = vpop.f32.mrb[45].mxu0 }
 0x91d   : > { %v6322_v49 = vmul.f32 0.17677669, %v2593_v32 }
 0x91e   : > { %v2741_v44 = vsel %vm2713_vm1, %v6320_v40, -inf }
 0x91f   : > { %v4337_v13 = vpop.f32.mrb[32].mxu1  ;;  %2742 = vmax.xlane.f32.xlu1 %v2741_v44  ;;  %v4332_v45 = vpop.f32.mrb[46].mxu0  ;;  %v2738_v46 = vsel %vm2713_vm1, %v6322_v49, -inf }
 0x920   : > { %v6328_v47 = vmul.f32 0.17677669, %v4337_v13  ;;  %v2678_v60 = vpop.f32.mrb[33].mxu1  ;;  %2739 = vmax.xlane.f32.xlu0 %v2738_v46  ;;  %v2603_v51 = vpop.f32.mrb[47].mxu0  ;;  %v6332_v53 = vmul.f32 0.17677669, %v4332_v45 }
 0x921   : > { %v6330_v30 = vmul.f32 0.17677669, %v2678_v60  ;;  %v6336_v54 = vmul.f32 0.17677669, %v2603_v51 }
 0x922   : > { %v2753_v59 = vsel %vm2713_vm1, %v6328_v47, -inf  ;;  %v2747_v5 = vsel %vm2713_vm1, %v6332_v53, -inf }
 0x923   : > { %v4340_v63 = vpop.f32.mrb[34].mxu1  ;;  %2754 = vmax.xlane.f32.xlu1 %v2753_v59  ;;  %v2750_v37 = vsel %vm2713_vm1, %v6330_v30, -inf  ;;  %v2744_v31 = vsel %vm2713_vm1, %v6336_v54, -inf }
 0x924   : > { %v2688_v38 = vpop.f32.mrb[35].mxu1  ;;  %2751 = vmax.xlane.f32.xlu0 %v2750_v37  ;;  %v6340_v3 = vmul.f32 0.17677669, %v4340_v63 }
 0x925   : > { %v6344_v50 = vmul.f32 0.17677669, %v2688_v38 }
 0x926   : > { %v2759_v36 = vsel %vm2713_vm1, %v6340_v3, -inf }
 0x927   : > { %2748 = vmax.xlane.f32.xlu1 %v2747_v5  ;;  %v2756_v42 = vsel %vm2713_vm1, %v6344_v50, -inf }
 0x928   : > { %2745 = vmax.xlane.f32.xlu0 %v2744_v31 }
 0x92b   : > { %2760 = vmax.xlane.f32.xlu1 %v2759_v36 }
 0x92c   : > { %2757 = vmax.xlane.f32.xlu0 %v2756_v42 }
 0x99c   : > { %v2719_v7 = vpop.xlane.xlu1 %2718 }
 0x99d   : > { %v2763_v9 = vsub.f32 %v6288_v11, %v2719_v7  ;;  %v2716_v55 = vpop.xlane.xlu0 %2715 }
 0x99e   : > { %v2762_v20 = vsub.f32 %v6290_v48, %v2716_v55 }
 0x99f   : > { %v2780_v17 = vmul.f32 1.442695, %v2763_v9 }
 0x9a0   : > { %v2778_v18 = vmul.f32 1.442695, %v2762_v20  ;;  %v2725_v10 = vpop.xlane.xlu1 %2724 }
 0x9a1   : > { %4914 = vpow2.f32 %v2780_v17  ;;  %v2765_v29 = vsub.f32 %v6296_v27, %v2725_v10  ;;  %v2722_v21 = vpop.xlane.xlu0 %2721 }
 0x9a2   : > { %4916 = vpow2.f32 %v2778_v18  ;;  %v2764_v22 = vsub.f32 %v6298_v2, %v2722_v21 }
 0x9a3   : > { %v2784_v12 = vmul.f32 1.442695, %v2765_v29 }
 0x9a4   : > { %v2782_v16 = vmul.f32 1.442695, %v2764_v22  ;;  %v2731_v14 = vpop.xlane.xlu1 %2730 }
 0x9a5   : > { %4918 = vpow2.f32 %v2784_v12  ;;  %v2767_v28 = vsub.f32 %v6304_v25, %v2731_v14  ;;  %v2728_v11 = vpop.xlane.xlu0 %2727 }
 0x9a6   : > { %4920 = vpow2.f32 %v2782_v16  ;;  %v2766_v48 = vsub.f32 %v6306_v52, %v2728_v11 }
 0x9a7   : > { %v2788_v56 = vmul.f32 1.442695, %v2767_v28 }
 0x9a8   : > { %v2786_v15 = vmul.f32 1.442695, %v2766_v48  ;;  %v2737_v58 = vpop.xlane.xlu1 %2736 }
 0x9a9   : > { %4922 = vpow2.f32 %v2788_v56  ;;  %v2769_v27 = vsub.f32 %v6312_v33, %v2737_v58  ;;  %v2734_v62 = vpop.xlane.xlu0 %2733 }
 0x9aa   : > { %4924 = vpow2.f32 %v2786_v15  ;;  %v2768_v2 = vsub.f32 %v6314_v6, %v2734_v62 }
 0x9ab   : > { %v6360_v4 = vpop.eup %4914  ;;  %v2792_v32 = vmul.f32 1.442695, %v2769_v27 }
 0x9ac   : > { %v6362_v44 = vpop.eup %4916  ;;  %v2790_v25 = vmul.f32 1.442695, %v2768_v2  ;;  %v2743_v13 = vpop.xlane.xlu1 %2742  ;;  %v2813_v52 = vsel %vm2713_vm1, %v6360_v4, 0.0 }
 0x9ad   : > { %4926 = vpow2.f32 %v2792_v32  ;;  %v2771_v45 = vsub.f32 %v6320_v40, %v2743_v13  ;;  %v2740_v46 = vpop.xlane.xlu0 %2739  ;;  %2814 = vadd.xlane.f32.xlu1 %v2813_v52  ;;  %v2810_v33 = vsel %vm2713_vm1, %v6362_v44, 0.0 }
 0x9ae   : > { %4928 = vpow2.f32 %v2790_v25  ;;  %v2770_v6 = vsub.f32 %v6322_v49, %v2740_v46  ;;  %2811 = vadd.xlane.f32.xlu0 %v2810_v33 }
 0x9af   : > { %v6370_v60 = vpop.eup %4918  ;;  %v2796_v51 = vmul.f32 1.442695, %v2771_v45 }
 0x9b0   : > { %v6372_v59 = vpop.eup %4920  ;;  %v2794_v63 = vmul.f32 1.442695, %v2770_v6  ;;  %v2755_v37 = vpop.xlane.xlu1 %2754  ;;  %v2819_v38 = vsel %vm2713_vm1, %v6370_v60, 0.0 }
 0x9b1   : > { %4930 = vpow2.f32 %v2796_v51  ;;  %v2775_v40 = vsub.f32 %v6328_v47, %v2755_v37  ;;  %v2752_v5 = vpop.xlane.xlu0 %2751  ;;  %2820 = vadd.xlane.f32.xlu1 %v2819_v38  ;;  %v2816_v31 = vsel %vm2713_vm1, %v6372_v59, 0.0 }
 0x9b2   : > { %4932 = vpow2.f32 %v2794_v63  ;;  %v2774_v49 = vsub.f32 %v6330_v30, %v2752_v5  ;;  %2817 = vadd.xlane.f32.xlu0 %v2816_v31 }
 0x9b3   : > { %v6380_v36 = vpop.eup %4922  ;;  %v2804_v42 = vmul.f32 1.442695, %v2775_v40 }
 0x9b4   : > { %v6382_v7 = vpop.eup %4924  ;;  %v2802_v9 = vmul.f32 1.442695, %v2774_v49  ;;  %v2749_v55 = vpop.xlane.xlu1 %2748  ;;  %v2825_v20 = vsel %vm2713_vm1, %v6380_v36, 0.0  ;;  %v3306_v49 = vld [vmem:[#allocation14] sm:$0xff] }
 0x9b5   : > { %4934 = vpow2.f32 %v2804_v42  ;;  %v2773_v47 = vsub.f32 %v6332_v53, %v2749_v55  ;;  %2826 = vadd.xlane.f32.xlu1 %v2825_v20  ;;  %v2746_v17 = vpop.xlane.xlu0 %2745  ;;  %v2822_v18 = vsel %vm2713_vm1, %v6382_v7, 0.0  ;;  %v3307_v42 = vld [vmem:[#allocation14 + $0x8] sm:$0xff] }
 0x9b6   : > { %4936 = vpow2.f32 %v2802_v9  ;;  %v2772_v30 = vsub.f32 %v6336_v54, %v2746_v17  ;;  %2823 = vadd.xlane.f32.xlu0 %v2822_v18  ;;  %v4641_v18 = vpack.c.bf16 %v3307_v42, %v3306_v49 }
 0x9b7   : > { %v6390_v10 = vpop.eup %4926  ;;  %v2800_v29 = vmul.f32 1.442695, %v2773_v47 }
 0x9b8   : > { %v6392_v21 = vpop.eup %4928  ;;  %v2798_v22 = vmul.f32 1.442695, %v2772_v30  ;;  %v2761_v12 = vpop.xlane.xlu1 %2760  ;;  %v2831_v16 = vsel %vm2713_vm1, %v6390_v10, 0.0 }
 0x9b9   : > { %4938 = vpow2.f32 %v2800_v29  ;;  %v2777_v53 = vsub.f32 %v6340_v3, %v2761_v12  ;;  %2832 = vadd.xlane.f32.xlu1 %v2831_v16  ;;  %v2758_v14 = vpop.xlane.xlu0 %2757  ;;  %v2828_v28 = vsel %vm2713_vm1, %v6392_v21, 0.0 }
 0x9ba   : > { %4940 = vpow2.f32 %v2798_v22  ;;  %v2776_v54 = vsub.f32 %v6344_v50, %v2758_v14  ;;  %2829 = vadd.xlane.f32.xlu0 %v2828_v28 }
 0x9bb   : > { %v6400_v11 = vpop.eup %4930  ;;  %v2808_v48 = vmul.f32 1.442695, %v2777_v53 }
 0x9bc   : > { %v6402_v56 = vpop.eup %4932  ;;  %v2806_v15 = vmul.f32 1.442695, %v2776_v54  ;;  %v2837_v58 = vsel %vm2713_vm1, %v6400_v11, 0.0 }
 0x9bd   : > { %4942 = vpow2.f32 %v2808_v48  ;;  %2838 = vadd.xlane.f32.xlu1 %v2837_v58  ;;  %v2834_v3 = vsel %vm2713_vm1, %v6402_v56, 0.0 }
 0x9be   : > { %4944 = vpow2.f32 %v2806_v15  ;;  %2835 = vadd.xlane.f32.xlu0 %v2834_v3 }
 0x9bf   : > { %v6408_v27 = vpop.eup %4934 }
 0x9c0   : > { %v6410_v50 = vpop.eup %4936  ;;  %v2849_v62 = vsel %vm2713_vm1, %v6408_v27, 0.0 }
 0x9c1   : > { %2850 = vadd.xlane.f32.xlu1 %v2849_v62  ;;  %v2846_v2 = vsel %vm2713_vm1, %v6410_v50, 0.0  ;;  %v3309_v62 = vld [vmem:[#allocation14 + $0x18] sm:$0xff] }
 0x9c2   : > { %2847 = vadd.xlane.f32.xlu0 %v2846_v2 }
 0x9c3   : > { %v6416_v32 = vpop.eup %4938 }
 0x9c4   : > { %v6418_v25 = vpop.eup %4940  ;;  %v2843_v13 = vsel %vm2713_vm1, %v6416_v32, 0.0 }
 0x9c5   : > { %2844 = vadd.xlane.f32.xlu1 %v2843_v13  ;;  %v2840_v52 = vsel %vm2713_vm1, %v6418_v25, 0.0 }
 0x9c6   : > { %2841 = vadd.xlane.f32.xlu0 %v2840_v52 }
 0x9c7   : > { %v6424_v45 = vpop.eup %4942 }
 0x9c8   : > { %v6426_v46 = vpop.eup %4944  ;;  %v2855_v33 = vsel %vm2713_vm1, %v6424_v45, 0.0 }
 0x9c9   : > { %2856 = vadd.xlane.f32.xlu1 %v2855_v33  ;;  %v2852_v6 = vsel %vm2713_vm1, %v6426_v46, 0.0 }
 0x9ca   : > { %2853 = vadd.xlane.f32.xlu0 %v2852_v6 }
 0xa3a   : > { %v2815_v51 = vpop.xlane.xlu1 %2814 }
 0xa3b   : > { %4946 = vrcp.f32 %v2815_v51  ;;  %v2812_v63 = vpop.xlane.xlu0 %2811  ;;  %v3311_v51 = vld [vmem:[#allocation14 + $0x28] sm:$0xff] }
 0xa3c   : > { %4948 = vrcp.f32 %v2812_v63 }
 0xa3e   : > { %v2821_v37 = vpop.xlane.xlu1 %2820 }
 0xa3f   : > { %4950 = vrcp.f32 %v2821_v37  ;;  %v2818_v38 = vpop.xlane.xlu0 %2817 }
 0xa40   : > { %4952 = vrcp.f32 %v2818_v38 }
 0xa42   : > { %v2827_v40 = vpop.xlane.xlu1 %2826 }
 0xa43   : > { %4954 = vrcp.f32 %v2827_v40  ;;  %v2824_v5 = vpop.xlane.xlu0 %2823 }
 0xa44   : > { %4956 = vrcp.f32 %v2824_v5 }
 0xa45   : > { %v4947_v31 = vpop.eup %4946 }
 0xa46   : > { %v4949_v9 = vpop.eup %4948  ;;  %v2833_v55 = vpop.xlane.xlu1 %2832  ;;  %v2875_v17 = vmul.f32 %v4947_v31, %v6360_v4 }
 0xa47   : > { %4958 = vrcp.f32 %v2833_v55  ;;  %v2830_v20 = vpop.xlane.xlu0 %2829  ;;  %v2874_v47 = vmul.f32 %v4949_v9, %v6362_v44  ;;  %v3313_v9 = vld [vmem:[#allocation14 + $0x38] sm:$0xff] }
 0xa48   : > { %4960 = vrcp.f32 %v2830_v20  ;;  %v3315_v20 = vld [vmem:[#allocation14 + $0x48] sm:$0xff] }
 0xa49   : > { %v4951_v30 = vpop.eup %4950  ;;  %4343 = vmatprep.mubr.msk.f32.mxu0 %vm2713_vm1, %v2874_v47 }
 0xa4a   : > { %v4953_v29 = vpop.eup %4952  ;;  %v2839_v22 = vpop.xlane.xlu1 %2838  ;;  %4344 = vmatmul.mubr.msk.f32.vlgmr.msra.gmra.mrb[48].mxu0 %vm2713_vm1, %v2875_v17  ;;  %v2877_v44 = vmul.f32 %v4951_v30, %v6370_v60  ;;  %v3316_v17 = vld [vmem:[#allocation14 + $0x50] sm:$0xff]  ;;  %v3319_v30 = vld [vmem:[#allocation14 + $0x68] sm:$0xff] }
 0xa4b   : > { %4962 = vrcp.f32 %v2839_v22  ;;  %4358 = vmatpush3.msra.mxu0 %v6278_v41  ;;  %v2836_v12 = vpop.xlane.xlu0 %2835  ;;  %v2876_v16 = vmul.f32 %v4953_v29, %v6372_v59  ;;  %v3320_v22 = vld [vmem:[#allocation14 + $0x70] sm:$0xff] }
 0xa4c   : > { %4964 = vrcp.f32 %v2836_v12  ;;  %4642 = vmatprep.subr.bf16.mxu0 %v4641_v18  ;;  %v3321_v12 = vld [vmem:[#allocation14 + $0x78] sm:$0xff] }
 0xa4d   : > { %v4955_v4 = vpop.eup %4954  ;;  %4346 = vmatprep.mubr.msk.f32.mxu0 %vm2713_vm1, %v2876_v16  ;;  %v4669_v16 = vpack.c.bf16 %v3321_v12, %v3320_v22 }
 0xa4e   : > { %v4957_v53 = vpop.eup %4956  ;;  %v2851_v14 = vpop.xlane.xlu1 %2850  ;;  %4347 = vmatmul.mubr.msk.f32.gmra.mrb[50].mxu0 %vm2713_vm1, %v2877_v44  ;;  %v2879_v41 = vmul.f32 %v4955_v4, %v6380_v36  ;;  %v3308_v36 = vld [vmem:[#allocation14 + $0x10] sm:$0xff] }
 0xa4f   : > { %4966 = vrcp.f32 %v2851_v14  ;;  %v2848_v28 = vpop.xlane.xlu0 %2847  ;;  %v2878_v54 = vmul.f32 %v4957_v53, %v6382_v7 }
 0xa50   : > { %4968 = vrcp.f32 %v2848_v28 }
 0xa51   : > { %v4959_v48 = vpop.eup %4958  ;;  %4351 = vmatprep.mubr.msk.f32.mxu1 %vm2713_vm1, %v2878_v54 }
 0xa52   : > { %v4961_v59 = vpop.eup %4960  ;;  %v2845_v60 = vpop.xlane.xlu1 %2844  ;;  %4352 = vmatmul.mubr.msk.f32.vlgmr.msra.gmra.mrb[36].mxu1 %vm2713_vm1, %v2879_v41  ;;  %v2881_v3 = vmul.f32 %v4959_v48, %v6390_v10  ;;  %v3310_v10 = vld [vmem:[#allocation14 + $0x20] sm:$0xff] }
 0xa53   : > { %4970 = vrcp.f32 %v2845_v60  ;;  %4366 = vmatpush3.msra.mxu1 %v6284_v8  ;;  %v2842_v15 = vpop.xlane.xlu0 %2841  ;;  %v2880_v58 = vmul.f32 %v4961_v59, %v6392_v21  ;;  %v4645_v21 = vpack.c.bf16 %v3309_v62, %v3308_v36  ;;  %v4649_v40 = vpack.c.bf16 %v3311_v51, %v3310_v10 }
 0xa54   : > { %4972 = vrcp.f32 %v2842_v15 }
 0xa55   : > { %v4963_v7 = vpop.eup %4962  ;;  %4354 = vmatprep.mubr.msk.f32.mxu1 %vm2713_vm1, %v2880_v58 }
 0xa56   : > { %v4965_v2 = vpop.eup %4964  ;;  %v2857_v13 = vpop.xlane.xlu1 %2856  ;;  %4355 = vmatmul.mubr.msk.f32.gmra.mrb[38].mxu1 %vm2713_vm1, %v2881_v3  ;;  %v2883_v8 = vmul.f32 %v4963_v7, %v6400_v11 }
 0xa57   : > { %4974 = vrcp.f32 %v2857_v13  ;;  %v2854_v52 = vpop.xlane.xlu0 %2853  ;;  %v2882_v33 = vmul.f32 %v4965_v2, %v6402_v56 }
 0xa58   : > { %4976 = vrcp.f32 %v2854_v52 }
 0xa59   : > { %v4967_v6 = vpop.eup %4966  ;;  %4359 = vmatprep.mubr.msk.f32.mxu0 %vm2713_vm1, %v2882_v33 }
 0xa5a   : > { %v4969_v63 = vpop.eup %4968  ;;  %4360 = vmatmul.mubr.msk.f32.vlgmr.msra.gmra.mrb[52].mxu0 %vm2713_vm1, %v2883_v8  ;;  %v2887_v38 = vmul.f32 %v4967_v6, %v6408_v27 }
 0xa5b   : > { %v2886_v37 = vmul.f32 %v4969_v63, %v6410_v50  ;;  %4644 = vmatpush3.bf16.msra.mxu0 %v4641_v18  ;;  %v3317_v18 = vld [vmem:[#allocation14 + $0x58] sm:$0xff] }
 0xa5c   : > { %4646 = vmatprep.subr.bf16.mxu0 %v4645_v21 }
 0xa5d   : > { %v4971_v56 = vpop.eup %4970  ;;  %4367 = vmatprep.mubr.msk.f32.mxu1 %vm2713_vm1, %v2886_v37 }
 0xa5e   : > { %v4973_v11 = vpop.eup %4972  ;;  %4368 = vmatmul.mubr.msk.f32.vlgmr.msra.gmra.mrb[40].mxu1 %vm2713_vm1, %v2887_v38  ;;  %v2885_v31 = vmul.f32 %v4971_v56, %v6416_v32  ;;  %v3314_v32 = vld [vmem:[#allocation14 + $0x40] sm:$0xff] }
 0xa5f   : > { %v2884_v5 = vmul.f32 %v4973_v11, %v6418_v25  ;;  %4648 = vmatpush3.bf16.msra.mxu0 %v4645_v21  ;;  %v3312_v25 = vld [vmem:[#allocation14 + $0x30] sm:$0xff]  ;;  %v4657_v47 = vpack.c.bf16 %v3315_v20, %v3314_v32 }
 0xa60   : > { %4650 = vmatprep.subr.bf16.mxu0 %v4649_v40  ;;  %v4653_v55 = vpack.c.bf16 %v3313_v9, %v3312_v25 }
 0xa61   : > { %v4975_v49 = vpop.eup %4974  ;;  %4362 = vmatprep.mubr.msk.f32.mxu0 %vm2713_vm1, %v2884_v5 }
 0xa62   : > { %v4977_v50 = vpop.eup %4976  ;;  %4363 = vmatmul.mubr.msk.f32.gmra.mrb[54].mxu0 %vm2713_vm1, %v2885_v31  ;;  %v2889_v42 = vmul.f32 %v4975_v49, %v6424_v45  ;;  %v3318_v45 = vld [vmem:[#allocation14 + $0x60] sm:$0xff] }
 0xa63   : > { %v2888_v27 = vmul.f32 %v4977_v50, %v6426_v46  ;;  %4652 = vmatpush3.bf16.msra.mxu0 %v4649_v40  ;;  %v4661_v46 = vpack.c.bf16 %v3317_v18, %v3316_v17  ;;  %v4665_v29 = vpack.c.bf16 %v3319_v30, %v3318_v45 }
 0xa64   : > { %4654 = vmatprep.subr.bf16.mxu0 %v4653_v55 }
 0xa65   : > { %4370 = vmatprep.mubr.msk.f32.mxu1 %vm2713_vm1, %v2888_v27 }
 0xa66   : > { %4371 = vmatmul.mubr.msk.f32.gmra.mrb[42].mxu1 %vm2713_vm1, %v2889_v42 }
 0xa67   : > { %4656 = vmatpush3.bf16.msra.mxu0 %v4653_v55 }
 0xa68   : > { %4658 = vmatprep.subr.bf16.mxu0 %v4657_v47 }
 0xa6b   : > { %4660 = vmatpush3.bf16.msra.mxu0 %v4657_v47 }
 0xa6c   : > { %4662 = vmatprep.subr.bf16.mxu0 %v4661_v46 }
 0xa6f   : > { %4664 = vmatpush3.bf16.msra.mxu0 %v4661_v46 }
 0xa70   : > { %4666 = vmatprep.subr.bf16.mxu0 %v4665_v29 }
 0xa73   : > { %4668 = vmatpush3.bf16.msra.mxu0 %v4665_v29 }
 0xa74   : > { %4670 = vmatprep.subr.bf16.mxu0 %v4669_v16 }
 0xa77   : > { %4672 = vmatpush3.bf16.msra.mxu0 %v4669_v16 }
 0xb1d   : > { %v4345_v44 = vpop.f32.mrb[48].mxu0 }
 0xb1e   : > { %v3279_v4 = vmul.f32 %v6253_v34, %v4345_v44  ;;  %v2968_v53 = vpop.f32.mrb[49].mxu0 }
 0xb1f   : > { %v3278_v14 = vmul.f32 %v6247_v0, %v2968_v53  ;;  %v3476_v53 = vld [vmem:[#allocation16 + $0x8] sm:$0xff] }
 0xb21   : > { %v3294_v28 = vadd.f32 %v3279_v4, %v3278_v14  ;;  %v4348_v54 = vpop.f32.mrb[50].mxu0  ;;  %v3477_v14 = vld [vmem:[#allocation16 + $0x10] sm:$0xff] }
 0xb22   : > { %v2978_v41 = vpop.f32.mrb[51].mxu0  ;;  %v3281_v59 = vmul.f32 %v6265_v39, %v4348_v54  ;;  %v3478_v54 = vld [vmem:[#allocation16 + $0x18] sm:$0xff] }
 0xb23   : > { %v3280_v48 = vmul.f32 %v6259_v35, %v2978_v41  ;;  %v3479_v41 = vld [vmem:[#allocation16 + $0x20] sm:$0xff] }
 0xb25   : > { %v3295_v60 = vadd.f32 %v3294_v28, %v3280_v48  ;;  %v4353_v15 = vpop.f32.mrb[36].mxu1 }
 0xb26   : > { %v3283_v58 = vmul.f32 %v6253_v34, %v4353_v15  ;;  %v3065_v3 = vpop.f32.mrb[37].mxu1 }
 0xb27   : > { %v3282_v7 = vmul.f32 %v6247_v0, %v3065_v3  ;;  %v3296_v36 = vadd.f32 %v3295_v60, %v3281_v59 }
 0xb29   : > { %v3297_v62 = vadd.f32 %v3283_v58, %v3282_v7  ;;  %v4356_v2 = vpop.f32.mrb[38].mxu1  ;;  %4405 = vmatprep.mubr.f32.mxu0 %v3296_v36 }
 0xb2a   : > { %v3075_v13 = vpop.f32.mrb[39].mxu1  ;;  %v3285_v33 = vmul.f32 %v6265_v39, %v4356_v2 }
 0xb2b   : > { %v3284_v52 = vmul.f32 %v6259_v35, %v3075_v13 }
 0xb2d   : > { %v3298_v8 = vadd.f32 %v3297_v62, %v3284_v52  ;;  %v4361_v21 = vpop.f32.mrb[52].mxu0 }
 0xb2e   : > { %v3287_v6 = vmul.f32 %v6253_v34, %v4361_v21  ;;  %v3162_v10 = vpop.f32.mrb[53].mxu0 }
 0xb2f   : > { %v3299_v51 = vadd.f32 %v3298_v8, %v3285_v33  ;;  %v3286_v63 = vmul.f32 %v6247_v0, %v3162_v10  ;;  %v3482_v10 = vld [vmem:[#allocation16 + $0x38] sm:$0xff] }
 0xb31   : > { %v3300_v37 = vadd.f32 %v3287_v6, %v3286_v63  ;;  %v4369_v38 = vpop.f32.mrb[40].mxu1  ;;  %4406 = vmatmul.mubr.f32.vlgmr.msra.gmra.mrb[56].mxu0 %v3299_v51  ;;  %v3481_v6 = vld [vmem:[#allocation16 + $0x30] sm:$0xff]  ;;  %v3483_v63 = vld [vmem:[#allocation16 + $0x40] sm:$0xff] }
 0xb32   : > { %v3291_v40 = vmul.f32 %v6253_v34, %v4369_v38  ;;  %v3259_v56 = vpop.f32.mrb[41].mxu1  ;;  %v4685_v51 = vpack.c.bf16 %v3482_v10, %v3481_v6 }
 0xb33   : > { %v3290_v11 = vmul.f32 %v6247_v0, %v3259_v56  ;;  %v3324_v0 = vsub.s32 4, %v5899_v23  ;;  %v3486_v56 = vld [vmem:[#allocation16 + $0x58] sm:$0xff] }
 0xb35   : > { %v3303_v5 = vadd.f32 %v3291_v40, %v3290_v11  ;;  %v4364_v31 = vpop.f32.mrb[54].mxu0  ;;  %v3325_v17 = vrot.slane %v6210_v61, %v3324_v0  ;;  %v3475_v61 = vld [vmem:[#allocation16] sm:$0xff]  ;;  %v3485_v40 = vld [vmem:[#allocation16 + $0x50] sm:$0xff]  ;;  %v3469_v0 = vsub.s32 6, %v5899_v23 }
 0xb36   : > { %v3172_v49 = vpop.f32.mrb[55].mxu0  ;;  %v3289_v27 = vmul.f32 %v6265_v39, %v4364_v31  ;;  %v4673_v28 = vpack.c.bf16 %v3476_v53, %v3475_v61  ;;  %v4693_v11 = vpack.c.bf16 %v3486_v56, %v3485_v40  ;;  %v3488_v31 = vld [vmem:[#allocation16 + $0x68] sm:$0xff] }
 0xb37   : > { %v3288_v50 = vmul.f32 %v6259_v35, %v3172_v49 }
 0xb38   : > { %4674 = vmatprep.subr.bf16.mxu1 %v4673_v28 }
 0xb39   : > { %v3301_v42 = vadd.f32 %v3300_v37, %v3288_v50  ;;  %v4372_v25 = vpop.f32.mrb[42].mxu1  ;;  %4676 = vmatpush3.bf16.msra.mxu1 %v4673_v28  ;;  %v3484_v37 = vld [vmem:[#allocation16 + $0x48] sm:$0xff]  ;;  %v3489_v50 = vld [vmem:[#allocation16 + $0x70] sm:$0xff] }
 0xb3a   : > { %v3269_v9 = vpop.f32.mrb[43].mxu1  ;;  %v3293_v20 = vmul.f32 %v6265_v39, %v4372_v25  ;;  %v4689_v38 = vpack.c.bf16 %v3484_v37, %v3483_v63 }
 0xb3b   : > { %v3292_v55 = vmul.f32 %v6259_v35, %v3269_v9  ;;  %v3302_v32 = vadd.f32 %v3301_v42, %v3289_v27  ;;  %v3490_v27 = vld [vmem:[#allocation16 + $0x78] sm:$0xff] }
 0xb3c   : > { %v4701_v42 = vpack.c.bf16 %v3490_v27, %v3489_v50 }
 0xb3d   : > { %v3304_v47 = vadd.f32 %v3303_v5, %v3292_v55  ;;  %4408 = vmatprep.mubr.f32.mxu0 %v3302_v32  ;;  %v3487_v5 = vld [vmem:[#allocation16 + $0x60] sm:$0xff] }
 0xb3e   : > { %v4697_v49 = vpack.c.bf16 %v3488_v31, %v3487_v5 }
 0xb3f   : > { %v3305_v34 = vadd.f32 %v3304_v47, %v3293_v20 }
 0xb41   : > { %4409 = vmatmul.mubr.f32.gmra.mrb[58].mxu0 %v3305_v34  ;;  %v3461_v34 = vsub.s32 5, %v5899_v23 }
 0xc04   : > { %v4407_v18 = vpop.f32.mrb[56].mxu0 }
 0xc05   : > { %v3398_v46 = vadd.f32 %v4407_v18, %v3325_v17  ;;  %v3392_v45 = vpop.f32.mrb[57].mxu0 }
 0xc06   : > { %v3393_v30 = vadd.f32 %v3392_v45, %v3325_v17 }
 0xc07   : > { %v3412_v29 = vadd.f32 %v3398_v46, %v6220_v43  ;;  %v4677_v43 = vpack.c.bf16 %v3478_v54, %v3477_v14 }
 0xc08   : > { %v3411_v22 = vadd.f32 %v3393_v30, %v6218_v1  ;;  %v3480_v1 = vld [vmem:[#allocation16 + $0x28] sm:$0xff] }
 0xc09   : > { %3417 = vadd.xlane.f32.xlu1 %v3412_v29  ;;  %4678 = vmatprep.subr.bf16.mxu1 %v4677_v43  ;;  %v4681_v48 = vpack.c.bf16 %v3480_v1, %v3479_v41 }
 0xc0a   : > { %3415 = vadd.xlane.f32.xlu0 %v3411_v22  ;;  %4680 = vmatpush3.bf16.msra.mxu1 %v4677_v43 }
 0xc0b   : > { %4682 = vmatprep.subr.bf16.mxu1 %v4681_v48 }
 0xc0e   : > { %4684 = vmatpush3.bf16.msra.mxu1 %v4681_v48 }
 0xc0f   : > { %4686 = vmatprep.subr.bf16.mxu1 %v4685_v51 }
 0xc12   : > { %4688 = vmatpush3.bf16.msra.mxu1 %v4685_v51 }
 0xc13   : > { %4690 = vmatprep.subr.bf16.mxu1 %v4689_v38 }
 0xc14   : > { %v4410_v35 = vpop.f32.mrb[58].mxu0 }
 0xc15   : > { %v3408_v39 = vadd.f32 %v4410_v35, %v3325_v17  ;;  %v3402_v12 = vpop.f32.mrb[59].mxu0 }
 0xc16   : > { %v3403_v16 = vadd.f32 %v3402_v12, %v3325_v17  ;;  %4692 = vmatpush3.bf16.msra.mxu1 %v4689_v38  ;;  %v5001_v17 = vld [vmem:[#allocation17] sm:$0xff] }
 0xc17   : > { %v3414_v44 = vadd.f32 %v3408_v39, %v6232_v19  ;;  %4694 = vmatprep.subr.bf16.mxu1 %v4693_v11  ;;  %v3462_v18 = vrot.slane %v5001_v17, %v3461_v34  ;;  %v3470_v12 = vrot.slane %v5001_v17, %v3469_v0 }
 0xc18   : > { %v3413_v4 = vadd.f32 %v3403_v16, %v6230_v57 }
 0xc19   : > { %3421 = vadd.xlane.f32.xlu1 %v3414_v44 }
 0xc1a   : > { %3419 = vadd.xlane.f32.xlu0 %v3413_v4  ;;  %4696 = vmatpush3.bf16.msra.mxu1 %v4693_v11 }
 0xc1b   : > { %4698 = vmatprep.subr.bf16.mxu1 %v4697_v49 }
 0xc1e   : > { %4700 = vmatpush3.bf16.msra.mxu1 %v4697_v49 }
 0xc1f   : > { %4702 = vmatprep.subr.bf16.mxu1 %v4701_v42 }
 0xc22   : > { %4704 = vmatpush3.bf16.msra.mxu1 %v4701_v42 }
 0xc96   : > { %v3418_v19 = vpop.xlane.xlu1 %3417 }
 0xc97   : > { %v3424_v59 = vmul.f32 0.0078125, %v3418_v19  ;;  %v3416_v57 = vpop.xlane.xlu0 %3415 }
 0xc98   : > { %v3423_v60 = vmul.f32 0.0078125, %v3416_v57 }
 0xc99   : > { %v3428_v15 = vsub.f32 %v3412_v29, %v3424_v59 }
 0xc9a   : > { %v3427_v58 = vsub.f32 %v3411_v22, %v3423_v60  ;;  %v3493_v60 = vsub.s32 7, %v5899_v23 }
 0xc9b   : > { %v3432_v3 = vmul.f32 %v3428_v15, %v3428_v15 }
 0xc9c   : > { %v3431_v7 = vmul.f32 %v3427_v58, %v3427_v58 }
 0xc9d   : > { %3437 = vadd.xlane.f32.xlu1 %v3432_v3 }
 0xc9e   : > { %3435 = vadd.xlane.f32.xlu0 %v3431_v7 }
 0xca6   : > { %v3422_v36 = vpop.xlane.xlu1 %3421 }
 0xca7   : > { %v3426_v62 = vmul.f32 0.0078125, %v3422_v36  ;;  %v3420_v2 = vpop.xlane.xlu0 %3419 }
 0xca8   : > { %v3425_v13 = vmul.f32 0.0078125, %v3420_v2 }
 0xca9   : > { %v6488_v52 = vsub.f32 %v3414_v44, %v3426_v62 }
 0xcaa   : > { %v6490_v33 = vsub.f32 %v3413_v4, %v3425_v13 }
 0xcab   : > { %v3434_v8 = vmul.f32 %v6488_v52, %v6488_v52 }
 0xcac   : > { %v3433_v21 = vmul.f32 %v6490_v33, %v6490_v33 }
 0xcad   : > { %3441 = vadd.xlane.f32.xlu1 %v3434_v8 }
 0xcae   : > { %3439 = vadd.xlane.f32.xlu0 %v3433_v21 }
 0xd2a   : > { %v3438_v25 = vpop.xlane.xlu1 %3437 }
 0xd2b   : > { %v3444_v9 = vmul.f32 0.0078125, %v3438_v25  ;;  %v3436_v55 = vpop.xlane.xlu0 %3435 }
 0xd2c   : > { %v3443_v32 = vmul.f32 0.0078125, %v3436_v55 }
 0xd2d   : > { %v3448_v20 = vadd.f32 1e-05, %v3444_v9 }
 0xd2e   : > { %v3447_v47 = vadd.f32 1e-05, %v3443_v32 }
 0xd2f   : > { %4978 = vrsqrt.f32 %v3448_v20 }
 0xd30   : > { %4980 = vrsqrt.f32 %v3447_v47 }
 0xd39   : > { %v4979_v46 = vpop.eup %4978 }
 0xd3a   : > { %v4981_v45 = vpop.eup %4980  ;;  %v3456_v30 = vmul.f32 %v4979_v46, %v3428_v15  ;;  %v3442_v29 = vpop.xlane.xlu1 %3441  ;;  %v3494_v15 = vrot.slane %v5001_v17, %v3493_v60 }
 0xd3b   : > { %v3446_v22 = vmul.f32 0.0078125, %v3442_v29  ;;  %v3440_v35 = vpop.xlane.xlu0 %3439  ;;  %v3455_v39 = vmul.f32 %v4981_v45, %v3427_v58  ;;  %v648_v45 = vld [vmem:[#allocation17 + $0x8] sm:$0x3] }
 0xd3c   : > { %v3445_v16 = vmul.f32 0.0078125, %v3440_v35  ;;  %v3464_v44 = vmul.f32 %v3462_v18, %v3456_v30  ;;  %v3635_v30 = vrot.slane %v648_v45, %v5902_v24  ;;  %v3643_v35 = vrot.slane %v648_v45, %v5908_v26 }
 0xd3d   : > { %v3450_v4 = vadd.f32 1e-05, %v3446_v22  ;;  %v3463_v61 = vmul.f32 %v3462_v18, %v3455_v39 }
 0xd3e   : > { %v3449_v53 = vadd.f32 1e-05, %v3445_v16  ;;  %v3472_v28 = vadd.f32 %v3470_v12, %v3464_v44 }
 0xd3f   : > { %4982 = vrsqrt.f32 %v3450_v4  ;;  %v3471_v14 = vadd.f32 %v3470_v12, %v3463_v61 }
 0xd40   : > { %4984 = vrsqrt.f32 %v3449_v53 }
 0xd41   : > { %4443 = vmatprep.mubr.f32.mxu1 %v3471_v14 }
 0xd42   : > { %4444 = vmatmul.mubr.f32.vlgmr.msra.gmra.mrb[44].mxu1 %v3472_v28 }
 0xd49   : > { %v4983_v54 = vpop.eup %4982 }
 0xd4a   : > { %v4985_v43 = vpop.eup %4984  ;;  %v3458_v41 = vmul.f32 %v4983_v54, %v6488_v52 }
 0xd4b   : > { %v3457_v1 = vmul.f32 %v4985_v43, %v6490_v33 }
 0xd4c   : > { %v3466_v48 = vmul.f32 %v3462_v18, %v3458_v41 }
 0xd4d   : > { %v3465_v19 = vmul.f32 %v3462_v18, %v3457_v1 }
 0xd4e   : > { %v3474_v57 = vadd.f32 %v3470_v12, %v3466_v48 }
 0xd4f   : > { %v3473_v59 = vadd.f32 %v3470_v12, %v3465_v19 }
 0xd51   : > { %4446 = vmatprep.mubr.f32.mxu1 %v3473_v59 }
 0xd52   : > { %4447 = vmatmul.mubr.f32.gmra.mrb[46].mxu1 %v3474_v57 }
 0xe15   : > { %v4445_v58 = vpop.f32.mrb[44].mxu1 }
 0xe16   : > { %v3567_v3 = vadd.f32 %v4445_v58, %v3494_v15  ;;  %v3561_v7 = vpop.f32.mrb[45].mxu1 }
 0xe17   : > { %v3562_v36 = vadd.f32 %v3561_v7, %v3494_v15 }
 0xe18   : > { %v3581_v62 = vmax.f32 %v3567_v3, 0.0 }
 0xe19   : > { %v3580_v2 = vmax.f32 %v3562_v36, 0.0 }
 0xe1a   : > { %v3585_v13 = vadd.f32 %v3581_v62, %v3472_v28 }
 0xe1b   : > { %v3584_v8 = vadd.f32 %v3580_v2, %v3471_v14 }
 0xe1c   : > { %3590 = vadd.xlane.f32.xlu1 %v3585_v13 }
 0xe1d   : > { %3588 = vadd.xlane.f32.xlu0 %v3584_v8 }
 0xe25   : > { %v4448_v52 = vpop.f32.mrb[46].mxu1 }
 0xe26   : > { %v3577_v33 = vadd.f32 %v4448_v52, %v3494_v15  ;;  %v3571_v21 = vpop.f32.mrb[47].mxu1 }
 0xe27   : > { %v3572_v6 = vadd.f32 %v3571_v21, %v3494_v15 }
 0xe28   : > { %v3583_v10 = vmax.f32 %v3577_v33, 0.0 }
 0xe29   : > { %v3582_v51 = vmax.f32 %v3572_v6, 0.0 }
 0xe2a   : > { %v3587_v63 = vadd.f32 %v3583_v10, %v3474_v57 }
 0xe2b   : > { %v3586_v37 = vadd.f32 %v3582_v51, %v3473_v59 }
 0xe2c   : > { %3594 = vadd.xlane.f32.xlu1 %v3587_v63 }
 0xe2d   : > { %3592 = vadd.xlane.f32.xlu0 %v3586_v37 }
 0xea9   : > { %v3591_v23 = vpop.xlane.xlu1 %3590 }
 0xeaa   : > { %v3597_v38 = vmul.f32 0.0078125, %v3591_v23  ;;  %v3589_v40 = vpop.xlane.xlu0 %3588 }
 0xeab   : > { %v3596_v56 = vmul.f32 0.0078125, %v3589_v40 }
 0xeac   : > { %v3601_v11 = vsub.f32 %v3585_v13, %v3597_v38 }
 0xead   : > { %v3600_v5 = vsub.f32 %v3584_v8, %v3596_v56 }
 0xeae   : > { %v3605_v31 = vmul.f32 %v3601_v11, %v3601_v11 }
 0xeaf   : > { %v3604_v49 = vmul.f32 %v3600_v5, %v3600_v5 }
 0xeb0   : > { %3610 = vadd.xlane.f32.xlu1 %v3605_v31 }
 0xeb1   : > { %3608 = vadd.xlane.f32.xlu0 %v3604_v49 }
 0xeb9   : > { %v3595_v50 = vpop.xlane.xlu1 %3594 }
 0xeba   : > { %v3599_v27 = vmul.f32 0.0078125, %v3595_v50  ;;  %v3593_v42 = vpop.xlane.xlu0 %3592 }
 0xebb   : > { %v3598_v25 = vmul.f32 0.0078125, %v3593_v42 }
 0xebc   : > { %v3603_v9 = vsub.f32 %v3587_v63, %v3599_v27 }
 0xebd   : > { %v3602_v55 = vsub.f32 %v3586_v37, %v3598_v25 }
 0xebe   : > { %v3607_v32 = vmul.f32 %v3603_v9, %v3603_v9 }
 0xebf   : > { %v3606_v20 = vmul.f32 %v3602_v55, %v3602_v55 }
 0xec0   : > { %3614 = vadd.xlane.f32.xlu1 %v3607_v32 }
 0xec1   : > { %3612 = vadd.xlane.f32.xlu0 %v3606_v20 }
 0xf3d   : > { %v3611_v47 = vpop.xlane.xlu1 %3610 }
 0xf3e   : > { %v3617_v34 = vmul.f32 0.0078125, %v3611_v47  ;;  %v3609_v0 = vpop.xlane.xlu0 %3608 }
 0xf3f   : > { %v3616_v17 = vmul.f32 0.0078125, %v3609_v0 }
 0xf40   : > { %v3621_v18 = vadd.f32 1e-05, %v3617_v34 }
 0xf41   : > { %v3620_v46 = vadd.f32 1e-05, %v3616_v17 }
 0xf42   : > { %4986 = vrsqrt.f32 %v3621_v18 }
 0xf43   : > { %4988 = vrsqrt.f32 %v3620_v46 }
 0xf4c   : > { %v4987_v29 = vpop.eup %4986 }
 0xf4d   : > { %v4989_v22 = vpop.eup %4988  ;;  %v3629_v39 = vmul.f32 %v4987_v29, %v3601_v11  ;;  %v3615_v12 = vpop.xlane.xlu1 %3614 }
 0xf4e   : > { %v3628_v16 = vmul.f32 %v4989_v22, %v3600_v5  ;;  %v3619_v44 = vmul.f32 0.0078125, %v3615_v12  ;;  %v3613_v4 = vpop.xlane.xlu0 %3612 }
 0xf4f   : > { %v3637_v61 = vmul.f32 %v3635_v30, %v3629_v39  ;;  %v3618_v53 = vmul.f32 0.0078125, %v3613_v4 }
 0xf50   : > { %v3636_v14 = vmul.f32 %v3635_v30, %v3628_v16  ;;  %v3623_v28 = vadd.f32 1e-05, %v3619_v44 }
 0xf51   : > { %v3645_v54 = vadd.f32 %v3643_v35, %v3637_v61  ;;  %v3622_v43 = vadd.f32 1e-05, %v3618_v53 }
 0xf52   : > { %v3644_v41 = vadd.f32 %v3643_v35, %v3636_v14  ;;  %4990 = vrsqrt.f32 %v3623_v28 }
 0xf53   : > { %3649 = vst [vmem:[%s638_s10 + $0x8] sm:$0xff] %v3645_v54  ;;  %4992 = vrsqrt.f32 %v3622_v43 }
 0xf54   : > { %3648 = vst [vmem:[%s638_s10] sm:$0xff] %v3644_v41 }
 0xf5c   : > { %v4991_v24 = vpop.eup %4990 }
 0xf5d   : > { %v4993_v26 = vpop.eup %4992  ;;  %v3631_v1 = vmul.f32 %v4991_v24, %v3603_v9 }
 0xf5e   : > { %v3630_v48 = vmul.f32 %v4993_v26, %v3602_v55 }
 0xf5f   : > { %v3639_v19 = vmul.f32 %v3635_v30, %v3631_v1 }
 0xf60   : > { %v3638_v59 = vmul.f32 %v3635_v30, %v3630_v48 }
 0xf61   : > { %v3647_v57 = vadd.f32 %v3643_v35, %v3639_v19 }
 0xf62   : > { %v3646_v60 = vadd.f32 %v3643_v35, %v3638_v59 }
 0xf63   : > { %3651 = vst [vmem:[%s638_s10 + $0x18] sm:$0xff] %v3647_v57 }
 0xf64   : > { %3650 = vst [vmem:[%s638_s10 + $0x10] sm:$0xff] %v3646_v60 }
 0xf65   : > { %5301 = shalt.err (!%p5298_p13)
}
 0xf66   : > { %s5302_s17 = scalar_lea.hbm %s6509_s12, 512  ;;  %s5306_s11 = scalar_lea.hbm %s6639_s24, 1024 }
 0xf67   : > { %p5303_p5 = scmp.ne.s32.totalorder %s6509_s12, %s5302_s17  ;;  %p5307_p3 = scmp.lt.u32.totalorder %s6509_s12, %s6639_s24 }
 0xf68   : > { %p5308_p2 = scmp.lt.u32.totalorder %s5306_s11, %s5302_s17  ;;  %p5310_p8 = scmp.lt.u32.totalorder %s5302_s17, %s6509_s12 }
 0xf69   : > { %p5304_p9 = pnand %p5303_p5, %p6640_p4 }
 0xf6a   : > { %p5309_p0 = por %p5308_p2, %p5307_p3 }
 0xf6b   : > { %p5305_p11 = pneg %p5304_p9 }
 0xf6c   : > { %p5311_p7 = por %p5310_p8, %p5309_p0 }
 0xf6e   : > { %p5312_p12 = pnand %p5311_p7, %p5305_p11 }
 0xf70   : > { %5315 = shalt.err (!%p5312_p12)
}
 0xf71   : > { %s5395_s3 = smov 128   ;;  %s5396_s25 = smov 8  }
 0xf72   : > { %4739 = dma.vmem_to_hbm [thread:$0]  (%p6640_p4), %s6511_s1, 512, %s6509_s12, %s3653_s7, %s5395_s3, %s5395_s3, %s5396_s25  }
 0xf73 PF: > { %s6641_s10 = sld [smem:[#allocation27_spill]]  ;;  %s6642_s21 = sld [smem:[#allocation32_spill]] }
 0xf74   : > { %p6644_p10 = scmp.ge.s32.totalorder %s5374_s28, 2 }
 0xf79   : > { %s3681_s18 = sand.u32 1, %s6641_s10   ;;  %p6643_p1 = scmp.ne.s32.totalorder %s6642_s21, 0 }
 0xf7a   : > { %s3682_s19 = scalar_lea.sflag [#allocation4], %s3681_s18 }
 0xf7b   : > { %p4774_p6 = pnand %p6644_p10, %p6643_p1 }
 0xf7d   : > { %5357 = dma.done.wait (!%p4774_p6), %s3682_s19, 512  }
 0xf7e   : > { %5359 = vsyncadd (!%p4774_p6), %s3682_s19, 4294966784  ;;  %s6645_s28 = sld [smem:[#allocation30_spill]]  ;;  %s6646_s15 = sld [smem:[#allocation28_spill]] }
 0xf7f   : > { %s6647_s27 = sld [smem:[#allocation31_spill]]  ;;  %s6648_s25 = smov %s5366_s26 }
 0xf84   : > { %p33_p13 = scmp.ge.s32.totalorder %s6645_s28, 4   ;;  %s6649_s26 = smov %s6646_s15 }
 0xf86   :  { %35 = sbr.rel (!%p33_p13) target bundleno = 20 (0x14), region = 169 }
 0xf8d   :  { %3687 = vsyncpa [#allocation3], 1 }
 0xf8e   :  { %3689 = vsyncpa [#allocation3 + $0x1], 1 }
 0xf8f   :  { %3690 = vsyncpa [#allocation6], 1 }
 0xf90   :  { %3692 = vsyncpa [#allocation6 + $0x1], 1 }
 0xf91   :  { %3693 = vsyncpa [#allocation9], 1 }
 0xf92   :  { %3694 = vsyncpa [#allocation12], 1 }
 0xf93   :  { %3695 = vsyncpa [#allocation15], 1 }
 0xf94   :  { %3696 = vsyncpa [#allocation18], 1 }
 0xf95   :  { %3697 = vsyncpa [#allocation4], 1 }
 0xf96   :  { %3699 = vsyncpa [#allocation4 + $0x1], 1 }

// kernel: tpu_custom_call.1
= control target key start
LH: loop header
LB: loop body
LE: loop exit
PB: predicated region body
PF: predicated region fallthrough
CT: control target
= control target key end

     0   :  { %s6555_s0 = inlined_call_operand.hbm [shape: f32[8,16,128], index: 0, kind: input, shape index: {}]   ;;  %s6556_s1 = inlined_call_operand.hbm [shape: f32[8,1,16], index: 1, kind: input, shape index: {}]   ;;  %s6557_s2 = inlined_call_operand.hbm [shape: f32[8,8,128], index: 2, kind: input, shape index: {}]   ;;  %s6558_s3 = inlined_call_operand.hbm [shape: f32[128,128], index: 3, kind: input, shape index: {}]   ;;  %s6559_s4 = inlined_call_operand.hbm [shape: f32[128,256], index: 4, kind: input, shape index: {}]   ;;  %s6560_s5 = inlined_call_operand.hbm [shape: f32[128,128], index: 5, kind: input, shape index: {}]   ;;  %s6561_s6 = inlined_call_operand.hbm [shape: f32[128,384], index: 6, kind: input, shape index: {}]   ;;  %s6562_s7 = inlined_call_operand.hbm [shape: f32[128,128], index: 7, kind: input, shape index: {}]   ;;  %s6563_s8 = inlined_call_operand.hbm [shape: f32[128,128], index: 8, kind: input, shape index: {}]   ;;  %s6564_s9 = inlined_call_operand.hbm [shape: f32[10,128], index: 9, kind: input, shape index: {}]   ;;  %s6565_s10 = inlined_call_operand.vmem [shape: f32[1,256], index: 10, kind: input, shape index: {}]   ;;  %s6566_s11 = inlined_call_operand.vmem [shape: f32[1,384], index: 11, kind: input, shape index: {}]   ;;  %s6567_s12 = inlined_call_operand.vmem [shape: f32[32,128], index: 12, kind: input, shape index: {}]   ;;  %s6568_s13 = inlined_call_operand.hbm [shape: f32[8,8,128], index: 13, kind: output, shape index: {}]  }
   0x1   :  { %6593 = sst [smem:[#allocation33_spill]] %s6556_s1 }
   0x2   :  { %6594 = sst [smem:[#allocation34_spill]] %s6558_s3 }
   0x3   :  { %6595 = sst [smem:[#allocation35_spill]] %s6560_s5 }
   0x4   :  { %6596 = sst [smem:[#allocation36_spill]] %s6562_s7 }
   0x5   :  { %6597 = sst [smem:[#allocation37_spill]] %s6565_s10 }
   0x6   :  { %6598 = sst [smem:[#allocation38_spill]] %s6566_s11 }
   0x7   :  { %6599 = sst [smem:[#allocation39_spill]] %s6567_s12 }
   0x8   :  { %6600 = sst [smem:[#allocation40_spill]] %s6568_s13 }
   0x9   :  { %18 = vsyncpa [#allocation3], 0 }
   0xa   :  { %20 = vsyncpa [#allocation3 + $0x1], 0 }
   0xb   :  { %21 = vsyncpa [#allocation6], 0 }
   0xc   :  { %23 = vsyncpa [#allocation6 + $0x1], 0 }
   0xd   :  { %24 = vsyncpa [#allocation9], 0 }
   0xe   :  { %25 = vsyncpa [#allocation12], 0 }
   0xf   :  { %26 = vsyncpa [#allocation15], 0 }
  0x10   :  { %27 = vsyncpa [#allocation18], 0 }
  0x11   :  { %28 = vsyncpa [#allocation4], 0 }
  0x12   :  { %30 = vsyncpa [#allocation4 + $0x1], 0  ;;  %s5467_s25 = smov 0   ;;  %s5469_s26 = smov 0  }
  0x13   :  { %s5471_s27 = smov 0   ;;  %s5473_s28 = smov 0  }
  0x14 LB: > { %6601 = sst [smem:[#allocation27_spill]] %s5362_s25  ;;  %s5376_s29 = smov [#allocation8]   ;;  %s5374_s28 = sphi %s5473_s28, %s6645_s28   ;;  %s5370_s27 = sphi %s5471_s27, %s6647_s27   ;;  %s5366_s26 = sphi %s5469_s26, %s6649_s26   ;;  %s5362_s25 = sphi %s5467_s25, %s6648_s25  }
  0x15   : > { %6602 = sst [smem:[#allocation28_spill]] %s5370_s27  ;;  %s367_s30 = sshll.u32 %s5376_s29, 4  ;;  %s5493_s30 = int_to_ptr.vmem [resolvable:$true] %s367_s30 }
  0x16   : > { %s5488_s14 = sadd.s32 4294967295, %s5374_s28   ;;  %p3850_p0 = scmp.ge.s32.totalorder %s5374_s28, 1 }
  0x17   : > { %p6577_p1 = scmp.eq.s32.totalorder %s5488_s14, 0  ;;  %p355_p2 = scmp.lt.s32.totalorder %s5374_s28, 3 }
  0x18   : > { %s5377_s16 = smov [#allocation11]   ;;  %s5378_s19 = smov [#allocation14]  }
  0x19   : > { %p5495_p3 = pnand %p3850_p0, %p355_p2  ;;  %s393_s17 = sshll.u32 %s5377_s16, 4  ;;  %s5508_s17 = int_to_ptr.vmem [resolvable:$true] %s393_s17 }
  0x1a   : > { %s419_s20 = sshll.u32 %s5378_s19, 4  ;;  %s6606_s3 = sld [smem:[#allocation34_spill]]  ;;  %s5510_s20 = int_to_ptr.vmem [resolvable:$true] %s419_s20 }
  0x1b   : > { %s6603_s15 = scalar_select %p5495_p3, 1, 0 }
  0x1c   : > { %p4741_p5 = pneg %p5495_p3 }
  0x1d   : > { %6604 = sst [smem:[#allocation29_spill]] %s6603_s15 }
  0x1e   : > { %p5504_p6 = pnand %p4741_p5, %p6577_p1 }
  0x20   : > { %s6605_s18 = scalar_select %p5504_p6, 1, 0 }
  0x21   : > { %s5002_s23 = scalar_lea.hbm %s6606_s3, 2048  ;;  %p5520_p8 = pneg %p5504_p6 }
  0x22   : > { %p5003_p7 = scmp.ne.s32.totalorder %s6606_s3, %s5002_s23  ;;  %p5009_p11 = scmp.lt.u32.totalorder %s5002_s23, %s6606_s3 }
  0x23   : > { %s6607_s16 = scalar_select %p5520_p8, 1, 0 }
  0x24   : > { %p5005_p9 = pnand %p5520_p8, %p5003_p7 }
  0x26   : > { %p5006_p10 = pneg %p5005_p9 }
  0x28   : > { %p5011_p12 = pnand %p5009_p11, %p5006_p10 }
  0x2a   : > { %5014 = shalt.err (!%p5011_p12)
}
  0x2b   : > { %s5015_s21 = scalar_lea.vmem %s5493_s30, 2048  ;;  %p5023_p5 = scmp.lt.s32.totalorder %s5493_s30, %s5493_s30 }
  0x2c   : > { %p5016_p13 = scmp.ne.s32.totalorder %s5493_s30, %s5015_s21  ;;  %p5024_p4 = scmp.lt.s32.totalorder %s5015_s21, %s5015_s21 }
  0x2e   : > { %p5018_p0 = pnand %p5016_p13, %p5520_p8  ;;  %p5025_p7 = por %p5024_p4, %p5023_p5 }
  0x30   : > { %p5019_p2 = pneg %p5018_p0 }
  0x32   : > { %p5026_p9 = pnand %p5025_p7, %p5019_p2 }
  0x34   : > { %5029 = shalt.err (!%p5026_p9)
}
  0x35   : > { %s6573_s22 = smov 128   ;;  %s6575_s13 = smov 8  }
  0x36   : > { %4744 = dma.hbm_to_vmem [thread:$0]  (!%p5504_p6), %s6606_s3, 2048, %s5493_s30, [#allocation9], %s6573_s22, %s6573_s22, %s6575_s13  }
  0x37   : > { %s6608_s5 = sld [smem:[#allocation35_spill]] }
  0x3d   : > { %s5030_s21 = scalar_lea.hbm %s6608_s5, 2048 }
  0x3e   : > { %p5031_p4 = scmp.ne.s32.totalorder %s6608_s5, %s5030_s21  ;;  %p5037_p12 = scmp.lt.u32.totalorder %s5030_s21, %s6608_s5 }
  0x40   : > { %p5033_p10 = pnand %p5031_p4, %p5520_p8 }
  0x42   : > { %p5034_p11 = pneg %p5033_p10 }
  0x44   : > { %p5039_p13 = pnand %p5037_p12, %p5034_p11 }
  0x46   : > { %5042 = shalt.err (!%p5039_p13)
}
  0x47   : > { %s5043_s30 = scalar_lea.vmem %s5508_s17, 2048  ;;  %p5051_p7 = scmp.lt.s32.totalorder %s5508_s17, %s5508_s17 }
  0x48   : > { %p5044_p0 = scmp.ne.s32.totalorder %s5508_s17, %s5043_s30  ;;  %p5052_p9 = scmp.lt.s32.totalorder %s5043_s30, %s5043_s30 }
  0x4a   : > { %p5046_p2 = pnand %p5044_p0, %p5520_p8  ;;  %p5053_p4 = por %p5052_p9, %p5051_p7 }
  0x4c   : > { %p5047_p5 = pneg %p5046_p2 }
  0x4e   : > { %p5054_p10 = pnand %p5053_p4, %p5047_p5 }
  0x50   : > { %5057 = shalt.err (!%p5054_p10)
}
  0x51   : > { %4750 = dma.hbm_to_vmem [thread:$0]  (!%p5504_p6), %s6608_s5, 2048, %s5508_s17, [#allocation12], %s6573_s22, %s6573_s22, %s6575_s13  }
  0x52   : > { %s6609_s7 = sld [smem:[#allocation36_spill]] }
  0x58   : > { %s5058_s23 = scalar_lea.hbm %s6609_s7, 2048 }
  0x59   : > { %p5059_p11 = scmp.ne.s32.totalorder %s6609_s7, %s5058_s23  ;;  %p5065_p0 = scmp.lt.u32.totalorder %s5058_s23, %s6609_s7 }
  0x5b   : > { %p5061_p12 = pnand %p5059_p11, %p5520_p8 }
  0x5d   : > { %p5062_p13 = pneg %p5061_p12 }
  0x5f   : > { %p5067_p2 = pnand %p5065_p0, %p5062_p13 }
  0x61   : > { %5070 = shalt.err (!%p5067_p2)
}
  0x62   : > { %s5071_s17 = scalar_lea.vmem %s5510_s20, 2048  ;;  %p5079_p4 = scmp.lt.s32.totalorder %s5510_s20, %s5510_s20 }
  0x63   : > { %p5072_p5 = scmp.ne.s32.totalorder %s5510_s20, %s5071_s17  ;;  %p5080_p10 = scmp.lt.s32.totalorder %s5071_s17, %s5071_s17 }
  0x65   : > { %p5074_p7 = pnand %p5072_p5, %p5520_p8  ;;  %p5081_p11 = por %p5080_p10, %p5079_p4 }
  0x67   : > { %p5075_p9 = pneg %p5074_p7 }
  0x69   : > { %p5082_p12 = pnand %p5081_p11, %p5075_p9 }
  0x6b   : > { %5085 = shalt.err (!%p5082_p12)
}
  0x6c   : > { %4756 = dma.hbm_to_vmem [thread:$0]  (!%p5504_p6), %s6609_s7, 2048, %s5510_s20, [#allocation15], %s6573_s22, %s6573_s22, %s6575_s13  }
  0x6d   : > { %s3849_s11 = sadd.s32 4294967294, %s5374_s28   ;;  %s5598_s12 = sadd.s32 1, %s5374_s28  }
  0x6e   : > { %6610 = sst [smem:[#allocation30_spill]] %s5598_s12  ;;  %s43_s15 = sadd.s32 1, %s5370_s27 }
  0x6f   : > { %s40_s23 = ssub.s32 %s5374_s28, %s5598_s12  ;;  %p50_p13 = scmp.ne.s32.totalorder %s5370_s27, %s5366_s26 }
  0x70   : > { %p41_p0 = scmp.eq.s32.totalorder %s40_s23, 0  ;;  %p51_p2 = scmp.eq.s32.totalorder %s5374_s28, 0 }
  0x71   : > { %p56_p5 = scmp.ne.s32.totalorder %s5366_s26, %s5362_s25  ;;  %p342_p7 = scmp.eq.s32.totalorder %s5488_s14, 1 }
  0x72   : > { %s5610_s24 = scalar_select %p41_p0, %s5370_s27, %s43_s15  }
  0x73   : > { %p52_p9 = por %p51_p2, %p50_p13  ;;  %p5614_p4 = por %p6577_p1, %p56_p5 }
  0x74   : > { %6611 = sst [smem:[#allocation31_spill]] %s5610_s24  ;;  %p5618_p10 = por %p342_p7, %p50_p13 }
  0x75   : > { %s6612_s20 = scalar_select %p5614_p4, 1, 0 }
  0x76   : > { %s6613_s29 = scalar_select %p5618_p10, 1, 0 }
  0x77   : > { %p348_p11 = scmp.eq.s32.totalorder %s3849_s11, 1  ;;  %p4784_p12 = scmp.lt.s32.totalorder %s5374_s28, 2 }
  0x78   : > { %s5628_s21 = sand.u32 1, %s5370_s27   ;;  %s490_s30 = sand.u32 1, %s5374_s28  }
  0x79   : > { %p5623_p3 = por %p348_p11, %p56_p5  ;;  %p5630_p0 = pnand %p4784_p12, %p52_p9 }
  0x7a   : > { %s3863_s10 = sshll.u32 %s5628_s21, 2  ;;  %s3924_s15 = sshll.u32 %s5374_s28, 6 }
  0x7b   : > { %s6614_s19 = scalar_select %p5623_p3, 1, 0 }
  0x7c   : > { %s6616_s17 = scalar_select %p5630_p0, 1, 0 }
  0x7d   : > { %6615 = sst [smem:[#allocation32_spill]] %s6614_s19  ;;  %s494_s23 = scalar_lea.vmem [#allocation5], %s3863_s10 }
  0x7e   : > { %s501_s22 = sshll.u32 %s494_s23, 4  ;;  %s6617_s1 = sld [smem:[#allocation33_spill]]  ;;  %s5642_s22 = int_to_ptr.vmem [resolvable:$true] %s501_s22 }
  0x7f   : > { %s5644_s5 = scalar_lea.sflag [#allocation6], %s490_s30  ;;  %p5650_p2 = pneg %p5630_p0 }
  0x81   : > { %s6618_s24 = scalar_select %p5650_p2, 1, 0 }
  0x84   : > { %s5640_s3 = scalar_lea.hbm %s6617_s1, %s3924_s15  ;;  %s5091_s15 = scalar_lea.hbm %s6617_s1, 128 }
  0x85   : > { %s5086_s7 = scalar_lea.hbm %s5640_s3, 64  ;;  %p5092_p9 = scmp.lt.u32.totalorder %s5640_s3, %s6617_s1 }
  0x86   : > { %p5087_p13 = scmp.ne.s32.totalorder %s5640_s3, %s5086_s7  ;;  %p5093_p11 = scmp.lt.u32.totalorder %s5091_s15, %s5086_s7 }
  0x87   : > { %p5095_p1 = scmp.lt.u32.totalorder %s5086_s7, %s5640_s3 }
  0x88   : > { %p5089_p5 = pnand %p5650_p2, %p5087_p13  ;;  %p5094_p12 = por %p5093_p11, %p5092_p9 }
  0x8a   : > { %p5090_p7 = pneg %p5089_p5  ;;  %p5096_p3 = por %p5095_p1, %p5094_p12 }
  0x8c   : > { %p5097_p10 = pnand %p5096_p3, %p5090_p7 }
  0x8e   : > { %5100 = shalt.err (!%p5097_p10)
}
  0x8f   : > { %s5101_s30 = scalar_lea.vmem %s5642_s22, 64  ;;  %s5381_s13 = smov [#allocation5]  }
  0x90   : > { %p5102_p13 = scmp.ne.s32.totalorder %s5642_s22, %s5101_s30  ;;  %s5106_s10 = sshll.u32 %s5381_s13, 4  ;;  %s5107_s10 = int_to_ptr.vmem [resolvable:$false] %s5106_s10 }
  0x91   : > { %s5108_s23 = scalar_lea.vmem %s5107_s10, 128  ;;  %p5109_p6 = scmp.lt.s32.totalorder %s5642_s22, %s5107_s10 }
  0x92   : > { %p5104_p5 = pnand %p5102_p13, %p5650_p2  ;;  %p5110_p8 = scmp.lt.s32.totalorder %s5108_s23, %s5101_s30 }
  0x94   : > { %p5105_p4 = pneg %p5104_p5  ;;  %p5111_p9 = por %p5110_p8, %p5109_p6 }
  0x96   : > { %p5112_p11 = pnand %p5111_p9, %p5105_p4 }
  0x98   : > { %5115 = shalt.err (!%p5112_p11)
}
  0x99   : > { %s5382_s7 = smov 16   ;;  %s5383_s15 = smov 1  }
  0x9a   : > { %4769 = dma.hbm_to_vmem [thread:$0]  (!%p5630_p0), %s5640_s3, 64, %s5642_s22, %s5644_s5, %s5382_s7, %s5382_s7, %s5383_s15  }
  0x9b   : > { %s5384_s11 = smov [#allocation10]   ;;  %s5116_s10 = scalar_lea.hbm %s6559_s4, 4096 }
  0x9c   : > { %s380_s1 = sshll.u32 %s5384_s11, 4  ;;  %p5117_p1 = scmp.ne.s32.totalorder %s6559_s4, %s5116_s10  ;;  %s381_s1 = int_to_ptr.vmem [resolvable:$true] %s380_s1 }
  0x9d   : > { %p6619_p3 = scmp.ne.s32.totalorder %s6607_s16, 0  ;;  %p5123_p4 = scmp.lt.u32.totalorder %s5116_s10, %s6559_s4 }
  0x9f   : > { %p5119_p6 = pnand %p5117_p1, %p6619_p3 }
  0xa1   : > { %p5120_p8 = pneg %p5119_p6 }
  0xa3   : > { %p5125_p10 = pnand %p5123_p4, %p5120_p8 }
  0xa5   : > { %5128 = shalt.err (!%p5125_p10)
}
  0xa6   : > { %s5129_s3 = scalar_lea.vmem %s381_s1, 4096  ;;  %p5137_p5 = scmp.lt.s32.totalorder %s381_s1, %s381_s1 }
  0xa7   : > { %p5130_p7 = scmp.ne.s32.totalorder %s381_s1, %s5129_s3  ;;  %p5138_p9 = scmp.lt.s32.totalorder %s5129_s3, %s5129_s3 }
  0xa9   : > { %p5132_p12 = pnand %p5130_p7, %p6619_p3  ;;  %p5139_p11 = por %p5138_p9, %p5137_p5 }
  0xab   : > { %p5133_p13 = pneg %p5132_p12 }
  0xad   : > { %p5140_p0 = pnand %p5139_p11, %p5133_p13 }
  0xaf   : > { %5143 = shalt.err (!%p5140_p0)
}
  0xb0   : > { %s5385_s27 = smov 256   ;;  %p6620_p1 = scmp.ne.s32.totalorder %s6605_s18, 0 }
  0xb1   : > { %s5386_s12 = smov [#allocation13]   ;;  %s5144_s10 = scalar_lea.hbm %s6561_s6, 6144 }
  0xb2   : > { %4747 = dma.hbm_to_vmem [thread:$0]  (!%p6620_p1), %s6559_s4, 4096, %s381_s1, [#allocation9], %s5385_s27, %s5385_s27, %s5382_s7  }
  0xb3   : > { %s406_s19 = sshll.u32 %s5386_s12, 4  ;;  %p5145_p6 = scmp.ne.s32.totalorder %s6561_s6, %s5144_s10  ;;  %s407_s19 = int_to_ptr.vmem [resolvable:$true] %s406_s19 }
  0xb4   : > { %p5151_p4 = scmp.lt.u32.totalorder %s5144_s10, %s6561_s6 }
  0xb5   : > { %p5147_p0 = pnand %p5145_p6, %p6619_p3 }
  0xb7   : > { %p5148_p8 = pneg %p5147_p0 }
  0xb9   : > { %p5153_p10 = pnand %p5151_p4, %p5148_p8 }
  0xbb   : > { %5156 = shalt.err (!%p5153_p10)
}
  0xbc   : > { %s5157_s1 = scalar_lea.vmem %s407_s19, 6144  ;;  %p5165_p5 = scmp.lt.s32.totalorder %s407_s19, %s407_s19 }
  0xbd   : > { %p5158_p7 = scmp.ne.s32.totalorder %s407_s19, %s5157_s1  ;;  %p5166_p9 = scmp.lt.s32.totalorder %s5157_s1, %s5157_s1 }
  0xbf   : > { %p5160_p12 = pnand %p5158_p7, %p6619_p3  ;;  %p5167_p11 = por %p5166_p9, %p5165_p5 }
  0xc1   : > { %p5161_p13 = pneg %p5160_p12 }
  0xc3   : > { %p5168_p2 = pnand %p5167_p11, %p5161_p13 }
  0xc5   : > { %5171 = shalt.err (!%p5168_p2)
}
  0xc6   : > { %s5387_s7 = smov 384   ;;  %s5388_s27 = smov 24  }
  0xc7   : > { %4753 = dma.hbm_to_vmem [thread:$0]  (!%p6620_p1), %s6561_s6, 6144, %s407_s19, [#allocation12], %s5387_s7, %s5387_s7, %s5388_s27  }
  0xc8   : > { %s5389_s15 = smov [#allocation16]   ;;  %s5390_s11 = smov [#allocation17]  }
  0xc9   : > { %s432_s12 = sshll.u32 %s5389_s15, 4  ;;  %s445_s13 = sshll.u32 %s5390_s11, 4  ;;  %s433_s12 = int_to_ptr.vmem [resolvable:$true] %s432_s12  ;;  %s5710_s13 = int_to_ptr.vmem [resolvable:$true] %s445_s13 }
  0xca   : > { %s5172_s23 = scalar_lea.hbm %s6563_s8, 2048 }
  0xcb   : > { %p5173_p2 = scmp.ne.s32.totalorder %s6563_s8, %s5172_s23  ;;  %p5179_p8 = scmp.lt.u32.totalorder %s5172_s23, %s6563_s8 }
  0xcd   : > { %p5175_p6 = pnand %p5173_p2, %p6619_p3 }
  0xcf   : > { %p5176_p0 = pneg %p5175_p6 }
  0xd1   : > { %p5181_p4 = pnand %p5179_p8, %p5176_p0 }
  0xd3   : > { %5184 = shalt.err (!%p5181_p4)
}
  0xd4   : > { %s5185_s7 = scalar_lea.vmem %s433_s12, 2048  ;;  %p5193_p13 = scmp.lt.s32.totalorder %s433_s12, %s433_s12 }
  0xd5   : > { %p5186_p10 = scmp.ne.s32.totalorder %s433_s12, %s5185_s7  ;;  %p5194_p5 = scmp.lt.s32.totalorder %s5185_s7, %s5185_s7 }
  0xd7   : > { %p5188_p7 = pnand %p5186_p10, %p6619_p3  ;;  %p5195_p9 = por %p5194_p5, %p5193_p13 }
  0xd9   : > { %p5189_p12 = pneg %p5188_p7 }
  0xdb   : > { %p5196_p11 = pnand %p5195_p9, %p5189_p12 }
  0xdd   : > { %5199 = shalt.err (!%p5196_p11)
}
  0xde   : > { %s6621_s27 = smov 8   ;;  %s6622_s22 = smov 128  }
  0xdf   : > { %4759 = dma.hbm_to_vmem [thread:$0]  (!%p6620_p1), %s6563_s8, 2048, %s433_s12, [#allocation15], %s6622_s22, %s6622_s22, %s6621_s27  }
  0xe0   : > { %s5200_s23 = scalar_lea.hbm %s6564_s9, 256 }
  0xe1   : > { %p5201_p2 = scmp.ne.s32.totalorder %s6564_s9, %s5200_s23  ;;  %p5207_p8 = scmp.lt.u32.totalorder %s5200_s23, %s6564_s9 }
  0xe3   : > { %p5203_p6 = pnand %p5201_p2, %p6619_p3 }
  0xe5   : > { %p5204_p0 = pneg %p5203_p6 }
  0xe7   : > { %p5209_p4 = pnand %p5207_p8, %p5204_p0 }
  0xe9   : > { %5212 = shalt.err (!%p5209_p4)
}
  0xea   : > { %s5213_s12 = scalar_lea.vmem %s5710_s13, 256  ;;  %p5221_p13 = scmp.lt.s32.totalorder %s5710_s13, %s5710_s13 }
  0xeb   : > { %p5214_p10 = scmp.ne.s32.totalorder %s5710_s13, %s5213_s12  ;;  %p5222_p5 = scmp.lt.s32.totalorder %s5213_s12, %s5213_s12 }
  0xed   : > { %p5216_p7 = pnand %p5214_p10, %p6619_p3  ;;  %p5223_p9 = por %p5222_p5, %p5221_p13 }
  0xef   : > { %p5217_p12 = pneg %p5216_p7 }
  0xf1   : > { %p5224_p11 = pnand %p5223_p9, %p5217_p12 }
  0xf3   : > { %5227 = shalt.err (!%p5224_p11)
}
  0xf4   : > { %4762 = dma.hbm_to_vmem [thread:$0]  (!%p6620_p1), %s6564_s9, 256, %s5710_s13, [#allocation18], %s6622_s22, %s6622_s22, %s6621_s27  }
  0xf5   : > { %s3859_s16 = sshll.u32 %s5628_s21, 6  ;;  %s3923_s11 = sshll.u32 %s5374_s28, 10 }
  0xf6   : > { %s5764_s23 = scalar_lea.hbm %s6555_s0, %s3923_s11  ;;  %s472_s18 = scalar_lea.vmem [#allocation2], %s3859_s16 }
  0xf7   : > { %s480_s3 = sshll.u32 %s472_s18, 4  ;;  %s3866_s1 = sshll.u32 %s5628_s21, 5  ;;  %s5766_s3 = int_to_ptr.vmem [resolvable:$true] %s480_s3 }
  0xf8   : > { %s469_s25 = scalar_lea.sflag [#allocation3], %s5628_s21  ;;  %s5228_s19 = scalar_lea.hbm %s5764_s23, 1024 }
  0xf9   : > { %p5229_p3 = scmp.ne.s32.totalorder %s5764_s23, %s5228_s19  ;;  %p6623_p1 = scmp.ne.s32.totalorder %s6618_s24, 0 }
  0xfa   : > { %s5233_s7 = scalar_lea.hbm %s6555_s0, 2048  ;;  %p5234_p0 = scmp.lt.u32.totalorder %s5764_s23, %s6555_s0 }
  0xfb   : > { %p5231_p2 = pnand %p5229_p3, %p6623_p1  ;;  %p5235_p8 = scmp.lt.u32.totalorder %s5233_s7, %s5228_s19 }
  0xfc   : > { %p5237_p10 = scmp.lt.u32.totalorder %s5228_s19, %s5764_s23 }
  0xfd   : > { %p5232_p6 = pneg %p5231_p2  ;;  %p5236_p4 = por %p5235_p8, %p5234_p0 }
  0xff   : > { %p5238_p7 = por %p5237_p10, %p5236_p4 }
 0x101   : > { %p5239_p12 = pnand %p5238_p7, %p5232_p6 }
 0x103   : > { %5242 = shalt.err (!%p5239_p12)
}
 0x104   : > { %s5243_s16 = scalar_lea.vmem %s5766_s3, 1024  ;;  %s5391_s10 = smov [#allocation2]  }
 0x105   : > { %p5244_p13 = scmp.ne.s32.totalorder %s5766_s3, %s5243_s16  ;;  %s5248_s30 = sshll.u32 %s5391_s10, 4  ;;  %s5249_s30 = int_to_ptr.vmem [resolvable:$false] %s5248_s30 }
 0x106   : > { %s5250_s18 = scalar_lea.vmem %s5249_s30, 2048  ;;  %p5251_p11 = scmp.lt.s32.totalorder %s5766_s3, %s5249_s30 }
 0x107   : > { %p5246_p5 = pnand %p5244_p13, %p6623_p1  ;;  %p5252_p3 = scmp.lt.s32.totalorder %s5250_s18, %s5243_s16 }
 0x109   : > { %p5247_p9 = pneg %p5246_p5  ;;  %p5253_p2 = por %p5252_p3, %p5251_p11 }
 0x10b   : > { %p5254_p0 = pnand %p5253_p2, %p5247_p9 }
 0x10d   : > { %5257 = shalt.err (!%p5254_p0)
}
 0x10e   : > { %p6624_p6 = scmp.ne.s32.totalorder %s6616_s17, 0  ;;  %s3925_s19 = sshll.u32 %s5374_s28, 9 }
 0x10f   : > { %s5800_s7 = scalar_lea.hbm %s6557_s2, %s3925_s19  ;;  %s515_s15 = scalar_lea.vmem [#allocation7], %s3866_s1 }
 0x110   : > { %4766 = dma.hbm_to_vmem [thread:$0]  (!%p6624_p6), %s5764_s23, 1024, %s5766_s3, %s469_s25, %s6622_s22, %s6622_s22, %s6621_s27  }
 0x111   : > { %s522_s11 = sshll.u32 %s515_s15, 4  ;;  %s5258_s16 = scalar_lea.hbm %s5800_s7, 512  ;;  %s5804_s11 = int_to_ptr.vmem [resolvable:$true] %s522_s11 }
 0x112   : > { %p5259_p8 = scmp.ne.s32.totalorder %s5800_s7, %s5258_s16  ;;  %s5263_s25 = scalar_lea.hbm %s6557_s2, 1024 }
 0x113   : > { %p5264_p7 = scmp.lt.u32.totalorder %s5800_s7, %s6557_s2  ;;  %p5265_p12 = scmp.lt.u32.totalorder %s5263_s25, %s5258_s16 }
 0x114   : > { %p5261_p4 = pnand %p5259_p8, %p6623_p1  ;;  %p5267_p5 = scmp.lt.u32.totalorder %s5258_s16, %s5800_s7 }
 0x115   : > { %p5266_p13 = por %p5265_p12, %p5264_p7 }
 0x116   : > { %p5262_p10 = pneg %p5261_p4 }
 0x117   : > { %p5268_p9 = por %p5267_p5, %p5266_p13 }
 0x119   : > { %p5269_p11 = pnand %p5268_p9, %p5262_p10 }
 0x11b   : > { %5272 = shalt.err (!%p5269_p11)
}
 0x11c   : > { %s5273_s21 = scalar_lea.vmem %s5804_s11, 512  ;;  %s5392_s1 = smov [#allocation7]  }
 0x11d   : > { %p5274_p3 = scmp.ne.s32.totalorder %s5804_s11, %s5273_s21  ;;  %s5278_s18 = sshll.u32 %s5392_s1, 4  ;;  %s5279_s18 = int_to_ptr.vmem [resolvable:$false] %s5278_s18 }
 0x11e   : > { %s5280_s19 = scalar_lea.vmem %s5279_s18, 1024  ;;  %p5281_p8 = scmp.lt.s32.totalorder %s5804_s11, %s5279_s18 }
 0x11f   : > { %p5276_p2 = pnand %p5274_p3, %p6623_p1  ;;  %p5282_p4 = scmp.lt.s32.totalorder %s5280_s19, %s5273_s21 }
 0x121   : > { %p5277_p0 = pneg %p5276_p2  ;;  %p5283_p7 = por %p5282_p4, %p5281_p8 }
 0x123   : > { %p5284_p12 = pnand %p5283_p7, %p5277_p0 }
 0x125   : > { %5287 = shalt.err (!%p5284_p12)
}
 0x126   : > { %4772 = dma.hbm_to_vmem [thread:$0]  (!%p6624_p6), %s5800_s7, 512, %s5804_s11, %s5644_s5, %s6622_s22, %s6622_s22, %s6621_s27  }
 0x127   : > { %s6625_s24 = sld [smem:[#allocation29_spill]] }
 0x12d   : > { %p6626_p1 = scmp.ne.s32.totalorder %s6625_s24, 0 }
 0x12e   : > { %s5834_s13 = sand.u32 (!%p6626_p1), 1, %s5366_s26   ;;  %p6627_p10 = scmp.ne.s32.totalorder (!%p6626_p1), %s6612_s20, 0 }
 0x12f   : > { %534 = sbr.rel (%p6626_p1) target bundleno = 3955 (0xf73), region = 72  ;;  %s3870_s12 = sshll.u32 (!%p6626_p1), %s5834_s13, 6 }
 0x130   : > { %s537_s15 = scalar_lea.sflag (!%p6626_p1), [#allocation3], %s5834_s13  ;;  %s5838_s16 = scalar_lea.vmem (!%p6626_p1), [#allocation2], %s3870_s12 }
 0x136   : > { %5333 = dma.done.wait (%p6627_p10), %s537_s15, 1024  }
 0x137   : > { %5335 = vsyncadd (%p6627_p10), %s537_s15, 4294966272  ;;  %s545_s5 = sand.u32 1, %s5488_s14   ;;  %s3871_s17 = sshll.u32 %s5834_s13, 2 }
 0x138   : > { %s546_s27 = scalar_lea.sflag [#allocation6], %s545_s5  ;;  %s5846_s22 = scalar_lea.vmem [#allocation5], %s3871_s17 }
 0x139   : > { %5337 = dma.done.wait (%p6627_p10), %s546_s27, 576  }
 0x13a   : > { %5339 = vsyncadd (%p6627_p10), %s546_s27, 4294966720  ;;  %s3872_s7 = sshll.u32 %s5834_s13, 5  ;;  %p6628_p6 = scmp.eq.s32.totalorder %s5488_s14, 0 }
 0x13b   : > { %s5855_s11 = scalar_lea.vmem [#allocation7], %s3872_s7 }
 0x13c   : > { %5341 = dma.done.wait (%p6628_p6), [#allocation9], 6144   ;;  %p6629_p13 = pmov %p6628_p6 }
 0x13d   : > { %p6630_p5 = pmov %p6628_p6 }
 0x13e   : > { %5343 = vsyncadd (%p6629_p13), [#allocation9], 4294961152 }
 0x13f   : > { %5345 = dma.done.wait (%p6630_p5), [#allocation12], 8192   ;;  %p6631_p9 = pmov %p6630_p5 }
 0x140   : > { %p6632_p11 = pmov %p6630_p5 }
 0x141   : > { %5347 = vsyncadd (%p6631_p9), [#allocation12], 4294959104 }
 0x142   : > { %5349 = dma.done.wait (%p6632_p11), [#allocation15], 4096   ;;  %p6633_p3 = pmov %p6630_p5 }
 0x144   : > { %5351 = vsyncadd (%p6633_p3), [#allocation15], 4294963200  ;;  %p6634_p2 = pmov %p6633_p3 }
 0x146   : > { %5353 = dma.done.wait (%p6634_p2), [#allocation18], 256   ;;  %p6635_p0 = pmov %p6634_p2 }
 0x147   : > { %v5393_v0 = vmov 0.0   ;;  %v772_v1 = vld [vmem:[#allocation10 + $0x8] sm:$0xff]  ;;  %v774_v2 = vld [vmem:[#allocation10 + $0x18] sm:$0xff]  ;;  %v771_v3 = vld [vmem:[#allocation10] sm:$0xff]  ;;  %s6636_s3 = sld [smem:[#allocation37_spill]]  ;;  %s6637_s30 = sld [smem:[#allocation39_spill]] }
 0x148   : > { %5355 = vsyncadd (%p6635_p0), [#allocation18], 4294967040  ;;  %878 = vmatprep.mubr.f32.mxu1 %v5393_v0  ;;  %v4481_v4 = vpack.c.bf16 %v774_v2, %v772_v1  ;;  %v773_v5 = vld [vmem:[#allocation10 + $0x10] sm:$0xff]  ;;  %v776_v6 = vld [vmem:[#allocation10 + $0x28] sm:$0xff]  ;;  %vm1339_vm0 = vcmask 130048   ;;  %s6638_s5 = sld [smem:[#allocation38_spill]] }
 0x149   : > { %v778_v7 = vld [vmem:[#allocation10 + $0x38] sm:$0xff]  ;;  %v4483_v8 = vpack.c.bf16 %v773_v5, %v771_v3  ;;  %v775_v10 = vld [vmem:[#allocation10 + $0x20] sm:$0xff]  ;;  %v777_v11 = vld [vmem:[#allocation10 + $0x30] sm:$0xff]  ;;  %vm2713_vm1 = vcmask 64512   ;;  %s638_s10 = scalar_lea.vmem [#allocation19], %s3872_s7  ;;  %s3926_s21 = sshll.u32 %s5488_s14, 9 }
 0x14a   : > { %v4485_v9 = vpack.c.bf16 %v778_v7, %v776_v6  ;;  %v780_v12 = vld [vmem:[#allocation10 + $0x48] sm:$0xff]  ;;  %4482 = vmatprep.subr.bf16.mxu1 %v4481_v4  ;;  %v782_v13 = vld [vmem:[#allocation10 + $0x58] sm:$0xff]  ;;  %v665_v14 = vld [vmem:[#allocation8] sm:$0xff]  ;;  %v4487_v16 = vpack.c.bf16 %v777_v11, %v775_v10  ;;  %s3666_s1 = sshll.u32 %s638_s10, 4  ;;  %s6639_s24 = sld [smem:[#allocation40_spill]]  ;;  %s6511_s1 = int_to_ptr.vmem [resolvable:$true] %s3666_s1 }
 0x14b   : > { %v666_v15 = vld [vmem:[#allocation8 + $0x8] sm:$0xff]  ;;  %4484 = vmatpush1.bf16.msra.mxu1 %v4483_v8  ;;  %v779_v18 = vld [vmem:[#allocation10 + $0x40] sm:$0xff]  ;;  %v4489_v19 = vpack.c.bf16 %v782_v13, %v780_v12  ;;  %v781_v20 = vld [vmem:[#allocation10 + $0x50] sm:$0xff]  ;;  %s3653_s7 = scalar_lea.sflag [#allocation4], %s5834_s13  ;;  %s5288_s15 = scalar_lea.vmem %s6511_s1, 512 }
 0x14c   : > { %v4449_v17 = vpack.c.bf16 %v666_v15, %v665_v14  ;;  %4486 = vmatprep.subr.bf16.mxu1 %v4485_v9  ;;  %v667_v21 = vld [vmem:[#allocation8 + $0x10] sm:$0xff]  ;;  %v668_v22 = vld [vmem:[#allocation8 + $0x18] sm:$0xff]  ;;  %v784_v23 = vld [vmem:[#allocation10 + $0x68] sm:$0xff]  ;;  %v4491_v28 = vpack.c.bf16 %v781_v20, %v779_v18  ;;  %p5289_p8 = scmp.ne.s32.totalorder %s6511_s1, %s5288_s15  ;;  %p6640_p4 = scmp.ne.s32.totalorder %s6613_s29, 0 }
 0x14d   : > { %v786_v24 = vld [vmem:[#allocation10 + $0x78] sm:$0xff]  ;;  %v4453_v25 = vpack.c.bf16 %v668_v22, %v667_v21  ;;  %v669_v26 = vld [vmem:[#allocation8 + $0x20] sm:$0xff]  ;;  %v670_v27 = vld [vmem:[#allocation8 + $0x28] sm:$0xff]  ;;  %v681_v22 = vlaneseq  ;;  %s5394_s14 = smov [#allocation19]  }
 0x14e   : > { %4450 = vmatprep.subr.bf16.mxu0 %v4449_v17  ;;  %v783_v29 = vld [vmem:[#allocation10 + $0x60] sm:$0xff]  ;;  %v4457_v30 = vpack.c.bf16 %v670_v27, %v669_v26  ;;  %v4493_v31 = vpack.c.bf16 %v786_v24, %v784_v23  ;;  %v785_v32 = vld [vmem:[#allocation10 + $0x70] sm:$0xff]  ;;  %v672_v34 = vld [vmem:[#allocation8 + $0x38] sm:$0xff]  ;;  %p5290_p7 = pnand %p5289_p8, %p6640_p4 }
 0x14f   : > { %4452 = vmatpush3.bf16.msra.mxu0 %v4449_v17  ;;  %4488 = vmatpush1.bf16.msra.mxu1 %v4487_v16  ;;  %v671_v33 = vld [vmem:[#allocation8 + $0x30] sm:$0xff]  ;;  %v788_v35 = vld [vmem:[#allocation10 + $0x88] sm:$0xff]  ;;  %v790_v36 = vld [vmem:[#allocation10 + $0x98] sm:$0xff]  ;;  %v4495_v37 = vpack.c.bf16 %v785_v32, %v783_v29  ;;  %v5899_v23 = vshrl.u32 %v681_v22, 7 }
 0x150   : > { %4454 = vmatprep.subr.bf16.mxu0 %v4453_v25  ;;  %4490 = vmatprep.subr.bf16.mxu1 %v4489_v19  ;;  %v787_v38 = vld [vmem:[#allocation10 + $0x80] sm:$0xff]  ;;  %v4461_v39 = vpack.c.bf16 %v672_v34, %v671_v33  ;;  %v4497_v40 = vpack.c.bf16 %v790_v36, %v788_v35  ;;  %v789_v41 = vld [vmem:[#allocation10 + $0x90] sm:$0xff]  ;;  %v674_v43 = vld [vmem:[#allocation8 + $0x48] sm:$0xff]  ;;  %s6509_s12 = scalar_lea.hbm %s6639_s24, %s3926_s21  ;;  %p5291_p12 = pneg %p5290_p7 }
 0x151   : > { %v673_v42 = vld [vmem:[#allocation8 + $0x40] sm:$0xff]  ;;  %v792_v44 = vld [vmem:[#allocation10 + $0xa8] sm:$0xff]  ;;  %v794_v45 = vld [vmem:[#allocation10 + $0xb8] sm:$0xff]  ;;  %v4499_v46 = vpack.c.bf16 %v789_v41, %v787_v38  ;;  %v5902_v24 = vsub.s32 0, %v5899_v23  ;;  %v5908_v26 = vsub.s32 1, %v5899_v23 }
 0x152   : > { %v791_v47 = vld [vmem:[#allocation10 + $0xa0] sm:$0xff]  ;;  %v4465_v48 = vpack.c.bf16 %v674_v43, %v673_v42  ;;  %v4501_v50 = vpack.c.bf16 %v794_v45, %v792_v44  ;;  %v793_v51 = vld [vmem:[#allocation10 + $0xb0] sm:$0xff]  ;;  %v676_v53 = vld [vmem:[#allocation8 + $0x58] sm:$0xff] }
 0x153   : > { %4456 = vmatpush3.bf16.msra.mxu0 %v4453_v25  ;;  %4492 = vmatpush1.bf16.msra.mxu1 %v4491_v28  ;;  %v649_v49 = vld [vmem:[%s5855_s11] sm:$0xff]  ;;  %v675_v52 = vld [vmem:[#allocation8 + $0x50] sm:$0xff]  ;;  %v796_v54 = vld [vmem:[#allocation10 + $0xc8] sm:$0xff]  ;;  %v4503_v56 = vpack.c.bf16 %v793_v51, %v791_v47 }
 0x154   : > { %4458 = vmatprep.subr.bf16.mxu0 %v4457_v30  ;;  %4494 = vmatprep.subr.bf16.mxu1 %v4493_v31  ;;  %v798_v55 = vld [vmem:[#allocation10 + $0xd8] sm:$0xff]  ;;  %v795_v57 = vld [vmem:[#allocation10 + $0xc0] sm:$0xff]  ;;  %v4469_v58 = vpack.c.bf16 %v676_v53, %v675_v52  ;;  %v797_v60 = vld [vmem:[#allocation10 + $0xd0] sm:$0xff] }
 0x155   : > { %4147 = vmatprep.mubr.f32.mxu0 %v649_v49  ;;  %v4505_v59 = vpack.c.bf16 %v798_v55, %v796_v54  ;;  %v677_v61 = vld [vmem:[#allocation8 + $0x60] sm:$0xff]  ;;  %v678_v62 = vld [vmem:[#allocation8 + $0x68] sm:$0xff]  ;;  %v802_v1 = vld [vmem:[#allocation10 + $0xf8] sm:$0xff]  ;;  %v4507_v2 = vpack.c.bf16 %v797_v60, %v795_v57 }
 0x156   : > { %v800_v63 = vld [vmem:[#allocation10 + $0xe8] sm:$0xff]  ;;  %v799_v3 = vld [vmem:[#allocation10 + $0xe0] sm:$0xff]  ;;  %v4473_v4 = vpack.c.bf16 %v678_v62, %v677_v61  ;;  %v801_v6 = vld [vmem:[#allocation10 + $0xf0] sm:$0xff] }
 0x157   : > { %4460 = vmatpush3.bf16.msra.mxu0 %v4457_v30  ;;  %4496 = vmatpush1.bf16.msra.mxu1 %v4495_v37  ;;  %v4509_v5 = vpack.c.bf16 %v802_v1, %v800_v63  ;;  %v679_v7 = vld [vmem:[#allocation8 + $0x70] sm:$0xff]  ;;  %v680_v8 = vld [vmem:[#allocation8 + $0x78] sm:$0xff]  ;;  %v4511_v9 = vpack.c.bf16 %v801_v6, %v799_v3  ;;  %v5877_v12 = vld [vmem:[%s5855_s11 + $0x8] sm:$0xff] }
 0x158   : > { %4462 = vmatprep.subr.bf16.mxu0 %v4461_v39  ;;  %4498 = vmatprep.subr.bf16.mxu1 %v4497_v40  ;;  %v4477_v10 = vpack.c.bf16 %v680_v8, %v679_v7  ;;  %v653_v11 = vld [vmem:[%s5838_s16] sm:$0xff]  ;;  %v654_v13 = vld [vmem:[%s5838_s16 + $0x8] sm:$0xff]  ;;  %v651_v14 = vld [vmem:[%s5855_s11 + $0x10] sm:$0xff] }
 0x159   : > { %v5884_v15 = vld [vmem:[%s5855_s11 + $0x18] sm:$0xff]  ;;  %v655_v16 = vld [vmem:[%s5838_s16 + $0x10] sm:$0xff]  ;;  %v656_v17 = vld [vmem:[%s5838_s16 + $0x18] sm:$0xff] }
 0x15a   : > { %v657_v18 = vld [vmem:[%s5838_s16 + $0x20] sm:$0xff]  ;;  %v658_v19 = vld [vmem:[%s5838_s16 + $0x28] sm:$0xff]  ;;  %v659_v20 = vld [vmem:[%s5838_s16 + $0x30] sm:$0xff] }
 0x15b   : > { %4464 = vmatpush3.bf16.msra.mxu0 %v4461_v39  ;;  %4500 = vmatpush1.bf16.msra.mxu1 %v4499_v46  ;;  %v660_v21 = vld [vmem:[%s5838_s16 + $0x38] sm:$0xff]  ;;  %v770_v25 = vld [vmem:[%s6636_s3] sm:$0x3]  ;;  %v5910_v27 = vld [vmem:[#allocation17] sm:$0xff]  ;;  %s5292_s16 = sshll.u32 %s5394_s14, 4  ;;  %s5293_s16 = int_to_ptr.vmem [resolvable:$false] %s5292_s16 }
 0x15c   : > { %4466 = vmatprep.subr.bf16.mxu0 %v4465_v48  ;;  %4502 = vmatprep.subr.bf16.mxu1 %v4501_v50  ;;  %v5913_v29 = vrot.slane %v770_v25, %v5902_v24  ;;  %v5917_v31 = vrot.slane %v5910_v27, %v5902_v24  ;;  %v5920_v32 = vrot.slane %v770_v25, %v5908_v26  ;;  %v5925_v36 = vld [vmem:[%s6637_s30] sm:$0xff]  ;;  %v5938_v50 = vld [vmem:[%s6637_s30 + $0x8] sm:$0xff]  ;;  %v5945_v55 = vld [vmem:[%s6637_s30 + $0x10] sm:$0xff]  ;;  %p5295_p1 = scmp.lt.s32.totalorder %s6511_s1, %s5293_s16 }
 0x15d   : > { %v5955_v1 = vld [vmem:[%s6637_s30 + $0x18] sm:$0xff] }
 0x15f   : > { %4468 = vmatpush3.bf16.msra.mxu0 %v4465_v48  ;;  %4504 = vmatpush1.bf16.msra.mxu1 %v4503_v56 }
 0x160   : > { %4470 = vmatprep.subr.bf16.mxu0 %v4469_v58  ;;  %4506 = vmatprep.subr.bf16.mxu1 %v4505_v59 }
 0x163   : > { %4472 = vmatpush3.bf16.msra.mxu0 %v4469_v58  ;;  %4508 = vmatpush1.bf16.msra.mxu1 %v4507_v2 }
 0x164   : > { %4474 = vmatprep.subr.bf16.mxu0 %v4473_v4  ;;  %4510 = vmatprep.subr.bf16.mxu1 %v4509_v5 }
 0x167   : > { %4476 = vmatpush3.bf16.msra.mxu0 %v4473_v4  ;;  %4512 = vmatpush1.bf16.msra.mxu1 %v4511_v9 }
 0x168   : > { %4478 = vmatprep.subr.bf16.mxu0 %v4477_v10 }
 0x16a   : > { %879 = vmatmul.mubr.f32.vlgmr.msra.gmra.mrb[0].mxu1 %v653_v11 }
 0x16b   : > { %4480 = vmatpush3.bf16.msra.mxu0 %v4477_v10  ;;  %884 = vmatprep.mubr.f32.mxu1 %v5393_v0 }
 0x16e   : > { %4148 = vmatmul.mubr.f32.vlgmr.msra.gmra.mrb[0].mxu0 %v5877_v12  ;;  %885 = vmatmul.mubr.f32.gmra.mrb[2].mxu1 %v654_v13 }
 0x16f   : > { %4150 = vmatprep.mubr.f32.mxu0 %v651_v14  ;;  %890 = vmatprep.mubr.f32.mxu1 %v5393_v0 }
 0x172   : > { %4151 = vmatmul.mubr.f32.gmra.mrb[2].mxu0 %v5884_v15  ;;  %891 = vmatmul.mubr.f32.gmra.mrb[4].mxu1 %v655_v16 }
 0x173   : > { %896 = vmatprep.mubr.f32.mxu1 %v5393_v0 }
 0x176   : > { %897 = vmatmul.mubr.f32.gmra.mrb[6].mxu1 %v656_v17 }
 0x177   : > { %902 = vmatprep.mubr.f32.mxu1 %v5393_v0 }
 0x17a   : > { %903 = vmatmul.mubr.f32.gmra.mrb[8].mxu1 %v657_v18 }
 0x17b   : > { %908 = vmatprep.mubr.f32.mxu1 %v5393_v0 }
 0x17e   : > { %909 = vmatmul.mubr.f32.gmra.mrb[10].mxu1 %v658_v19 }
 0x17f   : > { %914 = vmatprep.mubr.f32.mxu1 %v5393_v0 }
 0x182   : > { %915 = vmatmul.mubr.f32.gmra.mrb[12].mxu1 %v659_v20 }
 0x183   : > { %920 = vmatprep.mubr.f32.mxu1 %v5393_v0 }
 0x186   : > { %921 = vmatmul.mubr.f32.gmra.mrb[14].mxu1 %v660_v21 }
 0x23d   : > { %v880_v28 = vpop.f32.mrb[0].mxu1 }
 0x23e   : > { %v882_v30 = vpop.f32.mrb[1].mxu1  ;;  %v881_v37 = vadd.f32 %v880_v28, %v5913_v29 }
 0x23f   : > { %v883_v41 = vadd.f32 %v882_v30, %v5920_v32 }
 0x241   : > { %v4149_v33 = vpop.f32.mrb[0].mxu0  ;;  %v886_v34 = vpop.f32.mrb[2].mxu1 }
 0x242   : > { %v751_v35 = vpop.f32.mrb[1].mxu0  ;;  %v887_v38 = vadd.f32 %v886_v34, %v5913_v29  ;;  %v888_v39 = vpop.f32.mrb[3].mxu1  ;;  %v757_v60 = vadd.f32 %v4149_v33, %v5917_v31 }
 0x243   : > { %v752_v40 = vadd.f32 %v751_v35, %v5917_v31  ;;  %v889_v42 = vadd.f32 %v888_v39, %v5920_v32 }
 0x244   : > { %v4513_v43 = vpack.c.bf16 %v887_v38, %v881_v37  ;;  %v931_v6 = vmul.f32 %v757_v60, %v5925_v36  ;;  %v932_v13 = vmul.f32 %v757_v60, %v5938_v50  ;;  %v933_v18 = vmul.f32 %v757_v60, %v5945_v55 }
 0x245   : > { %v927_v44 = vmul.f32 %v752_v40, %v5925_v36  ;;  %v5933_v45 = vpop.f32.mrb[2].mxu0  ;;  %v4529_v46 = vpack.c.bf16 %v889_v42, %v883_v41  ;;  %v892_v47 = vpop.f32.mrb[4].mxu1  ;;  %v928_v58 = vmul.f32 %v752_v40, %v5938_v50  ;;  %v929_v63 = vmul.f32 %v752_v40, %v5945_v55 }
 0x246   : > { %v761_v48 = vpop.f32.mrb[3].mxu0  ;;  %v894_v49 = vpop.f32.mrb[5].mxu1  ;;  %4514 = vmatprep.subr.bf16.mxu0 %v4513_v43  ;;  %v893_v52 = vadd.f32 %v892_v47, %v5913_v29  ;;  %v930_v4 = vmul.f32 %v752_v40, %v5955_v1  ;;  %v934_v22 = vmul.f32 %v757_v60, %v5955_v1  ;;  %v767_v39 = vadd.f32 %v5933_v45, %v5917_v31 }
 0x247   : > { %4157 = vmatprep.mubr.f32.mxu0 %v927_v44  ;;  %4516 = vmatpush3.bf16.xpose.msra.mxu0 %v4513_v43  ;;  %v895_v56 = vadd.f32 %v894_v49, %v5920_v32  ;;  %v762_v11 = vadd.f32 %v761_v48, %v5917_v31  ;;  %v3881_v44 = vld [vmem:[%s5846_s22] ss:$0 sm:$0xff] }
 0x248   : > { %4530 = vmatprep.subr.bf16.mxu1 %v4529_v46  ;;  %v939_v41 = vmul.f32 %v767_v39, %v5925_v36  ;;  %v941_v42 = vmul.f32 %v767_v39, %v5945_v55  ;;  %v942_v31 = vmul.f32 %v767_v39, %v5955_v1 }
 0x249   : > { %4532 = vmatpush3.bf16.msra.mxu1 %v4529_v46  ;;  %v898_v51 = vpop.f32.mrb[6].mxu1  ;;  %v935_v20 = vmul.f32 %v762_v11, %v5925_v36  ;;  %v936_v28 = vmul.f32 %v762_v11, %v5938_v50  ;;  %v937_v37 = vmul.f32 %v762_v11, %v5945_v55 }
 0x24a   : > { %v899_v53 = vadd.f32 %v898_v51, %v5913_v29  ;;  %v900_v54 = vpop.f32.mrb[7].mxu1 }
 0x24b   : > { %v901_v57 = vadd.f32 %v900_v54, %v5920_v32 }
 0x24c   : > { %v4517_v59 = vpack.c.bf16 %v899_v53, %v893_v52 }
 0x24d   : > { %v4533_v61 = vpack.c.bf16 %v901_v57, %v895_v56  ;;  %v904_v62 = vpop.f32.mrb[8].mxu1 }
 0x24e   : > { %4158 = vmatmul.mubr.f32.vlgmr.msra.gmra.mrb[4].mxu0 %v928_v58  ;;  %4518 = vmatprep.subr.bf16.mxu0 %v4517_v59  ;;  %v906_v2 = vpop.f32.mrb[9].mxu1  ;;  %v905_v3 = vadd.f32 %v904_v62, %v5913_v29 }
 0x24f   : > { %4160 = vmatprep.mubr.f32.mxu0 %v929_v63  ;;  %4520 = vmatpush3.bf16.xpose.msra.mxu0 %v4517_v59  ;;  %v907_v9 = vadd.f32 %v906_v2, %v5920_v32  ;;  %v3882_v59 = vld [vmem:[%s5846_s22 + $0x1] ss:$0 sm:$0xff] }
 0x251   : > { %v910_v5 = vpop.f32.mrb[10].mxu1 }
 0x252   : > { %v911_v7 = vadd.f32 %v910_v5, %v5913_v29  ;;  %4161 = vmatmul.mubr.f32.gmra.mrb[6].mxu0 %v930_v4  ;;  %v912_v8 = vpop.f32.mrb[11].mxu1 }
 0x253   : > { %4167 = vmatprep.mubr.f32.mxu0 %v931_v6  ;;  %v913_v10 = vadd.f32 %v912_v8, %v5920_v32 }
 0x254   : > { %v4521_v14 = vpack.c.bf16 %v911_v7, %v905_v3 }
 0x255   : > { %v5965_v16 = vpack.c.bf16 %v913_v10, %v907_v9  ;;  %v916_v17 = vpop.f32.mrb[12].mxu1 }
 0x256   : > { %4168 = vmatmul.mubr.f32.vlgmr.msra.gmra.mrb[8].mxu0 %v932_v13  ;;  %4522 = vmatprep.subr.bf16.mxu0 %v4521_v14  ;;  %v918_v19 = vpop.f32.mrb[13].mxu1  ;;  %v917_v21 = vadd.f32 %v916_v17, %v5913_v29 }
 0x257   : > { %4170 = vmatprep.mubr.f32.mxu0 %v933_v18  ;;  %4524 = vmatpush3.bf16.xpose.msra.mxu0 %v4521_v14  ;;  %v919_v34 = vadd.f32 %v918_v19, %v5920_v32 }
 0x258   : > { %4538 = vmatprep.subr.bf16.mxu1 %v5965_v16 }
 0x259   : > { %v922_v25 = vpop.f32.mrb[14].mxu1 }
 0x25a   : > { %v923_v30 = vadd.f32 %v922_v25, %v5913_v29  ;;  %4171 = vmatmul.mubr.f32.gmra.mrb[10].mxu0 %v934_v22  ;;  %v924_v33 = vpop.f32.mrb[15].mxu1  ;;  %v938_v29 = vmul.f32 %v762_v11, %v5955_v1 }
 0x25b   : > { %4177 = vmatprep.mubr.f32.mxu0 %v935_v20  ;;  %v925_v35 = vadd.f32 %v924_v33, %v5920_v32  ;;  %v940_v32 = vmul.f32 %v767_v39, %v5938_v50 }
 0x25c   : > { %v4525_v38 = vpack.c.bf16 %v923_v30, %v917_v21  ;;  %v3883_v21 = vld [vmem:[%s5846_s22 + $0x2] ss:$0 sm:$0xff] }
 0x25d   : > { %v5979_v40 = vpack.c.bf16 %v925_v35, %v919_v34 }
 0x25e   : > { %4178 = vmatmul.mubr.f32.vlgmr.msra.gmra.mrb[12].mxu0 %v936_v28  ;;  %4526 = vmatprep.subr.bf16.mxu0 %v4525_v38 }
 0x25f   : > { %4528 = vmatpush3.bf16.xpose.msra.mxu0 %v4525_v38  ;;  %4180 = vmatprep.mubr.f32.mxu0 %v937_v37 }
 0x260   : > { %4534 = vmatprep.subr.bf16.mxu0 %v4533_v61 }
 0x262   : > { %4181 = vmatmul.mubr.f32.gmra.mrb[14].mxu0 %v938_v29 }
 0x263   : > { %4187 = vmatprep.mubr.f32.mxu0 %v939_v41 }
 0x266   : > { %4188 = vmatmul.mubr.f32.vlgmr.msra.gmra.mrb[16].mxu0 %v940_v32 }
 0x267   : > { %4190 = vmatprep.mubr.f32.mxu0 %v941_v42  ;;  %4536 = vmatpush3.bf16.msra.mxu0 %v4533_v61 }
 0x268   : > { %4542 = vmatprep.subr.bf16.mxu0 %v5979_v40 }
 0x26a   : > { %4191 = vmatmul.mubr.f32.gmra.mrb[18].mxu0 %v942_v31 }
 0x321   : > { %v4159_v43 = vpop.f32.mrb[4].mxu0 }
 0x322   : > { %v1284_v45 = vmul.f32 0.17677669, %v4159_v43  ;;  %v1009_v46 = vpop.f32.mrb[5].mxu0 }
 0x323   : > { %v1283_v47 = vmul.f32 0.17677669, %v1009_v46 }
 0x324   : > { %v5988_v48 = vadd.f32 %v3881_v44, %v1284_v45 }
 0x325   : > { %v4162_v49 = vpop.f32.mrb[6].mxu0  ;;  %v5992_v54 = vadd.f32 %v3881_v44, %v1283_v47 }
 0x326   : > { %v1286_v51 = vmul.f32 0.17677669, %v4162_v49  ;;  %v1019_v52 = vpop.f32.mrb[7].mxu0  ;;  %v1343_v53 = vsel %vm1339_vm0, %v5988_v48, -inf }
 0x327   : > { %v1285_v56 = vmul.f32 0.17677669, %v1019_v52  ;;  %1344 = vmax.xlane.f32.xlu0 %v1343_v53  ;;  %v1340_v62 = vsel %vm1339_vm0, %v5992_v54, -inf }
 0x328   : > { %v5994_v57 = vadd.f32 %v3881_v44, %v1286_v51 }
 0x329   : > { %v4169_v58 = vpop.f32.mrb[8].mxu0  ;;  %v6001_v2 = vadd.f32 %v3881_v44, %v1285_v56  ;;  %v3884_v44 = vld [vmem:[%s5846_s22 + $0x3] ss:$0 sm:$0xff] }
 0x32a   : > { %v1288_v60 = vmul.f32 0.17677669, %v4169_v58  ;;  %v1094_v61 = vpop.f32.mrb[9].mxu0  ;;  %v1349_v63 = vsel %vm1339_vm0, %v5994_v57, -inf }
 0x32b   : > { %v1287_v3 = vmul.f32 0.17677669, %v1094_v61  ;;  %1341 = vmax.xlane.f32.xlu0 %v1340_v62  ;;  %1350 = vmax.xlane.f32.xlu1 %v1349_v63  ;;  %v1346_v8 = vsel %vm1339_vm0, %v6001_v2, -inf }
 0x32c   : > { %v6003_v4 = vadd.f32 %v3882_v59, %v1288_v60 }
 0x32d   : > { %v4172_v5 = vpop.f32.mrb[10].mxu0  ;;  %v6009_v10 = vadd.f32 %v3882_v59, %v1287_v3 }
 0x32e   : > { %v1290_v6 = vmul.f32 0.17677669, %v4172_v5  ;;  %v1104_v7 = vpop.f32.mrb[11].mxu0  ;;  %v1355_v9 = vsel %vm1339_vm0, %v6003_v4, -inf }
 0x32f   : > { %v1289_v11 = vmul.f32 0.17677669, %v1104_v7  ;;  %1347 = vmax.xlane.f32.xlu0 %v1346_v8  ;;  %1356 = vmax.xlane.f32.xlu1 %v1355_v9  ;;  %v1352_v19 = vsel %vm1339_vm0, %v6009_v10, -inf }
 0x330   : > { %v6015_v20 = vadd.f32 %v3882_v59, %v1290_v6 }
 0x331   : > { %v4179_v13 = vpop.f32.mrb[12].mxu0  ;;  %v6011_v14 = vadd.f32 %v3882_v59, %v1289_v11 }
 0x332   : > { %v1292_v17 = vmul.f32 0.17677669, %v4179_v13  ;;  %v1179_v18 = vpop.f32.mrb[13].mxu0  ;;  %v1361_v35 = vsel %vm1339_vm0, %v6015_v20, -inf }
 0x333   : > { %v1291_v22 = vmul.f32 0.17677669, %v1179_v18  ;;  %1353 = vmax.xlane.f32.xlu1 %v1352_v19  ;;  %v1358_v25 = vsel %vm1339_vm0, %v6011_v14, -inf }
 0x334   : > { %1359 = vmax.xlane.f32.xlu0 %v1358_v25  ;;  %v6024_v37 = vadd.f32 %v3883_v21, %v1292_v17 }
 0x335   : > { %v4182_v28 = vpop.f32.mrb[14].mxu0  ;;  %v6020_v30 = vadd.f32 %v3883_v21, %v1291_v22 }
 0x336   : > { %v1294_v33 = vmul.f32 0.17677669, %v4182_v28  ;;  %v1189_v34 = vpop.f32.mrb[15].mxu0  ;;  %v1367_v31 = vsel %vm1339_vm0, %v6024_v37, -inf }
 0x337   : > { %v1293_v38 = vmul.f32 0.17677669, %v1189_v34  ;;  %1362 = vmax.xlane.f32.xlu1 %v1361_v35  ;;  %v1364_v39 = vsel %vm1339_vm0, %v6020_v30, -inf }
 0x338   : > { %1365 = vmax.xlane.f32.xlu0 %v1364_v39  ;;  %v6032_v43 = vadd.f32 %v3883_v21, %v1294_v33 }
 0x339   : > { %v4189_v29 = vpop.f32.mrb[16].mxu0  ;;  %v6028_v41 = vadd.f32 %v3883_v21, %v1293_v38 }
 0x33a   : > { %v1296_v32 = vmul.f32 0.17677669, %v4189_v29  ;;  %v1264_v42 = vpop.f32.mrb[17].mxu0  ;;  %v1373_v53 = vsel %vm1339_vm0, %v6032_v43, -inf }
 0x33b   : > { %v1295_v45 = vmul.f32 0.17677669, %v1264_v42  ;;  %1368 = vmax.xlane.f32.xlu1 %v1367_v31  ;;  %v1370_v46 = vsel %vm1339_vm0, %v6028_v41, -inf }
 0x33c   : > { %1371 = vmax.xlane.f32.xlu0 %v1370_v46  ;;  %v6041_v56 = vadd.f32 %v3884_v44, %v1296_v32 }
 0x33d   : > { %v4192_v47 = vpop.f32.mrb[18].mxu0  ;;  %v6037_v49 = vadd.f32 %v3884_v44, %v1295_v45 }
 0x33e   : > { %v1298_v51 = vmul.f32 0.17677669, %v4192_v47  ;;  %v1274_v52 = vpop.f32.mrb[19].mxu0  ;;  %v1379_v61 = vsel %vm1339_vm0, %v6041_v56, -inf }
 0x33f   : > { %v1297_v58 = vmul.f32 0.17677669, %v1274_v52  ;;  %1374 = vmax.xlane.f32.xlu1 %v1373_v53  ;;  %v1376_v59 = vsel %vm1339_vm0, %v6037_v49, -inf }
 0x340   : > { %1377 = vmax.xlane.f32.xlu0 %v1376_v59  ;;  %v6049_v62 = vadd.f32 %v3884_v44, %v1298_v51 }
 0x341   : > { %v6045_v60 = vadd.f32 %v3884_v44, %v1297_v58 }
 0x342   : > { %v1385_v3 = vsel %vm1339_vm0, %v6049_v62, -inf }
 0x343   : > { %1380 = vmax.xlane.f32.xlu1 %v1379_v61  ;;  %v1382_v63 = vsel %vm1339_vm0, %v6045_v60, -inf }
 0x344   : > { %1383 = vmax.xlane.f32.xlu0 %v1382_v63 }
 0x347   : > { %1386 = vmax.xlane.f32.xlu1 %v1385_v3 }
 0x3b4   : > { %v1345_v5 = vpop.xlane.xlu0 %1344 }
 0x3b5   : > { %v1389_v6 = vsub.f32 %v5988_v48, %v1345_v5 }
 0x3b7   : > { %v1406_v7 = vmul.f32 1.442695, %v1389_v6 }
 0x3b8   : > { %v1342_v8 = vpop.xlane.xlu0 %1341  ;;  %v1351_v9 = vpop.xlane.xlu1 %1350 }
 0x3b9   : > { %4842 = vpow2.f32 %v1406_v7  ;;  %v1388_v11 = vsub.f32 %v5992_v54, %v1342_v8  ;;  %v1391_v13 = vsub.f32 %v5994_v57, %v1351_v9 }
 0x3bb   : > { %v1404_v17 = vmul.f32 1.442695, %v1388_v11  ;;  %v1410_v18 = vmul.f32 1.442695, %v1391_v13 }
 0x3bc   : > { %v1348_v19 = vpop.xlane.xlu0 %1347  ;;  %v1357_v21 = vpop.xlane.xlu1 %1356 }
 0x3bd   : > { %4844 = vpow2.f32 %v1404_v17  ;;  %v1390_v22 = vsub.f32 %v6001_v2, %v1348_v19  ;;  %v1393_v25 = vsub.f32 %v6003_v4, %v1357_v21 }
 0x3be   : > { %4846 = vpow2.f32 %v1410_v18 }
 0x3bf   : > { %v1408_v28 = vmul.f32 1.442695, %v1390_v22  ;;  %v1414_v48 = vmul.f32 1.442695, %v1393_v25 }
 0x3c0   : > { %v1354_v33 = vpop.xlane.xlu1 %1353 }
 0x3c1   : > { %4848 = vpow2.f32 %v1408_v28  ;;  %v1392_v34 = vsub.f32 %v6009_v10, %v1354_v33  ;;  %v1360_v35 = vpop.xlane.xlu0 %1359 }
 0x3c2   : > { %4850 = vpow2.f32 %v1414_v48  ;;  %v1394_v54 = vsub.f32 %v6011_v14, %v1360_v35 }
 0x3c3   : > { %v6062_v57 = vpop.eup %4842  ;;  %v1412_v38 = vmul.f32 1.442695, %v1392_v34 }
 0x3c4   : > { %v1416_v39 = vmul.f32 1.442695, %v1394_v54  ;;  %v1363_v29 = vpop.xlane.xlu1 %1362  ;;  %v1439_v2 = vsel %vm1339_vm0, %v6062_v57, 0.0 }
 0x3c5   : > { %4852 = vpow2.f32 %v1412_v38  ;;  %v1395_v4 = vsub.f32 %v6015_v20, %v1363_v29  ;;  %v1366_v32 = vpop.xlane.xlu0 %1365  ;;  %1440 = vadd.xlane.f32.xlu1 %v1439_v2 }
 0x3c6   : > { %v1396_v42 = vsub.f32 %v6020_v30, %v1366_v32  ;;  %4854 = vpow2.f32 %v1416_v39 }
 0x3c7   : > { %v6068_v10 = vpop.eup %4844  ;;  %v1418_v31 = vmul.f32 1.442695, %v1395_v4 }
 0x3c8   : > { %v6070_v14 = vpop.eup %4846  ;;  %v1420_v44 = vmul.f32 1.442695, %v1396_v42  ;;  %v1369_v45 = vpop.xlane.xlu1 %1368  ;;  %v1436_v46 = vsel %vm1339_vm0, %v6068_v10, 0.0 }
 0x3c9   : > { %4856 = vpow2.f32 %v1418_v31  ;;  %v1397_v47 = vsub.f32 %v6024_v37, %v1369_v45  ;;  %v1372_v51 = vpop.xlane.xlu0 %1371  ;;  %v1445_v20 = vsel %vm1339_vm0, %v6070_v14, 0.0  ;;  %1437 = vadd.xlane.f32.xlu0 %v1436_v46 }
 0x3ca   : > { %v1398_v30 = vsub.f32 %v6028_v41, %v1372_v51  ;;  %1446 = vadd.xlane.f32.xlu1 %v1445_v20  ;;  %4858 = vpow2.f32 %v1420_v44 }
 0x3cb   : > { %v6078_v52 = vpop.eup %4848  ;;  %v1422_v53 = vmul.f32 1.442695, %v1397_v47 }
 0x3cc   : > { %v6080_v58 = vpop.eup %4850  ;;  %v1424_v59 = vmul.f32 1.442695, %v1398_v30  ;;  %v1375_v61 = vpop.xlane.xlu1 %1374  ;;  %v1442_v63 = vsel %vm1339_vm0, %v6078_v52, 0.0 }
 0x3cd   : > { %4860 = vpow2.f32 %v1422_v53  ;;  %v1399_v37 = vsub.f32 %v6032_v43, %v1375_v61  ;;  %v1378_v3 = vpop.xlane.xlu0 %1377  ;;  %v1451_v5 = vsel %vm1339_vm0, %v6080_v58, 0.0  ;;  %1443 = vadd.xlane.f32.xlu0 %v1442_v63  ;;  %v1932_v61 = vld [vmem:[#allocation11] sm:$0xff]  ;;  %v1933_v63 = vld [vmem:[#allocation11 + $0x8] sm:$0xff] }
 0x3ce   : > { %v1400_v41 = vsub.f32 %v6037_v49, %v1378_v3  ;;  %1452 = vadd.xlane.f32.xlu1 %v1451_v5  ;;  %4862 = vpow2.f32 %v1424_v59 }
 0x3cf   : > { %v6088_v6 = vpop.eup %4852  ;;  %v1426_v7 = vmul.f32 1.442695, %v1399_v37 }
 0x3d0   : > { %v1428_v8 = vmul.f32 1.442695, %v1400_v41  ;;  %v1381_v9 = vpop.xlane.xlu1 %1380  ;;  %v1448_v11 = vsel %vm1339_vm0, %v6088_v6, 0.0  ;;  %v6092_v13 = vpop.eup %4854 }
 0x3d1   : > { %4864 = vpow2.f32 %v1426_v7  ;;  %v1401_v43 = vsub.f32 %v6041_v56, %v1381_v9  ;;  %1449 = vadd.xlane.f32.xlu0 %v1448_v11  ;;  %v1384_v17 = vpop.xlane.xlu0 %1383  ;;  %v1454_v28 = vsel %vm1339_vm0, %v6092_v13, 0.0 }
 0x3d2   : > { %v1402_v18 = vsub.f32 %v6045_v60, %v1384_v17  ;;  %4866 = vpow2.f32 %v1428_v8  ;;  %v4545_v8 = vpack.c.bf16 %v1933_v63, %v1932_v61 }
 0x3d3   : > { %v6096_v49 = vpop.eup %4856  ;;  %v1430_v19 = vmul.f32 1.442695, %v1401_v43 }
 0x3d4   : > { %v1432_v21 = vmul.f32 1.442695, %v1402_v18  ;;  %v1387_v22 = vpop.xlane.xlu1 %1386  ;;  %v1457_v25 = vsel %vm1339_vm0, %v6096_v49, 0.0  ;;  %v6102_v48 = vpop.eup %4858 }
 0x3d5   : > { %4868 = vpow2.f32 %v1430_v19  ;;  %v1403_v56 = vsub.f32 %v6049_v62, %v1387_v22  ;;  %1458 = vadd.xlane.f32.xlu1 %v1457_v25  ;;  %1455 = vadd.xlane.f32.xlu0 %v1454_v28  ;;  %v1460_v35 = vsel %vm1339_vm0, %v6102_v48, 0.0 }
 0x3d6   : > { %4870 = vpow2.f32 %v1432_v21 }
 0x3d7   : > { %v6105_v60 = vpop.eup %4860  ;;  %v1434_v33 = vmul.f32 1.442695, %v1403_v56 }
 0x3d8   : > { %v1463_v34 = vsel %vm1339_vm0, %v6105_v60, 0.0  ;;  %v6111_v54 = vpop.eup %4862 }
 0x3d9   : > { %4872 = vpow2.f32 %v1434_v33  ;;  %1464 = vadd.xlane.f32.xlu1 %v1463_v34  ;;  %1461 = vadd.xlane.f32.xlu0 %v1460_v35  ;;  %v1466_v39 = vsel %vm1339_vm0, %v6111_v54, 0.0  ;;  %v1935_v35 = vld [vmem:[#allocation11 + $0x18] sm:$0xff] }
 0x3db   : > { %v6113_v38 = vpop.eup %4864 }
 0x3dc   : > { %v1469_v62 = vsel %vm1339_vm0, %v6113_v38, 0.0  ;;  %v6119_v29 = vpop.eup %4866 }
 0x3dd   : > { %1470 = vadd.xlane.f32.xlu1 %v1469_v62  ;;  %1467 = vadd.xlane.f32.xlu0 %v1466_v39  ;;  %v1472_v32 = vsel %vm1339_vm0, %v6119_v29, 0.0 }
 0x3df   : > { %v6121_v2 = vpop.eup %4868 }
 0x3e0   : > { %v1475_v4 = vsel %vm1339_vm0, %v6121_v2, 0.0  ;;  %v6127_v42 = vpop.eup %4870 }
 0x3e1   : > { %1476 = vadd.xlane.f32.xlu1 %v1475_v4  ;;  %1473 = vadd.xlane.f32.xlu0 %v1472_v32  ;;  %v1478_v45 = vsel %vm1339_vm0, %v6127_v42, 0.0 }
 0x3e3   : > { %v6129_v31 = vpop.eup %4872 }
 0x3e4   : > { %v1481_v44 = vsel %vm1339_vm0, %v6129_v31, 0.0 }
 0x3e5   : > { %1482 = vadd.xlane.f32.xlu1 %v1481_v44  ;;  %1479 = vadd.xlane.f32.xlu0 %v1478_v45  ;;  %v1937_v45 = vld [vmem:[#allocation11 + $0x28] sm:$0xff] }
 0x452   : > { %v1441_v46 = vpop.xlane.xlu1 %1440 }
 0x453   : > { %4874 = vrcp.f32 %v1441_v46 }
 0x456   : > { %v1438_v47 = vpop.xlane.xlu0 %1437 }
 0x457   : > { %v1447_v51 = vpop.xlane.xlu1 %1446  ;;  %4876 = vrcp.f32 %v1438_v47 }
 0x458   : > { %4878 = vrcp.f32 %v1447_v51 }
 0x45a   : > { %v1444_v20 = vpop.xlane.xlu0 %1443 }
 0x45b   : > { %v1453_v30 = vpop.xlane.xlu1 %1452  ;;  %4880 = vrcp.f32 %v1444_v20 }
 0x45c   : > { %4882 = vrcp.f32 %v1453_v30 }
 0x45d   : > { %v4875_v59 = vpop.eup %4874 }
 0x45e   : > { %v1450_v53 = vpop.xlane.xlu0 %1449  ;;  %v1501_v7 = vmul.f32 %v4875_v59, %v6062_v57 }
 0x45f   : > { %4884 = vrcp.f32 %v1450_v53 }
 0x461   : > { %v4877_v37 = vpop.eup %4876 }
 0x462   : > { %v1459_v3 = vpop.xlane.xlu1 %1458  ;;  %v1456_v5 = vpop.xlane.xlu0 %1455  ;;  %v1500_v41 = vmul.f32 %v4877_v37, %v6068_v10  ;;  %v1940_v37 = vld [vmem:[#allocation11 + $0x40] sm:$0xff] }
 0x463   : > { %4886 = vrcp.f32 %v1459_v3  ;;  %v4879_v9 = vpop.eup %4878  ;;  %v1941_v3 = vld [vmem:[#allocation11 + $0x48] sm:$0xff] }
 0x464   : > { %4888 = vrcp.f32 %v1456_v5  ;;  %4197 = vmatprep.mubr.msk.f32.mxu1 %vm1339_vm0, %v1500_v41  ;;  %v1503_v10 = vmul.f32 %v4879_v9, %v6070_v14  ;;  %v4561_v5 = vpack.c.bf16 %v1941_v3, %v1940_v37  ;;  %v1943_v41 = vld [vmem:[#allocation11 + $0x58] sm:$0xff] }
 0x465   : > { %v4881_v11 = vpop.eup %4880  ;;  %4198 = vmatmul.mubr.msk.f32.vlgmr.msra.gmra.mrb[16].mxu1 %vm1339_vm0, %v1501_v7  ;;  %v1944_v7 = vld [vmem:[#allocation11 + $0x60] sm:$0xff] }
 0x466   : > { %4540 = vmatpush3.bf16.msra.mxu1 %v5965_v16  ;;  %v1465_v43 = vpop.xlane.xlu1 %1464  ;;  %v1462_v17 = vpop.xlane.xlu0 %1461  ;;  %v1502_v18 = vmul.f32 %v4881_v11, %v6078_v52  ;;  %v1946_v11 = vld [vmem:[#allocation11 + $0x70] sm:$0xff] }
 0x467   : > { %4890 = vrcp.f32 %v1465_v43  ;;  %4546 = vmatprep.subr.bf16.mxu1 %v4545_v8  ;;  %v4883_v57 = vpop.eup %4882  ;;  %v1947_v43 = vld [vmem:[#allocation11 + $0x78] sm:$0xff] }
 0x468   : > { %4892 = vrcp.f32 %v1462_v17  ;;  %4200 = vmatprep.mubr.msk.f32.mxu1 %vm1339_vm0, %v1502_v18  ;;  %v1505_v16 = vmul.f32 %v4883_v57, %v6080_v58  ;;  %v1934_v58 = vld [vmem:[#allocation11 + $0x10] sm:$0xff]  ;;  %v4573_v17 = vpack.c.bf16 %v1947_v43, %v1946_v11 }
 0x469   : > { %v4885_v19 = vpop.eup %4884  ;;  %4201 = vmatmul.mubr.msk.f32.gmra.mrb[18].mxu1 %vm1339_vm0, %v1503_v10 }
 0x46a   : > { %v1471_v21 = vpop.xlane.xlu1 %1470  ;;  %v1468_v22 = vpop.xlane.xlu0 %1467  ;;  %v1504_v25 = vmul.f32 %v4885_v19, %v6088_v6 }
 0x46b   : > { %4894 = vrcp.f32 %v1471_v21 }
 0x46c   : > { %4896 = vrcp.f32 %v1468_v22  ;;  %4207 = vmatprep.mubr.msk.f32.mxu0 %vm1339_vm0, %v1504_v25 }
 0x46d   : > { %v4887_v52 = vpop.eup %4886  ;;  %4208 = vmatmul.mubr.msk.f32.vlgmr.msra.gmra.mrb[20].mxu0 %vm1339_vm0, %v1505_v16 }
 0x46e   : > { %v4889_v14 = vpop.eup %4888  ;;  %4544 = vmatpush3.bf16.msra.mxu0 %v5979_v40  ;;  %v1477_v28 = vpop.xlane.xlu1 %1476  ;;  %v1507_v33 = vmul.f32 %v4887_v52, %v6096_v49  ;;  %v4549_v49 = vpack.c.bf16 %v1935_v35, %v1934_v58 }
 0x46f   : > { %v1474_v56 = vpop.xlane.xlu0 %1473  ;;  %4898 = vrcp.f32 %v1477_v28  ;;  %v1506_v34 = vmul.f32 %v4889_v14, %v6092_v13  ;;  %v1936_v13 = vld [vmem:[#allocation11 + $0x20] sm:$0xff] }
 0x470   : > { %4900 = vrcp.f32 %v1474_v56  ;;  %v4553_v51 = vpack.c.bf16 %v1937_v45, %v1936_v13 }
 0x471   : > { %v4891_v6 = vpop.eup %4890  ;;  %4210 = vmatprep.mubr.msk.f32.mxu0 %vm1339_vm0, %v1506_v34 }
 0x472   : > { %v4893_v62 = vpop.eup %4892  ;;  %v1509_v39 = vmul.f32 %v4891_v6, %v6105_v60  ;;  %4211 = vmatmul.mubr.msk.f32.gmra.mrb[22].mxu0 %vm1339_vm0, %v1507_v33  ;;  %v1483_v4 = vpop.xlane.xlu1 %1482 }
 0x473   : > { %v1480_v40 = vpop.xlane.xlu0 %1479  ;;  %4902 = vrcp.f32 %v1483_v4  ;;  %v1508_v32 = vmul.f32 %v4893_v62, %v6102_v48 }
 0x474   : > { %4904 = vrcp.f32 %v1480_v40 }
 0x475   : > { %v4895_v44 = vpop.eup %4894  ;;  %4217 = vmatprep.mubr.msk.f32.mxu1 %vm1339_vm0, %v1508_v32 }
 0x476   : > { %v4897_v46 = vpop.eup %4896  ;;  %4218 = vmatmul.mubr.msk.f32.vlgmr.msra.gmra.mrb[20].mxu1 %vm1339_vm0, %v1509_v39  ;;  %v1511_v47 = vmul.f32 %v4895_v44, %v6113_v38 }
 0x477   : > { %v1510_v60 = vmul.f32 %v4897_v46, %v6111_v54  ;;  %4548 = vmatpush3.bf16.msra.mxu1 %v4545_v8  ;;  %v1945_v8 = vld [vmem:[#allocation11 + $0x68] sm:$0xff] }
 0x478   : > { %4550 = vmatprep.subr.bf16.mxu1 %v4549_v49  ;;  %v4569_v9 = vpack.c.bf16 %v1945_v8, %v1944_v7  ;;  %v4994_v8 = vld [vmem:[%s5855_s11] sm:$0xff] }
 0x479   : > { %v4899_v20 = vpop.eup %4898  ;;  %4220 = vmatprep.mubr.msk.f32.mxu1 %vm1339_vm0, %v1510_v60 }
 0x47a   : > { %v4901_v48 = vpop.eup %4900  ;;  %v1513_v30 = vmul.f32 %v4899_v20, %v6121_v2  ;;  %4221 = vmatmul.mubr.msk.f32.gmra.mrb[22].mxu1 %vm1339_vm0, %v1511_v47  ;;  %v1939_v2 = vld [vmem:[#allocation11 + $0x38] sm:$0xff] }
 0x47b   : > { %v1512_v53 = vmul.f32 %v4901_v48, %v6119_v29  ;;  %4552 = vmatpush3.bf16.msra.mxu1 %v4549_v49  ;;  %v1938_v29 = vld [vmem:[#allocation11 + $0x30] sm:$0xff] }
 0x47c   : > { %4554 = vmatprep.subr.bf16.mxu1 %v4553_v51  ;;  %v4557_v63 = vpack.c.bf16 %v1939_v2, %v1938_v29 }
 0x47d   : > { %v4903_v59 = vpop.eup %4902  ;;  %4227 = vmatprep.mubr.msk.f32.mxu0 %vm1339_vm0, %v1512_v53 }
 0x47e   : > { %v4905_v38 = vpop.eup %4904  ;;  %4228 = vmatmul.mubr.msk.f32.vlgmr.msra.gmra.mrb[24].mxu0 %vm1339_vm0, %v1513_v30  ;;  %v1515_v54 = vmul.f32 %v4903_v59, %v6129_v31  ;;  %v1942_v31 = vld [vmem:[#allocation11 + $0x50] sm:$0xff] }
 0x47f   : > { %v1514_v61 = vmul.f32 %v4905_v38, %v6127_v42  ;;  %4556 = vmatpush3.bf16.msra.mxu1 %v4553_v51  ;;  %v4565_v42 = vpack.c.bf16 %v1943_v41, %v1942_v31 }
 0x480   : > { %4558 = vmatprep.subr.bf16.mxu1 %v4557_v63 }
 0x481   : > { %4230 = vmatprep.mubr.msk.f32.mxu0 %vm1339_vm0, %v1514_v61 }
 0x482   : > { %4231 = vmatmul.mubr.msk.f32.gmra.mrb[26].mxu0 %vm1339_vm0, %v1515_v54 }
 0x483   : > { %2231 = vmatprep.mubr.f32.mxu0 %v5393_v0  ;;  %4560 = vmatpush3.bf16.msra.mxu1 %v4557_v63 }
 0x484   : > { %4562 = vmatprep.subr.bf16.mxu1 %v4561_v5 }
 0x487   : > { %4564 = vmatpush3.bf16.msra.mxu1 %v4561_v5 }
 0x488   : > { %4566 = vmatprep.subr.bf16.mxu1 %v4565_v42 }
 0x48b   : > { %4568 = vmatpush3.bf16.msra.mxu1 %v4565_v42 }
 0x48c   : > { %4570 = vmatprep.subr.bf16.mxu1 %v4569_v9 }
 0x48f   : > { %4572 = vmatpush3.bf16.msra.mxu1 %v4569_v9 }
 0x490   : > { %4574 = vmatprep.subr.bf16.mxu1 %v4573_v17 }
 0x493   : > { %4576 = vmatpush3.bf16.msra.mxu1 %v4573_v17 }
 0x538   : > { %v4199_v18 = vpop.f32.mrb[16].mxu1 }
 0x539   : > { %v1905_v10 = vmul.f32 %v4199_v18, %v5938_v50  ;;  %v1594_v57 = vpop.f32.mrb[17].mxu1  ;;  %v4995_v18 = vld [vmem:[%s5855_s11 + $0x10] sm:$0xff] }
 0x53a   : > { %v1904_v19 = vmul.f32 %v1594_v57, %v5925_v36  ;;  %v2107_v57 = vld [vmem:[#allocation13 + $0x20] sm:$0xff] }
 0x53c   : > { %v1920_v21 = vadd.f32 %v1905_v10, %v1904_v19  ;;  %v4202_v22 = vpop.f32.mrb[18].mxu1  ;;  %v2103_v19 = vld [vmem:[#allocation13] sm:$0xff] }
 0x53d   : > { %v1604_v25 = vpop.f32.mrb[19].mxu1  ;;  %v1907_v52 = vmul.f32 %v4202_v22, %v5955_v1  ;;  %v2106_v22 = vld [vmem:[#allocation13 + $0x18] sm:$0xff] }
 0x53e   : > { %v1906_v16 = vmul.f32 %v1604_v25, %v5945_v55  ;;  %v2108_v25 = vld [vmem:[#allocation13 + $0x28] sm:$0xff] }
 0x540   : > { %v1921_v14 = vadd.f32 %v1920_v21, %v1906_v16  ;;  %v4209_v28 = vpop.f32.mrb[20].mxu0  ;;  %v4579_v16 = vpack.c.bf16 %v2106_v22, %v2103_v19  ;;  %v2137_v19 = vld [vmem:[#allocation13 + $0x110] sm:$0xff] }
 0x541   : > { %v1909_v56 = vmul.f32 %v4209_v28, %v5938_v50  ;;  %v1691_v33 = vpop.f32.mrb[21].mxu0  ;;  %v2113_v28 = vld [vmem:[#allocation13 + $0x50] sm:$0xff] }
 0x542   : > { %v1908_v34 = vmul.f32 %v1691_v33, %v5925_v36  ;;  %v1922_v6 = vadd.f32 %v1921_v14, %v1907_v52  ;;  %v2110_v14 = vld [vmem:[#allocation13 + $0x38] sm:$0xff]  ;;  %v2133_v22 = vld [vmem:[#allocation13 + $0xf0] sm:$0xff] }
 0x543   : > { %v4581_v33 = vpack.c.bf16 %v2113_v28, %v2110_v14  ;;  %v2140_v28 = vld [vmem:[#allocation13 + $0x128] sm:$0xff] }
 0x544   : > { %v1923_v58 = vadd.f32 %v1909_v56, %v1908_v34  ;;  %4265 = vmatprep.mubr.f32.mxu1 %v1922_v6  ;;  %v2109_v56 = vld [vmem:[#allocation13 + $0x30] sm:$0xff]  ;;  %v2112_v34 = vld [vmem:[#allocation13 + $0x48] sm:$0xff]  ;;  %v2114_v6 = vld [vmem:[#allocation13 + $0x58] sm:$0xff] }
 0x545   : > { %v4212_v35 = vpop.f32.mrb[22].mxu0 }
 0x546   : > { %v1701_v62 = vpop.f32.mrb[23].mxu0  ;;  %v1911_v4 = vmul.f32 %v4212_v35, %v5955_v1 }
 0x547   : > { %v1910_v39 = vmul.f32 %v1701_v62, %v5945_v55  ;;  %v2116_v62 = vld [vmem:[#allocation13 + $0x68] sm:$0xff] }
 0x549   : > { %v1924_v40 = vadd.f32 %v1923_v58, %v1910_v39  ;;  %v4219_v32 = vpop.f32.mrb[20].mxu1  ;;  %v4583_v58 = vpack.c.bf16 %v2112_v34, %v2109_v56  ;;  %v2119_v39 = vld [vmem:[#allocation13 + $0x80] sm:$0xff] }
 0x54a   : > { %v1913_v49 = vmul.f32 %v4219_v32, %v5938_v50  ;;  %v1788_v44 = vpop.f32.mrb[21].mxu1  ;;  %v2118_v32 = vld [vmem:[#allocation13 + $0x78] sm:$0xff]  ;;  %v2143_v56 = vld [vmem:[#allocation13 + $0x140] sm:$0xff] }
 0x54b   : > { %v1925_v13 = vadd.f32 %v1924_v40, %v1911_v4  ;;  %v1912_v45 = vmul.f32 %v1788_v44, %v5925_v36  ;;  %v2115_v4 = vld [vmem:[#allocation13 + $0x60] sm:$0xff]  ;;  %v4585_v40 = vpack.c.bf16 %v2119_v39, %v2116_v62  ;;  %v2120_v44 = vld [vmem:[#allocation13 + $0x88] sm:$0xff]  ;;  %v2146_v39 = vld [vmem:[#allocation13 + $0x158] sm:$0xff] }
 0x54c   : > { %v2139_v34 = vld [vmem:[#allocation13 + $0x120] sm:$0xff] }
 0x54d   : > { %v1926_v46 = vadd.f32 %v1913_v49, %v1912_v45  ;;  %v4222_v47 = vpop.f32.mrb[22].mxu1  ;;  %4266 = vmatmul.mubr.f32.vlgmr.msra.gmra.mrb[24].mxu1 %v1925_v13  ;;  %v2117_v49 = vld [vmem:[#allocation13 + $0x70] sm:$0xff]  ;;  %v4587_v45 = vpack.c.bf16 %v2118_v32, %v2115_v4 }
 0x54e   : > { %v1798_v60 = vpop.f32.mrb[23].mxu1  ;;  %v1915_v20 = vmul.f32 %v4222_v47, %v5955_v1  ;;  %v4617_v13 = vpack.c.bf16 %v2120_v44, %v2117_v49  ;;  %v2149_v4 = vld [vmem:[#allocation13 + $0x170] sm:$0xff]  ;;  %v2148_v49 = vld [vmem:[#allocation13 + $0x168] sm:$0xff]  ;;  %v2147_v44 = vld [vmem:[#allocation13 + $0x160] sm:$0xff] }
 0x54f   : > { %v1914_v51 = vmul.f32 %v1798_v60, %v5945_v55  ;;  %v2145_v32 = vld [vmem:[#allocation13 + $0x150] sm:$0xff] }
 0x551   : > { %v1927_v48 = vadd.f32 %v1926_v46, %v1914_v51  ;;  %v4229_v30 = vpop.f32.mrb[24].mxu0 }
 0x552   : > { %v1917_v53 = vmul.f32 %v4229_v30, %v5938_v50  ;;  %v1885_v59 = vpop.f32.mrb[25].mxu0  ;;  %v1951_v50 = vrot.slane %v5910_v27, %v5908_v26  ;;  %v2104_v27 = vld [vmem:[#allocation13 + $0x8] sm:$0xff] }
 0x553   : > { %v1916_v38 = vmul.f32 %v1885_v59, %v5925_v36  ;;  %v1928_v54 = vadd.f32 %v1927_v48, %v1915_v20  ;;  %v4577_v21 = vpack.c.bf16 %v2107_v57, %v2104_v27  ;;  %v2134_v57 = vld [vmem:[#allocation13 + $0xf8] sm:$0xff] }
 0x555   : > { %v1929_v61 = vadd.f32 %v1917_v53, %v1916_v38  ;;  %v4232_v29 = vpop.f32.mrb[26].mxu0  ;;  %4268 = vmatprep.mubr.f32.mxu1 %v1928_v54  ;;  %4578 = vmatprep.subr.bf16.mxu0 %v4577_v21  ;;  %v4597_v21 = vpack.c.bf16 %v2137_v19, %v2134_v57 }
 0x556   : > { %v1895_v2 = vpop.f32.mrb[27].mxu0  ;;  %v1919_v37 = vmul.f32 %v4232_v29, %v5955_v1  ;;  %4580 = vmatpush1.bf16.msra.mxu0 %v4579_v16 }
 0x557   : > { %v1918_v63 = vmul.f32 %v1895_v2, %v5945_v55  ;;  %4582 = vmatprep.subr.bf16.mxu0 %v4581_v33  ;;  %v4601_v33 = vpack.c.bf16 %v2143_v56, %v2140_v28 }
 0x559   : > { %v1930_v3 = vadd.f32 %v1929_v61, %v1918_v63  ;;  %v2122_v63 = vld [vmem:[#allocation13 + $0x98] sm:$0xff] }
 0x55a   : > { %4584 = vmatpush1.bf16.msra.mxu0 %v4583_v58 }
 0x55b   : > { %v1931_v5 = vadd.f32 %v1930_v3, %v1919_v37  ;;  %4586 = vmatprep.subr.bf16.mxu0 %v4585_v40  ;;  %v2125_v37 = vld [vmem:[#allocation13 + $0xb0] sm:$0xff]  ;;  %v4605_v40 = vpack.c.bf16 %v2149_v4, %v2146_v39 }
 0x55c   : > { %v6265_v39 = vld [vmem:[%s6637_s30 + $0x18] sm:$0xff] }
 0x55d   : > { %4269 = vmatmul.mubr.f32.gmra.mrb[26].mxu1 %v1931_v5  ;;  %v4589_v5 = vpack.c.bf16 %v2125_v37, %v2122_v63 }
 0x55e   : > { %4588 = vmatpush1.bf16.msra.mxu0 %v4587_v45  ;;  %v2150_v45 = vld [vmem:[#allocation13 + $0x178] sm:$0xff] }
 0x55f   : > { %4590 = vmatprep.subr.bf16.mxu0 %v4589_v5 }
 0x620   : > { %v4267_v31 = vpop.f32.mrb[24].mxu1 }
 0x621   : > { %v2024_v41 = vadd.f32 %v4267_v31, %v1951_v50  ;;  %v2018_v36 = vpop.f32.mrb[25].mxu1  ;;  %v2124_v31 = vld [vmem:[#allocation13 + $0xa8] sm:$0xff] }
 0x622   : > { %v2019_v42 = vadd.f32 %v2018_v36, %v1951_v50 }
 0x623   : > { %v2038_v7 = vadd.f32 %v2024_v41, %v5877_v12  ;;  %v2105_v12 = vld [vmem:[#allocation13 + $0x10] sm:$0xff]  ;;  %v2123_v41 = vld [vmem:[#allocation13 + $0xa0] sm:$0xff] }
 0x624   : > { %v2037_v9 = vadd.f32 %v4994_v8, %v2019_v42  ;;  %v4609_v52 = vpack.c.bf16 %v2108_v25, %v2105_v12  ;;  %v2136_v12 = vld [vmem:[#allocation13 + $0x108] sm:$0xff]  ;;  %v2135_v25 = vld [vmem:[#allocation13 + $0x100] sm:$0xff] }
 0x625   : > { %2043 = vadd.xlane.f32.xlu1 %v2038_v7  ;;  %v4599_v16 = vpack.c.bf16 %v2136_v12, %v2133_v22 }
 0x626   : > { %2041 = vadd.xlane.f32.xlu0 %v2037_v9  ;;  %4610 = vmatprep.subr.bf16.mxu1 %v4609_v52 }
 0x627   : > { %4612 = vmatpush3.bf16.msra.mxu1 %v4609_v52  ;;  %v2138_v52 = vld [vmem:[#allocation13 + $0x118] sm:$0xff] }
 0x628   : > { %v4629_v14 = vpack.c.bf16 %v2138_v52, %v2135_v25 }
 0x630   : > { %v4270_v55 = vpop.f32.mrb[26].mxu1 }
 0x631   : > { %v2034_v11 = vadd.f32 %v4270_v55, %v1951_v50  ;;  %v2028_v1 = vpop.f32.mrb[27].mxu1  ;;  %v2131_v55 = vld [vmem:[#allocation13 + $0xe0] sm:$0xff] }
 0x632   : > { %v2029_v43 = vadd.f32 %v2028_v1, %v1951_v50  ;;  %v2121_v50 = vld [vmem:[#allocation13 + $0x90] sm:$0xff]  ;;  %v2127_v1 = vld [vmem:[#allocation13 + $0xc0] sm:$0xff] }
 0x633   : > { %v2040_v17 = vadd.f32 %v2034_v11, %v5884_v15  ;;  %v2111_v15 = vld [vmem:[#allocation13 + $0x40] sm:$0xff]  ;;  %v4591_v42 = vpack.c.bf16 %v2124_v31, %v2121_v50 }
 0x634   : > { %v2039_v10 = vadd.f32 %v4995_v18, %v2029_v43  ;;  %v4613_v35 = vpack.c.bf16 %v2114_v6, %v2111_v15  ;;  %v2130_v43 = vld [vmem:[#allocation13 + $0xd8] sm:$0xff]  ;;  %v2141_v6 = vld [vmem:[#allocation13 + $0x130] sm:$0xff] }
 0x635   : > { %2047 = vadd.xlane.f32.xlu1 %v2040_v17  ;;  %4592 = vmatpush1.bf16.msra.mxu0 %v4591_v42  ;;  %v4595_v18 = vpack.c.bf16 %v2130_v43, %v2127_v1  ;;  %v2142_v15 = vld [vmem:[#allocation13 + $0x138] sm:$0xff] }
 0x636   : > { %2045 = vadd.xlane.f32.xlu0 %v2039_v10  ;;  %4614 = vmatprep.subr.bf16.mxu1 %v4613_v35  ;;  %v4603_v58 = vpack.c.bf16 %v2142_v15, %v2139_v34  ;;  %v6253_v34 = vld [vmem:[%s6637_s30 + $0x8] sm:$0xff] }
 0x637   : > { %4616 = vmatpush3.bf16.msra.mxu1 %v4613_v35  ;;  %v2144_v35 = vld [vmem:[#allocation13 + $0x148] sm:$0xff] }
 0x638   : > { %4618 = vmatprep.subr.bf16.mxu1 %v4617_v13  ;;  %v4633_v62 = vpack.c.bf16 %v2144_v35, %v2141_v6  ;;  %v6259_v35 = vld [vmem:[%s6637_s30 + $0x10] sm:$0xff] }
 0x63b   : > { %4620 = vmatpush3.bf16.msra.mxu1 %v4617_v13  ;;  %v4607_v13 = vpack.c.bf16 %v2148_v49, %v2145_v32 }
 0x6b2   : > { %v2044_v46 = vpop.xlane.xlu1 %2043 }
 0x6b3   : > { %v2051_v47 = vmul.f32 0.0078125, %v2044_v46  ;;  %v2042_v60 = vpop.xlane.xlu0 %2041  ;;  %v4637_v46 = vpack.c.bf16 %v2150_v45, %v2147_v44 }
 0x6b4   : > { %v2050_v51 = vmul.f32 0.0078125, %v2042_v60 }
 0x6b5   : > { %v6192_v20 = vsub.f32 %v2038_v7, %v2051_v47  ;;  %v2126_v7 = vld [vmem:[#allocation13 + $0xb8] sm:$0xff] }
 0x6b6   : > { %v6194_v48 = vsub.f32 %v2037_v9, %v2050_v51  ;;  %v4621_v8 = vpack.c.bf16 %v2126_v7, %v2123_v41  ;;  %v2128_v9 = vld [vmem:[#allocation13 + $0xc8] sm:$0xff] }
 0x6b7   : > { %v2059_v30 = vmul.f32 %v6192_v20, %v6192_v20  ;;  %v4593_v11 = vpack.c.bf16 %v2131_v55, %v2128_v9 }
 0x6b8   : > { %v2058_v53 = vmul.f32 %v6194_v48, %v6194_v48  ;;  %4622 = vmatprep.subr.bf16.mxu1 %v4621_v8 }
 0x6b9   : > { %2064 = vadd.xlane.f32.xlu1 %v2059_v30  ;;  %4624 = vmatpush3.bf16.msra.mxu1 %v4621_v8 }
 0x6ba   : > { %2062 = vadd.xlane.f32.xlu0 %v2058_v53  ;;  %4594 = vmatprep.subr.bf16.mxu0 %v4593_v11 }
 0x6bb   : > { %4596 = vmatpush1.bf16.msra.mxu0 %v4595_v18 }
 0x6bc   : > { %4598 = vmatprep.subr.bf16.mxu0 %v4597_v21 }
 0x6bf   : > { %4600 = vmatpush1.bf16.msra.mxu0 %v4599_v16 }
 0x6c0   : > { %4602 = vmatprep.subr.bf16.mxu0 %v4601_v33 }
 0x6c2   : > { %v2048_v59 = vpop.xlane.xlu1 %2047 }
 0x6c3   : > { %v2053_v38 = vmul.f32 0.0078125, %v2048_v59  ;;  %v2046_v54 = vpop.xlane.xlu0 %2045  ;;  %4604 = vmatpush1.bf16.msra.mxu0 %v4603_v58 }
 0x6c4   : > { %v2052_v61 = vmul.f32 0.0078125, %v2046_v54  ;;  %4606 = vmatprep.subr.bf16.mxu0 %v4605_v40  ;;  %v2096_v54 = vsub.s32 3, %v5899_v23 }
 0x6c5   : > { %v6200_v29 = vsub.f32 %v2040_v17, %v2053_v38  ;;  %v2129_v17 = vld [vmem:[#allocation13 + $0xd0] sm:$0xff]  ;;  %v2088_v38 = vsub.s32 2, %v5899_v23 }
 0x6c6   : > { %v6202_v2 = vsub.f32 %v2039_v10, %v2052_v61  ;;  %v2132_v10 = vld [vmem:[#allocation13 + $0xe8] sm:$0xff]  ;;  %v6210_v61 = vld [vmem:[#allocation17] sm:$0xff] }
 0x6c7   : > { %v2061_v3 = vmul.f32 %v6200_v29, %v6200_v29  ;;  %v4625_v27 = vpack.c.bf16 %v2132_v10, %v2129_v17  ;;  %4608 = vmatpush1.bf16.msra.mxu0 %v4607_v13  ;;  %v2089_v63 = vrot.slane %v6210_v61, %v2088_v38  ;;  %v2097_v42 = vrot.slane %v6210_v61, %v2096_v54 }
 0x6c8   : > { %v2060_v36 = vmul.f32 %v6202_v2, %v6202_v2 }
 0x6c9   : > { %2068 = vadd.xlane.f32.xlu1 %v2061_v3  ;;  %4626 = vmatprep.subr.bf16.mxu1 %v4625_v27 }
 0x6ca   : > { %2066 = vadd.xlane.f32.xlu0 %v2060_v36  ;;  %4628 = vmatpush3.bf16.msra.mxu1 %v4625_v27 }
 0x6cb   : > { %4630 = vmatprep.subr.bf16.mxu1 %v4629_v14 }
 0x6ce   : > { %4632 = vmatpush3.bf16.msra.mxu1 %v4629_v14 }
 0x6cf   : > { %4634 = vmatprep.subr.bf16.mxu1 %v4633_v62 }
 0x6d2   : > { %4636 = vmatpush3.bf16.msra.mxu1 %v4633_v62 }
 0x6d3   : > { %4638 = vmatprep.subr.bf16.mxu1 %v4637_v46 }
 0x6d6   : > { %4640 = vmatpush3.bf16.msra.mxu1 %v4637_v46 }
 0x746   : > { %v2065_v47 = vpop.xlane.xlu1 %2064 }
 0x747   : > { %v2071_v60 = vmul.f32 0.0078125, %v2065_v47  ;;  %v2063_v51 = vpop.xlane.xlu0 %2062 }
 0x748   : > { %v2070_v30 = vmul.f32 0.0078125, %v2063_v51 }
 0x749   : > { %v2075_v53 = vadd.f32 1e-05, %v2071_v60 }
 0x74a   : > { %v2074_v59 = vadd.f32 1e-05, %v2070_v30 }
 0x74b   : > { %4906 = vrsqrt.f32 %v2075_v53 }
 0x74c   : > { %4908 = vrsqrt.f32 %v2074_v59 }
 0x755   : > { %v4907_v37 = vpop.eup %4906 }
 0x756   : > { %v4909_v3 = vpop.eup %4908  ;;  %v2083_v5 = vmul.f32 %v4907_v37, %v6192_v20  ;;  %v2069_v50 = vpop.xlane.xlu1 %2068 }
 0x757   : > { %v2082_v31 = vmul.f32 %v4909_v3, %v6194_v48  ;;  %v2073_v41 = vmul.f32 0.0078125, %v2069_v50  ;;  %v2067_v36 = vpop.xlane.xlu0 %2066 }
 0x758   : > { %v2072_v7 = vmul.f32 0.0078125, %v2067_v36  ;;  %v2091_v8 = vmul.f32 %v2089_v63, %v2083_v5 }
 0x759   : > { %v2077_v9 = vadd.f32 1e-05, %v2073_v41  ;;  %v2090_v55 = vmul.f32 %v2089_v63, %v2082_v31 }
 0x75a   : > { %v2076_v11 = vadd.f32 1e-05, %v2072_v7  ;;  %v6220_v43 = vadd.f32 %v2097_v42, %v2091_v8 }
 0x75b   : > { %4910 = vrsqrt.f32 %v2077_v9  ;;  %v6218_v1 = vadd.f32 %v2097_v42, %v2090_v55 }
 0x75c   : > { %4912 = vrsqrt.f32 %v2076_v11 }
 0x75d   : > { %2232 = vmatmul.mubr.f32.vlgmr.msra.gmra.mrb[28].mxu0 %v6218_v1  ;;  %4303 = vmatprep.mubr.f32.mxu1 %v6218_v1 }
 0x75e   : > { %4304 = vmatmul.mubr.f32.vlgmr.msra.gmra.mrb[28].mxu1 %v6220_v43  ;;  %2237 = vmatprep.mubr.f32.mxu0 %v5393_v0 }
 0x761   : > { %2238 = vmatmul.mubr.f32.gmra.mrb[30].mxu0 %v6220_v43 }
 0x762   : > { %2243 = vmatprep.mubr.f32.mxu0 %v5393_v0 }
 0x765   : > { %v4911_v20 = vpop.eup %4910 }
 0x766   : > { %v4913_v48 = vpop.eup %4912  ;;  %v2085_v17 = vmul.f32 %v4911_v20, %v6200_v29  ;;  %v2102_v29 = vld [vmem:[%s6638_s5] sm:$0x7]  ;;  %s5294_s5 = scalar_lea.vmem %s5293_s16, 1024 }
 0x767   : > { %v2084_v18 = vmul.f32 %v4913_v48, %v6202_v2  ;;  %v2155_v2 = vrot.slane %v2102_v29, %v5902_v24  ;;  %v2159_v21 = vrot.slane %v2102_v29, %v5908_v26  ;;  %v2163_v44 = vrot.slane %v2102_v29, %v2088_v38  ;;  %p5296_p10 = scmp.lt.s32.totalorder %s5294_s5, %s5288_s15 }
 0x768   : > { %v2093_v10 = vmul.f32 %v2089_v63, %v2085_v17 }
 0x769   : > { %v2092_v27 = vmul.f32 %v2089_v63, %v2084_v18  ;;  %p5297_p6 = por %p5296_p10, %p5295_p1 }
 0x76a   : > { %v6232_v19 = vadd.f32 %v2097_v42, %v2093_v10 }
 0x76b   : > { %v6230_v57 = vadd.f32 %v2097_v42, %v2092_v27  ;;  %p5298_p13 = pnand %p5297_p6, %p5291_p12 }
 0x76d   : > { %2244 = vmatmul.mubr.f32.gmra.mrb[32].mxu0 %v6230_v57  ;;  %4306 = vmatprep.mubr.f32.mxu1 %v6230_v57 }
 0x76e   : > { %4307 = vmatmul.mubr.f32.gmra.mrb[30].mxu1 %v6232_v19  ;;  %2249 = vmatprep.mubr.f32.mxu0 %v5393_v0  ;;  %v6247_v0 = vld [vmem:[%s6637_s30] sm:$0xff] }
 0x771   : > { %2250 = vmatmul.mubr.f32.gmra.mrb[34].mxu0 %v6232_v19 }
 0x830   : > { %v2233_v22 = vpop.f32.mrb[28].mxu0 }
 0x831   : > { %v2234_v12 = vadd.f32 %v2233_v22, %v2155_v2  ;;  %v2235_v25 = vpop.f32.mrb[29].mxu0  ;;  %v4305_v16 = vpop.f32.mrb[28].mxu1 }
 0x832   : > { %v2236_v52 = vadd.f32 %v2235_v25, %v2159_v21  ;;  %v2322_v14 = vpop.f32.mrb[29].mxu1  ;;  %v2328_v31 = vadd.f32 %v4305_v16, %v2163_v44 }
 0x833   : > { %v2341_v28 = vmul.f32 %v6247_v0, %v2234_v12  ;;  %v2342_v15 = vmul.f32 %v6253_v34, %v2234_v12  ;;  %v2343_v62 = vmul.f32 %v6259_v35, %v2234_v12  ;;  %v2344_v4 = vmul.f32 %v6265_v39, %v2234_v12 }
 0x834   : > { %v2239_v56 = vpop.f32.mrb[30].mxu0  ;;  %4309 = vmatprep.subr.mxu0 %v2236_v52  ;;  %v2323_v59 = vadd.f32 %v2322_v14, %v2163_v44 }
 0x835   : > { %v2241_v33 = vpop.f32.mrb[31].mxu0  ;;  %4310 = vmatpush3.xpose.msra.mxu0 %v2236_v52  ;;  %4311 = vmatprep.mubr.f32.mxu0 %v2341_v28  ;;  %v2240_v58 = vadd.f32 %v2239_v56, %v2155_v2 }
 0x836   : > { %v2242_v6 = vadd.f32 %v2241_v33, %v2159_v21 }
 0x837   : > { %v2345_v40 = vmul.f32 %v6247_v0, %v2240_v58  ;;  %v2346_v32 = vmul.f32 %v6253_v34, %v2240_v58  ;;  %v2347_v49 = vmul.f32 %v6259_v35, %v2240_v58  ;;  %v2348_v30 = vmul.f32 %v6265_v39, %v2240_v58 }
 0x838   : > { %4312 = vmatmul.mubr.f32.vlgmr.msra.gmra.mrb[36].mxu0 %v2342_v15  ;;  %4317 = vmatprep.subr.mxu0 %v2242_v6 }
 0x839   : > { %4314 = vmatprep.mubr.f32.mxu0 %v2343_v62  ;;  %4318 = vmatpush3.xpose.msra.mxu0 %v2242_v6 }
 0x83c   : > { %4315 = vmatmul.mubr.f32.gmra.mrb[38].mxu0 %v2344_v4 }
 0x83d   : > { %4319 = vmatprep.mubr.f32.mxu0 %v2345_v40 }
 0x840   : > { %v2245_v13 = vpop.f32.mrb[32].mxu0  ;;  %4320 = vmatmul.mubr.f32.vlgmr.msra.gmra.mrb[40].mxu0 %v2346_v32 }
 0x841   : > { %v2246_v45 = vadd.f32 %v2245_v13, %v2155_v2  ;;  %v2247_v46 = vpop.f32.mrb[33].mxu0  ;;  %v4308_v47 = vpop.f32.mrb[30].mxu1  ;;  %4322 = vmatprep.mubr.f32.mxu0 %v2347_v49 }
 0x842   : > { %v2248_v60 = vadd.f32 %v2247_v46, %v2159_v21  ;;  %v2332_v51 = vpop.f32.mrb[31].mxu1  ;;  %v6284_v8 = vadd.f32 %v4308_v47, %v2163_v44 }
 0x843   : > { %v2349_v53 = vmul.f32 %v6247_v0, %v2246_v45  ;;  %v2350_v38 = vmul.f32 %v6253_v34, %v2246_v45  ;;  %v2351_v5 = vmul.f32 %v6259_v35, %v2246_v45  ;;  %v6278_v41 = vadd.f32 %v2332_v51, %v2163_v44 }
 0x844   : > { %v2251_v54 = vpop.f32.mrb[34].mxu0  ;;  %4323 = vmatmul.mubr.f32.gmra.mrb[42].mxu0 %v2348_v30  ;;  %4325 = vmatprep.subr.mxu0 %v2248_v60  ;;  %v2352_v42 = vmul.f32 %v6265_v39, %v2246_v45 }
 0x845   : > { %v2252_v63 = vadd.f32 %v2251_v54, %v2155_v2  ;;  %v2253_v37 = vpop.f32.mrb[35].mxu0  ;;  %4326 = vmatpush3.xpose.msra.mxu0 %v2248_v60  ;;  %4327 = vmatprep.mubr.f32.mxu0 %v2349_v53 }
 0x846   : > { %v2254_v3 = vadd.f32 %v2253_v37, %v2159_v21  ;;  %4341 = vmatprep.subr.mxu0 %v2323_v59 }
 0x847   : > { %v2353_v50 = vmul.f32 %v6247_v0, %v2252_v63  ;;  %v2354_v36 = vmul.f32 %v6253_v34, %v2252_v63  ;;  %v2355_v7 = vmul.f32 %v6259_v35, %v2252_v63  ;;  %v2356_v9 = vmul.f32 %v6265_v39, %v2252_v63 }
 0x848   : > { %4328 = vmatmul.mubr.f32.vlgmr.msra.gmra.mrb[44].mxu0 %v2350_v38  ;;  %4333 = vmatprep.subr.mxu1 %v2254_v3 }
 0x849   : > { %4330 = vmatprep.mubr.f32.mxu0 %v2351_v5  ;;  %4334 = vmatpush3.xpose.msra.mxu1 %v2254_v3 }
 0x84a   : > { %4335 = vmatprep.mubr.f32.mxu1 %v2353_v50  ;;  %4342 = vmatpush3.msra.mxu0 %v2323_v59 }
 0x84b   : > { %4349 = vmatprep.subr.mxu1 %v2328_v31  ;;  %4357 = vmatprep.subr.mxu0 %v6278_v41 }
 0x84c   : > { %4331 = vmatmul.mubr.f32.gmra.mrb[46].mxu0 %v2352_v42  ;;  %4336 = vmatmul.mubr.f32.vlgmr.msra.gmra.mrb[32].mxu1 %v2354_v36 }
 0x84d   : > { %4338 = vmatprep.mubr.f32.mxu1 %v2355_v7  ;;  %4350 = vmatpush3.msra.mxu1 %v2328_v31 }
 0x84e   : > { %4365 = vmatprep.subr.mxu1 %v6284_v8 }
 0x850   : > { %4339 = vmatmul.mubr.f32.gmra.mrb[34].mxu1 %v2356_v9 }
 0x90b   : > { %v4313_v55 = vpop.f32.mrb[36].mxu0 }
 0x90c   : > { %v6288_v11 = vmul.f32 0.17677669, %v4313_v55  ;;  %v2423_v20 = vpop.f32.mrb[37].mxu0 }
 0x90d   : > { %v6290_v48 = vmul.f32 0.17677669, %v2423_v20 }
 0x90e   : > { %v2717_v17 = vsel %vm2713_vm1, %v6288_v11, -inf }
 0x90f   : > { %2718 = vmax.xlane.f32.xlu1 %v2717_v17  ;;  %v4316_v18 = vpop.f32.mrb[38].mxu0  ;;  %v2714_v10 = vsel %vm2713_vm1, %v6290_v48, -inf }
 0x910   : > { %v6296_v27 = vmul.f32 0.17677669, %v4316_v18  ;;  %2715 = vmax.xlane.f32.xlu0 %v2714_v10  ;;  %v2433_v29 = vpop.f32.mrb[39].mxu0 }
 0x911   : > { %v6298_v2 = vmul.f32 0.17677669, %v2433_v29 }
 0x912   : > { %v2723_v21 = vsel %vm2713_vm1, %v6296_v27, -inf }
 0x913   : > { %2724 = vmax.xlane.f32.xlu1 %v2723_v21  ;;  %v4321_v22 = vpop.f32.mrb[40].mxu0  ;;  %v2720_v12 = vsel %vm2713_vm1, %v6298_v2, -inf }
 0x914   : > { %v6304_v25 = vmul.f32 0.17677669, %v4321_v22  ;;  %2721 = vmax.xlane.f32.xlu0 %v2720_v12  ;;  %v2508_v16 = vpop.f32.mrb[41].mxu0 }
 0x915   : > { %v6306_v52 = vmul.f32 0.17677669, %v2508_v16 }
 0x916   : > { %v2729_v14 = vsel %vm2713_vm1, %v6304_v25, -inf }
 0x917   : > { %2730 = vmax.xlane.f32.xlu1 %v2729_v14  ;;  %v4324_v28 = vpop.f32.mrb[42].mxu0  ;;  %v2726_v56 = vsel %vm2713_vm1, %v6306_v52, -inf }
 0x918   : > { %v6312_v33 = vmul.f32 0.17677669, %v4324_v28  ;;  %2727 = vmax.xlane.f32.xlu0 %v2726_v56  ;;  %v2518_v15 = vpop.f32.mrb[43].mxu0 }
 0x919   : > { %v6314_v6 = vmul.f32 0.17677669, %v2518_v15 }
 0x91a   : > { %v2735_v58 = vsel %vm2713_vm1, %v6312_v33, -inf }
 0x91b   : > { %2736 = vmax.xlane.f32.xlu1 %v2735_v58  ;;  %v4329_v62 = vpop.f32.mrb[44].mxu0  ;;  %v2732_v4 = vsel %vm2713_vm1, %v6314_v6, -inf }
 0x91c   : > { %v6320_v40 = vmul.f32 0.17677669, %v4329_v62  ;;  %2733 = vmax.xlane.f32.xlu0 %v2732_v4  ;;  %v2593_v32 = vpop.f32.mrb[45].mxu0 }
 0x91d   : > { %v6322_v49 = vmul.f32 0.17677669, %v2593_v32 }
 0x91e   : > { %v2741_v44 = vsel %vm2713_vm1, %v6320_v40, -inf }
 0x91f   : > { %v4337_v13 = vpop.f32.mrb[32].mxu1  ;;  %2742 = vmax.xlane.f32.xlu1 %v2741_v44  ;;  %v4332_v45 = vpop.f32.mrb[46].mxu0  ;;  %v2738_v46 = vsel %vm2713_vm1, %v6322_v49, -inf }
 0x920   : > { %v6328_v47 = vmul.f32 0.17677669, %v4337_v13  ;;  %v2678_v60 = vpop.f32.mrb[33].mxu1  ;;  %2739 = vmax.xlane.f32.xlu0 %v2738_v46  ;;  %v2603_v51 = vpop.f32.mrb[47].mxu0  ;;  %v6332_v53 = vmul.f32 0.17677669, %v4332_v45 }
 0x921   : > { %v6330_v30 = vmul.f32 0.17677669, %v2678_v60  ;;  %v6336_v54 = vmul.f32 0.17677669, %v2603_v51 }
 0x922   : > { %v2753_v59 = vsel %vm2713_vm1, %v6328_v47, -inf  ;;  %v2747_v5 = vsel %vm2713_vm1, %v6332_v53, -inf }
 0x923   : > { %v4340_v63 = vpop.f32.mrb[34].mxu1  ;;  %2754 = vmax.xlane.f32.xlu1 %v2753_v59  ;;  %v2750_v37 = vsel %vm2713_vm1, %v6330_v30, -inf  ;;  %v2744_v31 = vsel %vm2713_vm1, %v6336_v54, -inf }
 0x924   : > { %v2688_v38 = vpop.f32.mrb[35].mxu1  ;;  %2751 = vmax.xlane.f32.xlu0 %v2750_v37  ;;  %v6340_v3 = vmul.f32 0.17677669, %v4340_v63 }
 0x925   : > { %v6344_v50 = vmul.f32 0.17677669, %v2688_v38 }
 0x926   : > { %v2759_v36 = vsel %vm2713_vm1, %v6340_v3, -inf }
 0x927   : > { %2748 = vmax.xlane.f32.xlu1 %v2747_v5  ;;  %v2756_v42 = vsel %vm2713_vm1, %v6344_v50, -inf }
 0x928   : > { %2745 = vmax.xlane.f32.xlu0 %v2744_v31 }
 0x92b   : > { %2760 = vmax.xlane.f32.xlu1 %v2759_v36 }
 0x92c   : > { %2757 = vmax.xlane.f32.xlu0 %v2756_v42 }
 0x99c   : > { %v2719_v7 = vpop.xlane.xlu1 %2718 }
 0x99d   : > { %v2763_v9 = vsub.f32 %v6288_v11, %v2719_v7  ;;  %v2716_v55 = vpop.xlane.xlu0 %2715 }
 0x99e   : > { %v2762_v20 = vsub.f32 %v6290_v48, %v2716_v55 }
 0x99f   : > { %v2780_v17 = vmul.f32 1.442695, %v2763_v9 }
 0x9a0   : > { %v2778_v18 = vmul.f32 1.442695, %v2762_v20  ;;  %v2725_v10 = vpop.xlane.xlu1 %2724 }
 0x9a1   : > { %4914 = vpow2.f32 %v2780_v17  ;;  %v2765_v29 = vsub.f32 %v6296_v27, %v2725_v10  ;;  %v2722_v21 = vpop.xlane.xlu0 %2721 }
 0x9a2   : > { %4916 = vpow2.f32 %v2778_v18  ;;  %v2764_v22 = vsub.f32 %v6298_v2, %v2722_v21 }
 0x9a3   : > { %v2784_v12 = vmul.f32 1.442695, %v2765_v29 }
 0x9a4   : > { %v2782_v16 = vmul.f32 1.442695, %v2764_v22  ;;  %v2731_v14 = vpop.xlane.xlu1 %2730 }
 0x9a5   : > { %4918 = vpow2.f32 %v2784_v12  ;;  %v2767_v28 = vsub.f32 %v6304_v25, %v2731_v14  ;;  %v2728_v11 = vpop.xlane.xlu0 %2727 }
 0x9a6   : > { %4920 = vpow2.f32 %v2782_v16  ;;  %v2766_v48 = vsub.f32 %v6306_v52, %v2728_v11 }
 0x9a7   : > { %v2788_v56 = vmul.f32 1.442695, %v2767_v28 }
 0x9a8   : > { %v2786_v15 = vmul.f32 1.442695, %v2766_v48  ;;  %v2737_v58 = vpop.xlane.xlu1 %2736 }
 0x9a9   : > { %4922 = vpow2.f32 %v2788_v56  ;;  %v2769_v27 = vsub.f32 %v6312_v33, %v2737_v58  ;;  %v2734_v62 = vpop.xlane.xlu0 %2733 }
 0x9aa   : > { %4924 = vpow2.f32 %v2786_v15  ;;  %v2768_v2 = vsub.f32 %v6314_v6, %v2734_v62 }
 0x9ab   : > { %v6360_v4 = vpop.eup %4914  ;;  %v2792_v32 = vmul.f32 1.442695, %v2769_v27 }
 0x9ac   : > { %v6362_v44 = vpop.eup %4916  ;;  %v2790_v25 = vmul.f32 1.442695, %v2768_v2  ;;  %v2743_v13 = vpop.xlane.xlu1 %2742  ;;  %v2813_v52 = vsel %vm2713_vm1, %v6360_v4, 0.0 }
 0x9ad   : > { %4926 = vpow2.f32 %v2792_v32  ;;  %v2771_v45 = vsub.f32 %v6320_v40, %v2743_v13  ;;  %v2740_v46 = vpop.xlane.xlu0 %2739  ;;  %2814 = vadd.xlane.f32.xlu1 %v2813_v52  ;;  %v2810_v33 = vsel %vm2713_vm1, %v6362_v44, 0.0 }
 0x9ae   : > { %4928 = vpow2.f32 %v2790_v25  ;;  %v2770_v6 = vsub.f32 %v6322_v49, %v2740_v46  ;;  %2811 = vadd.xlane.f32.xlu0 %v2810_v33 }
 0x9af   : > { %v6370_v60 = vpop.eup %4918  ;;  %v2796_v51 = vmul.f32 1.442695, %v2771_v45 }
 0x9b0   : > { %v6372_v59 = vpop.eup %4920  ;;  %v2794_v63 = vmul.f32 1.442695, %v2770_v6  ;;  %v2755_v37 = vpop.xlane.xlu1 %2754  ;;  %v2819_v38 = vsel %vm2713_vm1, %v6370_v60, 0.0 }
 0x9b1   : > { %4930 = vpow2.f32 %v2796_v51  ;;  %v2775_v40 = vsub.f32 %v6328_v47, %v2755_v37  ;;  %v2752_v5 = vpop.xlane.xlu0 %2751  ;;  %2820 = vadd.xlane.f32.xlu1 %v2819_v38  ;;  %v2816_v31 = vsel %vm2713_vm1, %v6372_v59, 0.0 }
 0x9b2   : > { %4932 = vpow2.f32 %v2794_v63  ;;  %v2774_v49 = vsub.f32 %v6330_v30, %v2752_v5  ;;  %2817 = vadd.xlane.f32.xlu0 %v2816_v31 }
 0x9b3   : > { %v6380_v36 = vpop.eup %4922  ;;  %v2804_v42 = vmul.f32 1.442695, %v2775_v40 }
 0x9b4   : > { %v6382_v7 = vpop.eup %4924  ;;  %v2802_v9 = vmul.f32 1.442695, %v2774_v49  ;;  %v2749_v55 = vpop.xlane.xlu1 %2748  ;;  %v2825_v20 = vsel %vm2713_vm1, %v6380_v36, 0.0  ;;  %v3306_v49 = vld [vmem:[#allocation14] sm:$0xff] }
 0x9b5   : > { %4934 = vpow2.f32 %v2804_v42  ;;  %v2773_v47 = vsub.f32 %v6332_v53, %v2749_v55  ;;  %2826 = vadd.xlane.f32.xlu1 %v2825_v20  ;;  %v2746_v17 = vpop.xlane.xlu0 %2745  ;;  %v2822_v18 = vsel %vm2713_vm1, %v6382_v7, 0.0  ;;  %v3307_v42 = vld [vmem:[#allocation14 + $0x8] sm:$0xff] }
 0x9b6   : > { %4936 = vpow2.f32 %v2802_v9  ;;  %v2772_v30 = vsub.f32 %v6336_v54, %v2746_v17  ;;  %2823 = vadd.xlane.f32.xlu0 %v2822_v18  ;;  %v4641_v18 = vpack.c.bf16 %v3307_v42, %v3306_v49 }
 0x9b7   : > { %v6390_v10 = vpop.eup %4926  ;;  %v2800_v29 = vmul.f32 1.442695, %v2773_v47 }
 0x9b8   : > { %v6392_v21 = vpop.eup %4928  ;;  %v2798_v22 = vmul.f32 1.442695, %v2772_v30  ;;  %v2761_v12 = vpop.xlane.xlu1 %2760  ;;  %v2831_v16 = vsel %vm2713_vm1, %v6390_v10, 0.0 }
 0x9b9   : > { %4938 = vpow2.f32 %v2800_v29  ;;  %v2777_v53 = vsub.f32 %v6340_v3, %v2761_v12  ;;  %2832 = vadd.xlane.f32.xlu1 %v2831_v16  ;;  %v2758_v14 = vpop.xlane.xlu0 %2757  ;;  %v2828_v28 = vsel %vm2713_vm1, %v6392_v21, 0.0 }
 0x9ba   : > { %4940 = vpow2.f32 %v2798_v22  ;;  %v2776_v54 = vsub.f32 %v6344_v50, %v2758_v14  ;;  %2829 = vadd.xlane.f32.xlu0 %v2828_v28 }
 0x9bb   : > { %v6400_v11 = vpop.eup %4930  ;;  %v2808_v48 = vmul.f32 1.442695, %v2777_v53 }
 0x9bc   : > { %v6402_v56 = vpop.eup %4932  ;;  %v2806_v15 = vmul.f32 1.442695, %v2776_v54  ;;  %v2837_v58 = vsel %vm2713_vm1, %v6400_v11, 0.0 }
 0x9bd   : > { %4942 = vpow2.f32 %v2808_v48  ;;  %2838 = vadd.xlane.f32.xlu1 %v2837_v58  ;;  %v2834_v3 = vsel %vm2713_vm1, %v6402_v56, 0.0 }
 0x9be   : > { %4944 = vpow2.f32 %v2806_v15  ;;  %2835 = vadd.xlane.f32.xlu0 %v2834_v3 }
 0x9bf   : > { %v6408_v27 = vpop.eup %4934 }
 0x9c0   : > { %v6410_v50 = vpop.eup %4936  ;;  %v2849_v62 = vsel %vm2713_vm1, %v6408_v27, 0.0 }
 0x9c1   : > { %2850 = vadd.xlane.f32.xlu1 %v2849_v62  ;;  %v2846_v2 = vsel %vm2713_vm1, %v6410_v50, 0.0  ;;  %v3309_v62 = vld [vmem:[#allocation14 + $0x18] sm:$0xff] }
 0x9c2   : > { %2847 = vadd.xlane.f32.xlu0 %v2846_v2 }
 0x9c3   : > { %v6416_v32 = vpop.eup %4938 }
 0x9c4   : > { %v6418_v25 = vpop.eup %4940  ;;  %v2843_v13 = vsel %vm2713_vm1, %v6416_v32, 0.0 }
 0x9c5   : > { %2844 = vadd.xlane.f32.xlu1 %v2843_v13  ;;  %v2840_v52 = vsel %vm2713_vm1, %v6418_v25, 0.0 }
 0x9c6   : > { %2841 = vadd.xlane.f32.xlu0 %v2840_v52 }
 0x9c7   : > { %v6424_v45 = vpop.eup %4942 }
 0x9c8   : > { %v6426_v46 = vpop.eup %4944  ;;  %v2855_v33 = vsel %vm2713_vm1, %v6424_v45, 0.0 }
 0x9c9   : > { %2856 = vadd.xlane.f32.xlu1 %v2855_v33  ;;  %v2852_v6 = vsel %vm2713_vm1, %v6426_v46, 0.0 }
 0x9ca   : > { %2853 = vadd.xlane.f32.xlu0 %v2852_v6 }
 0xa3a   : > { %v2815_v51 = vpop.xlane.xlu1 %2814 }
 0xa3b   : > { %4946 = vrcp.f32 %v2815_v51  ;;  %v2812_v63 = vpop.xlane.xlu0 %2811  ;;  %v3311_v51 = vld [vmem:[#allocation14 + $0x28] sm:$0xff] }
 0xa3c   : > { %4948 = vrcp.f32 %v2812_v63 }
 0xa3e   : > { %v2821_v37 = vpop.xlane.xlu1 %2820 }
 0xa3f   : > { %4950 = vrcp.f32 %v2821_v37  ;;  %v2818_v38 = vpop.xlane.xlu0 %2817 }
 0xa40   : > { %4952 = vrcp.f32 %v2818_v38 }
 0xa42   : > { %v2827_v40 = vpop.xlane.xlu1 %2826 }
 0xa43   : > { %4954 = vrcp.f32 %v2827_v40  ;;  %v2824_v5 = vpop.xlane.xlu0 %2823 }
 0xa44   : > { %4956 = vrcp.f32 %v2824_v5 }
 0xa45   : > { %v4947_v31 = vpop.eup %4946 }
 0xa46   : > { %v4949_v9 = vpop.eup %4948  ;;  %v2833_v55 = vpop.xlane.xlu1 %2832  ;;  %v2875_v17 = vmul.f32 %v4947_v31, %v6360_v4 }
 0xa47   : > { %4958 = vrcp.f32 %v2833_v55  ;;  %v2830_v20 = vpop.xlane.xlu0 %2829  ;;  %v2874_v47 = vmul.f32 %v4949_v9, %v6362_v44  ;;  %v3313_v9 = vld [vmem:[#allocation14 + $0x38] sm:$0xff] }
 0xa48   : > { %4960 = vrcp.f32 %v2830_v20  ;;  %v3315_v20 = vld [vmem:[#allocation14 + $0x48] sm:$0xff] }
 0xa49   : > { %v4951_v30 = vpop.eup %4950  ;;  %4343 = vmatprep.mubr.msk.f32.mxu0 %vm2713_vm1, %v2874_v47 }
 0xa4a   : > { %v4953_v29 = vpop.eup %4952  ;;  %v2839_v22 = vpop.xlane.xlu1 %2838  ;;  %4344 = vmatmul.mubr.msk.f32.vlgmr.msra.gmra.mrb[48].mxu0 %vm2713_vm1, %v2875_v17  ;;  %v2877_v44 = vmul.f32 %v4951_v30, %v6370_v60  ;;  %v3316_v17 = vld [vmem:[#allocation14 + $0x50] sm:$0xff]  ;;  %v3319_v30 = vld [vmem:[#allocation14 + $0x68] sm:$0xff] }
 0xa4b   : > { %4962 = vrcp.f32 %v2839_v22  ;;  %4358 = vmatpush3.msra.mxu0 %v6278_v41  ;;  %v2836_v12 = vpop.xlane.xlu0 %2835  ;;  %v2876_v16 = vmul.f32 %v4953_v29, %v6372_v59  ;;  %v3320_v22 = vld [vmem:[#allocation14 + $0x70] sm:$0xff] }
 0xa4c   : > { %4964 = vrcp.f32 %v2836_v12  ;;  %4642 = vmatprep.subr.bf16.mxu0 %v4641_v18  ;;  %v3321_v12 = vld [vmem:[#allocation14 + $0x78] sm:$0xff] }
 0xa4d   : > { %v4955_v4 = vpop.eup %4954  ;;  %4346 = vmatprep.mubr.msk.f32.mxu0 %vm2713_vm1, %v2876_v16  ;;  %v4669_v16 = vpack.c.bf16 %v3321_v12, %v3320_v22 }
 0xa4e   : > { %v4957_v53 = vpop.eup %4956  ;;  %v2851_v14 = vpop.xlane.xlu1 %2850  ;;  %4347 = vmatmul.mubr.msk.f32.gmra.mrb[50].mxu0 %vm2713_vm1, %v2877_v44  ;;  %v2879_v41 = vmul.f32 %v4955_v4, %v6380_v36  ;;  %v3308_v36 = vld [vmem:[#allocation14 + $0x10] sm:$0xff] }
 0xa4f   : > { %4966 = vrcp.f32 %v2851_v14  ;;  %v2848_v28 = vpop.xlane.xlu0 %2847  ;;  %v2878_v54 = vmul.f32 %v4957_v53, %v6382_v7 }
 0xa50   : > { %4968 = vrcp.f32 %v2848_v28 }
 0xa51   : > { %v4959_v48 = vpop.eup %4958  ;;  %4351 = vmatprep.mubr.msk.f32.mxu1 %vm2713_vm1, %v2878_v54 }
 0xa52   : > { %v4961_v59 = vpop.eup %4960  ;;  %v2845_v60 = vpop.xlane.xlu1 %2844  ;;  %4352 = vmatmul.mubr.msk.f32.vlgmr.msra.gmra.mrb[36].mxu1 %vm2713_vm1, %v2879_v41  ;;  %v2881_v3 = vmul.f32 %v4959_v48, %v6390_v10  ;;  %v3310_v10 = vld [vmem:[#allocation14 + $0x20] sm:$0xff] }
 0xa53   : > { %4970 = vrcp.f32 %v2845_v60  ;;  %4366 = vmatpush3.msra.mxu1 %v6284_v8  ;;  %v2842_v15 = vpop.xlane.xlu0 %2841  ;;  %v2880_v58 = vmul.f32 %v4961_v59, %v6392_v21  ;;  %v4645_v21 = vpack.c.bf16 %v3309_v62, %v3308_v36  ;;  %v4649_v40 = vpack.c.bf16 %v3311_v51, %v3310_v10 }
 0xa54   : > { %4972 = vrcp.f32 %v2842_v15 }
 0xa55   : > { %v4963_v7 = vpop.eup %4962  ;;  %4354 = vmatprep.mubr.msk.f32.mxu1 %vm2713_vm1, %v2880_v58 }
 0xa56   : > { %v4965_v2 = vpop.eup %4964  ;;  %v2857_v13 = vpop.xlane.xlu1 %2856  ;;  %4355 = vmatmul.mubr.msk.f32.gmra.mrb[38].mxu1 %vm2713_vm1, %v2881_v3  ;;  %v2883_v8 = vmul.f32 %v4963_v7, %v6400_v11 }
 0xa57   : > { %4974 = vrcp.f32 %v2857_v13  ;;  %v2854_v52 = vpop.xlane.xlu0 %2853  ;;  %v2882_v33 = vmul.f32 %v4965_v2, %v6402_v56 }
 0xa58   : > { %4976 = vrcp.f32 %v2854_v52 }
 0xa59   : > { %v4967_v6 = vpop.eup %4966  ;;  %4359 = vmatprep.mubr.msk.f32.mxu0 %vm2713_vm1, %v2882_v33 }
 0xa5a   : > { %v4969_v63 = vpop.eup %4968  ;;  %4360 = vmatmul.mubr.msk.f32.vlgmr.msra.gmra.mrb[52].mxu0 %vm2713_vm1, %v2883_v8  ;;  %v2887_v38 = vmul.f32 %v4967_v6, %v6408_v27 }
 0xa5b   : > { %v2886_v37 = vmul.f32 %v4969_v63, %v6410_v50  ;;  %4644 = vmatpush3.bf16.msra.mxu0 %v4641_v18  ;;  %v3317_v18 = vld [vmem:[#allocation14 + $0x58] sm:$0xff] }
 0xa5c   : > { %4646 = vmatprep.subr.bf16.mxu0 %v4645_v21 }
 0xa5d   : > { %v4971_v56 = vpop.eup %4970  ;;  %4367 = vmatprep.mubr.msk.f32.mxu1 %vm2713_vm1, %v2886_v37 }
 0xa5e   : > { %v4973_v11 = vpop.eup %4972  ;;  %4368 = vmatmul.mubr.msk.f32.vlgmr.msra.gmra.mrb[40].mxu1 %vm2713_vm1, %v2887_v38  ;;  %v2885_v31 = vmul.f32 %v4971_v56, %v6416_v32  ;;  %v3314_v32 = vld [vmem:[#allocation14 + $0x40] sm:$0xff] }
 0xa5f   : > { %v2884_v5 = vmul.f32 %v4973_v11, %v6418_v25  ;;  %4648 = vmatpush3.bf16.msra.mxu0 %v4645_v21  ;;  %v3312_v25 = vld [vmem:[#allocation14 + $0x30] sm:$0xff]  ;;  %v4657_v47 = vpack.c.bf16 %v3315_v20, %v3314_v32 }
 0xa60   : > { %4650 = vmatprep.subr.bf16.mxu0 %v4649_v40  ;;  %v4653_v55 = vpack.c.bf16 %v3313_v9, %v3312_v25 }
 0xa61   : > { %v4975_v49 = vpop.eup %4974  ;;  %4362 = vmatprep.mubr.msk.f32.mxu0 %vm2713_vm1, %v2884_v5 }
 0xa62   : > { %v4977_v50 = vpop.eup %4976  ;;  %4363 = vmatmul.mubr.msk.f32.gmra.mrb[54].mxu0 %vm2713_vm1, %v2885_v31  ;;  %v2889_v42 = vmul.f32 %v4975_v49, %v6424_v45  ;;  %v3318_v45 = vld [vmem:[#allocation14 + $0x60] sm:$0xff] }
 0xa63   : > { %v2888_v27 = vmul.f32 %v4977_v50, %v6426_v46  ;;  %4652 = vmatpush3.bf16.msra.mxu0 %v4649_v40  ;;  %v4661_v46 = vpack.c.bf16 %v3317_v18, %v3316_v17  ;;  %v4665_v29 = vpack.c.bf16 %v3319_v30, %v3318_v45 }
 0xa64   : > { %4654 = vmatprep.subr.bf16.mxu0 %v4653_v55 }
 0xa65   : > { %4370 = vmatprep.mubr.msk.f32.mxu1 %vm2713_vm1, %v2888_v27 }
 0xa66   : > { %4371 = vmatmul.mubr.msk.f32.gmra.mrb[42].mxu1 %vm2713_vm1, %v2889_v42 }
 0xa67   : > { %4656 = vmatpush3.bf16.msra.mxu0 %v4653_v55 }
 0xa68   : > { %4658 = vmatprep.subr.bf16.mxu0 %v4657_v47 }
 0xa6b   : > { %4660 = vmatpush3.bf16.msra.mxu0 %v4657_v47 }
 0xa6c   : > { %4662 = vmatprep.subr.bf16.mxu0 %v4661_v46 }
 0xa6f   : > { %4664 = vmatpush3.bf16.msra.mxu0 %v4661_v46 }
 0xa70   : > { %4666 = vmatprep.subr.bf16.mxu0 %v4665_v29 }
 0xa73   : > { %4668 = vmatpush3.bf16.msra.mxu0 %v4665_v29 }
 0xa74   : > { %4670 = vmatprep.subr.bf16.mxu0 %v4669_v16 }
 0xa77   : > { %4672 = vmatpush3.bf16.msra.mxu0 %v4669_v16 }
 0xb1d   : > { %v4345_v44 = vpop.f32.mrb[48].mxu0 }
 0xb1e   : > { %v3279_v4 = vmul.f32 %v6253_v34, %v4345_v44  ;;  %v2968_v53 = vpop.f32.mrb[49].mxu0 }
 0xb1f   : > { %v3278_v14 = vmul.f32 %v6247_v0, %v2968_v53  ;;  %v3476_v53 = vld [vmem:[#allocation16 + $0x8] sm:$0xff] }
 0xb21   : > { %v3294_v28 = vadd.f32 %v3279_v4, %v3278_v14  ;;  %v4348_v54 = vpop.f32.mrb[50].mxu0  ;;  %v3477_v14 = vld [vmem:[#allocation16 + $0x10] sm:$0xff] }
 0xb22   : > { %v2978_v41 = vpop.f32.mrb[51].mxu0  ;;  %v3281_v59 = vmul.f32 %v6265_v39, %v4348_v54  ;;  %v3478_v54 = vld [vmem:[#allocation16 + $0x18] sm:$0xff] }
 0xb23   : > { %v3280_v48 = vmul.f32 %v6259_v35, %v2978_v41  ;;  %v3479_v41 = vld [vmem:[#allocation16 + $0x20] sm:$0xff] }
 0xb25   : > { %v3295_v60 = vadd.f32 %v3294_v28, %v3280_v48  ;;  %v4353_v15 = vpop.f32.mrb[36].mxu1 }
 0xb26   : > { %v3283_v58 = vmul.f32 %v6253_v34, %v4353_v15  ;;  %v3065_v3 = vpop.f32.mrb[37].mxu1 }
 0xb27   : > { %v3282_v7 = vmul.f32 %v6247_v0, %v3065_v3  ;;  %v3296_v36 = vadd.f32 %v3295_v60, %v3281_v59 }
 0xb29   : > { %v3297_v62 = vadd.f32 %v3283_v58, %v3282_v7  ;;  %v4356_v2 = vpop.f32.mrb[38].mxu1  ;;  %4405 = vmatprep.mubr.f32.mxu0 %v3296_v36 }
 0xb2a   : > { %v3075_v13 = vpop.f32.mrb[39].mxu1  ;;  %v3285_v33 = vmul.f32 %v6265_v39, %v4356_v2 }
 0xb2b   : > { %v3284_v52 = vmul.f32 %v6259_v35, %v3075_v13 }
 0xb2d   : > { %v3298_v8 = vadd.f32 %v3297_v62, %v3284_v52  ;;  %v4361_v21 = vpop.f32.mrb[52].mxu0 }
 0xb2e   : > { %v3287_v6 = vmul.f32 %v6253_v34, %v4361_v21  ;;  %v3162_v10 = vpop.f32.mrb[53].mxu0 }
 0xb2f   : > { %v3299_v51 = vadd.f32 %v3298_v8, %v3285_v33  ;;  %v3286_v63 = vmul.f32 %v6247_v0, %v3162_v10  ;;  %v3482_v10 = vld [vmem:[#allocation16 + $0x38] sm:$0xff] }
 0xb31   : > { %v3300_v37 = vadd.f32 %v3287_v6, %v3286_v63  ;;  %v4369_v38 = vpop.f32.mrb[40].mxu1  ;;  %4406 = vmatmul.mubr.f32.vlgmr.msra.gmra.mrb[56].mxu0 %v3299_v51  ;;  %v3481_v6 = vld [vmem:[#allocation16 + $0x30] sm:$0xff]  ;;  %v3483_v63 = vld [vmem:[#allocation16 + $0x40] sm:$0xff] }
 0xb32   : > { %v3291_v40 = vmul.f32 %v6253_v34, %v4369_v38  ;;  %v3259_v56 = vpop.f32.mrb[41].mxu1  ;;  %v4685_v51 = vpack.c.bf16 %v3482_v10, %v3481_v6 }
 0xb33   : > { %v3290_v11 = vmul.f32 %v6247_v0, %v3259_v56  ;;  %v3324_v0 = vsub.s32 4, %v5899_v23  ;;  %v3486_v56 = vld [vmem:[#allocation16 + $0x58] sm:$0xff] }
 0xb35   : > { %v3303_v5 = vadd.f32 %v3291_v40, %v3290_v11  ;;  %v4364_v31 = vpop.f32.mrb[54].mxu0  ;;  %v3325_v17 = vrot.slane %v6210_v61, %v3324_v0  ;;  %v3475_v61 = vld [vmem:[#allocation16] sm:$0xff]  ;;  %v3485_v40 = vld [vmem:[#allocation16 + $0x50] sm:$0xff]  ;;  %v3469_v0 = vsub.s32 6, %v5899_v23 }
 0xb36   : > { %v3172_v49 = vpop.f32.mrb[55].mxu0  ;;  %v3289_v27 = vmul.f32 %v6265_v39, %v4364_v31  ;;  %v4673_v28 = vpack.c.bf16 %v3476_v53, %v3475_v61  ;;  %v4693_v11 = vpack.c.bf16 %v3486_v56, %v3485_v40  ;;  %v3488_v31 = vld [vmem:[#allocation16 + $0x68] sm:$0xff] }
 0xb37   : > { %v3288_v50 = vmul.f32 %v6259_v35, %v3172_v49 }
 0xb38   : > { %4674 = vmatprep.subr.bf16.mxu1 %v4673_v28 }
 0xb39   : > { %v3301_v42 = vadd.f32 %v3300_v37, %v3288_v50  ;;  %v4372_v25 = vpop.f32.mrb[42].mxu1  ;;  %4676 = vmatpush3.bf16.msra.mxu1 %v4673_v28  ;;  %v3484_v37 = vld [vmem:[#allocation16 + $0x48] sm:$0xff]  ;;  %v3489_v50 = vld [vmem:[#allocation16 + $0x70] sm:$0xff] }
 0xb3a   : > { %v3269_v9 = vpop.f32.mrb[43].mxu1  ;;  %v3293_v20 = vmul.f32 %v6265_v39, %v4372_v25  ;;  %v4689_v38 = vpack.c.bf16 %v3484_v37, %v3483_v63 }
 0xb3b   : > { %v3292_v55 = vmul.f32 %v6259_v35, %v3269_v9  ;;  %v3302_v32 = vadd.f32 %v3301_v42, %v3289_v27  ;;  %v3490_v27 = vld [vmem:[#allocation16 + $0x78] sm:$0xff] }
 0xb3c   : > { %v4701_v42 = vpack.c.bf16 %v3490_v27, %v3489_v50 }
 0xb3d   : > { %v3304_v47 = vadd.f32 %v3303_v5, %v3292_v55  ;;  %4408 = vmatprep.mubr.f32.mxu0 %v3302_v32  ;;  %v3487_v5 = vld [vmem:[#allocation16 + $0x60] sm:$0xff] }
 0xb3e   : > { %v4697_v49 = vpack.c.bf16 %v3488_v31, %v3487_v5 }
 0xb3f   : > { %v3305_v34 = vadd.f32 %v3304_v47, %v3293_v20 }
 0xb41   : > { %4409 = vmatmul.mubr.f32.gmra.mrb[58].mxu0 %v3305_v34  ;;  %v3461_v34 = vsub.s32 5, %v5899_v23 }
 0xc04   : > { %v4407_v18 = vpop.f32.mrb[56].mxu0 }
 0xc05   : > { %v3398_v46 = vadd.f32 %v4407_v18, %v3325_v17  ;;  %v3392_v45 = vpop.f32.mrb[57].mxu0 }
 0xc06   : > { %v3393_v30 = vadd.f32 %v3392_v45, %v3325_v17 }
 0xc07   : > { %v3412_v29 = vadd.f32 %v3398_v46, %v6220_v43  ;;  %v4677_v43 = vpack.c.bf16 %v3478_v54, %v3477_v14 }
 0xc08   : > { %v3411_v22 = vadd.f32 %v3393_v30, %v6218_v1  ;;  %v3480_v1 = vld [vmem:[#allocation16 + $0x28] sm:$0xff] }
 0xc09   : > { %3417 = vadd.xlane.f32.xlu1 %v3412_v29  ;;  %4678 = vmatprep.subr.bf16.mxu1 %v4677_v43  ;;  %v4681_v48 = vpack.c.bf16 %v3480_v1, %v3479_v41 }
 0xc0a   : > { %3415 = vadd.xlane.f32.xlu0 %v3411_v22  ;;  %4680 = vmatpush3.bf16.msra.mxu1 %v4677_v43 }
 0xc0b   : > { %4682 = vmatprep.subr.bf16.mxu1 %v4681_v48 }
 0xc0e   : > { %4684 = vmatpush3.bf16.msra.mxu1 %v4681_v48 }
 0xc0f   : > { %4686 = vmatprep.subr.bf16.mxu1 %v4685_v51 }
 0xc12   : > { %4688 = vmatpush3.bf16.msra.mxu1 %v4685_v51 }
 0xc13   : > { %4690 = vmatprep.subr.bf16.mxu1 %v4689_v38 }
 0xc14   : > { %v4410_v35 = vpop.f32.mrb[58].mxu0 }
 0xc15   : > { %v3408_v39 = vadd.f32 %v4410_v35, %v3325_v17  ;;  %v3402_v12 = vpop.f32.mrb[59].mxu0 }
 0xc16   : > { %v3403_v16 = vadd.f32 %v3402_v12, %v3325_v17  ;;  %4692 = vmatpush3.bf16.msra.mxu1 %v4689_v38  ;;  %v5001_v17 = vld [vmem:[#allocation17] sm:$0xff] }
 0xc17   : > { %v3414_v44 = vadd.f32 %v3408_v39, %v6232_v19  ;;  %4694 = vmatprep.subr.bf16.mxu1 %v4693_v11  ;;  %v3462_v18 = vrot.slane %v5001_v17, %v3461_v34  ;;  %v3470_v12 = vrot.slane %v5001_v17, %v3469_v0 }
 0xc18   : > { %v3413_v4 = vadd.f32 %v3403_v16, %v6230_v57 }
 0xc19   : > { %3421 = vadd.xlane.f32.xlu1 %v3414_v44 }
 0xc1a   : > { %3419 = vadd.xlane.f32.xlu0 %v3413_v4  ;;  %4696 = vmatpush3.bf16.msra.mxu1 %v4693_v11 }
 0xc1b   : > { %4698 = vmatprep.subr.bf16.mxu1 %v4697_v49 }
 0xc1e   : > { %4700 = vmatpush3.bf16.msra.mxu1 %v4697_v49 }
 0xc1f   : > { %4702 = vmatprep.subr.bf16.mxu1 %v4701_v42 }
 0xc22   : > { %4704 = vmatpush3.bf16.msra.mxu1 %v4701_v42 }
 0xc96   : > { %v3418_v19 = vpop.xlane.xlu1 %3417 }
 0xc97   : > { %v3424_v59 = vmul.f32 0.0078125, %v3418_v19  ;;  %v3416_v57 = vpop.xlane.xlu0 %3415 }
 0xc98   : > { %v3423_v60 = vmul.f32 0.0078125, %v3416_v57 }
 0xc99   : > { %v3428_v15 = vsub.f32 %v3412_v29, %v3424_v59 }
 0xc9a   : > { %v3427_v58 = vsub.f32 %v3411_v22, %v3423_v60  ;;  %v3493_v60 = vsub.s32 7, %v5899_v23 }
 0xc9b   : > { %v3432_v3 = vmul.f32 %v3428_v15, %v3428_v15 }
 0xc9c   : > { %v3431_v7 = vmul.f32 %v3427_v58, %v3427_v58 }
 0xc9d   : > { %3437 = vadd.xlane.f32.xlu1 %v3432_v3 }
 0xc9e   : > { %3435 = vadd.xlane.f32.xlu0 %v3431_v7 }
 0xca6   : > { %v3422_v36 = vpop.xlane.xlu1 %3421 }
 0xca7   : > { %v3426_v62 = vmul.f32 0.0078125, %v3422_v36  ;;  %v3420_v2 = vpop.xlane.xlu0 %3419 }
 0xca8   : > { %v3425_v13 = vmul.f32 0.0078125, %v3420_v2 }
 0xca9   : > { %v6488_v52 = vsub.f32 %v3414_v44, %v3426_v62 }
 0xcaa   : > { %v6490_v33 = vsub.f32 %v3413_v4, %v3425_v13 }
 0xcab   : > { %v3434_v8 = vmul.f32 %v6488_v52, %v6488_v52 }
 0xcac   : > { %v3433_v21 = vmul.f32 %v6490_v33, %v6490_v33 }
 0xcad   : > { %3441 = vadd.xlane.f32.xlu1 %v3434_v8 }
 0xcae   : > { %3439 = vadd.xlane.f32.xlu0 %v3433_v21 }
 0xd2a   : > { %v3438_v25 = vpop.xlane.xlu1 %3437 }
 0xd2b   : > { %v3444_v9 = vmul.f32 0.0078125, %v3438_v25  ;;  %v3436_v55 = vpop.xlane.xlu0 %3435 }
 0xd2c   : > { %v3443_v32 = vmul.f32 0.0078125, %v3436_v55 }
 0xd2d   : > { %v3448_v20 = vadd.f32 1e-05, %v3444_v9 }
 0xd2e   : > { %v3447_v47 = vadd.f32 1e-05, %v3443_v32 }
 0xd2f   : > { %4978 = vrsqrt.f32 %v3448_v20 }
 0xd30   : > { %4980 = vrsqrt.f32 %v3447_v47 }
 0xd39   : > { %v4979_v46 = vpop.eup %4978 }
 0xd3a   : > { %v4981_v45 = vpop.eup %4980  ;;  %v3456_v30 = vmul.f32 %v4979_v46, %v3428_v15  ;;  %v3442_v29 = vpop.xlane.xlu1 %3441  ;;  %v3494_v15 = vrot.slane %v5001_v17, %v3493_v60 }
 0xd3b   : > { %v3446_v22 = vmul.f32 0.0078125, %v3442_v29  ;;  %v3440_v35 = vpop.xlane.xlu0 %3439  ;;  %v3455_v39 = vmul.f32 %v4981_v45, %v3427_v58  ;;  %v648_v45 = vld [vmem:[#allocation17 + $0x8] sm:$0x3] }
 0xd3c   : > { %v3445_v16 = vmul.f32 0.0078125, %v3440_v35  ;;  %v3464_v44 = vmul.f32 %v3462_v18, %v3456_v30  ;;  %v3635_v30 = vrot.slane %v648_v45, %v5902_v24  ;;  %v3643_v35 = vrot.slane %v648_v45, %v5908_v26 }
 0xd3d   : > { %v3450_v4 = vadd.f32 1e-05, %v3446_v22  ;;  %v3463_v61 = vmul.f32 %v3462_v18, %v3455_v39 }
 0xd3e   : > { %v3449_v53 = vadd.f32 1e-05, %v3445_v16  ;;  %v3472_v28 = vadd.f32 %v3470_v12, %v3464_v44 }
 0xd3f   : > { %4982 = vrsqrt.f32 %v3450_v4  ;;  %v3471_v14 = vadd.f32 %v3470_v12, %v3463_v61 }
 0xd40   : > { %4984 = vrsqrt.f32 %v3449_v53 }
 0xd41   : > { %4443 = vmatprep.mubr.f32.mxu1 %v3471_v14 }
 0xd42   : > { %4444 = vmatmul.mubr.f32.vlgmr.msra.gmra.mrb[44].mxu1 %v3472_v28 }
 0xd49   : > { %v4983_v54 = vpop.eup %4982 }
 0xd4a   : > { %v4985_v43 = vpop.eup %4984  ;;  %v3458_v41 = vmul.f32 %v4983_v54, %v6488_v52 }
 0xd4b   : > { %v3457_v1 = vmul.f32 %v4985_v43, %v6490_v33 }
 0xd4c   : > { %v3466_v48 = vmul.f32 %v3462_v18, %v3458_v41 }
 0xd4d   : > { %v3465_v19 = vmul.f32 %v3462_v18, %v3457_v1 }
 0xd4e   : > { %v3474_v57 = vadd.f32 %v3470_v12, %v3466_v48 }
 0xd4f   : > { %v3473_v59 = vadd.f32 %v3470_v12, %v3465_v19 }
 0xd51   : > { %4446 = vmatprep.mubr.f32.mxu1 %v3473_v59 }
 0xd52   : > { %4447 = vmatmul.mubr.f32.gmra.mrb[46].mxu1 %v3474_v57 }
 0xe15   : > { %v4445_v58 = vpop.f32.mrb[44].mxu1 }
 0xe16   : > { %v3567_v3 = vadd.f32 %v4445_v58, %v3494_v15  ;;  %v3561_v7 = vpop.f32.mrb[45].mxu1 }
 0xe17   : > { %v3562_v36 = vadd.f32 %v3561_v7, %v3494_v15 }
 0xe18   : > { %v3581_v62 = vmax.f32 %v3567_v3, 0.0 }
 0xe19   : > { %v3580_v2 = vmax.f32 %v3562_v36, 0.0 }
 0xe1a   : > { %v3585_v13 = vadd.f32 %v3581_v62, %v3472_v28 }
 0xe1b   : > { %v3584_v8 = vadd.f32 %v3580_v2, %v3471_v14 }
 0xe1c   : > { %3590 = vadd.xlane.f32.xlu1 %v3585_v13 }
 0xe1d   : > { %3588 = vadd.xlane.f32.xlu0 %v3584_v8 }
 0xe25   : > { %v4448_v52 = vpop.f32.mrb[46].mxu1 }
 0xe26   : > { %v3577_v33 = vadd.f32 %v4448_v52, %v3494_v15  ;;  %v3571_v21 = vpop.f32.mrb[47].mxu1 }
 0xe27   : > { %v3572_v6 = vadd.f32 %v3571_v21, %v3494_v15 }
 0xe28   : > { %v3583_v10 = vmax.f32 %v3577_v33, 0.0 }
 0xe29   : > { %v3582_v51 = vmax.f32 %v3572_v6, 0.0 }
 0xe2a   : > { %v3587_v63 = vadd.f32 %v3583_v10, %v3474_v57 }
 0xe2b   : > { %v3586_v37 = vadd.f32 %v3582_v51, %v3473_v59 }
 0xe2c   : > { %3594 = vadd.xlane.f32.xlu1 %v3587_v63 }
 0xe2d   : > { %3592 = vadd.xlane.f32.xlu0 %v3586_v37 }
 0xea9   : > { %v3591_v23 = vpop.xlane.xlu1 %3590 }
 0xeaa   : > { %v3597_v38 = vmul.f32 0.0078125, %v3591_v23  ;;  %v3589_v40 = vpop.xlane.xlu0 %3588 }
 0xeab   : > { %v3596_v56 = vmul.f32 0.0078125, %v3589_v40 }
 0xeac   : > { %v3601_v11 = vsub.f32 %v3585_v13, %v3597_v38 }
 0xead   : > { %v3600_v5 = vsub.f32 %v3584_v8, %v3596_v56 }
 0xeae   : > { %v3605_v31 = vmul.f32 %v3601_v11, %v3601_v11 }
 0xeaf   : > { %v3604_v49 = vmul.f32 %v3600_v5, %v3600_v5 }
 0xeb0   : > { %3610 = vadd.xlane.f32.xlu1 %v3605_v31 }
 0xeb1   : > { %3608 = vadd.xlane.f32.xlu0 %v3604_v49 }
 0xeb9   : > { %v3595_v50 = vpop.xlane.xlu1 %3594 }
 0xeba   : > { %v3599_v27 = vmul.f32 0.0078125, %v3595_v50  ;;  %v3593_v42 = vpop.xlane.xlu0 %3592 }
 0xebb   : > { %v3598_v25 = vmul.f32 0.0078125, %v3593_v42 }
 0xebc   : > { %v3603_v9 = vsub.f32 %v3587_v63, %v3599_v27 }
 0xebd   : > { %v3602_v55 = vsub.f32 %v3586_v37, %v3598_v25 }
 0xebe   : > { %v3607_v32 = vmul.f32 %v3603_v9, %v3603_v9 }
 0xebf   : > { %v3606_v20 = vmul.f32 %v3602_v55, %v3602_v55 }
 0xec0   : > { %3614 = vadd.xlane.f32.xlu1 %v3607_v32 }
 0xec1   : > { %3612 = vadd.xlane.f32.xlu0 %v3606_v20 }
 0xf3d   : > { %v3611_v47 = vpop.xlane.xlu1 %3610 }
 0xf3e   : > { %v3617_v34 = vmul.f32 0.0078125, %v3611_v47  ;;  %v3609_v0 = vpop.xlane.xlu0 %3608 }
 0xf3f   : > { %v3616_v17 = vmul.f32 0.0078125, %v3609_v0 }
 0xf40   : > { %v3621_v18 = vadd.f32 1e-05, %v3617_v34 }
 0xf41   : > { %v3620_v46 = vadd.f32 1e-05, %v3616_v17 }
 0xf42   : > { %4986 = vrsqrt.f32 %v3621_v18 }
 0xf43   : > { %4988 = vrsqrt.f32 %v3620_v46 }
 0xf4c   : > { %v4987_v29 = vpop.eup %4986 }
 0xf4d   : > { %v4989_v22 = vpop.eup %4988  ;;  %v3629_v39 = vmul.f32 %v4987_v29, %v3601_v11  ;;  %v3615_v12 = vpop.xlane.xlu1 %3614 }
 0xf4e   : > { %v3628_v16 = vmul.f32 %v4989_v22, %v3600_v5  ;;  %v3619_v44 = vmul.f32 0.0078125, %v3615_v12  ;;  %v3613_v4 = vpop.xlane.xlu0 %3612 }
 0xf4f   : > { %v3637_v61 = vmul.f32 %v3635_v30, %v3629_v39  ;;  %v3618_v53 = vmul.f32 0.0078125, %v3613_v4 }
 0xf50   : > { %v3636_v14 = vmul.f32 %v3635_v30, %v3628_v16  ;;  %v3623_v28 = vadd.f32 1e-05, %v3619_v44 }
 0xf51   : > { %v3645_v54 = vadd.f32 %v3643_v35, %v3637_v61  ;;  %v3622_v43 = vadd.f32 1e-05, %v3618_v53 }
 0xf52   : > { %v3644_v41 = vadd.f32 %v3643_v35, %v3636_v14  ;;  %4990 = vrsqrt.f32 %v3623_v28 }
 0xf53   : > { %3649 = vst [vmem:[%s638_s10 + $0x8] sm:$0xff] %v3645_v54  ;;  %4992 = vrsqrt.f32 %v3622_v43 }
 0xf54   : > { %3648 = vst [vmem:[%s638_s10] sm:$0xff] %v3644_v41 }
 0xf5c   : > { %v4991_v24 = vpop.eup %4990 }
 0xf5d   : > { %v4993_v26 = vpop.eup %4992  ;;  %v3631_v1 = vmul.f32 %v4991_v24, %v3603_v9 }
 0xf5e   : > { %v3630_v48 = vmul.f32 %v4993_v26, %v3602_v55 }
 0xf5f   : > { %v3639_v19 = vmul.f32 %v3635_v30, %v3631_v1 }
 0xf60   : > { %v3638_v59 = vmul.f32 %v3635_v30, %v3630_v48 }
 0xf61   : > { %v3647_v57 = vadd.f32 %v3643_v35, %v3639_v19 }
 0xf62   : > { %v3646_v60 = vadd.f32 %v3643_v35, %v3638_v59 }
 0xf63   : > { %3651 = vst [vmem:[%s638_s10 + $0x18] sm:$0xff] %v3647_v57 }
 0xf64   : > { %3650 = vst [vmem:[%s638_s10 + $0x10] sm:$0xff] %v3646_v60 }
 0xf65   : > { %5301 = shalt.err (!%p5298_p13)
}
 0xf66   : > { %s5302_s17 = scalar_lea.hbm %s6509_s12, 512  ;;  %s5306_s11 = scalar_lea.hbm %s6639_s24, 1024 }
 0xf67   : > { %p5303_p5 = scmp.ne.s32.totalorder %s6509_s12, %s5302_s17  ;;  %p5307_p3 = scmp.lt.u32.totalorder %s6509_s12, %s6639_s24 }
 0xf68   : > { %p5308_p2 = scmp.lt.u32.totalorder %s5306_s11, %s5302_s17  ;;  %p5310_p8 = scmp.lt.u32.totalorder %s5302_s17, %s6509_s12 }
 0xf69   : > { %p5304_p9 = pnand %p5303_p5, %p6640_p4 }
 0xf6a   : > { %p5309_p0 = por %p5308_p2, %p5307_p3 }
 0xf6b   : > { %p5305_p11 = pneg %p5304_p9 }
 0xf6c   : > { %p5311_p7 = por %p5310_p8, %p5309_p0 }
 0xf6e   : > { %p5312_p12 = pnand %p5311_p7, %p5305_p11 }
 0xf70   : > { %5315 = shalt.err (!%p5312_p12)
}
 0xf71   : > { %s5395_s3 = smov 128   ;;  %s5396_s25 = smov 8  }
 0xf72   : > { %4739 = dma.vmem_to_hbm [thread:$0]  (%p6640_p4), %s6511_s1, 512, %s6509_s12, %s3653_s7, %s5395_s3, %s5395_s3, %s5396_s25  }
 0xf73 PF: > { %s6641_s10 = sld [smem:[#allocation27_spill]]  ;;  %s6642_s21 = sld [smem:[#allocation32_spill]] }
 0xf74   : > { %p6644_p10 = scmp.ge.s32.totalorder %s5374_s28, 2 }
 0xf79   : > { %s3681_s18 = sand.u32 1, %s6641_s10   ;;  %p6643_p1 = scmp.ne.s32.totalorder %s6642_s21, 0 }
 0xf7a   : > { %s3682_s19 = scalar_lea.sflag [#allocation4], %s3681_s18 }
 0xf7b   : > { %p4774_p6 = pnand %p6644_p10, %p6643_p1 }
 0xf7d   : > { %5357 = dma.done.wait (!%p4774_p6), %s3682_s19, 512  }
 0xf7e   : > { %5359 = vsyncadd (!%p4774_p6), %s3682_s19, 4294966784  ;;  %s6645_s28 = sld [smem:[#allocation30_spill]]  ;;  %s6646_s15 = sld [smem:[#allocation28_spill]] }
 0xf7f   : > { %s6647_s27 = sld [smem:[#allocation31_spill]]  ;;  %s6648_s25 = smov %s5366_s26 }
 0xf84   : > { %p33_p13 = scmp.ge.s32.totalorder %s6645_s28, 4   ;;  %s6649_s26 = smov %s6646_s15 }
 0xf86   :  { %35 = sbr.rel (!%p33_p13) target bundleno = 20 (0x14), region = 169 }
 0xf8d   :  { %3687 = vsyncpa [#allocation3], 1 }
 0xf8e   :  { %3689 = vsyncpa [#allocation3 + $0x1], 1 }
 0xf8f   :  { %3690 = vsyncpa [#allocation6], 1 }
 0xf90   :  { %3692 = vsyncpa [#allocation6 + $0x1], 1 }
 0xf91   :  { %3693 = vsyncpa [#allocation9], 1 }
 0xf92   :  { %3694 = vsyncpa [#allocation12], 1 }
 0xf93   :  { %3695 = vsyncpa [#allocation15], 1 }
 0xf94   :  { %3696 = vsyncpa [#allocation18], 1 }
 0xf95   :  { %3697 = vsyncpa [#allocation4], 1 }
 0xf96   :  { %3699 = vsyncpa [#allocation4 + $0x1], 1 }

</bundles_post_ra>
